<compile_context>
chip_gen: v7x
topology: tpu7x:2x2x1
jax: 0.10.0
libtpu: 0.0.40
codegen_flags: <defaults>
</compile_context>

<pallas_src>
import jax
import jax.numpy as jnp
from jax import lax
from jax.experimental import pallas as pl
from jax.experimental.pallas import tpu as pltpu


# ---------------------------------------------------------------------------
# Static per-conv metadata (computed on the host, never inside the kernel)
# ---------------------------------------------------------------------------
def _live_taps(k, pad, dil, length):
    """Taps whose shifted window overlaps real (non-padding) data.

    Tap t of a stride-1 dilated conv reads padded columns [t*dil, t*dil+length)
    while real data occupies [pad, pad+length).  Taps entirely inside the zero
    halo are statically pruned.
    """
    return tuple(t for t in range(k)
                 if t * dil < pad + length and t * dil + length > pad)


def _conv_cfg(k, pad, dil, length):
    return dict(pad=pad, dil=dil, live=_live_taps(k, pad, dil, length))


_STAGE_CONVS = ("down", "attc1", "attc2", "attp1", "attp2", "attp3",
                "conv1", "conv2", "conv3")


def _stage_cfg(l_in):
    l_out = l_in // 2
    return dict(
        l_in=l_in, l_out=l_out,
        down=_conv_cfg(3, 1, 1, l_in),        # stride 2 done via even-col select
        attc1=_conv_cfg(1, 0, 1, 1),          # 1x1 convs on the pooled (C,1) vec
        attc2=_conv_cfg(1, 0, 1, 1),
        attp1=_conv_cfg(7, 3, 1, l_out),
        attp2=_conv_cfg(9, 12, 3, l_out),
        attp3=_conv_cfg(1, 0, 1, l_out),
        conv1=_conv_cfg(3, 1, 1, l_out),
        conv2=_conv_cfg(5, 10, 5, l_out),
        conv3=_conv_cfg(7, 21, 7, l_out),
    )


# ---------------------------------------------------------------------------
# In-kernel helpers (operate on VMEM-resident values / refs)
# ---------------------------------------------------------------------------
def _conv1d(x, w_ref, b_ref, cfg, act=None):
    """Stride-1 'same' dilated conv, ideally as ONE MXU matmul.

    x:     (Cin, L) f32 value
    w_ref: (Cout, T*Cin) ref, tap-major column blocks for the live taps
    b_ref: (Cout, 1) ref
    """
    cin, length = x.shape
    pad, dil, live = cfg["pad"], cfg["dil"], cfg["live"]

    # Minimal zero halo actually read by the (pruned) live taps.
    lo = min(t * dil for t in live)
    hi = max(t * dil for t in live) + length
    left = max(0, pad - lo)
    right = max(0, hi - (pad + length))
    shift = pad - left
    parts = []
    if left:
        parts.append(jnp.zeros((cin, left), x.dtype))
    parts.append(x)
    if right:
        parts.append(jnp.zeros((cin, right), x.dtype))
    xp = parts[0] if len(parts) == 1 else jnp.concatenate(parts, axis=-1)

    views = [xp[:, t * dil - shift: t * dil - shift + length] for t in live]
    if len(views) == 1:
        y = jnp.dot(w_ref[...], views[0], preferred_element_type=jnp.float32)
    elif cin % 8 == 0:
        # Pack taps into the contraction dim -> single MXU dot.
        stacked = jnp.concatenate(views, axis=0)                 # (T*Cin, L)
        y = jnp.dot(w_ref[...], stacked, preferred_element_type=jnp.float32)
    else:
        # Fallback (only the 3-channel proj_first conv): per-tap dots.
        w = w_ref[...]
        y = None
        for j, v in enumerate(views):
            part = jnp.dot(w[:, j * cin:(j + 1) * cin], v,
                           preferred_element_type=jnp.float32)
            y = part if y is None else y + part

    y = y + b_ref[...]
    if act == "relu":
        return jnp.maximum(y, 0.0)
    if act == "sigmoid":
        return jax.nn.sigmoid(y)
    return y


def _downsample(x, w_ref, b_ref, cfg):
    """Conv1d(k3, stride=2, p=1) + folded BN + ReLU, fully in-kernel.

    Stride-1 'same' conv (one packed matmul) followed by an even-column
    selection matmul built from a 2-D iota, so no strided access or host-side
    deinterleave is needed and the activation never leaves VMEM.
    """
    y_full = _conv1d(x, w_ref, b_ref, cfg)                       # (Cout, L_in)
    l_in = y_full.shape[1]
    half = l_in // 2
    rows = lax.broadcasted_iota(jnp.int32, (l_in, half), 0)
    cols = lax.broadcasted_iota(jnp.int32, (l_in, half), 1)
    sel = (rows == 2 * cols).astype(jnp.float32)                 # sel[2l, l] = 1
    y = jnp.dot(y_full, sel, preferred_element_type=jnp.float32)
    return jnp.maximum(y, 0.0)


# ---------------------------------------------------------------------------
# Fused encoder kernel (whole forward pass, one sample per grid step)
# ---------------------------------------------------------------------------
def _make_kernel(proj_cfg, stage_cfgs, n_params):
    def kernel(*refs):
        x_ref = refs[0]
        params = refs[1:1 + n_params]
        o_x, o_r0, o_r1, o_r2, o_r3 = refs[1 + n_params:]

        it = iter(params)
        take = lambda: (next(it), next(it))                      # (w_ref, b_ref)

        # proj_first: Conv1d(3 -> c0, k3, s1, p1) + folded BN + ReLU
        y = _conv1d(x_ref[...], *take(), proj_cfg, act="relu")
        o_r0[...] = y.astype(o_r0.dtype)

        res_refs = (o_r1, o_r2, o_r3, o_x)
        for s, cfg in enumerate(stage_cfgs):
            # down_i: k3 / stride 2 / p1 (+ folded BN) + ReLU
            y = _downsample(y, *take(), cfg["down"])

            # RSABlock -- every intermediate stays in vregs/VMEM.
            # channel attention: AvgPool(1) -> 1x1 -> ReLU -> 1x1 -> Sigmoid
            pooled = jnp.mean(y, axis=-1, keepdims=True)
            h = _conv1d(pooled, *take(), cfg["attc1"], act="relu")
            a_c = _conv1d(h, *take(), cfg["attc2"], act="sigmoid")
            x1 = a_c * y
            # positional attention: k7 p3 -> ReLU -> k9 p12 d3 -> ReLU -> 1x1 -> Sigmoid
            t = _conv1d(x1, *take(), cfg["attp1"], act="relu")
            t = _conv1d(t, *take(), cfg["attp2"], act="relu")
            a_p = _conv1d(t, *take(), cfg["attp3"], act="sigmoid")
            x2 = a_p * y
            # conv branch (BN folded): k3 p1 / k5 p10 d5 / k7 p21 d7, each + ReLU
            c = _conv1d(y, *take(), cfg["conv1"], act="relu")
            c = _conv1d(c, *take(), cfg["conv2"], act="relu")
            x3 = _conv1d(c, *take(), cfg["conv3"], act="relu")
            y = x2 + x3
            res_refs[s][...] = y.astype(res_refs[s].dtype)

    return kernel


# ---------------------------------------------------------------------------
# Parameter init (PyTorch layout) + BN folding + kernel packing
# ---------------------------------------------------------------------------
def _init_conv(key, cout, cin, k):
    """PyTorch nn.Conv1d default init, weights in (Cout, Cin, K) layout."""
    k1, k2 = jax.random.split(key)
    bound = 1.0 / float(cin * k) ** 0.5
    w = jax.random.uniform(k1, (cout, cin, k), jnp.float32, -bound, bound)
    b = jax.random.uniform(k2, (cout,), jnp.float32, -bound, bound)
    return w, b


def fold_batchnorm(wb, gamma, beta, mean, var, eps=1e-5):
    """Fold an eval-mode BatchNorm1d into the preceding conv."""
    w, b = wb
    scale = gamma / jnp.sqrt(var + eps)
    return w * scale[:, None, None], (b - mean) * scale + beta


def _conv_bn(key, cout, cin, k):
    wb = _init_conv(key, cout, cin, k)
    ones = jnp.ones((cout,), jnp.float32)
    zeros = jnp.zeros((cout,), jnp.float32)
    return fold_batchnorm(wb, ones, zeros, zeros, ones)


def init_encoder_params(key, c_list):
    """Conv weights in PyTorch (Cout, Cin, K) layout, BN pre-folded."""
    ks = jax.random.split(key, 5)
    params = {"proj": _conv_bn(ks[0], c_list[0], 3, 3), "stages": []}
    for s in range(4):
        cin, nf = c_list[s], c_list[s + 1]
        kk = jax.random.split(ks[s + 1], 9)
        params["stages"].append({
            "down": _conv_bn(kk[0], nf, cin, 3),
            "attc1": _init_conv(kk[1], nf // 2, nf, 1),
            "attc2": _init_conv(kk[2], nf, nf // 2, 1),
            "attp1": _init_conv(kk[3], nf, nf, 7),
            "attp2": _init_conv(kk[4], nf, nf, 9),
            "attp3": _init_conv(kk[5], nf, nf, 1),
            "conv1": _conv_bn(kk[6], nf // 2, nf, 3),
            "conv2": _conv_bn(kk[7], nf // 2, nf // 2, 5),
            "conv3": _conv_bn(kk[8], nf, nf // 2, 7),
        })
    return params


def _pack_conv(wb, cfg):
    """(Cout, Cin, K) -> (Cout, T*Cin) keeping only the live taps; bias (Cout,1)."""
    w, b = wb
    packed = jnp.concatenate([w[:, :, t] for t in cfg["live"]], axis=1)
    return packed, b.reshape(-1, 1)


# ---------------------------------------------------------------------------
# Encoder builder: one pallas_call for the full forward pass
# ---------------------------------------------------------------------------
def make_encoder(c_list, length):
    assert length % 16 == 0, "length must be divisible by 16 (4 stride-2 stages)"
    proj_cfg = _conv_cfg(3, 1, 1, length)
    stage_cfgs, l_cur = [], length
    for _ in range(4):
        stage_cfgs.append(_stage_cfg(l_cur))
        l_cur //= 2
    n_params = 2 + 2 * len(_STAGE_CONVS) * 4
    kernel = _make_kernel(proj_cfg, stage_cfgs, n_params)

    def pack_params(params):
        flat = list(_pack_conv(params["proj"], proj_cfg))
        for sp, cfg in zip(params["stages"], stage_cfgs):
            for name in _STAGE_CONVS:
                flat.extend(_pack_conv(sp[name], cfg[name]))
        assert len(flat) == n_params
        return flat

    def forward(x, flat_params):
        b = x.shape[0]
        c0, c1, c2, c3, c4 = c_list
        out_shape = (
            jax.ShapeDtypeStruct((b, c4, length // 16), x.dtype),   # x (final)
            jax.ShapeDtypeStruct((b, c0, length), x.dtype),         # res0
            jax.ShapeDtypeStruct((b, c1, length // 2), x.dtype),    # res1
            jax.ShapeDtypeStruct((b, c2, length // 4), x.dtype),    # res2
            jax.ShapeDtypeStruct((b, c3, length // 8), x.dtype),    # res3
        )

        def batch_spec(shape):
            _, c, l = shape
            return pl.BlockSpec((None, c, l), lambda i: (i, 0, 0))

        def const_spec(a):
            nd = a.ndim
            return pl.BlockSpec(a.shape, lambda i, _nd=nd: (0,) * _nd)

        return pl.pallas_call(
            kernel,
            out_shape=out_shape,
            grid=(b,),
            in_specs=[batch_spec(x.shape)] + [const_spec(p) for p in flat_params],
            out_specs=tuple(batch_spec(s.shape) for s in out_shape),
            # TODO(synk): on v7x use pltpu.CORE_PARALLEL so the batch axis is
            # actually split across the two TensorCores.
            compiler_params=pltpu.CompilerParams(
                dimension_semantics=("parallel",)),
        )(x, *flat_params)

    return forward, pack_params


# ---------------------------------------------------------------------------
# Plain-XLA reference (for the numerical check)
# ---------------------------------------------------------------------------
def _ref_conv(x, wb, *, stride=1, padding=0, dilation=1):
    w, b = wb
    y = lax.conv_general_dilated(
        x, w, window_strides=(stride,), padding=[(padding, padding)],
        rhs_dilation=(dilation,), dimension_numbers=("NCH", "OIH", "NCH"),
        precision=lax.Precision.HIGHEST)
    return y + b.reshape(1, -1, 1)


def _ref_encoder(x, params):
    def rsa(x, p):
        pooled = jnp.mean(x, axis=-1, keepdims=True)
        h = jnp.maximum(_ref_conv(pooled, p["attc1"]), 0.0)
        a_c = jax.nn.sigmoid(_ref_conv(h, p["attc2"]))
        x1 = a_c * x
        t = jnp.maximum(_ref_conv(x1, p["attp1"], padding=3), 0.0)
        t = jnp.maximum(_ref_conv(t, p["attp2"], padding=12, dilation=3), 0.0)
        a_p = jax.nn.sigmoid(_ref_conv(t, p["attp3"]))
        x2 = a_p * x
        c = jnp.maximum(_ref_conv(x, p["conv1"], padding=1), 0.0)
        c = jnp.maximum(_ref_conv(c, p["conv2"], padding=10, dilation=5), 0.0)
        x3 = jnp.maximum(_ref_conv(c, p["conv3"], padding=21, dilation=7), 0.0)
        return x2 + x3

    x = jnp.maximum(_ref_conv(x, params["proj"], padding=1), 0.0)
    res0 = x
    outs = []
    for sp in params["stages"]:
        x = jnp.maximum(_ref_conv(x, sp["down"], stride=2, padding=1), 0.0)
        x = rsa(x, sp)
        outs.append(x)
    return x, res0, outs[0], outs[1], outs[2]


# ---------------------------------------------------------------------------
if __name__ == "__main__":
    key = jax.random.PRNGKey(0)
    k_x, k_p = jax.random.split(key)

    c_list = [8, 16, 16, 32, 32]
    B, L = 2, 64
    x = jax.random.normal(k_x, (B, 3, L), dtype=jnp.float32)

    params = init_encoder_params(k_p, c_list)
    forward, pack_params = make_encoder(c_list, L)
    flat_params = pack_params(params)            # packed once, outside jit

    outs = jax.jit(forward)(x, flat_params)
    outs = jax.block_until_ready(outs)

    expected = [
        (B, c_list[4], L // 16),  # x
        (B, c_list[0], L),        # res0
        (B, c_list[1], L // 2),   # res1
        (B, c_list[2], L // 4),   # res2
        (B, c_list[3], L // 8),   # res3
    ]
    assert [tuple(o.shape) for o in outs] == expected, [o.shape for o in outs]

    # Numerical check against a plain-XLA reference.  Everything is f32, so the
    # tolerance is tight enough that any tap/padding/stride-indexing error
    # (which produces O(activation)-sized deviations) cannot hide.
    refs = jax.jit(_ref_encoder)(x, params)
    for o, r in zip(outs, refs):
        assert bool(jnp.all(jnp.isfinite(o)))
        err = float(jnp.max(jnp.abs(o - r)))
        tol = 1e-3 + 2e-3 * float(jnp.max(jnp.abs(r)))
        assert err <= tol, (err, tol)

    print("KERNEL_OK")
</pallas_src>

<mosaic_0001>
module attributes {stable_mosaic.version = 11 : i64} {
  func.func @kernel(%arg0: i32, %arg1: memref<1x3x64xf32, #tpu.memory_space<vmem>>, %arg2: memref<8x9xf32, #tpu.memory_space<vmem>>, %arg3: memref<8x1xf32, #tpu.memory_space<vmem>>, %arg4: memref<16x24xf32, #tpu.memory_space<vmem>>, %arg5: memref<16x1xf32, #tpu.memory_space<vmem>>, %arg6: memref<8x16xf32, #tpu.memory_space<vmem>>, %arg7: memref<8x1xf32, #tpu.memory_space<vmem>>, %arg8: memref<16x8xf32, #tpu.memory_space<vmem>>, %arg9: memref<16x1xf32, #tpu.memory_space<vmem>>, %arg10: memref<16x112xf32, #tpu.memory_space<vmem>>, %arg11: memref<16x1xf32, #tpu.memory_space<vmem>>, %arg12: memref<16x144xf32, #tpu.memory_space<vmem>>, %arg13: memref<16x1xf32, #tpu.memory_space<vmem>>, %arg14: memref<16x16xf32, #tpu.memory_space<vmem>>, %arg15: memref<16x1xf32, #tpu.memory_space<vmem>>, %arg16: memref<8x48xf32, #tpu.memory_space<vmem>>, %arg17: memref<8x1xf32, #tpu.memory_space<vmem>>, %arg18: memref<8x40xf32, #tpu.memory_space<vmem>>, %arg19: memref<8x1xf32, #tpu.memory_space<vmem>>, %arg20: memref<16x56xf32, #tpu.memory_space<vmem>>, %arg21: memref<16x1xf32, #tpu.memory_space<vmem>>, %arg22: memref<16x48xf32, #tpu.memory_space<vmem>>, %arg23: memref<16x1xf32, #tpu.memory_space<vmem>>, %arg24: memref<8x16xf32, #tpu.memory_space<vmem>>, %arg25: memref<8x1xf32, #tpu.memory_space<vmem>>, %arg26: memref<16x8xf32, #tpu.memory_space<vmem>>, %arg27: memref<16x1xf32, #tpu.memory_space<vmem>>, %arg28: memref<16x112xf32, #tpu.memory_space<vmem>>, %arg29: memref<16x1xf32, #tpu.memory_space<vmem>>, %arg30: memref<16x144xf32, #tpu.memory_space<vmem>>, %arg31: memref<16x1xf32, #tpu.memory_space<vmem>>, %arg32: memref<16x16xf32, #tpu.memory_space<vmem>>, %arg33: memref<16x1xf32, #tpu.memory_space<vmem>>, %arg34: memref<8x48xf32, #tpu.memory_space<vmem>>, %arg35: memref<8x1xf32, #tpu.memory_space<vmem>>, %arg36: memref<8x40xf32, #tpu.memory_space<vmem>>, %arg37: memref<8x1xf32, #tpu.memory_space<vmem>>, %arg38: memref<16x40xf32, #tpu.memory_space<vmem>>, %arg39: memref<16x1xf32, #tpu.memory_space<vmem>>, %arg40: memref<32x48xf32, #tpu.memory_space<vmem>>, %arg41: memref<32x1xf32, #tpu.memory_space<vmem>>, %arg42: memref<16x32xf32, #tpu.memory_space<vmem>>, %arg43: memref<16x1xf32, #tpu.memory_space<vmem>>, %arg44: memref<32x16xf32, #tpu.memory_space<vmem>>, %arg45: memref<32x1xf32, #tpu.memory_space<vmem>>, %arg46: memref<32x224xf32, #tpu.memory_space<vmem>>, %arg47: memref<32x1xf32, #tpu.memory_space<vmem>>, %arg48: memref<32x160xf32, #tpu.memory_space<vmem>>, %arg49: memref<32x1xf32, #tpu.memory_space<vmem>>, %arg50: memref<32x32xf32, #tpu.memory_space<vmem>>, %arg51: memref<32x1xf32, #tpu.memory_space<vmem>>, %arg52: memref<16x96xf32, #tpu.memory_space<vmem>>, %arg53: memref<16x1xf32, #tpu.memory_space<vmem>>, %arg54: memref<16x48xf32, #tpu.memory_space<vmem>>, %arg55: memref<16x1xf32, #tpu.memory_space<vmem>>, %arg56: memref<32x48xf32, #tpu.memory_space<vmem>>, %arg57: memref<32x1xf32, #tpu.memory_space<vmem>>, %arg58: memref<32x96xf32, #tpu.memory_space<vmem>>, %arg59: memref<32x1xf32, #tpu.memory_space<vmem>>, %arg60: memref<16x32xf32, #tpu.memory_space<vmem>>, %arg61: memref<16x1xf32, #tpu.memory_space<vmem>>, %arg62: memref<32x16xf32, #tpu.memory_space<vmem>>, %arg63: memref<32x1xf32, #tpu.memory_space<vmem>>, %arg64: memref<32x224xf32, #tpu.memory_space<vmem>>, %arg65: memref<32x1xf32, #tpu.memory_space<vmem>>, %arg66: memref<32x96xf32, #tpu.memory_space<vmem>>, %arg67: memref<32x1xf32, #tpu.memory_space<vmem>>, %arg68: memref<32x32xf32, #tpu.memory_space<vmem>>, %arg69: memref<32x1xf32, #tpu.memory_space<vmem>>, %arg70: memref<16x96xf32, #tpu.memory_space<vmem>>, %arg71: memref<16x1xf32, #tpu.memory_space<vmem>>, %arg72: memref<16x16xf32, #tpu.memory_space<vmem>>, %arg73: memref<16x1xf32, #tpu.memory_space<vmem>>, %arg74: memref<32x16xf32, #tpu.memory_space<vmem>>, %arg75: memref<32x1xf32, #tpu.memory_space<vmem>>, %arg76: memref<1x32x4xf32, #tpu.memory_space<vmem>>, %arg77: memref<1x8x64xf32, #tpu.memory_space<vmem>>, %arg78: memref<1x16x32xf32, #tpu.memory_space<vmem>>, %arg79: memref<1x16x16xf32, #tpu.memory_space<vmem>>, %arg80: memref<1x32x8xf32, #tpu.memory_space<vmem>>) attributes {dimension_semantics = [#tpu.dimension_semantics<parallel>], iteration_bounds = array<i64: 2>, scalar_prefetch = 0 : i64, scratch_operands = 0 : i64, tpu.core_type = #tpu.core_type<tc>, window_params = [{transform_indices = @transform_0, window_bounds = array<i64: 1, 3, 64>}, {pipeline_mode = #tpu.pipeline_mode<synchronous>, transform_indices = @transform_1, window_bounds = array<i64: 8, 9>}, {pipeline_mode = #tpu.pipeline_mode<synchronous>, transform_indices = @transform_2, window_bounds = array<i64: 8, 1>}, {pipeline_mode = #tpu.pipeline_mode<synchronous>, transform_indices = @transform_3, window_bounds = array<i64: 16, 24>}, {pipeline_mode = #tpu.pipeline_mode<synchronous>, transform_indices = @transform_4, window_bounds = array<i64: 16, 1>}, {pipeline_mode = #tpu.pipeline_mode<synchronous>, transform_indices = @transform_5, window_bounds = array<i64: 8, 16>}, {pipeline_mode = #tpu.pipeline_mode<synchronous>, transform_indices = @transform_6, window_bounds = array<i64: 8, 1>}, {pipeline_mode = #tpu.pipeline_mode<synchronous>, transform_indices = @transform_7, window_bounds = array<i64: 16, 8>}, {pipeline_mode = #tpu.pipeline_mode<synchronous>, transform_indices = @transform_8, window_bounds = array<i64: 16, 1>}, {pipeline_mode = #tpu.pipeline_mode<synchronous>, transform_indices = @transform_9, window_bounds = array<i64: 16, 112>}, {pipeline_mode = #tpu.pipeline_mode<synchronous>, transform_indices = @transform_10, window_bounds = array<i64: 16, 1>}, {pipeline_mode = #tpu.pipeline_mode<synchronous>, transform_indices = @transform_11, window_bounds = array<i64: 16, 144>}, {pipeline_mode = #tpu.pipeline_mode<synchronous>, transform_indices = @transform_12, window_bounds = array<i64: 16, 1>}, {pipeline_mode = #tpu.pipeline_mode<synchronous>, transform_indices = @transform_13, window_bounds = array<i64: 16, 16>}, {pipeline_mode = #tpu.pipeline_mode<synchronous>, transform_indices = @transform_14, window_bounds = array<i64: 16, 1>}, {pipeline_mode = #tpu.pipeline_mode<synchronous>, transform_indices = @transform_15, window_bounds = array<i64: 8, 48>}, {pipeline_mode = #tpu.pipeline_mode<synchronous>, transform_indices = @transform_16, window_bounds = array<i64: 8, 1>}, {pipeline_mode = #tpu.pipeline_mode<synchronous>, transform_indices = @transform_17, window_bounds = array<i64: 8, 40>}, {pipeline_mode = #tpu.pipeline_mode<synchronous>, transform_indices = @transform_18, window_bounds = array<i64: 8, 1>}, {pipeline_mode = #tpu.pipeline_mode<synchronous>, transform_indices = @transform_19, window_bounds = array<i64: 16, 56>}, {pipeline_mode = #tpu.pipeline_mode<synchronous>, transform_indices = @transform_20, window_bounds = array<i64: 16, 1>}, {pipeline_mode = #tpu.pipeline_mode<synchronous>, transform_indices = @transform_21, window_bounds = array<i64: 16, 48>}, {pipeline_mode = #tpu.pipeline_mode<synchronous>, transform_indices = @transform_22, window_bounds = array<i64: 16, 1>}, {pipeline_mode = #tpu.pipeline_mode<synchronous>, transform_indices = @transform_23, window_bounds = array<i64: 8, 16>}, {pipeline_mode = #tpu.pipeline_mode<synchronous>, transform_indices = @transform_24, window_bounds = array<i64: 8, 1>}, {pipeline_mode = #tpu.pipeline_mode<synchronous>, transform_indices = @transform_25, window_bounds = array<i64: 16, 8>}, {pipeline_mode = #tpu.pipeline_mode<synchronous>, transform_indices = @transform_26, window_bounds = array<i64: 16, 1>}, {pipeline_mode = #tpu.pipeline_mode<synchronous>, transform_indices = @transform_27, window_bounds = array<i64: 16, 112>}, {pipeline_mode = #tpu.pipeline_mode<synchronous>, transform_indices = @transform_28, window_bounds = array<i64: 16, 1>}, {pipeline_mode = #tpu.pipeline_mode<synchronous>, transform_indices = @transform_29, window_bounds = array<i64: 16, 144>}, {pipeline_mode = #tpu.pipeline_mode<synchronous>, transform_indices = @transform_30, window_bounds = array<i64: 16, 1>}, {pipeline_mode = #tpu.pipeline_mode<synchronous>, transform_indices = @transform_31, window_bounds = array<i64: 16, 16>}, {pipeline_mode = #tpu.pipeline_mode<synchronous>, transform_indices = @transform_32, window_bounds = array<i64: 16, 1>}, {pipeline_mode = #tpu.pipeline_mode<synchronous>, transform_indices = @transform_33, window_bounds = array<i64: 8, 48>}, {pipeline_mode = #tpu.pipeline_mode<synchronous>, transform_indices = @transform_34, window_bounds = array<i64: 8, 1>}, {pipeline_mode = #tpu.pipeline_mode<synchronous>, transform_indices = @transform_35, window_bounds = array<i64: 8, 40>}, {pipeline_mode = #tpu.pipeline_mode<synchronous>, transform_indices = @transform_36, window_bounds = array<i64: 8, 1>}, {pipeline_mode = #tpu.pipeline_mode<synchronous>, transform_indices = @transform_37, window_bounds = array<i64: 16, 40>}, {pipeline_mode = #tpu.pipeline_mode<synchronous>, transform_indices = @transform_38, window_bounds = array<i64: 16, 1>}, {pipeline_mode = #tpu.pipeline_mode<synchronous>, transform_indices = @transform_39, window_bounds = array<i64: 32, 48>}, {pipeline_mode = #tpu.pipeline_mode<synchronous>, transform_indices = @transform_40, window_bounds = array<i64: 32, 1>}, {pipeline_mode = #tpu.pipeline_mode<synchronous>, transform_indices = @transform_41, window_bounds = array<i64: 16, 32>}, {pipeline_mode = #tpu.pipeline_mode<synchronous>, transform_indices = @transform_42, window_bounds = array<i64: 16, 1>}, {pipeline_mode = #tpu.pipeline_mode<synchronous>, transform_indices = @transform_43, window_bounds = array<i64: 32, 16>}, {pipeline_mode = #tpu.pipeline_mode<synchronous>, transform_indices = @transform_44, window_bounds = array<i64: 32, 1>}, {pipeline_mode = #tpu.pipeline_mode<synchronous>, transform_indices = @transform_45, window_bounds = array<i64: 32, 224>}, {pipeline_mode = #tpu.pipeline_mode<synchronous>, transform_indices = @transform_46, window_bounds = array<i64: 32, 1>}, {pipeline_mode = #tpu.pipeline_mode<synchronous>, transform_indices = @transform_47, window_bounds = array<i64: 32, 160>}, {pipeline_mode = #tpu.pipeline_mode<synchronous>, transform_indices = @transform_48, window_bounds = array<i64: 32, 1>}, {pipeline_mode = #tpu.pipeline_mode<synchronous>, transform_indices = @transform_49, window_bounds = array<i64: 32, 32>}, {pipeline_mode = #tpu.pipeline_mode<synchronous>, transform_indices = @transform_50, window_bounds = array<i64: 32, 1>}, {pipeline_mode = #tpu.pipeline_mode<synchronous>, transform_indices = @transform_51, window_bounds = array<i64: 16, 96>}, {pipeline_mode = #tpu.pipeline_mode<synchronous>, transform_indices = @transform_52, window_bounds = array<i64: 16, 1>}, {pipeline_mode = #tpu.pipeline_mode<synchronous>, transform_indices = @transform_53, window_bounds = array<i64: 16, 48>}, {pipeline_mode = #tpu.pipeline_mode<synchronous>, transform_indices = @transform_54, window_bounds = array<i64: 16, 1>}, {pipeline_mode = #tpu.pipeline_mode<synchronous>, transform_indices = @transform_55, window_bounds = array<i64: 32, 48>}, {pipeline_mode = #tpu.pipeline_mode<synchronous>, transform_indices = @transform_56, window_bounds = array<i64: 32, 1>}, {pipeline_mode = #tpu.pipeline_mode<synchronous>, transform_indices = @transform_57, window_bounds = array<i64: 32, 96>}, {pipeline_mode = #tpu.pipeline_mode<synchronous>, transform_indices = @transform_58, window_bounds = array<i64: 32, 1>}, {pipeline_mode = #tpu.pipeline_mode<synchronous>, transform_indices = @transform_59, window_bounds = array<i64: 16, 32>}, {pipeline_mode = #tpu.pipeline_mode<synchronous>, transform_indices = @transform_60, window_bounds = array<i64: 16, 1>}, {pipeline_mode = #tpu.pipeline_mode<synchronous>, transform_indices = @transform_61, window_bounds = array<i64: 32, 16>}, {pipeline_mode = #tpu.pipeline_mode<synchronous>, transform_indices = @transform_62, window_bounds = array<i64: 32, 1>}, {pipeline_mode = #tpu.pipeline_mode<synchronous>, transform_indices = @transform_63, window_bounds = array<i64: 32, 224>}, {pipeline_mode = #tpu.pipeline_mode<synchronous>, transform_indices = @transform_64, window_bounds = array<i64: 32, 1>}, {pipeline_mode = #tpu.pipeline_mode<synchronous>, transform_indices = @transform_65, window_bounds = array<i64: 32, 96>}, {pipeline_mode = #tpu.pipeline_mode<synchronous>, transform_indices = @transform_66, window_bounds = array<i64: 32, 1>}, {pipeline_mode = #tpu.pipeline_mode<synchronous>, transform_indices = @transform_67, window_bounds = array<i64: 32, 32>}, {pipeline_mode = #tpu.pipeline_mode<synchronous>, transform_indices = @transform_68, window_bounds = array<i64: 32, 1>}, {pipeline_mode = #tpu.pipeline_mode<synchronous>, transform_indices = @transform_69, window_bounds = array<i64: 16, 96>}, {pipeline_mode = #tpu.pipeline_mode<synchronous>, transform_indices = @transform_70, window_bounds = array<i64: 16, 1>}, {pipeline_mode = #tpu.pipeline_mode<synchronous>, transform_indices = @transform_71, window_bounds = array<i64: 16, 16>}, {pipeline_mode = #tpu.pipeline_mode<synchronous>, transform_indices = @transform_72, window_bounds = array<i64: 16, 1>}, {pipeline_mode = #tpu.pipeline_mode<synchronous>, transform_indices = @transform_73, window_bounds = array<i64: 32, 16>}, {pipeline_mode = #tpu.pipeline_mode<synchronous>, transform_indices = @transform_74, window_bounds = array<i64: 32, 1>}, {transform_indices = @transform_75, window_bounds = array<i64: 1, 32, 4>}, {transform_indices = @transform_76, window_bounds = array<i64: 1, 8, 64>}, {transform_indices = @transform_77, window_bounds = array<i64: 1, 16, 32>}, {transform_indices = @transform_78, window_bounds = array<i64: 1, 16, 16>}, {transform_indices = @transform_79, window_bounds = array<i64: 1, 32, 8>}]} {
    %c0 = arith.constant 0 : index
    %c0_0 = arith.constant 0 : index
    %c0_1 = arith.constant 0 : index
    %0 = vector.load %arg1[%c0, %c0_0, %c0_1] : memref<1x3x64xf32, #tpu.memory_space<vmem>>, vector<1x3x64xf32>
    %1 = vector.shape_cast %0 : vector<1x3x64xf32> to vector<3x64xf32>
    %cst = arith.constant 0.000000e+00 : f32
    %2 = vector.broadcast %cst : f32 to vector<3x1xf32>
    %cst_2 = arith.constant 0.000000e+00 : f32
    %3 = vector.broadcast %cst_2 : f32 to vector<3x1xf32>
    %4 = tpu.concatenate %2, %1, %3 in 1 : vector<3x1xf32>, vector<3x64xf32>, vector<3x1xf32> -> vector<3x66xf32>
    %5 = vector.extract_strided_slice %4 {offsets = [0, 0], sizes = [3, 64], strides = [1, 1]} : vector<3x66xf32> to vector<3x64xf32>
    %6 = vector.extract_strided_slice %4 {offsets = [0, 1], sizes = [3, 64], strides = [1, 1]} : vector<3x66xf32> to vector<3x64xf32>
    %7 = vector.extract_strided_slice %4 {offsets = [0, 2], sizes = [3, 64], strides = [1, 1]} : vector<3x66xf32> to vector<3x64xf32>
    %c0_3 = arith.constant 0 : index
    %c0_4 = arith.constant 0 : index
    %8 = vector.load %arg2[%c0_3, %c0_4] : memref<8x9xf32, #tpu.memory_space<vmem>>, vector<8x9xf32>
    %9 = vector.extract_strided_slice %8 {offsets = [0, 0], sizes = [8, 3], strides = [1, 1]} : vector<8x9xf32> to vector<8x3xf32>
    %cst_5 = arith.constant dense<0.000000e+00> : vector<8x64xf32>
    %10 = tpu.matmul %9, %5, %cst_5 {dimension_numbers = #tpu.dot_dimension_numbers<[1], [0], [0], [1], [0, 0, 1, 1], [], []>} : vector<8x3xf32>, vector<3x64xf32>, vector<8x64xf32> -> vector<8x64xf32>
    %11 = vector.extract_strided_slice %8 {offsets = [0, 3], sizes = [8, 3], strides = [1, 1]} : vector<8x9xf32> to vector<8x3xf32>
    %cst_6 = arith.constant dense<0.000000e+00> : vector<8x64xf32>
    %12 = tpu.matmul %11, %6, %cst_6 {dimension_numbers = #tpu.dot_dimension_numbers<[1], [0], [0], [1], [0, 0, 1, 1], [], []>} : vector<8x3xf32>, vector<3x64xf32>, vector<8x64xf32> -> vector<8x64xf32>
    %13 = arith.addf %10, %12 : vector<8x64xf32>
    %14 = vector.extract_strided_slice %8 {offsets = [0, 6], sizes = [8, 3], strides = [1, 1]} : vector<8x9xf32> to vector<8x3xf32>
    %cst_7 = arith.constant dense<0.000000e+00> : vector<8x64xf32>
    %15 = tpu.matmul %14, %7, %cst_7 {dimension_numbers = #tpu.dot_dimension_numbers<[1], [0], [0], [1], [0, 0, 1, 1], [], []>} : vector<8x3xf32>, vector<3x64xf32>, vector<8x64xf32> -> vector<8x64xf32>
    %16 = arith.addf %13, %15 : vector<8x64xf32>
    %c0_8 = arith.constant 0 : index
    %c0_9 = arith.constant 0 : index
    %17 = vector.load %arg3[%c0_8, %c0_9] : memref<8x1xf32, #tpu.memory_space<vmem>>, vector<8x1xf32>
    %18 = vector.broadcast %17 : vector<8x1xf32> to vector<8x64xf32>
    %19 = arith.addf %16, %18 : vector<8x64xf32>
    %cst_10 = arith.constant 0.000000e+00 : f32
    %20 = vector.broadcast %cst_10 : f32 to vector<8x64xf32>
    %21 = arith.maximumf %19, %20 : vector<8x64xf32>
    %c0_11 = arith.constant 0 : index
    %c0_12 = arith.constant 0 : index
    %c0_13 = arith.constant 0 : index
    %22 = vector.load %arg77[%c0_11, %c0_12, %c0_13] : memref<1x8x64xf32, #tpu.memory_space<vmem>>, vector<1x8x64xf32>
    %23 = vector.shape_cast %22 : vector<1x8x64xf32> to vector<8x64xf32>
    %24 = vector.shape_cast %21 : vector<8x64xf32> to vector<1x8x64xf32>
    tpu.vector_store %arg77[%c0_11, %c0_12, %c0_13], %24 {strides = array<i32>} : memref<1x8x64xf32, #tpu.memory_space<vmem>>, vector<1x8x64xf32>,
    %cst_14 = arith.constant 0.000000e+00 : f32
    %25 = vector.broadcast %cst_14 : f32 to vector<8x1xf32>
    %cst_15 = arith.constant 0.000000e+00 : f32
    %26 = vector.broadcast %cst_15 : f32 to vector<8x1xf32>
    %27 = tpu.concatenate %25, %21, %26 in 1 : vector<8x1xf32>, vector<8x64xf32>, vector<8x1xf32> -> vector<8x66xf32>
    %28 = vector.extract_strided_slice %27 {offsets = [0, 0], sizes = [8, 64], strides = [1, 1]} : vector<8x66xf32> to vector<8x64xf32>
    %29 = vector.extract_strided_slice %27 {offsets = [0, 1], sizes = [8, 64], strides = [1, 1]} : vector<8x66xf32> to vector<8x64xf32>
    %30 = vector.extract_strided_slice %27 {offsets = [0, 2], sizes = [8, 64], strides = [1, 1]} : vector<8x66xf32> to vector<8x64xf32>
    %31 = tpu.concatenate %28, %29, %30 in 0 : vector<8x64xf32>, vector<8x64xf32>, vector<8x64xf32> -> vector<24x64xf32>
    %c0_16 = arith.constant 0 : index
    %c0_17 = arith.constant 0 : index
    %32 = vector.load %arg4[%c0_16, %c0_17] : memref<16x24xf32, #tpu.memory_space<vmem>>, vector<16x24xf32>
    %cst_18 = arith.constant dense<0.000000e+00> : vector<16x64xf32>
    %33 = tpu.matmul %32, %31, %cst_18 {dimension_numbers = #tpu.dot_dimension_numbers<[1], [0], [0], [1], [0, 0, 1, 1], [], []>} : vector<16x24xf32>, vector<24x64xf32>, vector<16x64xf32> -> vector<16x64xf32>
    %c0_19 = arith.constant 0 : index
    %c0_20 = arith.constant 0 : index
    %34 = vector.load %arg5[%c0_19, %c0_20] : memref<16x1xf32, #tpu.memory_space<vmem>>, vector<16x1xf32>
    %35 = vector.broadcast %34 : vector<16x1xf32> to vector<16x64xf32>
    %36 = arith.addf %33, %35 : vector<16x64xf32>
    %37 = tpu.iota {dimensions = array<i32: 0>} : vector<64x32xi32>
    %38 = tpu.iota {dimensions = array<i32: 1>} : vector<64x32xi32>
    %c2_i32 = arith.constant 2 : i32
    %39 = vector.broadcast %c2_i32 : i32 to vector<64x32xi32>
    %40 = arith.muli %39, %38 : vector<64x32xi32>
    %41 = arith.cmpi eq, %37, %40 : vector<64x32xi32>
    %42 = arith.extui %41 : vector<64x32xi1> to vector<64x32xi32>
    %43 = arith.sitofp %42 : vector<64x32xi32> to vector<64x32xf32>
    %cst_21 = arith.constant dense<0.000000e+00> : vector<16x32xf32>
    %44 = tpu.matmul %36, %43, %cst_21 {dimension_numbers = #tpu.dot_dimension_numbers<[1], [0], [0], [1], [0, 0, 1, 1], [], []>} : vector<16x64xf32>, vector<64x32xf32>, vector<16x32xf32> -> vector<16x32xf32>
    %cst_22 = arith.constant 0.000000e+00 : f32
    %45 = vector.broadcast %cst_22 : f32 to vector<16x32xf32>
    %46 = arith.maximumf %44, %45 : vector<16x32xf32>
    %cst_23 = arith.constant dense<0.000000e+00> : vector<16xf32>
    %47 = vector.multi_reduction <add>, %46, %cst_23 [1] : vector<16x32xf32> to vector<16xf32>
    %48 = vector.shape_cast %47 : vector<16xf32> to vector<16x1xf32>
    %cst_24 = arith.constant 3.200000e+01 : f32
    %49 = vector.broadcast %cst_24 : f32 to vector<16x1xf32>
    %50 = arith.divf %48, %49 : vector<16x1xf32>
    %c0_25 = arith.constant 0 : index
    %c0_26 = arith.constant 0 : index
    %51 = vector.load %arg6[%c0_25, %c0_26] : memref<8x16xf32, #tpu.memory_space<vmem>>, vector<8x16xf32>
    %cst_27 = arith.constant dense<0.000000e+00> : vector<8x1xf32>
    %52 = tpu.matmul %51, %50, %cst_27 {dimension_numbers = #tpu.dot_dimension_numbers<[1], [0], [0], [1], [0, 0, 1, 1], [], []>} : vector<8x16xf32>, vector<16x1xf32>, vector<8x1xf32> -> vector<8x1xf32>
    %c0_28 = arith.constant 0 : index
    %c0_29 = arith.constant 0 : index
    %53 = vector.load %arg7[%c0_28, %c0_29] : memref<8x1xf32, #tpu.memory_space<vmem>>, vector<8x1xf32>
    %54 = arith.addf %52, %53 : vector<8x1xf32>
    %cst_30 = arith.constant 0.000000e+00 : f32
    %55 = vector.broadcast %cst_30 : f32 to vector<8x1xf32>
    %56 = arith.maximumf %54, %55 : vector<8x1xf32>
    %c0_31 = arith.constant 0 : index
    %c0_32 = arith.constant 0 : index
    %57 = vector.load %arg8[%c0_31, %c0_32] : memref<16x8xf32, #tpu.memory_space<vmem>>, vector<16x8xf32>
    %cst_33 = arith.constant dense<0.000000e+00> : vector<16x1xf32>
    %58 = tpu.matmul %57, %56, %cst_33 {dimension_numbers = #tpu.dot_dimension_numbers<[1], [0], [0], [1], [0, 0, 1, 1], [], []>} : vector<16x8xf32>, vector<8x1xf32>, vector<16x1xf32> -> vector<16x1xf32>
    %c0_34 = arith.constant 0 : index
    %c0_35 = arith.constant 0 : index
    %59 = vector.load %arg9[%c0_34, %c0_35] : memref<16x1xf32, #tpu.memory_space<vmem>>, vector<16x1xf32>
    %60 = arith.addf %58, %59 : vector<16x1xf32>
    %61 = arith.negf %60 : vector<16x1xf32>
    %62 = math.exp %61 : vector<16x1xf32>
    %cst_36 = arith.constant 1.000000e+00 : f32
    %63 = vector.broadcast %cst_36 : f32 to vector<16x1xf32>
    %64 = arith.addf %63, %62 : vector<16x1xf32>
    %65 = arith.divf %63, %64 : vector<16x1xf32>
    %66 = vector.broadcast %65 : vector<16x1xf32> to vector<16x32xf32>
    %67 = arith.mulf %66, %46 : vector<16x32xf32>
    %cst_37 = arith.constant 0.000000e+00 : f32
    %68 = vector.broadcast %cst_37 : f32 to vector<16x3xf32>
    %cst_38 = arith.constant 0.000000e+00 : f32
    %69 = vector.broadcast %cst_38 : f32 to vector<16x3xf32>
    %70 = tpu.concatenate %68, %67, %69 in 1 : vector<16x3xf32>, vector<16x32xf32>, vector<16x3xf32> -> vector<16x38xf32>
    %71 = vector.extract_strided_slice %70 {offsets = [0, 0], sizes = [16, 32], strides = [1, 1]} : vector<16x38xf32> to vector<16x32xf32>
    %72 = vector.extract_strided_slice %70 {offsets = [0, 1], sizes = [16, 32], strides = [1, 1]} : vector<16x38xf32> to vector<16x32xf32>
    %73 = vector.extract_strided_slice %70 {offsets = [0, 2], sizes = [16, 32], strides = [1, 1]} : vector<16x38xf32> to vector<16x32xf32>
    %74 = vector.extract_strided_slice %70 {offsets = [0, 3], sizes = [16, 32], strides = [1, 1]} : vector<16x38xf32> to vector<16x32xf32>
    %75 = vector.extract_strided_slice %70 {offsets = [0, 4], sizes = [16, 32], strides = [1, 1]} : vector<16x38xf32> to vector<16x32xf32>
    %76 = vector.extract_strided_slice %70 {offsets = [0, 5], sizes = [16, 32], strides = [1, 1]} : vector<16x38xf32> to vector<16x32xf32>
    %77 = vector.extract_strided_slice %70 {offsets = [0, 6], sizes = [16, 32], strides = [1, 1]} : vector<16x38xf32> to vector<16x32xf32>
    %78 = tpu.concatenate %71, %72, %73, %74, %75, %76, %77 in 0 : vector<16x32xf32>, vector<16x32xf32>, vector<16x32xf32>, vector<16x32xf32>, vector<16x32xf32>, vector<16x32xf32>, vector<16x32xf32> -> vector<112x32xf32>
    %c0_39 = arith.constant 0 : index
    %c0_40 = arith.constant 0 : index
    %79 = vector.load %arg10[%c0_39, %c0_40] : memref<16x112xf32, #tpu.memory_space<vmem>>, vector<16x112xf32>
    %cst_41 = arith.constant dense<0.000000e+00> : vector<16x32xf32>
    %80 = tpu.matmul %79, %78, %cst_41 {dimension_numbers = #tpu.dot_dimension_numbers<[1], [0], [0], [1], [0, 0, 1, 1], [], []>} : vector<16x112xf32>, vector<112x32xf32>, vector<16x32xf32> -> vector<16x32xf32>
    %c0_42 = arith.constant 0 : index
    %c0_43 = arith.constant 0 : index
    %81 = vector.load %arg11[%c0_42, %c0_43] : memref<16x1xf32, #tpu.memory_space<vmem>>, vector<16x1xf32>
    %82 = vector.broadcast %81 : vector<16x1xf32> to vector<16x32xf32>
    %83 = arith.addf %80, %82 : vector<16x32xf32>
    %cst_44 = arith.constant 0.000000e+00 : f32
    %84 = vector.broadcast %cst_44 : f32 to vector<16x32xf32>
    %85 = arith.maximumf %83, %84 : vector<16x32xf32>
    %cst_45 = arith.constant 0.000000e+00 : f32
    %86 = vector.broadcast %cst_45 : f32 to vector<16x12xf32>
    %cst_46 = arith.constant 0.000000e+00 : f32
    %87 = vector.broadcast %cst_46 : f32 to vector<16x12xf32>
    %88 = tpu.concatenate %86, %85, %87 in 1 : vector<16x12xf32>, vector<16x32xf32>, vector<16x12xf32> -> vector<16x56xf32>
    %89 = vector.extract_strided_slice %88 {offsets = [0, 0], sizes = [16, 32], strides = [1, 1]} : vector<16x56xf32> to vector<16x32xf32>
    %90 = vector.extract_strided_slice %88 {offsets = [0, 3], sizes = [16, 32], strides = [1, 1]} : vector<16x56xf32> to vector<16x32xf32>
    %91 = vector.extract_strided_slice %88 {offsets = [0, 6], sizes = [16, 32], strides = [1, 1]} : vector<16x56xf32> to vector<16x32xf32>
    %92 = vector.extract_strided_slice %88 {offsets = [0, 9], sizes = [16, 32], strides = [1, 1]} : vector<16x56xf32> to vector<16x32xf32>
    %93 = vector.extract_strided_slice %88 {offsets = [0, 12], sizes = [16, 32], strides = [1, 1]} : vector<16x56xf32> to vector<16x32xf32>
    %94 = vector.extract_strided_slice %88 {offsets = [0, 15], sizes = [16, 32], strides = [1, 1]} : vector<16x56xf32> to vector<16x32xf32>
    %95 = vector.extract_strided_slice %88 {offsets = [0, 18], sizes = [16, 32], strides = [1, 1]} : vector<16x56xf32> to vector<16x32xf32>
    %96 = vector.extract_strided_slice %88 {offsets = [0, 21], sizes = [16, 32], strides = [1, 1]} : vector<16x56xf32> to vector<16x32xf32>
    %97 = vector.extract_strided_slice %88 {offsets = [0, 24], sizes = [16, 32], strides = [1, 1]} : vector<16x56xf32> to vector<16x32xf32>
    %98 = tpu.concatenate %89, %90, %91, %92, %93, %94, %95, %96, %97 in 0 : vector<16x32xf32>, vector<16x32xf32>, vector<16x32xf32>, vector<16x32xf32>, vector<16x32xf32>, vector<16x32xf32>, vector<16x32xf32>, vector<16x32xf32>, vector<16x32xf32> -> vector<144x32xf32>
    %c0_47 = arith.constant 0 : index
    %c0_48 = arith.constant 0 : index
    %99 = vector.load %arg12[%c0_47, %c0_48] : memref<16x144xf32, #tpu.memory_space<vmem>>, vector<16x144xf32>
    %cst_49 = arith.constant dense<0.000000e+00> : vector<16x32xf32>
    %100 = tpu.matmul %99, %98, %cst_49 {dimension_numbers = #tpu.dot_dimension_numbers<[1], [0], [0], [1], [0, 0, 1, 1], [], []>} : vector<16x144xf32>, vector<144x32xf32>, vector<16x32xf32> -> vector<16x32xf32>
    %c0_50 = arith.constant 0 : index
    %c0_51 = arith.constant 0 : index
    %101 = vector.load %arg13[%c0_50, %c0_51] : memref<16x1xf32, #tpu.memory_space<vmem>>, vector<16x1xf32>
    %102 = vector.broadcast %101 : vector<16x1xf32> to vector<16x32xf32>
    %103 = arith.addf %100, %102 : vector<16x32xf32>
    %cst_52 = arith.constant 0.000000e+00 : f32
    %104 = vector.broadcast %cst_52 : f32 to vector<16x32xf32>
    %105 = arith.maximumf %103, %104 : vector<16x32xf32>
    %c0_53 = arith.constant 0 : index
    %c0_54 = arith.constant 0 : index
    %106 = vector.load %arg14[%c0_53, %c0_54] : memref<16x16xf32, #tpu.memory_space<vmem>>, vector<16x16xf32>
    %cst_55 = arith.constant dense<0.000000e+00> : vector<16x32xf32>
    %107 = tpu.matmul %106, %105, %cst_55 {dimension_numbers = #tpu.dot_dimension_numbers<[1], [0], [0], [1], [0, 0, 1, 1], [], []>} : vector<16x16xf32>, vector<16x32xf32>, vector<16x32xf32> -> vector<16x32xf32>
    %c0_56 = arith.constant 0 : index
    %c0_57 = arith.constant 0 : index
    %108 = vector.load %arg15[%c0_56, %c0_57] : memref<16x1xf32, #tpu.memory_space<vmem>>, vector<16x1xf32>
    %109 = vector.broadcast %108 : vector<16x1xf32> to vector<16x32xf32>
    %110 = arith.addf %107, %109 : vector<16x32xf32>
    %111 = arith.negf %110 : vector<16x32xf32>
    %112 = math.exp %111 : vector<16x32xf32>
    %cst_58 = arith.constant 1.000000e+00 : f32
    %113 = vector.broadcast %cst_58 : f32 to vector<16x32xf32>
    %114 = arith.addf %113, %112 : vector<16x32xf32>
    %115 = arith.divf %113, %114 : vector<16x32xf32>
    %116 = arith.mulf %115, %46 : vector<16x32xf32>
    %cst_59 = arith.constant 0.000000e+00 : f32
    %117 = vector.broadcast %cst_59 : f32 to vector<16x1xf32>
    %cst_60 = arith.constant 0.000000e+00 : f32
    %118 = vector.broadcast %cst_60 : f32 to vector<16x1xf32>
    %119 = tpu.concatenate %117, %46, %118 in 1 : vector<16x1xf32>, vector<16x32xf32>, vector<16x1xf32> -> vector<16x34xf32>
    %120 = vector.extract_strided_slice %119 {offsets = [0, 0], sizes = [16, 32], strides = [1, 1]} : vector<16x34xf32> to vector<16x32xf32>
    %121 = vector.extract_strided_slice %119 {offsets = [0, 1], sizes = [16, 32], strides = [1, 1]} : vector<16x34xf32> to vector<16x32xf32>
    %122 = vector.extract_strided_slice %119 {offsets = [0, 2], sizes = [16, 32], strides = [1, 1]} : vector<16x34xf32> to vector<16x32xf32>
    %123 = tpu.concatenate %120, %121, %122 in 0 : vector<16x32xf32>, vector<16x32xf32>, vector<16x32xf32> -> vector<48x32xf32>
    %c0_61 = arith.constant 0 : index
    %c0_62 = arith.constant 0 : index
    %124 = vector.load %arg16[%c0_61, %c0_62] : memref<8x48xf32, #tpu.memory_space<vmem>>, vector<8x48xf32>
    %cst_63 = arith.constant dense<0.000000e+00> : vector<8x32xf32>
    %125 = tpu.matmul %124, %123, %cst_63 {dimension_numbers = #tpu.dot_dimension_numbers<[1], [0], [0], [1], [0, 0, 1, 1], [], []>} : vector<8x48xf32>, vector<48x32xf32>, vector<8x32xf32> -> vector<8x32xf32>
    %c0_64 = arith.constant 0 : index
    %c0_65 = arith.constant 0 : index
    %126 = vector.load %arg17[%c0_64, %c0_65] : memref<8x1xf32, #tpu.memory_space<vmem>>, vector<8x1xf32>
    %127 = vector.broadcast %126 : vector<8x1xf32> to vector<8x32xf32>
    %128 = arith.addf %125, %127 : vector<8x32xf32>
    %cst_66 = arith.constant 0.000000e+00 : f32
    %129 = vector.broadcast %cst_66 : f32 to vector<8x32xf32>
    %130 = arith.maximumf %128, %129 : vector<8x32xf32>
    %cst_67 = arith.constant 0.000000e+00 : f32
    %131 = vector.broadcast %cst_67 : f32 to vector<8x10xf32>
    %cst_68 = arith.constant 0.000000e+00 : f32
    %132 = vector.broadcast %cst_68 : f32 to vector<8x10xf32>
    %133 = tpu.concatenate %131, %130, %132 in 1 : vector<8x10xf32>, vector<8x32xf32>, vector<8x10xf32> -> vector<8x52xf32>
    %134 = vector.extract_strided_slice %133 {offsets = [0, 0], sizes = [8, 32], strides = [1, 1]} : vector<8x52xf32> to vector<8x32xf32>
    %135 = vector.extract_strided_slice %133 {offsets = [0, 5], sizes = [8, 32], strides = [1, 1]} : vector<8x52xf32> to vector<8x32xf32>
    %136 = vector.extract_strided_slice %133 {offsets = [0, 10], sizes = [8, 32], strides = [1, 1]} : vector<8x52xf32> to vector<8x32xf32>
    %137 = vector.extract_strided_slice %133 {offsets = [0, 15], sizes = [8, 32], strides = [1, 1]} : vector<8x52xf32> to vector<8x32xf32>
    %138 = vector.extract_strided_slice %133 {offsets = [0, 20], sizes = [8, 32], strides = [1, 1]} : vector<8x52xf32> to vector<8x32xf32>
    %139 = tpu.concatenate %134, %135, %136, %137, %138 in 0 : vector<8x32xf32>, vector<8x32xf32>, vector<8x32xf32>, vector<8x32xf32>, vector<8x32xf32> -> vector<40x32xf32>
    %c0_69 = arith.constant 0 : index
    %c0_70 = arith.constant 0 : index
    %140 = vector.load %arg18[%c0_69, %c0_70] : memref<8x40xf32, #tpu.memory_space<vmem>>, vector<8x40xf32>
    %cst_71 = arith.constant dense<0.000000e+00> : vector<8x32xf32>
    %141 = tpu.matmul %140, %139, %cst_71 {dimension_numbers = #tpu.dot_dimension_numbers<[1], [0], [0], [1], [0, 0, 1, 1], [], []>} : vector<8x40xf32>, vector<40x32xf32>, vector<8x32xf32> -> vector<8x32xf32>
    %c0_72 = arith.constant 0 : index
    %c0_73 = arith.constant 0 : index
    %142 = vector.load %arg19[%c0_72, %c0_73] : memref<8x1xf32, #tpu.memory_space<vmem>>, vector<8x1xf32>
    %143 = vector.broadcast %142 : vector<8x1xf32> to vector<8x32xf32>
    %144 = arith.addf %141, %143 : vector<8x32xf32>
    %cst_74 = arith.constant 0.000000e+00 : f32
    %145 = vector.broadcast %cst_74 : f32 to vector<8x32xf32>
    %146 = arith.maximumf %144, %145 : vector<8x32xf32>
    %cst_75 = arith.constant 0.000000e+00 : f32
    %147 = vector.broadcast %cst_75 : f32 to vector<8x21xf32>
    %cst_76 = arith.constant 0.000000e+00 : f32
    %148 = vector.broadcast %cst_76 : f32 to vector<8x21xf32>
    %149 = tpu.concatenate %147, %146, %148 in 1 : vector<8x21xf32>, vector<8x32xf32>, vector<8x21xf32> -> vector<8x74xf32>
    %150 = vector.extract_strided_slice %149 {offsets = [0, 0], sizes = [8, 32], strides = [1, 1]} : vector<8x74xf32> to vector<8x32xf32>
    %151 = vector.extract_strided_slice %149 {offsets = [0, 7], sizes = [8, 32], strides = [1, 1]} : vector<8x74xf32> to vector<8x32xf32>
    %152 = vector.extract_strided_slice %149 {offsets = [0, 14], sizes = [8, 32], strides = [1, 1]} : vector<8x74xf32> to vector<8x32xf32>
    %153 = vector.extract_strided_slice %149 {offsets = [0, 21], sizes = [8, 32], strides = [1, 1]} : vector<8x74xf32> to vector<8x32xf32>
    %154 = vector.extract_strided_slice %149 {offsets = [0, 28], sizes = [8, 32], strides = [1, 1]} : vector<8x74xf32> to vector<8x32xf32>
    %155 = vector.extract_strided_slice %149 {offsets = [0, 35], sizes = [8, 32], strides = [1, 1]} : vector<8x74xf32> to vector<8x32xf32>
    %156 = vector.extract_strided_slice %149 {offsets = [0, 42], sizes = [8, 32], strides = [1, 1]} : vector<8x74xf32> to vector<8x32xf32>
    %157 = tpu.concatenate %150, %151, %152, %153, %154, %155, %156 in 0 : vector<8x32xf32>, vector<8x32xf32>, vector<8x32xf32>, vector<8x32xf32>, vector<8x32xf32>, vector<8x32xf32>, vector<8x32xf32> -> vector<56x32xf32>
    %c0_77 = arith.constant 0 : index
    %c0_78 = arith.constant 0 : index
    %158 = vector.load %arg20[%c0_77, %c0_78] : memref<16x56xf32, #tpu.memory_space<vmem>>, vector<16x56xf32>
    %cst_79 = arith.constant dense<0.000000e+00> : vector<16x32xf32>
    %159 = tpu.matmul %158, %157, %cst_79 {dimension_numbers = #tpu.dot_dimension_numbers<[1], [0], [0], [1], [0, 0, 1, 1], [], []>} : vector<16x56xf32>, vector<56x32xf32>, vector<16x32xf32> -> vector<16x32xf32>
    %c0_80 = arith.constant 0 : index
    %c0_81 = arith.constant 0 : index
    %160 = vector.load %arg21[%c0_80, %c0_81] : memref<16x1xf32, #tpu.memory_space<vmem>>, vector<16x1xf32>
    %161 = vector.broadcast %160 : vector<16x1xf32> to vector<16x32xf32>
    %162 = arith.addf %159, %161 : vector<16x32xf32>
    %cst_82 = arith.constant 0.000000e+00 : f32
    %163 = vector.broadcast %cst_82 : f32 to vector<16x32xf32>
    %164 = arith.maximumf %162, %163 : vector<16x32xf32>
    %165 = arith.addf %116, %164 : vector<16x32xf32>
    %c0_83 = arith.constant 0 : index
    %c0_84 = arith.constant 0 : index
    %c0_85 = arith.constant 0 : index
    %166 = vector.load %arg78[%c0_83, %c0_84, %c0_85] : memref<1x16x32xf32, #tpu.memory_space<vmem>>, vector<1x16x32xf32>
    %167 = vector.shape_cast %166 : vector<1x16x32xf32> to vector<16x32xf32>
    %168 = vector.shape_cast %165 : vector<16x32xf32> to vector<1x16x32xf32>
    tpu.vector_store %arg78[%c0_83, %c0_84, %c0_85], %168 {strides = array<i32>} : memref<1x16x32xf32, #tpu.memory_space<vmem>>, vector<1x16x32xf32>,
    %cst_86 = arith.constant 0.000000e+00 : f32
    %169 = vector.broadcast %cst_86 : f32 to vector<16x1xf32>
    %cst_87 = arith.constant 0.000000e+00 : f32
    %170 = vector.broadcast %cst_87 : f32 to vector<16x1xf32>
    %171 = tpu.concatenate %169, %165, %170 in 1 : vector<16x1xf32>, vector<16x32xf32>, vector<16x1xf32> -> vector<16x34xf32>
    %172 = vector.extract_strided_slice %171 {offsets = [0, 0], sizes = [16, 32], strides = [1, 1]} : vector<16x34xf32> to vector<16x32xf32>
    %173 = vector.extract_strided_slice %171 {offsets = [0, 1], sizes = [16, 32], strides = [1, 1]} : vector<16x34xf32> to vector<16x32xf32>
    %174 = vector.extract_strided_slice %171 {offsets = [0, 2], sizes = [16, 32], strides = [1, 1]} : vector<16x34xf32> to vector<16x32xf32>
    %175 = tpu.concatenate %172, %173, %174 in 0 : vector<16x32xf32>, vector<16x32xf32>, vector<16x32xf32> -> vector<48x32xf32>
    %c0_88 = arith.constant 0 : index
    %c0_89 = arith.constant 0 : index
    %176 = vector.load %arg22[%c0_88, %c0_89] : memref<16x48xf32, #tpu.memory_space<vmem>>, vector<16x48xf32>
    %cst_90 = arith.constant dense<0.000000e+00> : vector<16x32xf32>
    %177 = tpu.matmul %176, %175, %cst_90 {dimension_numbers = #tpu.dot_dimension_numbers<[1], [0], [0], [1], [0, 0, 1, 1], [], []>} : vector<16x48xf32>, vector<48x32xf32>, vector<16x32xf32> -> vector<16x32xf32>
    %c0_91 = arith.constant 0 : index
    %c0_92 = arith.constant 0 : index
    %178 = vector.load %arg23[%c0_91, %c0_92] : memref<16x1xf32, #tpu.memory_space<vmem>>, vector<16x1xf32>
    %179 = vector.broadcast %178 : vector<16x1xf32> to vector<16x32xf32>
    %180 = arith.addf %177, %179 : vector<16x32xf32>
    %181 = tpu.iota {dimensions = array<i32: 0>} : vector<32x16xi32>
    %182 = tpu.iota {dimensions = array<i32: 1>} : vector<32x16xi32>
    %c2_i32_93 = arith.constant 2 : i32
    %183 = vector.broadcast %c2_i32_93 : i32 to vector<32x16xi32>
    %184 = arith.muli %183, %182 : vector<32x16xi32>
    %185 = arith.cmpi eq, %181, %184 : vector<32x16xi32>
    %186 = arith.extui %185 : vector<32x16xi1> to vector<32x16xi32>
    %187 = arith.sitofp %186 : vector<32x16xi32> to vector<32x16xf32>
    %cst_94 = arith.constant dense<0.000000e+00> : vector<16x16xf32>
    %188 = tpu.matmul %180, %187, %cst_94 {dimension_numbers = #tpu.dot_dimension_numbers<[1], [0], [0], [1], [0, 0, 1, 1], [], []>} : vector<16x32xf32>, vector<32x16xf32>, vector<16x16xf32> -> vector<16x16xf32>
    %cst_95 = arith.constant 0.000000e+00 : f32
    %189 = vector.broadcast %cst_95 : f32 to vector<16x16xf32>
    %190 = arith.maximumf %188, %189 : vector<16x16xf32>
    %cst_96 = arith.constant dense<0.000000e+00> : vector<16xf32>
    %191 = vector.multi_reduction <add>, %190, %cst_96 [1] : vector<16x16xf32> to vector<16xf32>
    %192 = vector.shape_cast %191 : vector<16xf32> to vector<16x1xf32>
    %cst_97 = arith.constant 1.600000e+01 : f32
    %193 = vector.broadcast %cst_97 : f32 to vector<16x1xf32>
    %194 = arith.divf %192, %193 : vector<16x1xf32>
    %c0_98 = arith.constant 0 : index
    %c0_99 = arith.constant 0 : index
    %195 = vector.load %arg24[%c0_98, %c0_99] : memref<8x16xf32, #tpu.memory_space<vmem>>, vector<8x16xf32>
    %cst_100 = arith.constant dense<0.000000e+00> : vector<8x1xf32>
    %196 = tpu.matmul %195, %194, %cst_100 {dimension_numbers = #tpu.dot_dimension_numbers<[1], [0], [0], [1], [0, 0, 1, 1], [], []>} : vector<8x16xf32>, vector<16x1xf32>, vector<8x1xf32> -> vector<8x1xf32>
    %c0_101 = arith.constant 0 : index
    %c0_102 = arith.constant 0 : index
    %197 = vector.load %arg25[%c0_101, %c0_102] : memref<8x1xf32, #tpu.memory_space<vmem>>, vector<8x1xf32>
    %198 = arith.addf %196, %197 : vector<8x1xf32>
    %cst_103 = arith.constant 0.000000e+00 : f32
    %199 = vector.broadcast %cst_103 : f32 to vector<8x1xf32>
    %200 = arith.maximumf %198, %199 : vector<8x1xf32>
    %c0_104 = arith.constant 0 : index
    %c0_105 = arith.constant 0 : index
    %201 = vector.load %arg26[%c0_104, %c0_105] : memref<16x8xf32, #tpu.memory_space<vmem>>, vector<16x8xf32>
    %cst_106 = arith.constant dense<0.000000e+00> : vector<16x1xf32>
    %202 = tpu.matmul %201, %200, %cst_106 {dimension_numbers = #tpu.dot_dimension_numbers<[1], [0], [0], [1], [0, 0, 1, 1], [], []>} : vector<16x8xf32>, vector<8x1xf32>, vector<16x1xf32> -> vector<16x1xf32>
    %c0_107 = arith.constant 0 : index
    %c0_108 = arith.constant 0 : index
    %203 = vector.load %arg27[%c0_107, %c0_108] : memref<16x1xf32, #tpu.memory_space<vmem>>, vector<16x1xf32>
    %204 = arith.addf %202, %203 : vector<16x1xf32>
    %205 = arith.negf %204 : vector<16x1xf32>
    %206 = math.exp %205 : vector<16x1xf32>
    %cst_109 = arith.constant 1.000000e+00 : f32
    %207 = vector.broadcast %cst_109 : f32 to vector<16x1xf32>
    %208 = arith.addf %207, %206 : vector<16x1xf32>
    %209 = arith.divf %207, %208 : vector<16x1xf32>
    %210 = vector.broadcast %209 : vector<16x1xf32> to vector<16x16xf32>
    %211 = arith.mulf %210, %190 : vector<16x16xf32>
    %cst_110 = arith.constant 0.000000e+00 : f32
    %212 = vector.broadcast %cst_110 : f32 to vector<16x3xf32>
    %cst_111 = arith.constant 0.000000e+00 : f32
    %213 = vector.broadcast %cst_111 : f32 to vector<16x3xf32>
    %214 = tpu.concatenate %212, %211, %213 in 1 : vector<16x3xf32>, vector<16x16xf32>, vector<16x3xf32> -> vector<16x22xf32>
    %215 = vector.extract_strided_slice %214 {offsets = [0, 0], sizes = [16, 16], strides = [1, 1]} : vector<16x22xf32> to vector<16x16xf32>
    %216 = vector.extract_strided_slice %214 {offsets = [0, 1], sizes = [16, 16], strides = [1, 1]} : vector<16x22xf32> to vector<16x16xf32>
    %217 = vector.extract_strided_slice %214 {offsets = [0, 2], sizes = [16, 16], strides = [1, 1]} : vector<16x22xf32> to vector<16x16xf32>
    %218 = vector.extract_strided_slice %214 {offsets = [0, 3], sizes = [16, 16], strides = [1, 1]} : vector<16x22xf32> to vector<16x16xf32>
    %219 = vector.extract_strided_slice %214 {offsets = [0, 4], sizes = [16, 16], strides = [1, 1]} : vector<16x22xf32> to vector<16x16xf32>
    %220 = vector.extract_strided_slice %214 {offsets = [0, 5], sizes = [16, 16], strides = [1, 1]} : vector<16x22xf32> to vector<16x16xf32>
    %221 = vector.extract_strided_slice %214 {offsets = [0, 6], sizes = [16, 16], strides = [1, 1]} : vector<16x22xf32> to vector<16x16xf32>
    %222 = tpu.concatenate %215, %216, %217, %218, %219, %220, %221 in 0 : vector<16x16xf32>, vector<16x16xf32>, vector<16x16xf32>, vector<16x16xf32>, vector<16x16xf32>, vector<16x16xf32>, vector<16x16xf32> -> vector<112x16xf32>
    %c0_112 = arith.constant 0 : index
    %c0_113 = arith.constant 0 : index
    %223 = vector.load %arg28[%c0_112, %c0_113] : memref<16x112xf32, #tpu.memory_space<vmem>>, vector<16x112xf32>
    %cst_114 = arith.constant dense<0.000000e+00> : vector<16x16xf32>
    %224 = tpu.matmul %223, %222, %cst_114 {dimension_numbers = #tpu.dot_dimension_numbers<[1], [0], [0], [1], [0, 0, 1, 1], [], []>} : vector<16x112xf32>, vector<112x16xf32>, vector<16x16xf32> -> vector<16x16xf32>
    %c0_115 = arith.constant 0 : index
    %c0_116 = arith.constant 0 : index
    %225 = vector.load %arg29[%c0_115, %c0_116] : memref<16x1xf32, #tpu.memory_space<vmem>>, vector<16x1xf32>
    %226 = vector.broadcast %225 : vector<16x1xf32> to vector<16x16xf32>
    %227 = arith.addf %224, %226 : vector<16x16xf32>
    %cst_117 = arith.constant 0.000000e+00 : f32
    %228 = vector.broadcast %cst_117 : f32 to vector<16x16xf32>
    %229 = arith.maximumf %227, %228 : vector<16x16xf32>
    %cst_118 = arith.constant 0.000000e+00 : f32
    %230 = vector.broadcast %cst_118 : f32 to vector<16x12xf32>
    %cst_119 = arith.constant 0.000000e+00 : f32
    %231 = vector.broadcast %cst_119 : f32 to vector<16x12xf32>
    %232 = tpu.concatenate %230, %229, %231 in 1 : vector<16x12xf32>, vector<16x16xf32>, vector<16x12xf32> -> vector<16x40xf32>
    %233 = vector.extract_strided_slice %232 {offsets = [0, 0], sizes = [16, 16], strides = [1, 1]} : vector<16x40xf32> to vector<16x16xf32>
    %234 = vector.extract_strided_slice %232 {offsets = [0, 3], sizes = [16, 16], strides = [1, 1]} : vector<16x40xf32> to vector<16x16xf32>
    %235 = vector.extract_strided_slice %232 {offsets = [0, 6], sizes = [16, 16], strides = [1, 1]} : vector<16x40xf32> to vector<16x16xf32>
    %236 = vector.extract_strided_slice %232 {offsets = [0, 9], sizes = [16, 16], strides = [1, 1]} : vector<16x40xf32> to vector<16x16xf32>
    %237 = vector.extract_strided_slice %232 {offsets = [0, 12], sizes = [16, 16], strides = [1, 1]} : vector<16x40xf32> to vector<16x16xf32>
    %238 = vector.extract_strided_slice %232 {offsets = [0, 15], sizes = [16, 16], strides = [1, 1]} : vector<16x40xf32> to vector<16x16xf32>
    %239 = vector.extract_strided_slice %232 {offsets = [0, 18], sizes = [16, 16], strides = [1, 1]} : vector<16x40xf32> to vector<16x16xf32>
    %240 = vector.extract_strided_slice %232 {offsets = [0, 21], sizes = [16, 16], strides = [1, 1]} : vector<16x40xf32> to vector<16x16xf32>
    %241 = vector.extract_strided_slice %232 {offsets = [0, 24], sizes = [16, 16], strides = [1, 1]} : vector<16x40xf32> to vector<16x16xf32>
    %242 = tpu.concatenate %233, %234, %235, %236, %237, %238, %239, %240, %241 in 0 : vector<16x16xf32>, vector<16x16xf32>, vector<16x16xf32>, vector<16x16xf32>, vector<16x16xf32>, vector<16x16xf32>, vector<16x16xf32>, vector<16x16xf32>, vector<16x16xf32> -> vector<144x16xf32>
    %c0_120 = arith.constant 0 : index
    %c0_121 = arith.constant 0 : index
    %243 = vector.load %arg30[%c0_120, %c0_121] : memref<16x144xf32, #tpu.memory_space<vmem>>, vector<16x144xf32>
    %cst_122 = arith.constant dense<0.000000e+00> : vector<16x16xf32>
    %244 = tpu.matmul %243, %242, %cst_122 {dimension_numbers = #tpu.dot_dimension_numbers<[1], [0], [0], [1], [0, 0, 1, 1], [], []>} : vector<16x144xf32>, vector<144x16xf32>, vector<16x16xf32> -> vector<16x16xf32>
    %c0_123 = arith.constant 0 : index
    %c0_124 = arith.constant 0 : index
    %245 = vector.load %arg31[%c0_123, %c0_124] : memref<16x1xf32, #tpu.memory_space<vmem>>, vector<16x1xf32>
    %246 = vector.broadcast %245 : vector<16x1xf32> to vector<16x16xf32>
    %247 = arith.addf %244, %246 : vector<16x16xf32>
    %cst_125 = arith.constant 0.000000e+00 : f32
    %248 = vector.broadcast %cst_125 : f32 to vector<16x16xf32>
    %249 = arith.maximumf %247, %248 : vector<16x16xf32>
    %c0_126 = arith.constant 0 : index
    %c0_127 = arith.constant 0 : index
    %250 = vector.load %arg32[%c0_126, %c0_127] : memref<16x16xf32, #tpu.memory_space<vmem>>, vector<16x16xf32>
    %cst_128 = arith.constant dense<0.000000e+00> : vector<16x16xf32>
    %251 = tpu.matmul %250, %249, %cst_128 {dimension_numbers = #tpu.dot_dimension_numbers<[1], [0], [0], [1], [0, 0, 1, 1], [], []>} : vector<16x16xf32>, vector<16x16xf32>, vector<16x16xf32> -> vector<16x16xf32>
    %c0_129 = arith.constant 0 : index
    %c0_130 = arith.constant 0 : index
    %252 = vector.load %arg33[%c0_129, %c0_130] : memref<16x1xf32, #tpu.memory_space<vmem>>, vector<16x1xf32>
    %253 = vector.broadcast %252 : vector<16x1xf32> to vector<16x16xf32>
    %254 = arith.addf %251, %253 : vector<16x16xf32>
    %255 = arith.negf %254 : vector<16x16xf32>
    %256 = math.exp %255 : vector<16x16xf32>
    %cst_131 = arith.constant 1.000000e+00 : f32
    %257 = vector.broadcast %cst_131 : f32 to vector<16x16xf32>
    %258 = arith.addf %257, %256 : vector<16x16xf32>
    %259 = arith.divf %257, %258 : vector<16x16xf32>
    %260 = arith.mulf %259, %190 : vector<16x16xf32>
    %cst_132 = arith.constant 0.000000e+00 : f32
    %261 = vector.broadcast %cst_132 : f32 to vector<16x1xf32>
    %cst_133 = arith.constant 0.000000e+00 : f32
    %262 = vector.broadcast %cst_133 : f32 to vector<16x1xf32>
    %263 = tpu.concatenate %261, %190, %262 in 1 : vector<16x1xf32>, vector<16x16xf32>, vector<16x1xf32> -> vector<16x18xf32>
    %264 = vector.extract_strided_slice %263 {offsets = [0, 0], sizes = [16, 16], strides = [1, 1]} : vector<16x18xf32> to vector<16x16xf32>
    %265 = vector.extract_strided_slice %263 {offsets = [0, 1], sizes = [16, 16], strides = [1, 1]} : vector<16x18xf32> to vector<16x16xf32>
    %266 = vector.extract_strided_slice %263 {offsets = [0, 2], sizes = [16, 16], strides = [1, 1]} : vector<16x18xf32> to vector<16x16xf32>
    %267 = tpu.concatenate %264, %265, %266 in 0 : vector<16x16xf32>, vector<16x16xf32>, vector<16x16xf32> -> vector<48x16xf32>
    %c0_134 = arith.constant 0 : index
    %c0_135 = arith.constant 0 : index
    %268 = vector.load %arg34[%c0_134, %c0_135] : memref<8x48xf32, #tpu.memory_space<vmem>>, vector<8x48xf32>
    %cst_136 = arith.constant dense<0.000000e+00> : vector<8x16xf32>
    %269 = tpu.matmul %268, %267, %cst_136 {dimension_numbers = #tpu.dot_dimension_numbers<[1], [0], [0], [1], [0, 0, 1, 1], [], []>} : vector<8x48xf32>, vector<48x16xf32>, vector<8x16xf32> -> vector<8x16xf32>
    %c0_137 = arith.constant 0 : index
    %c0_138 = arith.constant 0 : index
    %270 = vector.load %arg35[%c0_137, %c0_138] : memref<8x1xf32, #tpu.memory_space<vmem>>, vector<8x1xf32>
    %271 = vector.broadcast %270 : vector<8x1xf32> to vector<8x16xf32>
    %272 = arith.addf %269, %271 : vector<8x16xf32>
    %cst_139 = arith.constant 0.000000e+00 : f32
    %273 = vector.broadcast %cst_139 : f32 to vector<8x16xf32>
    %274 = arith.maximumf %272, %273 : vector<8x16xf32>
    %cst_140 = arith.constant 0.000000e+00 : f32
    %275 = vector.broadcast %cst_140 : f32 to vector<8x10xf32>
    %cst_141 = arith.constant 0.000000e+00 : f32
    %276 = vector.broadcast %cst_141 : f32 to vector<8x10xf32>
    %277 = tpu.concatenate %275, %274, %276 in 1 : vector<8x10xf32>, vector<8x16xf32>, vector<8x10xf32> -> vector<8x36xf32>
    %278 = vector.extract_strided_slice %277 {offsets = [0, 0], sizes = [8, 16], strides = [1, 1]} : vector<8x36xf32> to vector<8x16xf32>
    %279 = vector.extract_strided_slice %277 {offsets = [0, 5], sizes = [8, 16], strides = [1, 1]} : vector<8x36xf32> to vector<8x16xf32>
    %280 = vector.extract_strided_slice %277 {offsets = [0, 10], sizes = [8, 16], strides = [1, 1]} : vector<8x36xf32> to vector<8x16xf32>
    %281 = vector.extract_strided_slice %277 {offsets = [0, 15], sizes = [8, 16], strides = [1, 1]} : vector<8x36xf32> to vector<8x16xf32>
    %282 = vector.extract_strided_slice %277 {offsets = [0, 20], sizes = [8, 16], strides = [1, 1]} : vector<8x36xf32> to vector<8x16xf32>
    %283 = tpu.concatenate %278, %279, %280, %281, %282 in 0 : vector<8x16xf32>, vector<8x16xf32>, vector<8x16xf32>, vector<8x16xf32>, vector<8x16xf32> -> vector<40x16xf32>
    %c0_142 = arith.constant 0 : index
    %c0_143 = arith.constant 0 : index
    %284 = vector.load %arg36[%c0_142, %c0_143] : memref<8x40xf32, #tpu.memory_space<vmem>>, vector<8x40xf32>
    %cst_144 = arith.constant dense<0.000000e+00> : vector<8x16xf32>
    %285 = tpu.matmul %284, %283, %cst_144 {dimension_numbers = #tpu.dot_dimension_numbers<[1], [0], [0], [1], [0, 0, 1, 1], [], []>} : vector<8x40xf32>, vector<40x16xf32>, vector<8x16xf32> -> vector<8x16xf32>
    %c0_145 = arith.constant 0 : index
    %c0_146 = arith.constant 0 : index
    %286 = vector.load %arg37[%c0_145, %c0_146] : memref<8x1xf32, #tpu.memory_space<vmem>>, vector<8x1xf32>
    %287 = vector.broadcast %286 : vector<8x1xf32> to vector<8x16xf32>
    %288 = arith.addf %285, %287 : vector<8x16xf32>
    %cst_147 = arith.constant 0.000000e+00 : f32
    %289 = vector.broadcast %cst_147 : f32 to vector<8x16xf32>
    %290 = arith.maximumf %288, %289 : vector<8x16xf32>
    %cst_148 = arith.constant 0.000000e+00 : f32
    %291 = vector.broadcast %cst_148 : f32 to vector<8x14xf32>
    %cst_149 = arith.constant 0.000000e+00 : f32
    %292 = vector.broadcast %cst_149 : f32 to vector<8x14xf32>
    %293 = tpu.concatenate %291, %290, %292 in 1 : vector<8x14xf32>, vector<8x16xf32>, vector<8x14xf32> -> vector<8x44xf32>
    %294 = vector.extract_strided_slice %293 {offsets = [0, 0], sizes = [8, 16], strides = [1, 1]} : vector<8x44xf32> to vector<8x16xf32>
    %295 = vector.extract_strided_slice %293 {offsets = [0, 7], sizes = [8, 16], strides = [1, 1]} : vector<8x44xf32> to vector<8x16xf32>
    %296 = vector.extract_strided_slice %293 {offsets = [0, 14], sizes = [8, 16], strides = [1, 1]} : vector<8x44xf32> to vector<8x16xf32>
    %297 = vector.extract_strided_slice %293 {offsets = [0, 21], sizes = [8, 16], strides = [1, 1]} : vector<8x44xf32> to vector<8x16xf32>
    %298 = vector.extract_strided_slice %293 {offsets = [0, 28], sizes = [8, 16], strides = [1, 1]} : vector<8x44xf32> to vector<8x16xf32>
    %299 = tpu.concatenate %294, %295, %296, %297, %298 in 0 : vector<8x16xf32>, vector<8x16xf32>, vector<8x16xf32>, vector<8x16xf32>, vector<8x16xf32> -> vector<40x16xf32>
    %c0_150 = arith.constant 0 : index
    %c0_151 = arith.constant 0 : index
    %300 = vector.load %arg38[%c0_150, %c0_151] : memref<16x40xf32, #tpu.memory_space<vmem>>, vector<16x40xf32>
    %cst_152 = arith.constant dense<0.000000e+00> : vector<16x16xf32>
    %301 = tpu.matmul %300, %299, %cst_152 {dimension_numbers = #tpu.dot_dimension_numbers<[1], [0], [0], [1], [0, 0, 1, 1], [], []>} : vector<16x40xf32>, vector<40x16xf32>, vector<16x16xf32> -> vector<16x16xf32>
    %c0_153 = arith.constant 0 : index
    %c0_154 = arith.constant 0 : index
    %302 = vector.load %arg39[%c0_153, %c0_154] : memref<16x1xf32, #tpu.memory_space<vmem>>, vector<16x1xf32>
    %303 = vector.broadcast %302 : vector<16x1xf32> to vector<16x16xf32>
    %304 = arith.addf %301, %303 : vector<16x16xf32>
    %cst_155 = arith.constant 0.000000e+00 : f32
    %305 = vector.broadcast %cst_155 : f32 to vector<16x16xf32>
    %306 = arith.maximumf %304, %305 : vector<16x16xf32>
    %307 = arith.addf %260, %306 : vector<16x16xf32>
    %c0_156 = arith.constant 0 : index
    %c0_157 = arith.constant 0 : index
    %c0_158 = arith.constant 0 : index
    %308 = vector.load %arg79[%c0_156, %c0_157, %c0_158] : memref<1x16x16xf32, #tpu.memory_space<vmem>>, vector<1x16x16xf32>
    %309 = vector.shape_cast %308 : vector<1x16x16xf32> to vector<16x16xf32>
    %310 = vector.shape_cast %307 : vector<16x16xf32> to vector<1x16x16xf32>
    tpu.vector_store %arg79[%c0_156, %c0_157, %c0_158], %310 {strides = array<i32>} : memref<1x16x16xf32, #tpu.memory_space<vmem>>, vector<1x16x16xf32>,
    %cst_159 = arith.constant 0.000000e+00 : f32
    %311 = vector.broadcast %cst_159 : f32 to vector<16x1xf32>
    %cst_160 = arith.constant 0.000000e+00 : f32
    %312 = vector.broadcast %cst_160 : f32 to vector<16x1xf32>
    %313 = tpu.concatenate %311, %307, %312 in 1 : vector<16x1xf32>, vector<16x16xf32>, vector<16x1xf32> -> vector<16x18xf32>
    %314 = vector.extract_strided_slice %313 {offsets = [0, 0], sizes = [16, 16], strides = [1, 1]} : vector<16x18xf32> to vector<16x16xf32>
    %315 = vector.extract_strided_slice %313 {offsets = [0, 1], sizes = [16, 16], strides = [1, 1]} : vector<16x18xf32> to vector<16x16xf32>
    %316 = vector.extract_strided_slice %313 {offsets = [0, 2], sizes = [16, 16], strides = [1, 1]} : vector<16x18xf32> to vector<16x16xf32>
    %317 = tpu.concatenate %314, %315, %316 in 0 : vector<16x16xf32>, vector<16x16xf32>, vector<16x16xf32> -> vector<48x16xf32>
    %c0_161 = arith.constant 0 : index
    %c0_162 = arith.constant 0 : index
    %318 = vector.load %arg40[%c0_161, %c0_162] : memref<32x48xf32, #tpu.memory_space<vmem>>, vector<32x48xf32>
    %cst_163 = arith.constant dense<0.000000e+00> : vector<32x16xf32>
    %319 = tpu.matmul %318, %317, %cst_163 {dimension_numbers = #tpu.dot_dimension_numbers<[1], [0], [0], [1], [0, 0, 1, 1], [], []>} : vector<32x48xf32>, vector<48x16xf32>, vector<32x16xf32> -> vector<32x16xf32>
    %c0_164 = arith.constant 0 : index
    %c0_165 = arith.constant 0 : index
    %320 = vector.load %arg41[%c0_164, %c0_165] : memref<32x1xf32, #tpu.memory_space<vmem>>, vector<32x1xf32>
    %321 = vector.broadcast %320 : vector<32x1xf32> to vector<32x16xf32>
    %322 = arith.addf %319, %321 : vector<32x16xf32>
    %323 = tpu.iota {dimensions = array<i32: 0>} : vector<16x8xi32>
    %324 = tpu.iota {dimensions = array<i32: 1>} : vector<16x8xi32>
    %c2_i32_166 = arith.constant 2 : i32
    %325 = vector.broadcast %c2_i32_166 : i32 to vector<16x8xi32>
    %326 = arith.muli %325, %324 : vector<16x8xi32>
    %327 = arith.cmpi eq, %323, %326 : vector<16x8xi32>
    %328 = arith.extui %327 : vector<16x8xi1> to vector<16x8xi32>
    %329 = arith.sitofp %328 : vector<16x8xi32> to vector<16x8xf32>
    %cst_167 = arith.constant dense<0.000000e+00> : vector<32x8xf32>
    %330 = tpu.matmul %322, %329, %cst_167 {dimension_numbers = #tpu.dot_dimension_numbers<[1], [0], [0], [1], [0, 0, 1, 1], [], []>} : vector<32x16xf32>, vector<16x8xf32>, vector<32x8xf32> -> vector<32x8xf32>
    %cst_168 = arith.constant 0.000000e+00 : f32
    %331 = vector.broadcast %cst_168 : f32 to vector<32x8xf32>
    %332 = arith.maximumf %330, %331 : vector<32x8xf32>
    %cst_169 = arith.constant dense<0.000000e+00> : vector<32xf32>
    %333 = vector.multi_reduction <add>, %332, %cst_169 [1] : vector<32x8xf32> to vector<32xf32>
    %334 = vector.shape_cast %333 : vector<32xf32> to vector<32x1xf32>
    %cst_170 = arith.constant 8.000000e+00 : f32
    %335 = vector.broadcast %cst_170 : f32 to vector<32x1xf32>
    %336 = arith.divf %334, %335 : vector<32x1xf32>
    %c0_171 = arith.constant 0 : index
    %c0_172 = arith.constant 0 : index
    %337 = vector.load %arg42[%c0_171, %c0_172] : memref<16x32xf32, #tpu.memory_space<vmem>>, vector<16x32xf32>
    %cst_173 = arith.constant dense<0.000000e+00> : vector<16x1xf32>
    %338 = tpu.matmul %337, %336, %cst_173 {dimension_numbers = #tpu.dot_dimension_numbers<[1], [0], [0], [1], [0, 0, 1, 1], [], []>} : vector<16x32xf32>, vector<32x1xf32>, vector<16x1xf32> -> vector<16x1xf32>
    %c0_174 = arith.constant 0 : index
    %c0_175 = arith.constant 0 : index
    %339 = vector.load %arg43[%c0_174, %c0_175] : memref<16x1xf32, #tpu.memory_space<vmem>>, vector<16x1xf32>
    %340 = arith.addf %338, %339 : vector<16x1xf32>
    %cst_176 = arith.constant 0.000000e+00 : f32
    %341 = vector.broadcast %cst_176 : f32 to vector<16x1xf32>
    %342 = arith.maximumf %340, %341 : vector<16x1xf32>
    %c0_177 = arith.constant 0 : index
    %c0_178 = arith.constant 0 : index
    %343 = vector.load %arg44[%c0_177, %c0_178] : memref<32x16xf32, #tpu.memory_space<vmem>>, vector<32x16xf32>
    %cst_179 = arith.constant dense<0.000000e+00> : vector<32x1xf32>
    %344 = tpu.matmul %343, %342, %cst_179 {dimension_numbers = #tpu.dot_dimension_numbers<[1], [0], [0], [1], [0, 0, 1, 1], [], []>} : vector<32x16xf32>, vector<16x1xf32>, vector<32x1xf32> -> vector<32x1xf32>
    %c0_180 = arith.constant 0 : index
    %c0_181 = arith.constant 0 : index
    %345 = vector.load %arg45[%c0_180, %c0_181] : memref<32x1xf32, #tpu.memory_space<vmem>>, vector<32x1xf32>
    %346 = arith.addf %344, %345 : vector<32x1xf32>
    %347 = arith.negf %346 : vector<32x1xf32>
    %348 = math.exp %347 : vector<32x1xf32>
    %cst_182 = arith.constant 1.000000e+00 : f32
    %349 = vector.broadcast %cst_182 : f32 to vector<32x1xf32>
    %350 = arith.addf %349, %348 : vector<32x1xf32>
    %351 = arith.divf %349, %350 : vector<32x1xf32>
    %352 = vector.broadcast %351 : vector<32x1xf32> to vector<32x8xf32>
    %353 = arith.mulf %352, %332 : vector<32x8xf32>
    %cst_183 = arith.constant 0.000000e+00 : f32
    %354 = vector.broadcast %cst_183 : f32 to vector<32x3xf32>
    %cst_184 = arith.constant 0.000000e+00 : f32
    %355 = vector.broadcast %cst_184 : f32 to vector<32x3xf32>
    %356 = tpu.concatenate %354, %353, %355 in 1 : vector<32x3xf32>, vector<32x8xf32>, vector<32x3xf32> -> vector<32x14xf32>
    %357 = vector.extract_strided_slice %356 {offsets = [0, 0], sizes = [32, 8], strides = [1, 1]} : vector<32x14xf32> to vector<32x8xf32>
    %358 = vector.extract_strided_slice %356 {offsets = [0, 1], sizes = [32, 8], strides = [1, 1]} : vector<32x14xf32> to vector<32x8xf32>
    %359 = vector.extract_strided_slice %356 {offsets = [0, 2], sizes = [32, 8], strides = [1, 1]} : vector<32x14xf32> to vector<32x8xf32>
    %360 = vector.extract_strided_slice %356 {offsets = [0, 3], sizes = [32, 8], strides = [1, 1]} : vector<32x14xf32> to vector<32x8xf32>
    %361 = vector.extract_strided_slice %356 {offsets = [0, 4], sizes = [32, 8], strides = [1, 1]} : vector<32x14xf32> to vector<32x8xf32>
    %362 = vector.extract_strided_slice %356 {offsets = [0, 5], sizes = [32, 8], strides = [1, 1]} : vector<32x14xf32> to vector<32x8xf32>
    %363 = vector.extract_strided_slice %356 {offsets = [0, 6], sizes = [32, 8], strides = [1, 1]} : vector<32x14xf32> to vector<32x8xf32>
    %364 = tpu.concatenate %357, %358, %359, %360, %361, %362, %363 in 0 : vector<32x8xf32>, vector<32x8xf32>, vector<32x8xf32>, vector<32x8xf32>, vector<32x8xf32>, vector<32x8xf32>, vector<32x8xf32> -> vector<224x8xf32>
    %c0_185 = arith.constant 0 : index
    %c0_186 = arith.constant 0 : index
    %365 = vector.load %arg46[%c0_185, %c0_186] : memref<32x224xf32, #tpu.memory_space<vmem>>, vector<32x224xf32>
    %cst_187 = arith.constant dense<0.000000e+00> : vector<32x8xf32>
    %366 = tpu.matmul %365, %364, %cst_187 {dimension_numbers = #tpu.dot_dimension_numbers<[1], [0], [0], [1], [0, 0, 1, 1], [], []>} : vector<32x224xf32>, vector<224x8xf32>, vector<32x8xf32> -> vector<32x8xf32>
    %c0_188 = arith.constant 0 : index
    %c0_189 = arith.constant 0 : index
    %367 = vector.load %arg47[%c0_188, %c0_189] : memref<32x1xf32, #tpu.memory_space<vmem>>, vector<32x1xf32>
    %368 = vector.broadcast %367 : vector<32x1xf32> to vector<32x8xf32>
    %369 = arith.addf %366, %368 : vector<32x8xf32>
    %cst_190 = arith.constant 0.000000e+00 : f32
    %370 = vector.broadcast %cst_190 : f32 to vector<32x8xf32>
    %371 = arith.maximumf %369, %370 : vector<32x8xf32>
    %cst_191 = arith.constant 0.000000e+00 : f32
    %372 = vector.broadcast %cst_191 : f32 to vector<32x6xf32>
    %cst_192 = arith.constant 0.000000e+00 : f32
    %373 = vector.broadcast %cst_192 : f32 to vector<32x6xf32>
    %374 = tpu.concatenate %372, %371, %373 in 1 : vector<32x6xf32>, vector<32x8xf32>, vector<32x6xf32> -> vector<32x20xf32>
    %375 = vector.extract_strided_slice %374 {offsets = [0, 0], sizes = [32, 8], strides = [1, 1]} : vector<32x20xf32> to vector<32x8xf32>
    %376 = vector.extract_strided_slice %374 {offsets = [0, 3], sizes = [32, 8], strides = [1, 1]} : vector<32x20xf32> to vector<32x8xf32>
    %377 = vector.extract_strided_slice %374 {offsets = [0, 6], sizes = [32, 8], strides = [1, 1]} : vector<32x20xf32> to vector<32x8xf32>
    %378 = vector.extract_strided_slice %374 {offsets = [0, 9], sizes = [32, 8], strides = [1, 1]} : vector<32x20xf32> to vector<32x8xf32>
    %379 = vector.extract_strided_slice %374 {offsets = [0, 12], sizes = [32, 8], strides = [1, 1]} : vector<32x20xf32> to vector<32x8xf32>
    %380 = tpu.concatenate %375, %376, %377, %378, %379 in 0 : vector<32x8xf32>, vector<32x8xf32>, vector<32x8xf32>, vector<32x8xf32>, vector<32x8xf32> -> vector<160x8xf32>
    %c0_193 = arith.constant 0 : index
    %c0_194 = arith.constant 0 : index
    %381 = vector.load %arg48[%c0_193, %c0_194] : memref<32x160xf32, #tpu.memory_space<vmem>>, vector<32x160xf32>
    %cst_195 = arith.constant dense<0.000000e+00> : vector<32x8xf32>
    %382 = tpu.matmul %381, %380, %cst_195 {dimension_numbers = #tpu.dot_dimension_numbers<[1], [0], [0], [1], [0, 0, 1, 1], [], []>} : vector<32x160xf32>, vector<160x8xf32>, vector<32x8xf32> -> vector<32x8xf32>
    %c0_196 = arith.constant 0 : index
    %c0_197 = arith.constant 0 : index
    %383 = vector.load %arg49[%c0_196, %c0_197] : memref<32x1xf32, #tpu.memory_space<vmem>>, vector<32x1xf32>
    %384 = vector.broadcast %383 : vector<32x1xf32> to vector<32x8xf32>
    %385 = arith.addf %382, %384 : vector<32x8xf32>
    %cst_198 = arith.constant 0.000000e+00 : f32
    %386 = vector.broadcast %cst_198 : f32 to vector<32x8xf32>
    %387 = arith.maximumf %385, %386 : vector<32x8xf32>
    %c0_199 = arith.constant 0 : index
    %c0_200 = arith.constant 0 : index
    %388 = vector.load %arg50[%c0_199, %c0_200] : memref<32x32xf32, #tpu.memory_space<vmem>>, vector<32x32xf32>
    %cst_201 = arith.constant dense<0.000000e+00> : vector<32x8xf32>
    %389 = tpu.matmul %388, %387, %cst_201 {dimension_numbers = #tpu.dot_dimension_numbers<[1], [0], [0], [1], [0, 0, 1, 1], [], []>} : vector<32x32xf32>, vector<32x8xf32>, vector<32x8xf32> -> vector<32x8xf32>
    %c0_202 = arith.constant 0 : index
    %c0_203 = arith.constant 0 : index
    %390 = vector.load %arg51[%c0_202, %c0_203] : memref<32x1xf32, #tpu.memory_space<vmem>>, vector<32x1xf32>
    %391 = vector.broadcast %390 : vector<32x1xf32> to vector<32x8xf32>
    %392 = arith.addf %389, %391 : vector<32x8xf32>
    %393 = arith.negf %392 : vector<32x8xf32>
    %394 = math.exp %393 : vector<32x8xf32>
    %cst_204 = arith.constant 1.000000e+00 : f32
    %395 = vector.broadcast %cst_204 : f32 to vector<32x8xf32>
    %396 = arith.addf %395, %394 : vector<32x8xf32>
    %397 = arith.divf %395, %396 : vector<32x8xf32>
    %398 = arith.mulf %397, %332 : vector<32x8xf32>
    %cst_205 = arith.constant 0.000000e+00 : f32
    %399 = vector.broadcast %cst_205 : f32 to vector<32x1xf32>
    %cst_206 = arith.constant 0.000000e+00 : f32
    %400 = vector.broadcast %cst_206 : f32 to vector<32x1xf32>
    %401 = tpu.concatenate %399, %332, %400 in 1 : vector<32x1xf32>, vector<32x8xf32>, vector<32x1xf32> -> vector<32x10xf32>
    %402 = vector.extract_strided_slice %401 {offsets = [0, 0], sizes = [32, 8], strides = [1, 1]} : vector<32x10xf32> to vector<32x8xf32>
    %403 = vector.extract_strided_slice %401 {offsets = [0, 1], sizes = [32, 8], strides = [1, 1]} : vector<32x10xf32> to vector<32x8xf32>
    %404 = vector.extract_strided_slice %401 {offsets = [0, 2], sizes = [32, 8], strides = [1, 1]} : vector<32x10xf32> to vector<32x8xf32>
    %405 = tpu.concatenate %402, %403, %404 in 0 : vector<32x8xf32>, vector<32x8xf32>, vector<32x8xf32> -> vector<96x8xf32>
    %c0_207 = arith.constant 0 : index
    %c0_208 = arith.constant 0 : index
    %406 = vector.load %arg52[%c0_207, %c0_208] : memref<16x96xf32, #tpu.memory_space<vmem>>, vector<16x96xf32>
    %cst_209 = arith.constant dense<0.000000e+00> : vector<16x8xf32>
    %407 = tpu.matmul %406, %405, %cst_209 {dimension_numbers = #tpu.dot_dimension_numbers<[1], [0], [0], [1], [0, 0, 1, 1], [], []>} : vector<16x96xf32>, vector<96x8xf32>, vector<16x8xf32> -> vector<16x8xf32>
    %c0_210 = arith.constant 0 : index
    %c0_211 = arith.constant 0 : index
    %408 = vector.load %arg53[%c0_210, %c0_211] : memref<16x1xf32, #tpu.memory_space<vmem>>, vector<16x1xf32>
    %409 = vector.broadcast %408 : vector<16x1xf32> to vector<16x8xf32>
    %410 = arith.addf %407, %409 : vector<16x8xf32>
    %cst_212 = arith.constant 0.000000e+00 : f32
    %411 = vector.broadcast %cst_212 : f32 to vector<16x8xf32>
    %412 = arith.maximumf %410, %411 : vector<16x8xf32>
    %cst_213 = arith.constant 0.000000e+00 : f32
    %413 = vector.broadcast %cst_213 : f32 to vector<16x5xf32>
    %cst_214 = arith.constant 0.000000e+00 : f32
    %414 = vector.broadcast %cst_214 : f32 to vector<16x5xf32>
    %415 = tpu.concatenate %413, %412, %414 in 1 : vector<16x5xf32>, vector<16x8xf32>, vector<16x5xf32> -> vector<16x18xf32>
    %416 = vector.extract_strided_slice %415 {offsets = [0, 0], sizes = [16, 8], strides = [1, 1]} : vector<16x18xf32> to vector<16x8xf32>
    %417 = vector.extract_strided_slice %415 {offsets = [0, 5], sizes = [16, 8], strides = [1, 1]} : vector<16x18xf32> to vector<16x8xf32>
    %418 = vector.extract_strided_slice %415 {offsets = [0, 10], sizes = [16, 8], strides = [1, 1]} : vector<16x18xf32> to vector<16x8xf32>
    %419 = tpu.concatenate %416, %417, %418 in 0 : vector<16x8xf32>, vector<16x8xf32>, vector<16x8xf32> -> vector<48x8xf32>
    %c0_215 = arith.constant 0 : index
    %c0_216 = arith.constant 0 : index
    %420 = vector.load %arg54[%c0_215, %c0_216] : memref<16x48xf32, #tpu.memory_space<vmem>>, vector<16x48xf32>
    %cst_217 = arith.constant dense<0.000000e+00> : vector<16x8xf32>
    %421 = tpu.matmul %420, %419, %cst_217 {dimension_numbers = #tpu.dot_dimension_numbers<[1], [0], [0], [1], [0, 0, 1, 1], [], []>} : vector<16x48xf32>, vector<48x8xf32>, vector<16x8xf32> -> vector<16x8xf32>
    %c0_218 = arith.constant 0 : index
    %c0_219 = arith.constant 0 : index
    %422 = vector.load %arg55[%c0_218, %c0_219] : memref<16x1xf32, #tpu.memory_space<vmem>>, vector<16x1xf32>
    %423 = vector.broadcast %422 : vector<16x1xf32> to vector<16x8xf32>
    %424 = arith.addf %421, %423 : vector<16x8xf32>
    %cst_220 = arith.constant 0.000000e+00 : f32
    %425 = vector.broadcast %cst_220 : f32 to vector<16x8xf32>
    %426 = arith.maximumf %424, %425 : vector<16x8xf32>
    %cst_221 = arith.constant 0.000000e+00 : f32
    %427 = vector.broadcast %cst_221 : f32 to vector<16x7xf32>
    %cst_222 = arith.constant 0.000000e+00 : f32
    %428 = vector.broadcast %cst_222 : f32 to vector<16x7xf32>
    %429 = tpu.concatenate %427, %426, %428 in 1 : vector<16x7xf32>, vector<16x8xf32>, vector<16x7xf32> -> vector<16x22xf32>
    %430 = vector.extract_strided_slice %429 {offsets = [0, 0], sizes = [16, 8], strides = [1, 1]} : vector<16x22xf32> to vector<16x8xf32>
    %431 = vector.extract_strided_slice %429 {offsets = [0, 7], sizes = [16, 8], strides = [1, 1]} : vector<16x22xf32> to vector<16x8xf32>
    %432 = vector.extract_strided_slice %429 {offsets = [0, 14], sizes = [16, 8], strides = [1, 1]} : vector<16x22xf32> to vector<16x8xf32>
    %433 = tpu.concatenate %430, %431, %432 in 0 : vector<16x8xf32>, vector<16x8xf32>, vector<16x8xf32> -> vector<48x8xf32>
    %c0_223 = arith.constant 0 : index
    %c0_224 = arith.constant 0 : index
    %434 = vector.load %arg56[%c0_223, %c0_224] : memref<32x48xf32, #tpu.memory_space<vmem>>, vector<32x48xf32>
    %cst_225 = arith.constant dense<0.000000e+00> : vector<32x8xf32>
    %435 = tpu.matmul %434, %433, %cst_225 {dimension_numbers = #tpu.dot_dimension_numbers<[1], [0], [0], [1], [0, 0, 1, 1], [], []>} : vector<32x48xf32>, vector<48x8xf32>, vector<32x8xf32> -> vector<32x8xf32>
    %c0_226 = arith.constant 0 : index
    %c0_227 = arith.constant 0 : index
    %436 = vector.load %arg57[%c0_226, %c0_227] : memref<32x1xf32, #tpu.memory_space<vmem>>, vector<32x1xf32>
    %437 = vector.broadcast %436 : vector<32x1xf32> to vector<32x8xf32>
    %438 = arith.addf %435, %437 : vector<32x8xf32>
    %cst_228 = arith.constant 0.000000e+00 : f32
    %439 = vector.broadcast %cst_228 : f32 to vector<32x8xf32>
    %440 = arith.maximumf %438, %439 : vector<32x8xf32>
    %441 = arith.addf %398, %440 : vector<32x8xf32>
    %c0_229 = arith.constant 0 : index
    %c0_230 = arith.constant 0 : index
    %c0_231 = arith.constant 0 : index
    %442 = vector.load %arg80[%c0_229, %c0_230, %c0_231] : memref<1x32x8xf32, #tpu.memory_space<vmem>>, vector<1x32x8xf32>
    %443 = vector.shape_cast %442 : vector<1x32x8xf32> to vector<32x8xf32>
    %444 = vector.shape_cast %441 : vector<32x8xf32> to vector<1x32x8xf32>
    tpu.vector_store %arg80[%c0_229, %c0_230, %c0_231], %444 {strides = array<i32>} : memref<1x32x8xf32, #tpu.memory_space<vmem>>, vector<1x32x8xf32>,
    %cst_232 = arith.constant 0.000000e+00 : f32
    %445 = vector.broadcast %cst_232 : f32 to vector<32x1xf32>
    %cst_233 = arith.constant 0.000000e+00 : f32
    %446 = vector.broadcast %cst_233 : f32 to vector<32x1xf32>
    %447 = tpu.concatenate %445, %441, %446 in 1 : vector<32x1xf32>, vector<32x8xf32>, vector<32x1xf32> -> vector<32x10xf32>
    %448 = vector.extract_strided_slice %447 {offsets = [0, 0], sizes = [32, 8], strides = [1, 1]} : vector<32x10xf32> to vector<32x8xf32>
    %449 = vector.extract_strided_slice %447 {offsets = [0, 1], sizes = [32, 8], strides = [1, 1]} : vector<32x10xf32> to vector<32x8xf32>
    %450 = vector.extract_strided_slice %447 {offsets = [0, 2], sizes = [32, 8], strides = [1, 1]} : vector<32x10xf32> to vector<32x8xf32>
    %451 = tpu.concatenate %448, %449, %450 in 0 : vector<32x8xf32>, vector<32x8xf32>, vector<32x8xf32> -> vector<96x8xf32>
    %c0_234 = arith.constant 0 : index
    %c0_235 = arith.constant 0 : index
    %452 = vector.load %arg58[%c0_234, %c0_235] : memref<32x96xf32, #tpu.memory_space<vmem>>, vector<32x96xf32>
    %cst_236 = arith.constant dense<0.000000e+00> : vector<32x8xf32>
    %453 = tpu.matmul %452, %451, %cst_236 {dimension_numbers = #tpu.dot_dimension_numbers<[1], [0], [0], [1], [0, 0, 1, 1], [], []>} : vector<32x96xf32>, vector<96x8xf32>, vector<32x8xf32> -> vector<32x8xf32>
    %c0_237 = arith.constant 0 : index
    %c0_238 = arith.constant 0 : index
    %454 = vector.load %arg59[%c0_237, %c0_238] : memref<32x1xf32, #tpu.memory_space<vmem>>, vector<32x1xf32>
    %455 = vector.broadcast %454 : vector<32x1xf32> to vector<32x8xf32>
    %456 = arith.addf %453, %455 : vector<32x8xf32>
    %457 = tpu.iota {dimensions = array<i32: 0>} : vector<8x4xi32>
    %458 = tpu.iota {dimensions = array<i32: 1>} : vector<8x4xi32>
    %c2_i32_239 = arith.constant 2 : i32
    %459 = vector.broadcast %c2_i32_239 : i32 to vector<8x4xi32>
    %460 = arith.muli %459, %458 : vector<8x4xi32>
    %461 = arith.cmpi eq, %457, %460 : vector<8x4xi32>
    %462 = arith.extui %461 : vector<8x4xi1> to vector<8x4xi32>
    %463 = arith.sitofp %462 : vector<8x4xi32> to vector<8x4xf32>
    %cst_240 = arith.constant dense<0.000000e+00> : vector<32x4xf32>
    %464 = tpu.matmul %456, %463, %cst_240 {dimension_numbers = #tpu.dot_dimension_numbers<[1], [0], [0], [1], [0, 0, 1, 1], [], []>} : vector<32x8xf32>, vector<8x4xf32>, vector<32x4xf32> -> vector<32x4xf32>
    %cst_241 = arith.constant 0.000000e+00 : f32
    %465 = vector.broadcast %cst_241 : f32 to vector<32x4xf32>
    %466 = arith.maximumf %464, %465 : vector<32x4xf32>
    %cst_242 = arith.constant dense<0.000000e+00> : vector<32xf32>
    %467 = vector.multi_reduction <add>, %466, %cst_242 [1] : vector<32x4xf32> to vector<32xf32>
    %468 = vector.shape_cast %467 : vector<32xf32> to vector<32x1xf32>
    %cst_243 = arith.constant 4.000000e+00 : f32
    %469 = vector.broadcast %cst_243 : f32 to vector<32x1xf32>
    %470 = arith.divf %468, %469 : vector<32x1xf32>
    %c0_244 = arith.constant 0 : index
    %c0_245 = arith.constant 0 : index
    %471 = vector.load %arg60[%c0_244, %c0_245] : memref<16x32xf32, #tpu.memory_space<vmem>>, vector<16x32xf32>
    %cst_246 = arith.constant dense<0.000000e+00> : vector<16x1xf32>
    %472 = tpu.matmul %471, %470, %cst_246 {dimension_numbers = #tpu.dot_dimension_numbers<[1], [0], [0], [1], [0, 0, 1, 1], [], []>} : vector<16x32xf32>, vector<32x1xf32>, vector<16x1xf32> -> vector<16x1xf32>
    %c0_247 = arith.constant 0 : index
    %c0_248 = arith.constant 0 : index
    %473 = vector.load %arg61[%c0_247, %c0_248] : memref<16x1xf32, #tpu.memory_space<vmem>>, vector<16x1xf32>
    %474 = arith.addf %472, %473 : vector<16x1xf32>
    %cst_249 = arith.constant 0.000000e+00 : f32
    %475 = vector.broadcast %cst_249 : f32 to vector<16x1xf32>
    %476 = arith.maximumf %474, %475 : vector<16x1xf32>
    %c0_250 = arith.constant 0 : index
    %c0_251 = arith.constant 0 : index
    %477 = vector.load %arg62[%c0_250, %c0_251] : memref<32x16xf32, #tpu.memory_space<vmem>>, vector<32x16xf32>
    %cst_252 = arith.constant dense<0.000000e+00> : vector<32x1xf32>
    %478 = tpu.matmul %477, %476, %cst_252 {dimension_numbers = #tpu.dot_dimension_numbers<[1], [0], [0], [1], [0, 0, 1, 1], [], []>} : vector<32x16xf32>, vector<16x1xf32>, vector<32x1xf32> -> vector<32x1xf32>
    %c0_253 = arith.constant 0 : index
    %c0_254 = arith.constant 0 : index
    %479 = vector.load %arg63[%c0_253, %c0_254] : memref<32x1xf32, #tpu.memory_space<vmem>>, vector<32x1xf32>
    %480 = arith.addf %478, %479 : vector<32x1xf32>
    %481 = arith.negf %480 : vector<32x1xf32>
    %482 = math.exp %481 : vector<32x1xf32>
    %cst_255 = arith.constant 1.000000e+00 : f32
    %483 = vector.broadcast %cst_255 : f32 to vector<32x1xf32>
    %484 = arith.addf %483, %482 : vector<32x1xf32>
    %485 = arith.divf %483, %484 : vector<32x1xf32>
    %486 = vector.broadcast %485 : vector<32x1xf32> to vector<32x4xf32>
    %487 = arith.mulf %486, %466 : vector<32x4xf32>
    %cst_256 = arith.constant 0.000000e+00 : f32
    %488 = vector.broadcast %cst_256 : f32 to vector<32x3xf32>
    %cst_257 = arith.constant 0.000000e+00 : f32
    %489 = vector.broadcast %cst_257 : f32 to vector<32x3xf32>
    %490 = tpu.concatenate %488, %487, %489 in 1 : vector<32x3xf32>, vector<32x4xf32>, vector<32x3xf32> -> vector<32x10xf32>
    %491 = vector.extract_strided_slice %490 {offsets = [0, 0], sizes = [32, 4], strides = [1, 1]} : vector<32x10xf32> to vector<32x4xf32>
    %492 = vector.extract_strided_slice %490 {offsets = [0, 1], sizes = [32, 4], strides = [1, 1]} : vector<32x10xf32> to vector<32x4xf32>
    %493 = vector.extract_strided_slice %490 {offsets = [0, 2], sizes = [32, 4], strides = [1, 1]} : vector<32x10xf32> to vector<32x4xf32>
    %494 = vector.extract_strided_slice %490 {offsets = [0, 3], sizes = [32, 4], strides = [1, 1]} : vector<32x10xf32> to vector<32x4xf32>
    %495 = vector.extract_strided_slice %490 {offsets = [0, 4], sizes = [32, 4], strides = [1, 1]} : vector<32x10xf32> to vector<32x4xf32>
    %496 = vector.extract_strided_slice %490 {offsets = [0, 5], sizes = [32, 4], strides = [1, 1]} : vector<32x10xf32> to vector<32x4xf32>
    %497 = vector.extract_strided_slice %490 {offsets = [0, 6], sizes = [32, 4], strides = [1, 1]} : vector<32x10xf32> to vector<32x4xf32>
    %498 = tpu.concatenate %491, %492, %493, %494, %495, %496, %497 in 0 : vector<32x4xf32>, vector<32x4xf32>, vector<32x4xf32>, vector<32x4xf32>, vector<32x4xf32>, vector<32x4xf32>, vector<32x4xf32> -> vector<224x4xf32>
    %c0_258 = arith.constant 0 : index
    %c0_259 = arith.constant 0 : index
    %499 = vector.load %arg64[%c0_258, %c0_259] : memref<32x224xf32, #tpu.memory_space<vmem>>, vector<32x224xf32>
    %cst_260 = arith.constant dense<0.000000e+00> : vector<32x4xf32>
    %500 = tpu.matmul %499, %498, %cst_260 {dimension_numbers = #tpu.dot_dimension_numbers<[1], [0], [0], [1], [0, 0, 1, 1], [], []>} : vector<32x224xf32>, vector<224x4xf32>, vector<32x4xf32> -> vector<32x4xf32>
    %c0_261 = arith.constant 0 : index
    %c0_262 = arith.constant 0 : index
    %501 = vector.load %arg65[%c0_261, %c0_262] : memref<32x1xf32, #tpu.memory_space<vmem>>, vector<32x1xf32>
    %502 = vector.broadcast %501 : vector<32x1xf32> to vector<32x4xf32>
    %503 = arith.addf %500, %502 : vector<32x4xf32>
    %cst_263 = arith.constant 0.000000e+00 : f32
    %504 = vector.broadcast %cst_263 : f32 to vector<32x4xf32>
    %505 = arith.maximumf %503, %504 : vector<32x4xf32>
    %cst_264 = arith.constant 0.000000e+00 : f32
    %506 = vector.broadcast %cst_264 : f32 to vector<32x3xf32>
    %cst_265 = arith.constant 0.000000e+00 : f32
    %507 = vector.broadcast %cst_265 : f32 to vector<32x3xf32>
    %508 = tpu.concatenate %506, %505, %507 in 1 : vector<32x3xf32>, vector<32x4xf32>, vector<32x3xf32> -> vector<32x10xf32>
    %509 = vector.extract_strided_slice %508 {offsets = [0, 0], sizes = [32, 4], strides = [1, 1]} : vector<32x10xf32> to vector<32x4xf32>
    %510 = vector.extract_strided_slice %508 {offsets = [0, 3], sizes = [32, 4], strides = [1, 1]} : vector<32x10xf32> to vector<32x4xf32>
    %511 = vector.extract_strided_slice %508 {offsets = [0, 6], sizes = [32, 4], strides = [1, 1]} : vector<32x10xf32> to vector<32x4xf32>
    %512 = tpu.concatenate %509, %510, %511 in 0 : vector<32x4xf32>, vector<32x4xf32>, vector<32x4xf32> -> vector<96x4xf32>
    %c0_266 = arith.constant 0 : index
    %c0_267 = arith.constant 0 : index
    %513 = vector.load %arg66[%c0_266, %c0_267] : memref<32x96xf32, #tpu.memory_space<vmem>>, vector<32x96xf32>
    %cst_268 = arith.constant dense<0.000000e+00> : vector<32x4xf32>
    %514 = tpu.matmul %513, %512, %cst_268 {dimension_numbers = #tpu.dot_dimension_numbers<[1], [0], [0], [1], [0, 0, 1, 1], [], []>} : vector<32x96xf32>, vector<96x4xf32>, vector<32x4xf32> -> vector<32x4xf32>
    %c0_269 = arith.constant 0 : index
    %c0_270 = arith.constant 0 : index
    %515 = vector.load %arg67[%c0_269, %c0_270] : memref<32x1xf32, #tpu.memory_space<vmem>>, vector<32x1xf32>
    %516 = vector.broadcast %515 : vector<32x1xf32> to vector<32x4xf32>
    %517 = arith.addf %514, %516 : vector<32x4xf32>
    %cst_271 = arith.constant 0.000000e+00 : f32
    %518 = vector.broadcast %cst_271 : f32 to vector<32x4xf32>
    %519 = arith.maximumf %517, %518 : vector<32x4xf32>
    %c0_272 = arith.constant 0 : index
    %c0_273 = arith.constant 0 : index
    %520 = vector.load %arg68[%c0_272, %c0_273] : memref<32x32xf32, #tpu.memory_space<vmem>>, vector<32x32xf32>
    %cst_274 = arith.constant dense<0.000000e+00> : vector<32x4xf32>
    %521 = tpu.matmul %520, %519, %cst_274 {dimension_numbers = #tpu.dot_dimension_numbers<[1], [0], [0], [1], [0, 0, 1, 1], [], []>} : vector<32x32xf32>, vector<32x4xf32>, vector<32x4xf32> -> vector<32x4xf32>
    %c0_275 = arith.constant 0 : index
    %c0_276 = arith.constant 0 : index
    %522 = vector.load %arg69[%c0_275, %c0_276] : memref<32x1xf32, #tpu.memory_space<vmem>>, vector<32x1xf32>
    %523 = vector.broadcast %522 : vector<32x1xf32> to vector<32x4xf32>
    %524 = arith.addf %521, %523 : vector<32x4xf32>
    %525 = arith.negf %524 : vector<32x4xf32>
    %526 = math.exp %525 : vector<32x4xf32>
    %cst_277 = arith.constant 1.000000e+00 : f32
    %527 = vector.broadcast %cst_277 : f32 to vector<32x4xf32>
    %528 = arith.addf %527, %526 : vector<32x4xf32>
    %529 = arith.divf %527, %528 : vector<32x4xf32>
    %530 = arith.mulf %529, %466 : vector<32x4xf32>
    %cst_278 = arith.constant 0.000000e+00 : f32
    %531 = vector.broadcast %cst_278 : f32 to vector<32x1xf32>
    %cst_279 = arith.constant 0.000000e+00 : f32
    %532 = vector.broadcast %cst_279 : f32 to vector<32x1xf32>
    %533 = tpu.concatenate %531, %466, %532 in 1 : vector<32x1xf32>, vector<32x4xf32>, vector<32x1xf32> -> vector<32x6xf32>
    %534 = vector.extract_strided_slice %533 {offsets = [0, 0], sizes = [32, 4], strides = [1, 1]} : vector<32x6xf32> to vector<32x4xf32>
    %535 = vector.extract_strided_slice %533 {offsets = [0, 1], sizes = [32, 4], strides = [1, 1]} : vector<32x6xf32> to vector<32x4xf32>
    %536 = vector.extract_strided_slice %533 {offsets = [0, 2], sizes = [32, 4], strides = [1, 1]} : vector<32x6xf32> to vector<32x4xf32>
    %537 = tpu.concatenate %534, %535, %536 in 0 : vector<32x4xf32>, vector<32x4xf32>, vector<32x4xf32> -> vector<96x4xf32>
    %c0_280 = arith.constant 0 : index
    %c0_281 = arith.constant 0 : index
    %538 = vector.load %arg70[%c0_280, %c0_281] : memref<16x96xf32, #tpu.memory_space<vmem>>, vector<16x96xf32>
    %cst_282 = arith.constant dense<0.000000e+00> : vector<16x4xf32>
    %539 = tpu.matmul %538, %537, %cst_282 {dimension_numbers = #tpu.dot_dimension_numbers<[1], [0], [0], [1], [0, 0, 1, 1], [], []>} : vector<16x96xf32>, vector<96x4xf32>, vector<16x4xf32> -> vector<16x4xf32>
    %c0_283 = arith.constant 0 : index
    %c0_284 = arith.constant 0 : index
    %540 = vector.load %arg71[%c0_283, %c0_284] : memref<16x1xf32, #tpu.memory_space<vmem>>, vector<16x1xf32>
    %541 = vector.broadcast %540 : vector<16x1xf32> to vector<16x4xf32>
    %542 = arith.addf %539, %541 : vector<16x4xf32>
    %cst_285 = arith.constant 0.000000e+00 : f32
    %543 = vector.broadcast %cst_285 : f32 to vector<16x4xf32>
    %544 = arith.maximumf %542, %543 : vector<16x4xf32>
    %c0_286 = arith.constant 0 : index
    %c0_287 = arith.constant 0 : index
    %545 = vector.load %arg72[%c0_286, %c0_287] : memref<16x16xf32, #tpu.memory_space<vmem>>, vector<16x16xf32>
    %cst_288 = arith.constant dense<0.000000e+00> : vector<16x4xf32>
    %546 = tpu.matmul %545, %544, %cst_288 {dimension_numbers = #tpu.dot_dimension_numbers<[1], [0], [0], [1], [0, 0, 1, 1], [], []>} : vector<16x16xf32>, vector<16x4xf32>, vector<16x4xf32> -> vector<16x4xf32>
    %c0_289 = arith.constant 0 : index
    %c0_290 = arith.constant 0 : index
    %547 = vector.load %arg73[%c0_289, %c0_290] : memref<16x1xf32, #tpu.memory_space<vmem>>, vector<16x1xf32>
    %548 = vector.broadcast %547 : vector<16x1xf32> to vector<16x4xf32>
    %549 = arith.addf %546, %548 : vector<16x4xf32>
    %cst_291 = arith.constant 0.000000e+00 : f32
    %550 = vector.broadcast %cst_291 : f32 to vector<16x4xf32>
    %551 = arith.maximumf %549, %550 : vector<16x4xf32>
    %c0_292 = arith.constant 0 : index
    %c0_293 = arith.constant 0 : index
    %552 = vector.load %arg74[%c0_292, %c0_293] : memref<32x16xf32, #tpu.memory_space<vmem>>, vector<32x16xf32>
    %cst_294 = arith.constant dense<0.000000e+00> : vector<32x4xf32>
    %553 = tpu.matmul %552, %551, %cst_294 {dimension_numbers = #tpu.dot_dimension_numbers<[1], [0], [0], [1], [0, 0, 1, 1], [], []>} : vector<32x16xf32>, vector<16x4xf32>, vector<32x4xf32> -> vector<32x4xf32>
    %c0_295 = arith.constant 0 : index
    %c0_296 = arith.constant 0 : index
    %554 = vector.load %arg75[%c0_295, %c0_296] : memref<32x1xf32, #tpu.memory_space<vmem>>, vector<32x1xf32>
    %555 = vector.broadcast %554 : vector<32x1xf32> to vector<32x4xf32>
    %556 = arith.addf %553, %555 : vector<32x4xf32>
    %cst_297 = arith.constant 0.000000e+00 : f32
    %557 = vector.broadcast %cst_297 : f32 to vector<32x4xf32>
    %558 = arith.maximumf %556, %557 : vector<32x4xf32>
    %559 = arith.addf %530, %558 : vector<32x4xf32>
    %c0_298 = arith.constant 0 : index
    %c0_299 = arith.constant 0 : index
    %c0_300 = arith.constant 0 : index
    %560 = vector.load %arg76[%c0_298, %c0_299, %c0_300] : memref<1x32x4xf32, #tpu.memory_space<vmem>>, vector<1x32x4xf32>
    %561 = vector.shape_cast %560 : vector<1x32x4xf32> to vector<32x4xf32>
    %562 = vector.shape_cast %559 : vector<32x4xf32> to vector<1x32x4xf32>
    tpu.vector_store %arg76[%c0_298, %c0_299, %c0_300], %562 {strides = array<i32>} : memref<1x32x4xf32, #tpu.memory_space<vmem>>, vector<1x32x4xf32>,
    return
  }
  func.func @transform_0(%arg0: i32) -> (i32, i32, i32) {
    %c0_i32 = arith.constant 0 : i32
    %c0_i32_0 = arith.constant 0 : i32
    %c0_i32_1 = arith.constant 0 : i32
    return %arg0, %c0_i32, %c0_i32_0 : i32, i32, i32
  }
  func.func @transform_1(%arg0: i32) -> (i32, i32) {
    %c0_i32 = arith.constant 0 : i32
    %c0_i32_0 = arith.constant 0 : i32
    %c0_i32_1 = arith.constant 0 : i32
    return %c0_i32, %c0_i32_0 : i32, i32
  }
  func.func @transform_2(%arg0: i32) -> (i32, i32) {
    %c0_i32 = arith.constant 0 : i32
    %c0_i32_0 = arith.constant 0 : i32
    %c0_i32_1 = arith.constant 0 : i32
    return %c0_i32, %c0_i32_0 : i32, i32
  }
  func.func @transform_3(%arg0: i32) -> (i32, i32) {
    %c0_i32 = arith.constant 0 : i32
    %c0_i32_0 = arith.constant 0 : i32
    %c0_i32_1 = arith.constant 0 : i32
    return %c0_i32, %c0_i32_0 : i32, i32
  }
  func.func @transform_4(%arg0: i32) -> (i32, i32) {
    %c0_i32 = arith.constant 0 : i32
    %c0_i32_0 = arith.constant 0 : i32
    %c0_i32_1 = arith.constant 0 : i32
    return %c0_i32, %c0_i32_0 : i32, i32
  }
  func.func @transform_5(%arg0: i32) -> (i32, i32) {
    %c0_i32 = arith.constant 0 : i32
    %c0_i32_0 = arith.constant 0 : i32
    %c0_i32_1 = arith.constant 0 : i32
    return %c0_i32, %c0_i32_0 : i32, i32
  }
  func.func @transform_6(%arg0: i32) -> (i32, i32) {
    %c0_i32 = arith.constant 0 : i32
    %c0_i32_0 = arith.constant 0 : i32
    %c0_i32_1 = arith.constant 0 : i32
    return %c0_i32, %c0_i32_0 : i32, i32
  }
  func.func @transform_7(%arg0: i32) -> (i32, i32) {
    %c0_i32 = arith.constant 0 : i32
    %c0_i32_0 = arith.constant 0 : i32
    %c0_i32_1 = arith.constant 0 : i32
    return %c0_i32, %c0_i32_0 : i32, i32
  }
  func.func @transform_8(%arg0: i32) -> (i32, i32) {
    %c0_i32 = arith.constant 0 : i32
    %c0_i32_0 = arith.constant 0 : i32
    %c0_i32_1 = arith.constant 0 : i32
    return %c0_i32, %c0_i32_0 : i32, i32
  }
  func.func @transform_9(%arg0: i32) -> (i32, i32) {
    %c0_i32 = arith.constant 0 : i32
    %c0_i32_0 = arith.constant 0 : i32
    %c0_i32_1 = arith.constant 0 : i32
    return %c0_i32, %c0_i32_0 : i32, i32
  }
  func.func @transform_10(%arg0: i32) -> (i32, i32) {
    %c0_i32 = arith.constant 0 : i32
    %c0_i32_0 = arith.constant 0 : i32
    %c0_i32_1 = arith.constant 0 : i32
    return %c0_i32, %c0_i32_0 : i32, i32
  }
  func.func @transform_11(%arg0: i32) -> (i32, i32) {
    %c0_i32 = arith.constant 0 : i32
    %c0_i32_0 = arith.constant 0 : i32
    %c0_i32_1 = arith.constant 0 : i32
    return %c0_i32, %c0_i32_0 : i32, i32
  }
  func.func @transform_12(%arg0: i32) -> (i32, i32) {
    %c0_i32 = arith.constant 0 : i32
    %c0_i32_0 = arith.constant 0 : i32
    %c0_i32_1 = arith.constant 0 : i32
    return %c0_i32, %c0_i32_0 : i32, i32
  }
  func.func @transform_13(%arg0: i32) -> (i32, i32) {
    %c0_i32 = arith.constant 0 : i32
    %c0_i32_0 = arith.constant 0 : i32
    %c0_i32_1 = arith.constant 0 : i32
    return %c0_i32, %c0_i32_0 : i32, i32
  }
  func.func @transform_14(%arg0: i32) -> (i32, i32) {
    %c0_i32 = arith.constant 0 : i32
    %c0_i32_0 = arith.constant 0 : i32
    %c0_i32_1 = arith.constant 0 : i32
    return %c0_i32, %c0_i32_0 : i32, i32
  }
  func.func @transform_15(%arg0: i32) -> (i32, i32) {
    %c0_i32 = arith.constant 0 : i32
    %c0_i32_0 = arith.constant 0 : i32
    %c0_i32_1 = arith.constant 0 : i32
    return %c0_i32, %c0_i32_0 : i32, i32
  }
  func.func @transform_16(%arg0: i32) -> (i32, i32) {
    %c0_i32 = arith.constant 0 : i32
    %c0_i32_0 = arith.constant 0 : i32
    %c0_i32_1 = arith.constant 0 : i32
    return %c0_i32, %c0_i32_0 : i32, i32
  }
  func.func @transform_17(%arg0: i32) -> (i32, i32) {
    %c0_i32 = arith.constant 0 : i32
    %c0_i32_0 = arith.constant 0 : i32
    %c0_i32_1 = arith.constant 0 : i32
    return %c0_i32, %c0_i32_0 : i32, i32
  }
  func.func @transform_18(%arg0: i32) -> (i32, i32) {
    %c0_i32 = arith.constant 0 : i32
    %c0_i32_0 = arith.constant 0 : i32
    %c0_i32_1 = arith.constant 0 : i32
    return %c0_i32, %c0_i32_0 : i32, i32
  }
  func.func @transform_19(%arg0: i32) -> (i32, i32) {
    %c0_i32 = arith.constant 0 : i32
    %c0_i32_0 = arith.constant 0 : i32
    %c0_i32_1 = arith.constant 0 : i32
    return %c0_i32, %c0_i32_0 : i32, i32
  }
  func.func @transform_20(%arg0: i32) -> (i32, i32) {
    %c0_i32 = arith.constant 0 : i32
    %c0_i32_0 = arith.constant 0 : i32
    %c0_i32_1 = arith.constant 0 : i32
    return %c0_i32, %c0_i32_0 : i32, i32
  }
  func.func @transform_21(%arg0: i32) -> (i32, i32) {
    %c0_i32 = arith.constant 0 : i32
    %c0_i32_0 = arith.constant 0 : i32
    %c0_i32_1 = arith.constant 0 : i32
    return %c0_i32, %c0_i32_0 : i32, i32
  }
  func.func @transform_22(%arg0: i32) -> (i32, i32) {
    %c0_i32 = arith.constant 0 : i32
    %c0_i32_0 = arith.constant 0 : i32
    %c0_i32_1 = arith.constant 0 : i32
    return %c0_i32, %c0_i32_0 : i32, i32
  }
  func.func @transform_23(%arg0: i32) -> (i32, i32) {
    %c0_i32 = arith.constant 0 : i32
    %c0_i32_0 = arith.constant 0 : i32
    %c0_i32_1 = arith.constant 0 : i32
    return %c0_i32, %c0_i32_0 : i32, i32
  }
  func.func @transform_24(%arg0: i32) -> (i32, i32) {
    %c0_i32 = arith.constant 0 : i32
    %c0_i32_0 = arith.constant 0 : i32
    %c0_i32_1 = arith.constant 0 : i32
    return %c0_i32, %c0_i32_0 : i32, i32
  }
  func.func @transform_25(%arg0: i32) -> (i32, i32) {
    %c0_i32 = arith.constant 0 : i32
    %c0_i32_0 = arith.constant 0 : i32
    %c0_i32_1 = arith.constant 0 : i32
    return %c0_i32, %c0_i32_0 : i32, i32
  }
  func.func @transform_26(%arg0: i32) -> (i32, i32) {
    %c0_i32 = arith.constant 0 : i32
    %c0_i32_0 = arith.constant 0 : i32
    %c0_i32_1 = arith.constant 0 : i32
    return %c0_i32, %c0_i32_0 : i32, i32
  }
  func.func @transform_27(%arg0: i32) -> (i32, i32) {
    %c0_i32 = arith.constant 0 : i32
    %c0_i32_0 = arith.constant 0 : i32
    %c0_i32_1 = arith.constant 0 : i32
    return %c0_i32, %c0_i32_0 : i32, i32
  }
  func.func @transform_28(%arg0: i32) -> (i32, i32) {
    %c0_i32 = arith.constant 0 : i32
    %c0_i32_0 = arith.constant 0 : i32
    %c0_i32_1 = arith.constant 0 : i32
    return %c0_i32, %c0_i32_0 : i32, i32
  }
  func.func @transform_29(%arg0: i32) -> (i32, i32) {
    %c0_i32 = arith.constant 0 : i32
    %c0_i32_0 = arith.constant 0 : i32
    %c0_i32_1 = arith.constant 0 : i32
    return %c0_i32, %c0_i32_0 : i32, i32
  }
  func.func @transform_30(%arg0: i32) -> (i32, i32) {
    %c0_i32 = arith.constant 0 : i32
    %c0_i32_0 = arith.constant 0 : i32
    %c0_i32_1 = arith.constant 0 : i32
    return %c0_i32, %c0_i32_0 : i32, i32
  }
  func.func @transform_31(%arg0: i32) -> (i32, i32) {
    %c0_i32 = arith.constant 0 : i32
    %c0_i32_0 = arith.constant 0 : i32
    %c0_i32_1 = arith.constant 0 : i32
    return %c0_i32, %c0_i32_0 : i32, i32
  }
  func.func @transform_32(%arg0: i32) -> (i32, i32) {
    %c0_i32 = arith.constant 0 : i32
    %c0_i32_0 = arith.constant 0 : i32
    %c0_i32_1 = arith.constant 0 : i32
    return %c0_i32, %c0_i32_0 : i32, i32
  }
  func.func @transform_33(%arg0: i32) -> (i32, i32) {
    %c0_i32 = arith.constant 0 : i32
    %c0_i32_0 = arith.constant 0 : i32
    %c0_i32_1 = arith.constant 0 : i32
    return %c0_i32, %c0_i32_0 : i32, i32
  }
  func.func @transform_34(%arg0: i32) -> (i32, i32) {
    %c0_i32 = arith.constant 0 : i32
    %c0_i32_0 = arith.constant 0 : i32
    %c0_i32_1 = arith.constant 0 : i32
    return %c0_i32, %c0_i32_0 : i32, i32
  }
  func.func @transform_35(%arg0: i32) -> (i32, i32) {
    %c0_i32 = arith.constant 0 : i32
    %c0_i32_0 = arith.constant 0 : i32
    %c0_i32_1 = arith.constant 0 : i32
    return %c0_i32, %c0_i32_0 : i32, i32
  }
  func.func @transform_36(%arg0: i32) -> (i32, i32) {
    %c0_i32 = arith.constant 0 : i32
    %c0_i32_0 = arith.constant 0 : i32
    %c0_i32_1 = arith.constant 0 : i32
    return %c0_i32, %c0_i32_0 : i32, i32
  }
  func.func @transform_37(%arg0: i32) -> (i32, i32) {
    %c0_i32 = arith.constant 0 : i32
    %c0_i32_0 = arith.constant 0 : i32
    %c0_i32_1 = arith.constant 0 : i32
    return %c0_i32, %c0_i32_0 : i32, i32
  }
  func.func @transform_38(%arg0: i32) -> (i32, i32) {
    %c0_i32 = arith.constant 0 : i32
    %c0_i32_0 = arith.constant 0 : i32
    %c0_i32_1 = arith.constant 0 : i32
    return %c0_i32, %c0_i32_0 : i32, i32
  }
  func.func @transform_39(%arg0: i32) -> (i32, i32) {
    %c0_i32 = arith.constant 0 : i32
    %c0_i32_0 = arith.constant 0 : i32
    %c0_i32_1 = arith.constant 0 : i32
    return %c0_i32, %c0_i32_0 : i32, i32
  }
  func.func @transform_40(%arg0: i32) -> (i32, i32) {
    %c0_i32 = arith.constant 0 : i32
    %c0_i32_0 = arith.constant 0 : i32
    %c0_i32_1 = arith.constant 0 : i32
    return %c0_i32, %c0_i32_0 : i32, i32
  }
  func.func @transform_41(%arg0: i32) -> (i32, i32) {
    %c0_i32 = arith.constant 0 : i32
    %c0_i32_0 = arith.constant 0 : i32
    %c0_i32_1 = arith.constant 0 : i32
    return %c0_i32, %c0_i32_0 : i32, i32
  }
  func.func @transform_42(%arg0: i32) -> (i32, i32) {
    %c0_i32 = arith.constant 0 : i32
    %c0_i32_0 = arith.constant 0 : i32
    %c0_i32_1 = arith.constant 0 : i32
    return %c0_i32, %c0_i32_0 : i32, i32
  }
  func.func @transform_43(%arg0: i32) -> (i32, i32) {
    %c0_i32 = arith.constant 0 : i32
    %c0_i32_0 = arith.constant 0 : i32
    %c0_i32_1 = arith.constant 0 : i32
    return %c0_i32, %c0_i32_0 : i32, i32
  }
  func.func @transform_44(%arg0: i32) -> (i32, i32) {
    %c0_i32 = arith.constant 0 : i32
    %c0_i32_0 = arith.constant 0 : i32
    %c0_i32_1 = arith.constant 0 : i32
    return %c0_i32, %c0_i32_0 : i32, i32
  }
  func.func @transform_45(%arg0: i32) -> (i32, i32) {
    %c0_i32 = arith.constant 0 : i32
    %c0_i32_0 = arith.constant 0 : i32
    %c0_i32_1 = arith.constant 0 : i32
    return %c0_i32, %c0_i32_0 : i32, i32
  }
  func.func @transform_46(%arg0: i32) -> (i32, i32) {
    %c0_i32 = arith.constant 0 : i32
    %c0_i32_0 = arith.constant 0 : i32
    %c0_i32_1 = arith.constant 0 : i32
    return %c0_i32, %c0_i32_0 : i32, i32
  }
  func.func @transform_47(%arg0: i32) -> (i32, i32) {
    %c0_i32 = arith.constant 0 : i32
    %c0_i32_0 = arith.constant 0 : i32
    %c0_i32_1 = arith.constant 0 : i32
    return %c0_i32, %c0_i32_0 : i32, i32
  }
  func.func @transform_48(%arg0: i32) -> (i32, i32) {
    %c0_i32 = arith.constant 0 : i32
    %c0_i32_0 = arith.constant 0 : i32
    %c0_i32_1 = arith.constant 0 : i32
    return %c0_i32, %c0_i32_0 : i32, i32
  }
  func.func @transform_49(%arg0: i32) -> (i32, i32) {
    %c0_i32 = arith.constant 0 : i32
    %c0_i32_0 = arith.constant 0 : i32
    %c0_i32_1 = arith.constant 0 : i32
    return %c0_i32, %c0_i32_0 : i32, i32
  }
  func.func @transform_50(%arg0: i32) -> (i32, i32) {
    %c0_i32 = arith.constant 0 : i32
    %c0_i32_0 = arith.constant 0 : i32
    %c0_i32_1 = arith.constant 0 : i32
    return %c0_i32, %c0_i32_0 : i32, i32
  }
  func.func @transform_51(%arg0: i32) -> (i32, i32) {
    %c0_i32 = arith.constant 0 : i32
    %c0_i32_0 = arith.constant 0 : i32
    %c0_i32_1 = arith.constant 0 : i32
    return %c0_i32, %c0_i32_0 : i32, i32
  }
  func.func @transform_52(%arg0: i32) -> (i32, i32) {
    %c0_i32 = arith.constant 0 : i32
    %c0_i32_0 = arith.constant 0 : i32
    %c0_i32_1 = arith.constant 0 : i32
    return %c0_i32, %c0_i32_0 : i32, i32
  }
  func.func @transform_53(%arg0: i32) -> (i32, i32) {
    %c0_i32 = arith.constant 0 : i32
    %c0_i32_0 = arith.constant 0 : i32
    %c0_i32_1 = arith.constant 0 : i32
    return %c0_i32, %c0_i32_0 : i32, i32
  }
  func.func @transform_54(%arg0: i32) -> (i32, i32) {
    %c0_i32 = arith.constant 0 : i32
    %c0_i32_0 = arith.constant 0 : i32
    %c0_i32_1 = arith.constant 0 : i32
    return %c0_i32, %c0_i32_0 : i32, i32
  }
  func.func @transform_55(%arg0: i32) -> (i32, i32) {
    %c0_i32 = arith.constant 0 : i32
    %c0_i32_0 = arith.constant 0 : i32
    %c0_i32_1 = arith.constant 0 : i32
    return %c0_i32, %c0_i32_0 : i32, i32
  }
  func.func @transform_56(%arg0: i32) -> (i32, i32) {
    %c0_i32 = arith.constant 0 : i32
    %c0_i32_0 = arith.constant 0 : i32
    %c0_i32_1 = arith.constant 0 : i32
    return %c0_i32, %c0_i32_0 : i32, i32
  }
  func.func @transform_57(%arg0: i32) -> (i32, i32) {
    %c0_i32 = arith.constant 0 : i32
    %c0_i32_0 = arith.constant 0 : i32
    %c0_i32_1 = arith.constant 0 : i32
    return %c0_i32, %c0_i32_0 : i32, i32
  }
  func.func @transform_58(%arg0: i32) -> (i32, i32) {
    %c0_i32 = arith.constant 0 : i32
    %c0_i32_0 = arith.constant 0 : i32
    %c0_i32_1 = arith.constant 0 : i32
    return %c0_i32, %c0_i32_0 : i32, i32
  }
  func.func @transform_59(%arg0: i32) -> (i32, i32) {
    %c0_i32 = arith.constant 0 : i32
    %c0_i32_0 = arith.constant 0 : i32
    %c0_i32_1 = arith.constant 0 : i32
    return %c0_i32, %c0_i32_0 : i32, i32
  }
  func.func @transform_60(%arg0: i32) -> (i32, i32) {
    %c0_i32 = arith.constant 0 : i32
    %c0_i32_0 = arith.constant 0 : i32
    %c0_i32_1 = arith.constant 0 : i32
    return %c0_i32, %c0_i32_0 : i32, i32
  }
  func.func @transform_61(%arg0: i32) -> (i32, i32) {
    %c0_i32 = arith.constant 0 : i32
    %c0_i32_0 = arith.constant 0 : i32
    %c0_i32_1 = arith.constant 0 : i32
    return %c0_i32, %c0_i32_0 : i32, i32
  }
  func.func @transform_62(%arg0: i32) -> (i32, i32) {
    %c0_i32 = arith.constant 0 : i32
    %c0_i32_0 = arith.constant 0 : i32
    %c0_i32_1 = arith.constant 0 : i32
    return %c0_i32, %c0_i32_0 : i32, i32
  }
  func.func @transform_63(%arg0: i32) -> (i32, i32) {
    %c0_i32 = arith.constant 0 : i32
    %c0_i32_0 = arith.constant 0 : i32
    %c0_i32_1 = arith.constant 0 : i32
    return %c0_i32, %c0_i32_0 : i32, i32
  }
  func.func @transform_64(%arg0: i32) -> (i32, i32) {
    %c0_i32 = arith.constant 0 : i32
    %c0_i32_0 = arith.constant 0 : i32
    %c0_i32_1 = arith.constant 0 : i32
    return %c0_i32, %c0_i32_0 : i32, i32
  }
  func.func @transform_65(%arg0: i32) -> (i32, i32) {
    %c0_i32 = arith.constant 0 : i32
    %c0_i32_0 = arith.constant 0 : i32
    %c0_i32_1 = arith.constant 0 : i32
    return %c0_i32, %c0_i32_0 : i32, i32
  }
  func.func @transform_66(%arg0: i32) -> (i32, i32) {
    %c0_i32 = arith.constant 0 : i32
    %c0_i32_0 = arith.constant 0 : i32
    %c0_i32_1 = arith.constant 0 : i32
    return %c0_i32, %c0_i32_0 : i32, i32
  }
  func.func @transform_67(%arg0: i32) -> (i32, i32) {
    %c0_i32 = arith.constant 0 : i32
    %c0_i32_0 = arith.constant 0 : i32
    %c0_i32_1 = arith.constant 0 : i32
    return %c0_i32, %c0_i32_0 : i32, i32
  }
  func.func @transform_68(%arg0: i32) -> (i32, i32) {
    %c0_i32 = arith.constant 0 : i32
    %c0_i32_0 = arith.constant 0 : i32
    %c0_i32_1 = arith.constant 0 : i32
    return %c0_i32, %c0_i32_0 : i32, i32
  }
  func.func @transform_69(%arg0: i32) -> (i32, i32) {
    %c0_i32 = arith.constant 0 : i32
    %c0_i32_0 = arith.constant 0 : i32
    %c0_i32_1 = arith.constant 0 : i32
    return %c0_i32, %c0_i32_0 : i32, i32
  }
  func.func @transform_70(%arg0: i32) -> (i32, i32) {
    %c0_i32 = arith.constant 0 : i32
    %c0_i32_0 = arith.constant 0 : i32
    %c0_i32_1 = arith.constant 0 : i32
    return %c0_i32, %c0_i32_0 : i32, i32
  }
  func.func @transform_71(%arg0: i32) -> (i32, i32) {
    %c0_i32 = arith.constant 0 : i32
    %c0_i32_0 = arith.constant 0 : i32
    %c0_i32_1 = arith.constant 0 : i32
    return %c0_i32, %c0_i32_0 : i32, i32
  }
  func.func @transform_72(%arg0: i32) -> (i32, i32) {
    %c0_i32 = arith.constant 0 : i32
    %c0_i32_0 = arith.constant 0 : i32
    %c0_i32_1 = arith.constant 0 : i32
    return %c0_i32, %c0_i32_0 : i32, i32
  }
  func.func @transform_73(%arg0: i32) -> (i32, i32) {
    %c0_i32 = arith.constant 0 : i32
    %c0_i32_0 = arith.constant 0 : i32
    %c0_i32_1 = arith.constant 0 : i32
    return %c0_i32, %c0_i32_0 : i32, i32
  }
  func.func @transform_74(%arg0: i32) -> (i32, i32) {
    %c0_i32 = arith.constant 0 : i32
    %c0_i32_0 = arith.constant 0 : i32
    %c0_i32_1 = arith.constant 0 : i32
    return %c0_i32, %c0_i32_0 : i32, i32
  }
  func.func @transform_75(%arg0: i32) -> (i32, i32, i32) {
    %c0_i32 = arith.constant 0 : i32
    %c0_i32_0 = arith.constant 0 : i32
    %c0_i32_1 = arith.constant 0 : i32
    return %arg0, %c0_i32, %c0_i32_0 : i32, i32, i32
  }
  func.func @transform_76(%arg0: i32) -> (i32, i32, i32) {
    %c0_i32 = arith.constant 0 : i32
    %c0_i32_0 = arith.constant 0 : i32
    %c0_i32_1 = arith.constant 0 : i32
    return %arg0, %c0_i32, %c0_i32_0 : i32, i32, i32
  }
  func.func @transform_77(%arg0: i32) -> (i32, i32, i32) {
    %c0_i32 = arith.constant 0 : i32
    %c0_i32_0 = arith.constant 0 : i32
    %c0_i32_1 = arith.constant 0 : i32
    return %arg0, %c0_i32, %c0_i32_0 : i32, i32, i32
  }
  func.func @transform_78(%arg0: i32) -> (i32, i32, i32) {
    %c0_i32 = arith.constant 0 : i32
    %c0_i32_0 = arith.constant 0 : i32
    %c0_i32_1 = arith.constant 0 : i32
    return %arg0, %c0_i32, %c0_i32_0 : i32, i32, i32
  }
  func.func @transform_79(%arg0: i32) -> (i32, i32, i32) {
    %c0_i32 = arith.constant 0 : i32
    %c0_i32_0 = arith.constant 0 : i32
    %c0_i32_1 = arith.constant 0 : i32
    return %arg0, %c0_i32, %c0_i32_0 : i32, i32, i32
  }
}

</mosaic_0001>

<bundles_post_ra>
// kernel: forward.1
= control target key start
LH: loop header
LB: loop body
LE: loop exit
PB: predicated region body
PF: predicated region fallthrough
CT: control target
= control target key end

     0   :  { %s10826_s6 = smov 1   ;;  %s10827_s10 = smov 2   ;;  %s12482_s0 = inlined_call_operand.smem [shape: u32[80], index: -1, kind: input, shape index: {}] }
   0x1   :  { %s10953_s5 = sld [smem:[%s12482_s0]]   ;;  %s10828_s14 = smov 3  }
   0x2   :  { %s10958_s9 = sld [smem:[%s12482_s0 + %s10826_s6]]   ;;  %s10829_s18 = smov 4  }
   0x3   :  { %s10963_s13 = sld [smem:[%s12482_s0 + %s10827_s10]]   ;;  %s10830_s22 = smov 5  }
   0x4   :  { %s10968_s17 = sld [smem:[%s12482_s0 + %s10828_s14]]   ;;  %s10831_s26 = smov 6  }
   0x5   :  { %s10973_s21 = sld [smem:[%s12482_s0 + %s10829_s18]]   ;;  %s10832_s30 = smov 7  }
   0x6   :  { %s10978_s25 = sld [smem:[%s12482_s0 + %s10830_s22]]   ;;  %s10833_s4 = smov 8  }
   0x7   :  { %12639 = sst [smem:[#allocation9_spill]] %s10953_s5  ;;  %s10834_s10 = smov 9  }
   0x8   :  { %12640 = sst [smem:[#allocation10_spill]] %s10958_s9  ;;  %s10835_s15 = smov 10  }
   0x9   :  { %12641 = sst [smem:[#allocation11_spill]] %s10963_s13  ;;  %s10836_s20 = smov 11  }
   0xa   :  { %12642 = sst [smem:[#allocation12_spill]] %s10968_s17  ;;  %s10838_s1 = smov 13  }
   0xb   :  { %12643 = sst [smem:[#allocation13_spill]] %s10973_s21  ;;  %s10839_s7 = smov 14  }
   0xc   :  { %12644 = sst [smem:[#allocation14_spill]] %s10978_s25  ;;  %s10841_s22 = smov 16  }
   0xd   :  { %s10983_s29 = sld [smem:[%s12482_s0 + %s10831_s26]]   ;;  %s10837_s26 = smov 12  }
   0xe   :  { %s10988_s3 = sld [smem:[%s12482_s0 + %s10832_s30]]   ;;  %s10842_s28 = smov 17  }
   0xf   :  { %s10993_s8 = sld [smem:[%s12482_s0 + %s10833_s4]]  }
  0x10   :  { %s10998_s14 = sld [smem:[%s12482_s0 + %s10834_s10]]  }
  0x11   :  { %s11003_s19 = sld [smem:[%s12482_s0 + %s10835_s15]]   ;;  %s10840_s15 = smov 15  }
  0x12   :  { %s11008_s24 = sld [smem:[%s12482_s0 + %s10836_s20]]  }
  0x13   :  { %12645 = sst [smem:[#allocation15_spill]] %s10983_s29 }
  0x14   :  { %12646 = sst [smem:[#allocation16_spill]] %s10988_s3 }
  0x15   :  { %12647 = sst [smem:[#allocation17_spill]] %s10993_s8 }
  0x16   :  { %12648 = sst [smem:[#allocation18_spill]] %s10998_s14 }
  0x17   :  { %12649 = sst [smem:[#allocation19_spill]] %s11003_s19 }
  0x18   :  { %12650 = sst [smem:[#allocation20_spill]] %s11008_s24 }
  0x19   :  { %s11013_s30 = sld [smem:[%s12482_s0 + %s10837_s26]]  }
  0x1a   :  { %s11018_s6 = sld [smem:[%s12482_s0 + %s10838_s1]]  }
  0x1b   :  { %s11023_s12 = sld [smem:[%s12482_s0 + %s10839_s7]]   ;;  %s10843_s7 = smov 18  }
  0x1c   :  { %s11028_s20 = sld [smem:[%s12482_s0 + %s10840_s15]]   ;;  %s10844_s15 = smov 19  }
  0x1d   :  { %s11033_s27 = sld [smem:[%s12482_s0 + %s10841_s22]]   ;;  %s10845_s22 = smov 20  }
  0x1e   :  { %s11038_s4 = sld [smem:[%s12482_s0 + %s10842_s28]]   ;;  %s10846_s28 = smov 21  }
  0x1f   :  { %12651 = sst [smem:[#allocation21_spill]] %s11013_s30 }
  0x20   :  { %12652 = sst [smem:[#allocation22_spill]] %s11018_s6 }
  0x21   :  { %12653 = sst [smem:[#allocation23_spill]] %s11023_s12 }
  0x22   :  { %12654 = sst [smem:[#allocation24_spill]] %s11028_s20 }
  0x23   :  { %12655 = sst [smem:[#allocation25_spill]] %s11033_s27 }
  0x24   :  { %12656 = sst [smem:[#allocation26_spill]] %s11038_s4 }
  0x25   :  { %s11043_s12 = sld [smem:[%s12482_s0 + %s10843_s7]]   ;;  %s10847_s7 = smov 22  }
  0x26   :  { %s11048_s20 = sld [smem:[%s12482_s0 + %s10844_s15]]   ;;  %s10848_s15 = smov 23  }
  0x27   :  { %s11053_s6 = sld [smem:[%s12482_s0 + %s10845_s22]]   ;;  %s10849_s22 = smov 24  }
  0x28   :  { %s11058_s4 = sld [smem:[%s12482_s0 + %s10846_s28]]   ;;  %s10850_s28 = smov 25  }
  0x2b   :  { %12657 = sst [smem:[#allocation27_spill]] %s11043_s12 }
  0x2c   :  { %12658 = sst [smem:[#allocation28_spill]] %s11048_s20 }
  0x2d   :  { %12659 = sst [smem:[#allocation29_spill]] %s11053_s6 }
  0x2e   :  { %12660 = sst [smem:[#allocation30_spill]] %s11058_s4 }
  0x2f   :  { %s11063_s12 = sld [smem:[%s12482_s0 + %s10847_s7]]   ;;  %s10851_s7 = smov 26  }
  0x30   :  { %s11068_s20 = sld [smem:[%s12482_s0 + %s10848_s15]]   ;;  %s10852_s15 = smov 27  }
  0x31   :  { %s11073_s6 = sld [smem:[%s12482_s0 + %s10849_s22]]   ;;  %s10853_s22 = smov 28  }
  0x32   :  { %s11078_s4 = sld [smem:[%s12482_s0 + %s10850_s28]]   ;;  %s10854_s28 = smov 29  }
  0x35   :  { %12661 = sst [smem:[#allocation31_spill]] %s11063_s12 }
  0x36   :  { %12662 = sst [smem:[#allocation32_spill]] %s11068_s20 }
  0x37   :  { %12663 = sst [smem:[#allocation33_spill]] %s11073_s6 }
  0x38   :  { %12664 = sst [smem:[#allocation34_spill]] %s11078_s4 }
  0x39   :  { %s11083_s12 = sld [smem:[%s12482_s0 + %s10851_s7]]   ;;  %s10855_s7 = smov 30  }
  0x3a   :  { %s11088_s20 = sld [smem:[%s12482_s0 + %s10852_s15]]   ;;  %s10856_s15 = smov 31  }
  0x3b   :  { %s11093_s6 = sld [smem:[%s12482_s0 + %s10853_s22]]   ;;  %s10857_s22 = smov 32  }
  0x3c   :  { %s11098_s4 = sld [smem:[%s12482_s0 + %s10854_s28]]   ;;  %s10858_s28 = smov 33  }
  0x3f   :  { %12665 = sst [smem:[#allocation35_spill]] %s11083_s12 }
  0x40   :  { %12666 = sst [smem:[#allocation36_spill]] %s11088_s20 }
  0x41   :  { %12667 = sst [smem:[#allocation37_spill]] %s11093_s6 }
  0x42   :  { %12668 = sst [smem:[#allocation38_spill]] %s11098_s4 }
  0x43   :  { %s11103_s12 = sld [smem:[%s12482_s0 + %s10855_s7]]   ;;  %s10859_s7 = smov 34  }
  0x44   :  { %s11108_s20 = sld [smem:[%s12482_s0 + %s10856_s15]]   ;;  %s10860_s15 = smov 35  }
  0x45   :  { %s11113_s6 = sld [smem:[%s12482_s0 + %s10857_s22]]   ;;  %s10861_s22 = smov 36  }
  0x46   :  { %s11118_s4 = sld [smem:[%s12482_s0 + %s10858_s28]]   ;;  %s10862_s28 = smov 37  }
  0x49   :  { %12669 = sst [smem:[#allocation39_spill]] %s11103_s12 }
  0x4a   :  { %12670 = sst [smem:[#allocation40_spill]] %s11108_s20 }
  0x4b   :  { %12671 = sst [smem:[#allocation41_spill]] %s11113_s6 }
  0x4c   :  { %12672 = sst [smem:[#allocation42_spill]] %s11118_s4 }
  0x4d   :  { %s11123_s12 = sld [smem:[%s12482_s0 + %s10859_s7]]   ;;  %s10863_s7 = smov 38  }
  0x4e   :  { %s11128_s20 = sld [smem:[%s12482_s0 + %s10860_s15]]   ;;  %s10864_s15 = smov 39  }
  0x4f   :  { %s11133_s6 = sld [smem:[%s12482_s0 + %s10861_s22]]   ;;  %s10865_s22 = smov 40  }
  0x50   :  { %s11138_s4 = sld [smem:[%s12482_s0 + %s10862_s28]]   ;;  %s10866_s28 = smov 41  }
  0x53   :  { %12673 = sst [smem:[#allocation43_spill]] %s11123_s12 }
  0x54   :  { %12674 = sst [smem:[#allocation44_spill]] %s11128_s20 }
  0x55   :  { %12675 = sst [smem:[#allocation45_spill]] %s11133_s6 }
  0x56   :  { %12676 = sst [smem:[#allocation46_spill]] %s11138_s4 }
  0x57   :  { %s11143_s12 = sld [smem:[%s12482_s0 + %s10863_s7]]   ;;  %s10867_s7 = smov 42  }
  0x58   :  { %s11148_s20 = sld [smem:[%s12482_s0 + %s10864_s15]]   ;;  %s10868_s15 = smov 43  }
  0x59   :  { %s11153_s6 = sld [smem:[%s12482_s0 + %s10865_s22]]   ;;  %s10869_s22 = smov 44  }
  0x5a   :  { %s11158_s4 = sld [smem:[%s12482_s0 + %s10866_s28]]   ;;  %s10870_s28 = smov 45  }
  0x5d   :  { %12677 = sst [smem:[#allocation47_spill]] %s11143_s12 }
  0x5e   :  { %12678 = sst [smem:[#allocation48_spill]] %s11148_s20 }
  0x5f   :  { %12679 = sst [smem:[#allocation49_spill]] %s11153_s6 }
  0x60   :  { %12680 = sst [smem:[#allocation50_spill]] %s11158_s4 }
  0x61   :  { %s11163_s12 = sld [smem:[%s12482_s0 + %s10867_s7]]   ;;  %s10871_s7 = smov 46  }
  0x62   :  { %s11168_s20 = sld [smem:[%s12482_s0 + %s10868_s15]]   ;;  %s10872_s15 = smov 47  }
  0x63   :  { %s11173_s6 = sld [smem:[%s12482_s0 + %s10869_s22]]   ;;  %s10873_s22 = smov 48  }
  0x64   :  { %s11178_s4 = sld [smem:[%s12482_s0 + %s10870_s28]]   ;;  %s10874_s28 = smov 49  }
  0x67   :  { %12681 = sst [smem:[#allocation51_spill]] %s11163_s12 }
  0x68   :  { %12682 = sst [smem:[#allocation52_spill]] %s11168_s20 }
  0x69   :  { %12683 = sst [smem:[#allocation53_spill]] %s11173_s6 }
  0x6a   :  { %12684 = sst [smem:[#allocation54_spill]] %s11178_s4 }
  0x6b   :  { %s11183_s12 = sld [smem:[%s12482_s0 + %s10871_s7]]   ;;  %s10875_s7 = smov 50  }
  0x6c   :  { %s11188_s20 = sld [smem:[%s12482_s0 + %s10872_s15]]   ;;  %s10876_s15 = smov 51  }
  0x6d   :  { %s11193_s6 = sld [smem:[%s12482_s0 + %s10873_s22]]   ;;  %s10877_s22 = smov 52  }
  0x6e   :  { %s11198_s4 = sld [smem:[%s12482_s0 + %s10874_s28]]   ;;  %s10878_s28 = smov 53  }
  0x71   :  { %12685 = sst [smem:[#allocation55_spill]] %s11183_s12 }
  0x72   :  { %12686 = sst [smem:[#allocation56_spill]] %s11188_s20 }
  0x73   :  { %12687 = sst [smem:[#allocation57_spill]] %s11193_s6 }
  0x74   :  { %12688 = sst [smem:[#allocation58_spill]] %s11198_s4 }
  0x75   :  { %s11203_s12 = sld [smem:[%s12482_s0 + %s10875_s7]]   ;;  %s10879_s7 = smov 54  }
  0x76   :  { %s11208_s20 = sld [smem:[%s12482_s0 + %s10876_s15]]   ;;  %s10880_s15 = smov 55  }
  0x77   :  { %s11213_s6 = sld [smem:[%s12482_s0 + %s10877_s22]]   ;;  %s10881_s22 = smov 56  }
  0x78   :  { %s11218_s4 = sld [smem:[%s12482_s0 + %s10878_s28]]   ;;  %s10882_s28 = smov 57  }
  0x7b   :  { %12689 = sst [smem:[#allocation59_spill]] %s11203_s12 }
  0x7c   :  { %12690 = sst [smem:[#allocation60_spill]] %s11208_s20 }
  0x7d   :  { %12691 = sst [smem:[#allocation61_spill]] %s11213_s6 }
  0x7e   :  { %12692 = sst [smem:[#allocation62_spill]] %s11218_s4 }
  0x7f   :  { %s11223_s12 = sld [smem:[%s12482_s0 + %s10879_s7]]   ;;  %s10883_s7 = smov 58  }
  0x80   :  { %s11228_s20 = sld [smem:[%s12482_s0 + %s10880_s15]]   ;;  %s10884_s15 = smov 59  }
  0x81   :  { %s11233_s6 = sld [smem:[%s12482_s0 + %s10881_s22]]   ;;  %s10885_s22 = smov 60  }
  0x82   :  { %s11238_s4 = sld [smem:[%s12482_s0 + %s10882_s28]]   ;;  %s10886_s28 = smov 61  }
  0x85   :  { %12693 = sst [smem:[#allocation63_spill]] %s11223_s12 }
  0x86   :  { %12694 = sst [smem:[#allocation64_spill]] %s11228_s20 }
  0x87   :  { %12695 = sst [smem:[#allocation65_spill]] %s11233_s6 }
  0x88   :  { %12696 = sst [smem:[#allocation66_spill]] %s11238_s4 }
  0x89   :  { %s11243_s12 = sld [smem:[%s12482_s0 + %s10883_s7]]   ;;  %s10887_s7 = smov 62  }
  0x8a   :  { %s11248_s20 = sld [smem:[%s12482_s0 + %s10884_s15]]   ;;  %s10888_s15 = smov 63  }
  0x8b   :  { %s11253_s6 = sld [smem:[%s12482_s0 + %s10885_s22]]   ;;  %s10889_s22 = smov 64  }
  0x8c   :  { %s11258_s4 = sld [smem:[%s12482_s0 + %s10886_s28]]   ;;  %s10890_s28 = smov 65  }
  0x8f   :  { %12697 = sst [smem:[#allocation67_spill]] %s11243_s12 }
  0x90   :  { %12698 = sst [smem:[#allocation68_spill]] %s11248_s20 }
  0x91   :  { %12699 = sst [smem:[#allocation69_spill]] %s11253_s6 }
  0x92   :  { %12700 = sst [smem:[#allocation70_spill]] %s11258_s4 }
  0x93   :  { %s11263_s12 = sld [smem:[%s12482_s0 + %s10887_s7]]   ;;  %s10891_s7 = smov 66  }
  0x94   :  { %s11268_s20 = sld [smem:[%s12482_s0 + %s10888_s15]]   ;;  %s10892_s15 = smov 67  }
  0x95   :  { %s11273_s6 = sld [smem:[%s12482_s0 + %s10889_s22]]   ;;  %s10893_s22 = smov 68  }
  0x96   :  { %s11278_s4 = sld [smem:[%s12482_s0 + %s10890_s28]]   ;;  %s10894_s28 = smov 69  }
  0x99   :  { %12701 = sst [smem:[#allocation71_spill]] %s11263_s12 }
  0x9a   :  { %12702 = sst [smem:[#allocation72_spill]] %s11268_s20 }
  0x9b   :  { %12703 = sst [smem:[#allocation73_spill]] %s11273_s6 }
  0x9c   :  { %12704 = sst [smem:[#allocation74_spill]] %s11278_s4 }
  0x9d   :  { %s11283_s12 = sld [smem:[%s12482_s0 + %s10891_s7]]   ;;  %s10895_s7 = smov 70  }
  0x9e   :  { %s11288_s20 = sld [smem:[%s12482_s0 + %s10892_s15]]   ;;  %s10896_s15 = smov 71  }
  0x9f   :  { %s11293_s6 = sld [smem:[%s12482_s0 + %s10893_s22]]   ;;  %s10897_s22 = smov 72  }
  0xa0   :  { %s11298_s4 = sld [smem:[%s12482_s0 + %s10894_s28]]   ;;  %s10898_s28 = smov 73  }
  0xa3   :  { %12705 = sst [smem:[#allocation75_spill]] %s11283_s12 }
  0xa4   :  { %12706 = sst [smem:[#allocation76_spill]] %s11288_s20 }
  0xa5   :  { %12707 = sst [smem:[#allocation77_spill]] %s11293_s6 }
  0xa6   :  { %12708 = sst [smem:[#allocation78_spill]] %s11298_s4 }
  0xa7   :  { %s11303_s12 = sld [smem:[%s12482_s0 + %s10895_s7]]   ;;  %s10899_s7 = smov 74  }
  0xa8   :  { %s11308_s20 = sld [smem:[%s12482_s0 + %s10896_s15]]   ;;  %s10900_s15 = smov 75  }
  0xa9   :  { %s11313_s6 = sld [smem:[%s12482_s0 + %s10897_s22]]   ;;  %s10901_s22 = smov 76  }
  0xaa   :  { %s11318_s4 = sld [smem:[%s12482_s0 + %s10898_s28]]   ;;  %s10902_s28 = smov 77  }
  0xad   :  { %12709 = sst [smem:[#allocation79_spill]] %s11303_s12 }
  0xae   :  { %12710 = sst [smem:[#allocation80_spill]] %s11308_s20 }
  0xaf   :  { %12711 = sst [smem:[#allocation81_spill]] %s11313_s6 }
  0xb0   :  { %12712 = sst [smem:[#allocation82_spill]] %s11318_s4 }
  0xb1   :  { %s11323_s12 = sld [smem:[%s12482_s0 + %s10899_s7]]   ;;  %s10903_s7 = smov 78  }
  0xb2   :  { %s11328_s20 = sld [smem:[%s12482_s0 + %s10900_s15]]   ;;  %s10904_s15 = smov 79  }
  0xb3   :  { %s11333_s6 = sld [smem:[%s12482_s0 + %s10901_s22]]  }
  0xb4   :  { %s11338_s4 = sld [smem:[%s12482_s0 + %s10902_s28]]  }
  0xb7   :  { %12713 = sst [smem:[#allocation83_spill]] %s11323_s12 }
  0xb8   :  { %12714 = sst [smem:[#allocation84_spill]] %s11328_s20 }
  0xb9   :  { %s11343_s12 = sld [smem:[%s12482_s0 + %s10903_s7]]  }
  0xba   :  { %12715 = sst [smem:[#allocation85_spill]] %s11338_s4 }
  0xbb   :  { %s11348_s20 = sld [smem:[%s12482_s0 + %s10904_s15]]  }
  0xbc   :  { %165 = vsyncpa [#allocation3], 0 }
  0xbd   :  { %167 = vsyncpa [#allocation3 + $0x1], 0 }
  0xbe   :  { %168 = vsyncpa [#allocation5], 0 }
  0xbf   :  { %170 = vsyncpa [#allocation5 + $0x1], 0  ;;  %s11350_s22 = smov 0   ;;  %s11352_s23 = smov 0  }
  0xc0   :  { %s11354_s26 = smov 0   ;;  %s11356_s28 = smov 0  }
  0xc1 LB: > { %s12716_s4 = sld [smem:[#allocation85_spill]]  ;;  %s12718_s24 = sld [smem:[#allocation20_spill]]  ;;  %s10812_s22 = sphi %s11350_s22, %s12859_s22   ;;  %s10824_s28 = sphi %s11356_s28, %s12858_s28   ;;  %s10820_s26 = sphi %s11354_s26, %s12861_s26   ;;  %s10816_s23 = sphi %s11352_s23, %s12860_s23  }
  0xc2   : > { %s12717_s30 = sld [smem:[#allocation21_spill]]  ;;  %s12720_s19 = sld [smem:[#allocation19_spill]] }
  0xc3   : > { %s12719_s21 = sld [smem:[#allocation13_spill]]  ;;  %s12721_s17 = sld [smem:[#allocation12_spill]] }
  0xc4   : > { %s12722_s14 = sld [smem:[#allocation18_spill]]  ;;  %s12723_s8 = sld [smem:[#allocation17_spill]] }
  0xc5   : > { %s12724_s3 = sld [smem:[#allocation16_spill]]  ;;  %12725 = sst [smem:[#allocation86_spill]] %s10816_s23 }
  0xc6   : > { %12726 = sst [smem:[#allocation87_spill]] %s10820_s26  ;;  %s11371_s0 = sadd.s32 4294967295, %s10824_s28  }
  0xc7   : > { %s12535_s1 = sadd.s32 4294967294, %s10824_s28   ;;  %s11375_s2 = sadd.s32 1, %s10824_s28  }
  0xc8   : > { %12727 = sst [smem:[#allocation88_spill]] %s11375_s2  ;;  %s1789_s7 = sadd.s32 1, %s10820_s26 }
  0xc9   : > { %s1786_s10 = ssub.s32 %s10824_s28, %s11375_s2  ;;  %p1799_p0 = scmp.ne.s32.totalorder %s10820_s26, %s10816_s23 }
  0xca   : > { %p1787_p1 = scmp.eq.s32.totalorder %s1786_s10, 0  ;;  %p1800_p2 = scmp.eq.s32.totalorder %s11371_s0, 1 }
  0xcb   : > { %p1805_p3 = scmp.ne.s32.totalorder %s10816_s23, %s10812_s22  ;;  %p1806_p4 = scmp.eq.s32.totalorder %s12535_s1, 1 }
  0xcc   : > { %s11388_s11 = scalar_select %p1787_p1, %s10820_s26, %s1789_s7  }
  0xcd   : > { %p11390_p5 = por %p1800_p2, %p1799_p0  ;;  %p11394_p6 = por %p1806_p4, %p1805_p3 }
  0xce   : > { %12728 = sst [smem:[#allocation89_spill]] %s11388_s11  ;;  %p8287_p7 = scmp.ge.s32.totalorder %s10824_s28, 1 }
  0xcf   : > { %s12730_s16 = scalar_select %p11394_p6, 1, 0 }
  0xd0   : > { %p2131_p8 = scmp.lt.s32.totalorder %s10824_s28, 3 }
  0xd1   : > { %12731 = sst [smem:[#allocation90_spill]] %s12730_s16 }
  0xd2   : > { %p2132_p9 = pnand %p8287_p7, %p2131_p8 }
  0xd3   : > { %s12732_s9 = sld [smem:[#allocation10_spill]] (!%p2132_p9)  ;;  %s12733_s5 = sld [smem:[#allocation9_spill]] (!%p2132_p9)  ;;  %v10905_v1 = vmov (!%p2132_p9), 0.0   ;;  %vm10908_vm0 = vmmov (!%p2132_p9), 0   ;;  %v10909_v3 = vmov (!%p2132_p9), 0   ;;  %vm2345_vm1 = vcmask (!%p2132_p9), 7168  }
  0xd4   : > { %2135 = sbr.rel (%p2132_p9) target bundleno = 14082 (0x3702), region = 320  ;;  %p2326_p10 = scmp.lt.s32.totalorder (!%p2132_p9), %s11371_s0, 1  ;;  %8801 = vmatprep.subr.mxu1 (!%p2132_p9), %v10905_v1  ;;  %8796 = vmatprep.subr.mxu0 (!%p2132_p9), %v10905_v1  ;;  %vm2347_vm2 = vcmask (!%p2132_p9), 531456   ;;  %vm2359_vm3 = vcmask (!%p2132_p9), 1042432   ;;  %vm2356_vm4 = vcmask (!%p2132_p9), 23552   ;;  %vm2593_vm5 = vcmask (!%p2132_p9), 523264  }
  0xd5   : > { %s12536_s7 = smov (!%p2132_p9), 125   ;;  %s12546_s11 = smov (!%p2132_p9), 1   ;;  %8798 = vmatprep.mubr.msk.f32.mxu0 (!%p2132_p9), %vm10908_vm0, %v10905_v1  ;;  %8803 = vmatprep.mubr.msk.f32.mxu1 (!%p2132_p9), %vm10908_vm0, %v10905_v1  ;;  %v2608_v23 = vld [vmem:[%s12721_s17] sm:$0xff] (!%p2132_p9)  ;;  %vm2622_vm6 = vcmask (!%p2132_p9), 195584   ;;  %v2611_v28 = vld [vmem:[%s12719_s21 + $0x8] sm:$0xff] (!%p2132_p9)  ;;  %v2704_v29 = vlaneseq (!%p2132_p9)  ;;  %v10915_v59 = vmov (!%p2132_p9), 0.0|0.0  }
  0xd6   : > { %s12734_s13 = sld [smem:[#allocation11_spill]] (!%p2132_p9)  ;;  %10044 = vset.pattern.permute.xlu1 (!%p2132_p9), %v10909_v3  ;;  %10045 = vset.pattern.permute.xlu0 (!%p2132_p9), %v10909_v3  ;;  %v2610_v27 = vld [vmem:[%s12719_s21] sm:$0xff] (!%p2132_p9)  ;;  %v10913_v39 = vmov (!%p2132_p9), 1.0|1.0   ;;  %v2609_v44 = vld [vmem:[%s12721_s17 + $0x8] sm:$0xff] (!%p2132_p9)  ;;  %s12741_s25 = sld [smem:[#allocation14_spill]] (!%p2132_p9) }
  0xd7   : > { %v11447_v30 = vshrl.u32 (!%p2132_p9), %v2704_v29, 7  ;;  %v2714_v31 = vand.u32 (!%p2132_p9), 127, %v2704_v29  ;;  %s12742_s29 = sld [smem:[#allocation15_spill]] (!%p2132_p9)  ;;  %v2910_v3 = vld [vmem:[%s12724_s3] sm:$0xff] (!%p2132_p9)  ;;  %s12560_s17 = smov (!%p2132_p9), 104  }
  0xd8   : > { %s12746_s27 = sld [smem:[#allocation25_spill]] (!%p2132_p9)  ;;  %s12574_s21 = smov (!%p2132_p9), 108  }
  0xd9   : > { %v2349_v0 = vld [vmem:[%s12732_s9] sm:$0xff] (!%p2132_p9)  ;;  %s12736_s9 = smov (!%p2132_p9), 127   ;;  %v2706_v32 = vadd.s32 (!%p2132_p9), 8, %v11447_v30  ;;  %v11450_v33 = vmul.u32 (!%p2132_p9), 2, %v2714_v31  ;;  %v2707_v34 = vadd.s32 (!%p2132_p9), 16, %v11447_v30  ;;  %v2708_v35 = vadd.s32 (!%p2132_p9), 24, %v11447_v30 }
  0xda   : > { %2351 = vrot.lane.b32.xlu1 (!%p2132_p9), %v2349_v0, %s12536_s7  ;;  %s12538_s7 = smov (!%p2132_p9), 122   ;;  %v2709_v36 = vadd.s32 (!%p2132_p9), 32, %v11447_v30  ;;  %v2710_v37 = vadd.s32 (!%p2132_p9), 40, %v11447_v30  ;;  %v2711_v45 = vadd.s32 (!%p2132_p9), 48, %v11447_v30  ;;  %v2712_v46 = vadd.s32 (!%p2132_p9), 56, %v11447_v30  ;;  %s12777_s26 = smov (!%p2132_p9), 104  }
  0xdb   : > { %s11405_s18 = scalar_select %p2326_p10, %s11371_s0, 1  ;;  %vm12566_vm7 = vcmp.eq.s32.totalorder %v11447_v30, %v11450_v33  ;;  %vm2717_vm8 = vcmp.eq.s32.totalorder %v2706_v32, %v11450_v33  ;;  %vm2718_vm9 = vcmp.eq.s32.totalorder %v2707_v34, %v11450_v33  ;;  %vm2719_vm10 = vcmp.eq.s32.totalorder %v2708_v35, %v11450_v33 }
  0xdc   : > { %v2585_v7 = vld [vmem:[%s12734_s13] sm:$0xff]  ;;  %vm11464_vm11 = vmpackc.low %vm2717_vm8, %vm12566_vm7  ;;  %vm2720_vm13 = vcmp.eq.s32.totalorder %v2709_v36, %v11450_v33  ;;  %vm2721_vm14 = vcmp.eq.s32.totalorder %v2710_v37, %v11450_v33  ;;  %s12561_s13 = smov 110   ;;  %vm3556_vm7 = vcmask 343040   ;;  %s12795_s2 = smov 121  }
  0xdd   : > { %s8291_s10 = sshll.u32 %s11405_s18, 2  ;;  %vm11471_vm12 = vmpackc.low %vm2719_vm10, %vm2718_vm9  ;;  %vm2722_vm9 = vcmp.eq.s32.totalorder %v2711_v45, %v11450_v33  ;;  %v3071_v45 = vld [vmem:[%s12722_s14] sm:$0xff]  ;;  %s12796_s16 = smov 100  }
  0xde   : > { %s2329_s1 = scalar_lea.vmem %s12733_s5, %s8291_s10  ;;  %s12540_s10 = smov 127   ;;  %vm9335_vm15 = vmpackc.low %vm2721_vm14, %vm2720_vm13  ;;  %vm2914_vm13 = vcmask 64512   ;;  %vm3030_vm14 = vcmask 285696  }
  0xdf   : > { %v2340_v2 = vld [vmem:[%s2329_s1] sm:$0x7]  ;;  %s12542_s1 = smov 126   ;;  %s12735_s5 = smov 126  }
  0xe0   : > { %2342 = vrot.lane.b32.xlu0 %v2340_v2, %s12546_s11  ;;  %v2833_v2 = vld [vmem:[%s12741_s25] sm:$0xff]  ;;  %s12757_s25 = sld [smem:[#allocation29_spill]] }
 0x14c   : > { %v2352_v8 = vpop.permute.xlu1 %2351 }
 0x152   : > { %v2343_v4 = vpop.permute.xlu0 %2342 }
 0x153   : > { %v2346_v5 = vsel %vm2345_vm1, 0.0, %v2343_v4  ;;  %v2834_v4 = vld [vmem:[%s12742_s29] sm:$0xff]  ;;  %s10933_s29 = smov 86  }
 0x154   : > { %v2348_v6 = vsel %vm2347_vm2, %v2346_v5, 0.0 }
 0x155   : > { %2508 = vrot.lane.b32.xlu1 %v2348_v6, %s12542_s1  ;;  %2354 = vrot.lane.b32.xlu0 %v2348_v6, %s12540_s10 }
 0x156   : > { %8802 = vmatpush3.msk.msra.mxu1 %vm2359_vm3, %v2348_v6 }
 0x157   : > { %8804 = vmatmul.mubr.msk.f32.vlgmr.msra.gmra.mrb[0].mxu1 %vm2356_vm4, %v2349_v0 }
 0x158   : > { %8817 = vmatprep.mubr.msk.f32.mxu1 %vm2622_vm6, %v2608_v23 }
 0x159   : > { %2506 = vrot.lane.b32.xlu0 %v2349_v0, %s12538_s7  ;;  %2588 = vperm.xlu1 %10044, %v2585_v7   ;;  %s11431_s7 = sand.u32 1, %s10816_s23   ;;  %s12788_s23 = smov 108  }
 0x15a   : > { %s8288_s10 = sshll.u32 %s11431_s7, 3 }
 0x15b   : > { %s11435_s1 = scalar_lea.vmem [#allocation2], %s8288_s10  ;;  %s12544_s10 = smov 3  }
 0x1c7   : > { %v2355_v9 = vpop.permute.xlu0 %2354  ;;  %v2509_v10 = vpop.permute.xlu1 %2508 }
 0x1c8   : > { %8797 = vmatpush3.msk.msra.mxu0 %vm2359_vm3, %v2355_v9  ;;  %v2911_v9 = vld [vmem:[%s12724_s3 + $0x8] sm:$0xff]  ;;  %s12744_s3 = smov 122  }
 0x1c9   : > { %8799 = vmatmul.mubr.msk.f32.vlgmr.msra.gmra.mrb[0].mxu0 %vm2356_vm4, %v2352_v8  ;;  %8806 = vmatprep.subr.mxu0 %v10905_v1 }
 0x1ca   : > { %8807 = vmatpush3.msk.msra.mxu0 %vm2359_vm3, %v2509_v10  ;;  %8808 = vmatprep.mubr.msk.f32.mxu0 %vm10908_vm0, %v10905_v1  ;;  %vm10914_vm3 = vmmov 1   ;;  %v2913_v10 = vld [vmem:[%s12723_s8 + $0x8] sm:$0xff] }
 0x1cb   : > { %v2507_v11 = vpop.permute.xlu0 %2506  ;;  %9328 = vmatprep.subr.msk.bf16.mxu0 %vm11464_vm11, %v10913_v39  ;;  %vm9322_vm8 = vmpackc.low %vm10914_vm3, %vm2347_vm2 }
 0x1cd   : > { %8809 = vmatmul.mubr.msk.f32.vlgmr.msra.gmra.mrb[2].mxu0 %vm2356_vm4, %v2507_v11  ;;  %v2912_v11 = vld [vmem:[%s12723_s8] sm:$0xff]  ;;  %s12553_s8 = smov 123  }
 0x1ce   : > { %9330 = vmatpush3.bf16.msk.msra.mxu0 %vm11464_vm11, %v10913_v39 }
 0x1cf   : > { %9332 = vmatprep.subr.msk.bf16.mxu0 %vm11471_vm12, %v10913_v39 }
 0x1d2   : > { %9334 = vmatpush3.bf16.msk.msra.mxu0 %vm11471_vm12, %v10913_v39 }
 0x1d3   : > { %9336 = vmatprep.subr.msk.bf16.mxu0 %vm9335_vm15, %v10913_v39 }
 0x1d6   : > { %9338 = vmatpush3.bf16.msk.msra.mxu0 %vm9335_vm15, %v10913_v39  ;;  %vm9347_vm15 = vmpackc.low %vm3030_vm14, %vm3030_vm14 }
 0x1d8   : > { %v2589_v18 = vpop.permute.xlu1 %2588 }
 0x22a   : > { %v2502_v12 = vpop.f32.mrb[0].mxu1 }
 0x22b   : > { %v8805_v13 = vpop.f32.mrb[1].mxu1 }
 0x29c   : > { %v2428_v14 = vpop.f32.mrb[0].mxu0 }
 0x29d   : > { %v2503_v15 = vadd.f32 %v2502_v12, %v2428_v14  ;;  %v8800_v16 = vpop.f32.mrb[1].mxu0 }
 0x2a0   : > { %v2580_v17 = vpop.f32.mrb[2].mxu0 }
 0x2a1   : > { %v2584_v19 = vadd.f32 %v2580_v17, %v2503_v15  ;;  %v8810_v20 = vpop.f32.mrb[3].mxu0 }
 0x2a3   : > { %v2591_v21 = vadd.f32 %v2589_v18, %v2584_v19 }
 0x2a5   : > { %v2592_v22 = vmax.f32 %v2591_v21, 0.0 }
 0x2a7   : > { %2596 = vrot.lane.b32.xlu0 %v2592_v22, %s12546_s11  ;;  %2594 = vst.msk [vmem:[%s11435_s1] sm:$0xff] %vm2593_vm5, %v2592_v22  ;;  %s12743_s11 = smov 125  }
 0x319   : > { %v2597_v24 = vpop.permute.xlu0 %2596 }
 0x31a   : > { %v2599_v25 = vsel %vm2345_vm1, 0.0, %v2597_v24 }
 0x31b   : > { %v2600_v26 = vsel %vm2347_vm2, %v2599_v25, 0.0  ;;  %vm2723_vm2 = vcmp.eq.s32.totalorder %v2712_v46, %v11450_v33 }
 0x31c   : > { %2605 = vrot.lane.b32.xlu0 %v2600_v26, %s12735_s5  ;;  %2602 = vrot.lane.b32.xlu1 %v2600_v26, %s12736_s9  ;;  %vm9339_vm10 = vmpackc.low %vm2723_vm2, %vm2722_vm9  ;;  %vm12572_vm9 = vcmask 97280   ;;  %vm3180_vm2 = vcmask 359424  }
 0x31d   : > { %9340 = vmatprep.subr.msk.bf16.mxu0 %vm9339_vm10, %v10913_v39 }
 0x31e   : > { %9342 = vmatpush3.bf16.msk.msra.mxu0 %vm9339_vm10, %v10913_v39  ;;  %vm9378_vm10 = vmpackc.low %vm3180_vm2, %vm3180_vm2 }
 0x31f   : > { %9376 = vmatprep.subr.bf16.mxu0 %v10915_v59 }
 0x320   : > { %2614 = vperm.xlu1 %10044, %v2610_v27   ;;  %2619 = vperm.xlu0 %10045, %v2611_v28  }
 0x38e   : > { %v2603_v41 = vpop.permute.xlu1 %2602  ;;  %v2606_v43 = vpop.permute.xlu0 %2605 }
 0x38f   : > { %v9321_v42 = vpack.c.bf16 %v2603_v41, %v2599_v25 }
 0x391   : > { %9323 = vmatprep.subr.msk.bf16.mxu1 %vm9322_vm8, %v9321_v42 }
 0x392   : > { %9326 = vmatpush3.bf16.msk.msra.mxu1 %vm9322_vm8, %v9321_v42  ;;  %vm3085_vm8 = vcmask 916480  }
 0x393   : > { %8815 = vmatprep.subr.mxu1 %v2606_v43 }
 0x396   : > { %8816 = vmatpush3.msra.mxu1 %v2606_v43  ;;  %v3074_v43 = vld [vmem:[%s12720_s19 + $0x8] sm:$0xff] }
 0x397   : > { %8818 = vmatmul.mubr.msk.f32.vlgmr.msra.gmra.mrb[2].mxu1 %vm2622_vm6, %v2609_v44  ;;  %vm2823_vm6 = vcmask 261120   ;;  %9343 = vmatprep.subr.bf16.mxu1 %v10915_v59  ;;  %v3073_v44 = vld [vmem:[%s12720_s19] sm:$0xff]  ;;  %s12564_s19 = smov 107  }
 0x398   : > { %8843 = vmatprep.mubr.msk.f32.mxu1 %vm10908_vm0, %v10905_v1 }
 0x39f   : > { %v2620_v47 = vpop.permute.xlu0 %2619  ;;  %v2615_v49 = vpop.permute.xlu1 %2614 }
 0x46a   : > { %v8819_v48 = vpop.f32.mrb[2].mxu1 }
 0x46b   : > { %v2695_v50 = vpop.f32.mrb[3].mxu1  ;;  %v2701_v52 = vadd.f32 %v8819_v48, %v2620_v47 }
 0x46c   : > { %v2696_v51 = vadd.f32 %v2695_v50, %v2615_v49 }
 0x46e   : > { %8836 = vmatprep.mubr.msk.f32.mxu0 %vm2593_vm5, %v2696_v51 }
 0x46f   : > { %8837 = vmatmul.mubr.msk.f32.vlgmr.msra.gmra.mrb[4].mxu0 %vm2593_vm5, %v2701_v52  ;;  %vm2835_vm5 = vcmask 130048  }
 0x542   : > { %v8838_v53 = vpop.f32.mrb[4].mxu0 }
 0x543   : > { %v11502_v54 = vmax.f32 %v8838_v53, 0.0  ;;  %v2812_v55 = vpop.f32.mrb[5].mxu0 }
 0x544   : > { %v11504_v56 = vmax.f32 %v2812_v55, 0.0 }
 0x545   : > { %v2827_v57 = vsel %vm2823_vm6, %v11502_v54, 0.0 }
 0x546   : > { %2828 = vadd.xlane.f32.xlu0 %v2827_v57  ;;  %v2824_v58 = vsel %vm2823_vm6, %v11504_v56, 0.0 }
 0x547   : > { %2825 = vadd.xlane.f32.xlu1 %v2824_v58 }
 0x5d3   : > { %v2829_v60 = vpop.xlane.xlu0 %2828 }
 0x5d4   : > { %v2832_v61 = vmul.f32 0.03125, %v2829_v60  ;;  %v2826_v62 = vpop.xlane.xlu1 %2825 }
 0x5d5   : > { %v2831_v63 = vmul.f32 0.03125, %v2826_v62 }
 0x5d7   : > { %v9344_v0 = vpack.c.bf16 %v2832_v61, %v2831_v63 }
 0x5d9   : > { %9345 = vmatpush3.bf16.msra.mxu1 %v9344_v0 }
 0x5dc   : > { %8844 = vmatmul.mubr.msk.f32.vlgmr.msra.gmra.mrb[4].mxu1 %vm2835_vm5, %v2833_v2 }
 0x5dd   : > { %8848 = vmatprep.mubr.msk.f32.mxu1 %vm2914_vm13, %v2910_v3 }
 0x6af   : > { %v2905_v5 = vpop.f32.mrb[4].mxu1 }
 0x6b0   : > { %v2906_v6 = vadd.f32 %v2905_v5, %v2834_v4  ;;  %v8845_v7 = vpop.f32.mrb[5].mxu1 }
 0x6b2   : > { %v2909_v8 = vmax.f32 %v2906_v6, 0.0 }
 0x6b4   : > { %8846 = vmatprep.subr.mxu1 %v2909_v8 }
 0x6b5   : > { %8847 = vmatpush3.msra.mxu1 %v2909_v8 }
 0x6b6   : > { %8849 = vmatmul.mubr.msk.f32.vlgmr.msra.gmra.mrb[6].mxu1 %vm2914_vm13, %v2911_v9 }
 0x6b7   : > { %8879 = vmatprep.mubr.msk.f32.mxu1 %vm3085_vm8, %v3071_v45 }
 0x789   : > { %v8850_v12 = vpop.f32.mrb[6].mxu1 }
 0x78a   : > { %v2993_v13 = vadd.f32 %v8850_v12, %v2913_v10  ;;  %v2987_v14 = vpop.f32.mrb[7].mxu1  ;;  %v3072_v10 = vld [vmem:[%s12722_s14 + $0x8] sm:$0xff]  ;;  %s12567_s14 = smov 113  }
 0x78b   : > { %v2988_v15 = vadd.f32 %v2987_v14, %v2912_v11 }
 0x78c   : > { %v8327_v16 = vmul.f32 -1.442695, %v2993_v13 }
 0x78d   : > { %v8326_v17 = vmul.f32 -1.442695, %v2988_v15 }
 0x78e   : > { %10606 = vpow2.f32 %v8327_v16 }
 0x78f   : > { %10608 = vpow2.f32 %v8326_v17 }
 0x798   : > { %v10607_v18 = vpop.eup %10606 }
 0x799   : > { %v10609_v19 = vpop.eup %10608  ;;  %v3003_v20 = vadd.f32 1.0, %v10607_v18 }
 0x79a   : > { %v3002_v21 = vadd.f32 1.0, %v10609_v19 }
 0x79b   : > { %10610 = vrcp.f32 %v3003_v20 }
 0x79c   : > { %10612 = vrcp.f32 %v3002_v21 }
 0x7a5   : > { %v10611_v22 = vpop.eup %10610 }
 0x7a6   : > { %v10613_v23 = vpop.eup %10612  ;;  %3015 = vperm.xlu0 %10045, %v10611_v22  }
 0x7a7   : > { %3010 = vperm.xlu1 %10044, %v10613_v23  }
 0x825   : > { %v3016_v24 = vpop.permute.xlu0 %3015 }
 0x826   : > { %v3019_v25 = vmul.f32 %v3016_v24, %v11502_v54  ;;  %v3011_v26 = vpop.permute.xlu1 %3010 }
 0x827   : > { %v3018_v27 = vmul.f32 %v3011_v26, %v11504_v56 }
 0x829   : > { %v10046_v28 = vpack.i.bf16 %v3019_v25, %v3018_v27 }
 0x82b   : > { %10047 = vrot.lane.b32.xlu1 %v10046_v28, %s12544_s10  ;;  %s12550_s10 = smov 124  }
 0x89d   : > { %v10048_v29 = vpop.permute.xlu1 %10047 }
 0x89e   : > { %v10050_v31 = vunpack.i.h.bf16 %v10048_v29  ;;  %v10049_v32 = vunpack.i.l.bf16 %v10048_v29  ;;  %v3237_v29 = vld [vmem:[%s12717_s30] sm:$0xff] }
 0x8a0   : > { %v3029_v34 = vsel %vm2356_vm4, 0.0, %v10050_v31  ;;  %v3028_v35 = vsel %vm2356_vm4, 0.0, %v10049_v32  ;;  %v10126_v31 = vpack.i.bf16 %v11502_v54, %v11504_v56  ;;  %v3238_v32 = vld [vmem:[%s12717_s30 + $0x8] sm:$0xff]  ;;  %s10934_s30 = smov 93  }
 0x8a1   : > { %v9346_v36 = vpack.c.bf16 %v3029_v34, %v3028_v35  ;;  %v3031_v37 = vsel %vm3030_vm14, %v3028_v35, 0.0  ;;  %v3032_v41 = vsel %vm3030_vm14, %v3029_v34, 0.0  ;;  %v3234_v34 = vld [vmem:[%s12718_s24 + $0x8] sm:$0xff]  ;;  %vm3451_vm14 = vcmask 269312  }
 0x8a2   : > { %v10056_v42 = vpack.i.bf16 %v3032_v41, %v3031_v37  ;;  %8334 = vmatprep.mubr.msk.f32.mxu0 %vm2835_vm5, %v3234_v34 }
 0x8a3   : > { %9348 = vmatprep.subr.msk.bf16.mxu1 %vm9347_vm15, %v9346_v36 }
 0x8a4   : > { %9351 = vmatpush3.bf16.msk.msra.mxu1 %vm9347_vm15, %v9346_v36  ;;  %10057 = vrot.lane.b32.xlu0 %v10056_v42, %s12735_s5  ;;  %vm11584_vm15 = vmpackc.low %vm3451_vm14, %vm3451_vm14 }
 0x8a5   : > { %10052 = vrot.lane.b32.xlu1 %v10056_v42, %s12736_s9 }
 0x8a8   : > { %10067 = vrot.lane.b32.xlu0 %v10056_v42, %s12550_s10  ;;  %s12552_s10 = smov 12  }
 0x8a9   : > { %10062 = vrot.lane.b32.xlu1 %v10056_v42, %s12743_s11 }
 0x8ac   : > { %10077 = vrot.lane.b32.xlu0 %v10056_v42, %s12744_s3 }
 0x8ad   : > { %10072 = vrot.lane.b32.xlu1 %v10056_v42, %s12553_s8  ;;  %s12562_s8 = smov 119  }
 0x8b0   : > { %3082 = vperm.xlu0 %10045, %v3074_v43  }
 0x8b1   : > { %3077 = vperm.xlu1 %10044, %v3073_v44  }
 0x916   : > { %v10058_v46 = vpop.permute.xlu0 %10057 }
 0x917   : > { %v10053_v47 = vpop.permute.xlu1 %10052  ;;  %v10060_v48 = vunpack.i.h.bf16 %v10058_v46  ;;  %v10059_v49 = vunpack.i.l.bf16 %v10058_v46 }
 0x918   : > { %v10055_v50 = vunpack.i.h.bf16 %v10053_v47  ;;  %v10054_v51 = vunpack.i.l.bf16 %v10053_v47 }
 0x919   : > { %v9356_v58 = vpack.c.bf16 %v10060_v48, %v10059_v49 }
 0x91a   : > { %v9352_v52 = vpack.c.bf16 %v10055_v50, %v10054_v51  ;;  %v10068_v60 = vpop.permute.xlu0 %10067 }
 0x91b   : > { %v10063_v53 = vpop.permute.xlu1 %10062  ;;  %v10070_v61 = vunpack.i.h.bf16 %v10068_v60  ;;  %v10069_v62 = vunpack.i.l.bf16 %v10068_v60 }
 0x91c   : > { %v10065_v55 = vunpack.i.h.bf16 %v10063_v53  ;;  %v10064_v57 = vunpack.i.l.bf16 %v10063_v53  ;;  %9353 = vmatprep.subr.bf16.mxu1 %v9352_v52 }
 0x91d   : > { %9355 = vmatpush3.bf16.msra.mxu1 %v9352_v52  ;;  %v9364_v4 = vpack.c.bf16 %v10070_v61, %v10069_v62 }
 0x91e   : > { %9357 = vmatprep.subr.bf16.mxu1 %v9356_v58  ;;  %v9360_v63 = vpack.c.bf16 %v10065_v55, %v10064_v57  ;;  %v10078_v5 = vpop.permute.xlu0 %10077 }
 0x91f   : > { %v10073_v0 = vpop.permute.xlu1 %10072  ;;  %v10080_v6 = vunpack.i.h.bf16 %v10078_v5  ;;  %v10079_v7 = vunpack.i.l.bf16 %v10078_v5 }
 0x920   : > { %v10075_v2 = vunpack.i.h.bf16 %v10073_v0  ;;  %v10074_v3 = vunpack.i.l.bf16 %v10073_v0 }
 0x921   : > { %9359 = vmatpush3.bf16.msra.mxu1 %v9356_v58  ;;  %v9372_v9 = vpack.c.bf16 %v10080_v6, %v10079_v7 }
 0x922   : > { %9361 = vmatprep.subr.bf16.mxu1 %v9360_v63  ;;  %v9368_v8 = vpack.c.bf16 %v10075_v2, %v10074_v3 }
 0x925   : > { %9363 = vmatpush3.bf16.msra.mxu1 %v9360_v63 }
 0x926   : > { %9365 = vmatprep.subr.bf16.mxu1 %v9364_v4 }
 0x929   : > { %9367 = vmatpush3.bf16.msra.mxu1 %v9364_v4 }
 0x92a   : > { %9369 = vmatprep.subr.bf16.mxu1 %v9368_v8 }
 0x92d   : > { %9371 = vmatpush3.bf16.msra.mxu1 %v9368_v8 }
 0x92e   : > { %9373 = vmatprep.subr.bf16.mxu1 %v9372_v9 }
 0x92f   : > { %v3083_v11 = vpop.permute.xlu0 %3082 }
 0x930   : > { %v3078_v13 = vpop.permute.xlu1 %3077 }
 0x931   : > { %9375 = vmatpush3.bf16.msra.mxu1 %v9372_v9 }
 0x934   : > { %8880 = vmatmul.mubr.msk.f32.vlgmr.msra.gmra.mrb[8].mxu1 %vm3085_vm8, %v3072_v10 }
 0xa07   : > { %v8881_v12 = vpop.f32.mrb[8].mxu1 }
 0xa08   : > { %v3164_v14 = vadd.f32 %v8881_v12, %v3083_v11  ;;  %v3158_v15 = vpop.f32.mrb[9].mxu1 }
 0xa09   : > { %v3159_v16 = vadd.f32 %v3158_v15, %v3078_v13  ;;  %v3469_v15 = vld [vmem:[%s12746_s27] sm:$0xff]  ;;  %s12758_s27 = smov 107  }
 0xa0a   : > { %v3168_v17 = vmax.f32 %v3164_v14, 0.0 }
 0xa0b   : > { %v3167_v18 = vmax.f32 %v3159_v16, 0.0 }
 0xa0d   : > { %v10081_v19 = vpack.i.bf16 %v3168_v17, %v3167_v18 }
 0xa0f   : > { %10082 = vrot.lane.b32.xlu1 %v10081_v19, %s12552_s10  ;;  %s12558_s10 = smov 116  }
 0xa81   : > { %v10083_v20 = vpop.permute.xlu1 %10082 }
 0xa82   : > { %v10085_v21 = vunpack.i.h.bf16 %v10083_v20  ;;  %v10084_v22 = vunpack.i.l.bf16 %v10083_v20  ;;  %v3233_v20 = vld [vmem:[%s12718_s24] sm:$0xff] }
 0xa84   : > { %v3179_v23 = vsel %vm12572_vm9, 0.0, %v10085_v21  ;;  %v3178_v24 = vsel %vm12572_vm9, 0.0, %v10084_v22  ;;  %v3236_v21 = vld [vmem:[%s12718_s24 + $0x18] sm:$0xff]  ;;  %v3235_v22 = vld [vmem:[%s12718_s24 + $0x10] sm:$0xff]  ;;  %s12754_s24 = smov 113   ;;  %vm9420_vm9 = vmpackc.low %vm10914_vm3, %vm3556_vm7 }
 0xa85   : > { %v3182_v25 = vsel %vm3180_vm2, %v3179_v23, 0.0  ;;  %v3181_v26 = vsel %vm3180_vm2, %v3178_v24, 0.0  ;;  %v9377_v27 = vpack.c.bf16 %v3179_v23, %v3178_v24  ;;  %vm3475_vm2 = vcmask 392192  }
 0xa86   : > { %v10091_v28 = vpack.i.bf16 %v3182_v25, %v3181_v26 }
 0xa87   : > { %9379 = vmatpush1.bf16.msk.msra.mxu0 %vm9378_vm10, %v9377_v27  ;;  %vm12573_vm10 = vcmask 80896  }
 0xa88   : > { %10092 = vrot.lane.b32.xlu1 %v10091_v28, %s12744_s3  ;;  %10087 = vrot.lane.b32.xlu0 %v10091_v28, %s12743_s11 }
 0xa89   : > { %9380 = vmatprep.subr.bf16.mxu0 %v10915_v59 }
 0xa8c   : > { %10102 = vrot.lane.b32.xlu1 %v10091_v28, %s12558_s10  ;;  %10097 = vrot.lane.b32.xlu0 %v10091_v28, %s12562_s8  ;;  %s12745_s10 = smov 1   ;;  %s12751_s8 = sld [smem:[#allocation27_spill]] }
 0xa90   : > { %10112 = vrot.lane.b32.xlu1 %v10091_v28, %s12561_s13  ;;  %10107 = vrot.lane.b32.xlu0 %v10091_v28, %s12567_s14  ;;  %s12748_s13 = sld [smem:[#allocation24_spill]]  ;;  %s12752_s14 = smov 123  }
 0xa94   : > { %10122 = vrot.lane.b32.xlu1 %v10091_v28, %s12560_s17  ;;  %10117 = vrot.lane.b32.xlu0 %v10091_v28, %s12564_s19  ;;  %s12747_s17 = sld [smem:[#allocation22_spill]]  ;;  %s12577_s19 = smov 10  }
 0xa98   : > { %3241 = vperm.xlu1 %10044, %v3237_v29   ;;  %10127 = vrot.lane.b32.xlu0 %v10126_v31, %s12745_s10 }
 0xa9a   : > { %v3332_v23 = vld [vmem:[%s12747_s17] sm:$0xff] }
 0xa9b   : > { %8886 = vmatprep.mubr.msk.f32.mxu1 %vm2835_vm5, %v3332_v23 }
 0xa9c   : > { %3246 = vperm.xlu0 %10045, %v3238_v32  }
 0xafa   : > { %v10093_v35 = vpop.permute.xlu1 %10092  ;;  %v10088_v36 = vpop.permute.xlu0 %10087 }
 0xafb   : > { %v10090_v37 = vunpack.i.h.bf16 %v10088_v36  ;;  %v10089_v41 = vunpack.i.l.bf16 %v10088_v36  ;;  %v10095_v42 = vunpack.i.h.bf16 %v10093_v35  ;;  %v10094_v43 = vunpack.i.l.bf16 %v10093_v35 }
 0xafd   : > { %v9381_v44 = vpack.c.bf16 %v10090_v37, %v10089_v41  ;;  %v9384_v46 = vpack.c.bf16 %v10095_v42, %v10094_v43  ;;  %v3333_v41 = vld [vmem:[%s12747_s17 + $0x8] sm:$0xff]  ;;  %s12753_s17 = sld [smem:[#allocation26_spill]] }
 0xafe   : > { %v10098_v45 = vpop.permute.xlu0 %10097  ;;  %v10103_v49 = vpop.permute.xlu1 %10102 }
 0xaff   : > { %9382 = vmatpush1.bf16.msra.mxu0 %v9381_v44  ;;  %v10100_v47 = vunpack.i.h.bf16 %v10098_v45  ;;  %v10099_v48 = vunpack.i.l.bf16 %v10098_v45  ;;  %v10105_v51 = vunpack.i.h.bf16 %v10103_v49  ;;  %v10104_v52 = vunpack.i.l.bf16 %v10103_v49 }
 0xb00   : > { %9383 = vmatprep.subr.bf16.mxu0 %v10915_v59 }
 0xb01   : > { %v9387_v53 = vpack.c.bf16 %v10100_v47, %v10099_v48  ;;  %v9390_v57 = vpack.c.bf16 %v10105_v51, %v10104_v52 }
 0xb02   : > { %v10108_v50 = vpop.permute.xlu0 %10107  ;;  %v10113_v58 = vpop.permute.xlu1 %10112 }
 0xb03   : > { %9385 = vmatpush1.bf16.msra.mxu0 %v9384_v46  ;;  %v10110_v60 = vunpack.i.h.bf16 %v10108_v50  ;;  %v10109_v61 = vunpack.i.l.bf16 %v10108_v50  ;;  %v10115_v2 = vunpack.i.h.bf16 %v10113_v58  ;;  %v10114_v3 = vunpack.i.l.bf16 %v10113_v58  ;;  %v3468_v50 = vld [vmem:[%s12748_s13] sm:$0xff]  ;;  %s12575_s13 = smov 118  }
 0xb04   : > { %9386 = vmatprep.subr.bf16.mxu0 %v10915_v59 }
 0xb05   : > { %v9393_v4 = vpack.c.bf16 %v10110_v60, %v10109_v61  ;;  %v9396_v11 = vpack.c.bf16 %v10115_v2, %v10114_v3 }
 0xb06   : > { %v10118_v55 = vpop.permute.xlu0 %10117  ;;  %v10123_v14 = vpop.permute.xlu1 %10122 }
 0xb07   : > { %9388 = vmatpush1.bf16.msra.mxu0 %v9387_v53  ;;  %v10120_v12 = vunpack.i.h.bf16 %v10118_v55  ;;  %v10119_v13 = vunpack.i.l.bf16 %v10118_v55  ;;  %v10125_v16 = vunpack.i.h.bf16 %v10123_v14  ;;  %v10124_v17 = vunpack.i.l.bf16 %v10123_v14 }
 0xb08   : > { %9389 = vmatprep.subr.bf16.mxu0 %v10915_v59 }
 0xb09   : > { %v9399_v18 = vpack.c.bf16 %v10120_v12, %v10119_v13  ;;  %v9402_v19 = vpack.c.bf16 %v10125_v16, %v10124_v17 }
 0xb0a   : > { %v10128_v62 = vpop.permute.xlu0 %10127 }
 0xb0b   : > { %v10130_v63 = vunpack.i.h.bf16 %v10128_v62  ;;  %v10129_v0 = vunpack.i.l.bf16 %v10128_v62  ;;  %9391 = vmatpush1.bf16.msra.mxu0 %v9390_v57 }
 0xb0c   : > { %9392 = vmatprep.subr.bf16.mxu0 %v10915_v59 }
 0xb0d   : > { %v3450_v5 = vsel %vm2345_vm1, 0.0, %v10130_v63  ;;  %v3449_v6 = vsel %vm2345_vm1, 0.0, %v10129_v0  ;;  %v3572_v0 = vld [vmem:[%s12751_s8] sm:$0xff]  ;;  %s12755_s8 = sld [smem:[#allocation28_spill]] }
 0xb0e   : > { %v9409_v7 = vpack.c.bf16 %v3450_v5, %v3449_v6  ;;  %v3452_v8 = vsel %vm3451_vm14, %v3449_v6, 0.0  ;;  %v3453_v9 = vsel %vm3451_vm14, %v3450_v5, 0.0 }
 0xb0f   : > { %9394 = vmatpush1.bf16.msra.mxu0 %v9393_v4  ;;  %v10136_v10 = vpack.i.bf16 %v3453_v9, %v3452_v8 }
 0xb10   : > { %9395 = vmatprep.subr.bf16.mxu0 %v10915_v59 }
 0xb11   : > { %10137 = vrot.lane.b32.xlu0 %v10136_v10, %s12735_s5  ;;  %10132 = vrot.lane.b32.xlu1 %v10136_v10, %s12736_s9 }
 0xb13   : > { %9397 = vmatpush1.bf16.msra.mxu0 %v9396_v11  ;;  %v3680_v17 = vld [vmem:[%s12755_s8] sm:$0xff] }
 0xb14   : > { %9398 = vmatprep.subr.bf16.mxu0 %v10915_v59 }
 0xb15   : > { %3472 = vperm.xlu1 %10044, %v3469_v15  }
 0xb17   : > { %9400 = vmatpush1.bf16.msra.mxu0 %v9399_v18  ;;  %v3242_v26 = vpop.permute.xlu1 %3241 }
 0xb18   : > { %9401 = vmatprep.subr.bf16.mxu0 %v10915_v59 }
 0xb1b   : > { %9403 = vmatpush1.bf16.msra.mxu0 %v9402_v19  ;;  %v3247_v28 = vpop.permute.xlu0 %3246 }
 0xb1c   : > { %9418 = vmatprep.subr.bf16.mxu0 %v10915_v59 }
 0xb1e   : > { %3320 = vmatmul.mubr.f32.vlgmr.msra.gmra.mrb[6].mxu0 %v3233_v20  ;;  %v3683_v20 = vld [vmem:[%s12757_s25 + $0x8] sm:$0xff] }
 0xb1f   : > { %8335 = vmatprep.mubr.msk.f32.mxu0 %vm2835_vm5, %v3236_v21  ;;  %v3682_v21 = vld [vmem:[%s12757_s25] sm:$0xff]  ;;  %s12773_s25 = sld [smem:[#allocation38_spill]] }
 0xb22   : > { %3325 = vmatmul.mubr.f32.gmra.mrb[8].mxu0 %v3235_v22 }
 0xb23   : > { %8914 = vmatprep.mubr.msk.f32.mxu0 %vm10908_vm0, %v10905_v1 }
 0xb83   : > { %v10133_v37 = vpop.permute.xlu1 %10132  ;;  %v10138_v45 = vpop.permute.xlu0 %10137 }
 0xb84   : > { %v10135_v43 = vunpack.i.h.bf16 %v10133_v37  ;;  %v10134_v44 = vunpack.i.l.bf16 %v10133_v37  ;;  %v10140_v46 = vunpack.i.h.bf16 %v10138_v45  ;;  %v10139_v47 = vunpack.i.l.bf16 %v10138_v45 }
 0xb86   : > { %v9413_v48 = vpack.c.bf16 %v10135_v43, %v10134_v44  ;;  %v9416_v49 = vpack.c.bf16 %v10140_v46, %v10139_v47 }
 0xb94   : > { %v3473_v53 = vpop.permute.xlu1 %3472 }
 0xbf1   : > { %v3321_v24 = vpop.f32.mrb[6].mxu0 }
 0xbf2   : > { %v3323_v25 = vpop.f32.mrb[7].mxu0  ;;  %v3322_v27 = vadd.f32 %v3321_v24, %v3242_v26 }
 0xbf4   : > { %v3330_v34 = vmax.f32 %v3322_v27, 0.0 }
 0xbf5   : > { %v3326_v29 = vpop.f32.mrb[8].mxu0 }
 0xbf6   : > { %v3327_v31 = vadd.f32 %v3326_v29, %v3247_v28  ;;  %v3328_v32 = vpop.f32.mrb[9].mxu0 }
 0xbf7   : > { %v3681_v32 = vld [vmem:[%s12755_s8 + $0x8] sm:$0xff]  ;;  %s12763_s8 = sld [smem:[#allocation33_spill]] }
 0xbf8   : > { %v3331_v35 = vmax.f32 %v3327_v31, 0.0 }
 0xbfa   : > { %v9404_v36 = vpack.c.bf16 %v3331_v35, %v3330_v34 }
 0xbfc   : > { %9405 = vmatprep.subr.bf16.mxu1 %v9404_v36 }
 0xbfd   : > { %9407 = vmatpush3.bf16.msra.mxu1 %v9404_v36 }
 0xbfe   : > { %9408 = vmatprep.subr.bf16.mxu1 %v10915_v59 }
 0xc00   : > { %8887 = vmatmul.mubr.msk.f32.vlgmr.msra.gmra.mrb[10].mxu1 %vm2835_vm5, %v3333_v41 }
 0xc01   : > { %9411 = vmatpush3.bf16.msk.msra.mxu1 %vm11584_vm15, %v9409_v7  ;;  %8901 = vmatprep.mubr.msk.f32.mxu1 %vm10908_vm0, %v10905_v1  ;;  %v3571_v7 = vld [vmem:[%s12753_s17] sm:$0xff]  ;;  %s12584_s17 = smov 114  }
 0xc02   : > { %9412 = vmatprep.subr.bf16.mxu1 %v10915_v59 }
 0xc05   : > { %9414 = vmatpush3.bf16.msra.mxu1 %v9413_v48 }
 0xc06   : > { %9415 = vmatprep.subr.bf16.mxu1 %v10915_v59 }
 0xc09   : > { %9417 = vmatpush3.bf16.msra.mxu1 %v9416_v49 }
 0xc0c   : > { %8902 = vmatmul.mubr.msk.f32.vlgmr.msra.gmra.mrb[12].mxu1 %vm3475_vm2, %v3468_v50 }
 0xcd3   : > { %v11597_v51 = vpop.f32.mrb[10].mxu1 }
 0xcd4   : > { %v11599_v52 = vpop.f32.mrb[11].mxu1 }
 0xcdf   : > { %v3545_v55 = vpop.f32.mrb[12].mxu1 }
 0xce0   : > { %v3546_v57 = vadd.f32 %v3545_v55, %v3473_v53  ;;  %v8903_v58 = vpop.f32.mrb[13].mxu1 }
 0xce2   : > { %v3549_v60 = vmax.f32 %v3546_v57, 0.0 }
 0xce4   : > { %3551 = vrot.lane.b32.xlu0 %v3549_v60, %s12577_s19  ;;  %s12581_s19 = smov 121  }
 0xd56   : > { %v3552_v61 = vpop.permute.xlu0 %3551 }
 0xd57   : > { %v3555_v62 = vsel %vm12573_vm10, 0.0, %v3552_v61  ;;  %vm12578_vm10 = vcmask 326656  }
 0xd58   : > { %v3557_v63 = vsel %vm3556_vm7, %v3555_v62, 0.0  ;;  %vm3657_vm7 = vcmask 171008  }
 0xd59   : > { %3562 = vrot.lane.b32.xlu0 %v3557_v63, %s12575_s13  ;;  %3559 = vrot.lane.b32.xlu1 %v3557_v63, %s12752_s14  ;;  %s12756_s13 = sld [smem:[#allocation23_spill]] }
 0xd5d   : > { %3568 = vrot.lane.b32.xlu0 %v3557_v63, %s12574_s21  ;;  %3565 = vrot.lane.b32.xlu1 %v3557_v63, %s12754_s24  ;;  %s10929_s21 = smov 21  }
 0xd5f   : > { %v3335_v18 = vld [vmem:[%s12756_s13 + $0x8] sm:$0xff]  ;;  %v3334_v19 = vld [vmem:[%s12756_s13] sm:$0xff]  ;;  %s12764_s13 = sld [smem:[#allocation35_spill]] }
 0xd61   : > { %3575 = vperm.xlu1 %10044, %v3572_v0  }
 0xdcb   : > { %v3560_v2 = vpop.permute.xlu1 %3559  ;;  %v3563_v4 = vpop.permute.xlu0 %3562 }
 0xdcc   : > { %v9419_v3 = vpack.c.bf16 %v3560_v2, %v3555_v62 }
 0xdce   : > { %9421 = vmatpush3.bf16.msk.msra.mxu0 %vm9420_vm9, %v9419_v3  ;;  %vm3659_vm9 = vcmask 433152  }
 0xdcf   : > { %v3566_v5 = vpop.permute.xlu1 %3565  ;;  %9422 = vmatprep.subr.bf16.mxu0 %v10915_v59  ;;  %v3569_v8 = vpop.permute.xlu0 %3568 }
 0xdd0   : > { %v9423_v6 = vpack.c.bf16 %v3566_v5, %v3563_v4 }
 0xdd2   : > { %9424 = vmatpush3.bf16.msra.mxu0 %v9423_v6 }
 0xdd3   : > { %8912 = vmatprep.subr.mxu0 %v10905_v1 }
 0xdd6   : > { %8913 = vmatpush3.msra.mxu0 %v3569_v8 }
 0xdd7   : > { %8915 = vmatmul.mubr.msk.f32.vlgmr.msra.gmra.mrb[10].mxu0 %vm12578_vm10, %v3571_v7  ;;  %vm3694_vm10 = vcmask 457728  }
 0xdd8   : > { %8931 = vmatprep.mubr.msk.f32.mxu1 %vm3694_vm10, %v3680_v17 }
 0xde0   : > { %v3576_v9 = vpop.permute.xlu1 %3575 }
 0xeaa   : > { %v3648_v10 = vpop.f32.mrb[10].mxu0 }
 0xeab   : > { %v3649_v11 = vadd.f32 %v3648_v10, %v3576_v9  ;;  %v8916_v12 = vpop.f32.mrb[11].mxu0 }
 0xead   : > { %v3652_v13 = vmax.f32 %v3649_v11, 0.0 }
 0xeaf   : > { %3654 = vrot.lane.b32.xlu0 %v3652_v13, %s10929_s21  ;;  %s12580_s21 = smov 100  }
 0xf21   : > { %v3655_v14 = vpop.permute.xlu0 %3654 }
 0xf22   : > { %v3658_v15 = vsel %vm3657_vm7, 0.0, %v3655_v14  ;;  %vm9426_vm7 = vmpackc.low %vm10914_vm3, %vm3659_vm9 }
 0xf23   : > { %v3660_v16 = vsel %vm3659_vm9, %v3658_v15, 0.0 }
 0xf24   : > { %3665 = vrot.lane.b32.xlu0 %v3660_v16, %s12584_s17  ;;  %3662 = vrot.lane.b32.xlu1 %v3660_v16, %s12581_s19  ;;  %s12760_s19 = sld [smem:[#allocation31_spill]]  ;;  %s12762_s17 = sld [smem:[#allocation34_spill]] }
 0xf28   : > { %3671 = vrot.lane.b32.xlu0 %v3660_v16, %s12580_s21  ;;  %3668 = vrot.lane.b32.xlu1 %v3660_v16, %s12758_s27 }
 0xf2a   : > { %v3811_v10 = vld [vmem:[%s12760_s19 + $0x8] sm:$0xff]  ;;  %v3810_v11 = vld [vmem:[%s12760_s19] sm:$0xff]  ;;  %s12769_s19 = smov 12  }
 0xf2c   : > { %3677 = vrot.lane.b32.xlu0 %v3660_v16, %s10933_s29  ;;  %3674 = vrot.lane.b32.xlu1 %v3660_v16, %s10934_s30  ;;  %s12583_s29 = sshll.u32 %s11431_s7, 4  ;;  %s12759_s30 = sld [smem:[#allocation30_spill]] }
 0xf2d   : > { %s11647_s21 = scalar_lea.vmem [#allocation4], %s12583_s29  ;;  %s12761_s29 = sld [smem:[#allocation32_spill]] }
 0xf30   : > { %3343 = vperm.xlu0 %10045, %v3335_v18   ;;  %3338 = vperm.xlu1 %10044, %v3334_v19  }
 0xf32   : > { %v3808_v8 = vld [vmem:[%s12759_s30] sm:$0xff]  ;;  %v3809_v42 = vld [vmem:[%s12759_s30 + $0x8] sm:$0xff]  ;;  %s12776_s30 = smov 110  }
 0xf33   : > { %8946 = vmatprep.mubr.msk.f32.mxu0 %vm3475_vm2, %v3808_v8 }
 0xf34   : > { %3691 = vperm.xlu0 %10045, %v3683_v20   ;;  %3686 = vperm.xlu1 %10044, %v3682_v21  }
 0xf96   : > { %v3666_v22 = vpop.permute.xlu0 %3665  ;;  %v3663_v23 = vpop.permute.xlu1 %3662 }
 0xf97   : > { %v9425_v24 = vpack.c.bf16 %v3663_v23, %v3658_v15 }
 0xf99   : > { %9427 = vmatprep.subr.msk.bf16.mxu1 %vm9426_vm7, %v9425_v24 }
 0xf9a   : > { %9430 = vmatpush3.bf16.msk.msra.mxu1 %vm9426_vm7, %v9425_v24  ;;  %v3669_v25 = vpop.permute.xlu1 %3668  ;;  %v3672_v27 = vpop.permute.xlu0 %3671  ;;  %vm4609_vm7 = vcmask 138240  }
 0xf9b   : > { %v9431_v26 = vpack.c.bf16 %v3669_v25, %v3666_v22 }
 0xf9d   : > { %9432 = vmatprep.subr.bf16.mxu1 %v9431_v26 }
 0xf9e   : > { %9434 = vmatpush3.bf16.msra.mxu1 %v9431_v26  ;;  %v3675_v28 = vpop.permute.xlu1 %3674  ;;  %v3678_v31 = vpop.permute.xlu0 %3677 }
 0xf9f   : > { %v9435_v29 = vpack.c.bf16 %v3675_v28, %v3672_v27 }
 0xfa1   : > { %9436 = vmatprep.subr.bf16.mxu1 %v9435_v29 }
 0xfa2   : > { %9438 = vmatpush3.bf16.msra.mxu1 %v9435_v29 }
 0xfa3   : > { %8929 = vmatprep.subr.mxu1 %v3678_v31 }
 0xfa6   : > { %8930 = vmatpush3.msra.mxu1 %v3678_v31 }
 0xfa7   : > { %8932 = vmatmul.mubr.msk.f32.vlgmr.msra.gmra.mrb[14].mxu1 %vm3694_vm10, %v3681_v32  ;;  %9454 = vmatprep.subr.msk.bf16.mxu1 %vm11464_vm11, %v10913_v39  ;;  %vm12770_vm10 = vcmask 97280  }
 0xfa8   : > { %9456 = vmatpush3.bf16.msk.msra.mxu1 %vm11464_vm11, %v10913_v39  ;;  %vm12771_vm9 = vmmov %vm12770_vm10 }
 0xfa9   : > { %9458 = vmatprep.subr.msk.bf16.mxu1 %vm11471_vm12, %v10913_v39 }
 0xfac   : > { %9460 = vmatpush3.bf16.msk.msra.mxu1 %vm11471_vm12, %v10913_v39  ;;  %vm4190_vm12 = vcmask 154624  }
 0xfaf   : > { %v3344_v34 = vpop.permute.xlu0 %3343  ;;  %v3339_v35 = vpop.permute.xlu1 %3338 }
 0xfb0   : > { %v3424_v36 = vadd.f32 %v11597_v51, %v3344_v34  ;;  %v3419_v37 = vadd.f32 %v11599_v52, %v3339_v35 }
 0xfb2   : > { %v8339_v41 = vmul.f32 -1.442695, %v3424_v36  ;;  %v8338_v43 = vmul.f32 -1.442695, %v3419_v37 }
 0xfb3   : > { %v3692_v48 = vpop.permute.xlu0 %3691  ;;  %v3687_v53 = vpop.permute.xlu1 %3686 }
 0xfb4   : > { %10614 = vpow2.f32 %v8339_v41 }
 0xfb5   : > { %10616 = vpow2.f32 %v8338_v43  ;;  %v3995_v43 = vld [vmem:[%s12761_s29] sm:$0xff]  ;;  %s12766_s29 = sld [smem:[#allocation37_spill]] }
 0xfbe   : > { %v10615_v44 = vpop.eup %10614 }
 0xfbf   : > { %v10617_v45 = vpop.eup %10616  ;;  %v3434_v46 = vadd.f32 1.0, %v10615_v44  ;;  %v4071_v44 = vld [vmem:[%s12762_s17] sm:$0xff] }
 0xfc0   : > { %v3433_v47 = vadd.f32 1.0, %v10617_v45  ;;  %v3996_v45 = vld [vmem:[%s12763_s8] sm:$0xff]  ;;  %s12765_s8 = smov 3  }
 0xfc1   : > { %10618 = vrcp.f32 %v3434_v46 }
 0xfc2   : > { %10620 = vrcp.f32 %v3433_v47 }
 0xfcb   : > { %v10619_v40 = vpop.eup %10618 }
 0xfcc   : > { %v10621_v50 = vpop.eup %10620  ;;  %v3440_v57 = vmul.f32 %v10619_v40, %v11502_v54 }
 0xfcd   : > { %v3439_v60 = vmul.f32 %v10621_v50, %v11504_v56  ;;  %v4074_v50 = vld [vmem:[%s12764_s13 + $0x8] sm:$0xff] }
0x107a   : > { %v8933_v49 = vpop.f32.mrb[14].mxu1 }
0x107b   : > { %v3773_v51 = vadd.f32 %v8933_v49, %v3692_v48  ;;  %v3767_v52 = vpop.f32.mrb[15].mxu1  ;;  %v4072_v49 = vld [vmem:[%s12762_s17 + $0x8] sm:$0xff]  ;;  %s12768_s17 = smov 124  }
0x107c   : > { %v3768_v55 = vadd.f32 %v3767_v52, %v3687_v53  ;;  %v4073_v53 = vld [vmem:[%s12764_s13] sm:$0xff]  ;;  %s12767_s13 = sld [smem:[#allocation36_spill]] }
0x107d   : > { %v3777_v58 = vmax.f32 %v3773_v51, 0.0 }
0x107e   : > { %v3776_v61 = vmax.f32 %v3768_v55, 0.0 }
0x107f   : > { %v3779_v62 = vadd.f32 %v3777_v58, %v3440_v57 }
0x1080   : > { %v3778_v63 = vadd.f32 %v3776_v61, %v3439_v60 }
0x1081   : > { %3781 = vst.msk [vmem:[%s11647_s21 + $0x8] sm:$0xff] %vm2823_vm6, %v3779_v62 }
0x1082   : > { %3780 = vst.msk [vmem:[%s11647_s21] sm:$0xff] %vm2823_vm6, %v3778_v63  ;;  %v10141_v0 = vpack.i.bf16 %v3779_v62, %v3778_v63 }
0x1084   : > { %10142 = vrot.lane.b32.xlu1 %v10141_v0, %s12745_s10 }
0x10f6   : > { %v10143_v54 = vpop.permute.xlu1 %10142 }
0x10f7   : > { %v10145_v56 = vunpack.i.h.bf16 %v10143_v54  ;;  %v10144_v2 = vunpack.i.l.bf16 %v10143_v54 }
0x10f9   : > { %v3791_v3 = vsel %vm2345_vm1, 0.0, %v10145_v56  ;;  %v3790_v4 = vsel %vm2345_vm1, 0.0, %v10144_v2 }
0x10fa   : > { %v9439_v5 = vpack.c.bf16 %v3791_v3, %v3790_v4  ;;  %v3792_v6 = vsel %vm3451_vm14, %v3790_v4, 0.0  ;;  %v3793_v7 = vsel %vm3451_vm14, %v3791_v3, 0.0  ;;  %vm9465_vm14 = vmpackc.low %vm4190_vm12, %vm4190_vm12 }
0x10fb   : > { %v10151_v9 = vpack.i.bf16 %v3793_v7, %v3792_v6 }
0x10fc   : > { %9441 = vmatprep.subr.msk.bf16.mxu0 %vm11584_vm15, %v9439_v5 }
0x10fd   : > { %9444 = vmatpush3.bf16.msk.msra.mxu0 %vm11584_vm15, %v9439_v5  ;;  %10152 = vrot.lane.b32.xlu1 %v10151_v9, %s12735_s5  ;;  %vm4338_vm15 = vcmask 228352  }
0x10fe   : > { %10147 = vrot.lane.b32.xlu0 %v10151_v9, %s12736_s9 }
0x1101   : > { %3819 = vperm.xlu1 %10044, %v3811_v10  }
0x1102   : > { %3814 = vperm.xlu0 %10045, %v3810_v11  }
0x116f   : > { %v10153_v12 = vpop.permute.xlu1 %10152 }
0x1170   : > { %v10148_v13 = vpop.permute.xlu0 %10147  ;;  %v10155_v14 = vunpack.i.h.bf16 %v10153_v12  ;;  %v10154_v15 = vunpack.i.l.bf16 %v10153_v12 }
0x1171   : > { %v10150_v16 = vunpack.i.h.bf16 %v10148_v13  ;;  %v10149_v17 = vunpack.i.l.bf16 %v10148_v13 }
0x1172   : > { %v9449_v19 = vpack.c.bf16 %v10155_v14, %v10154_v15 }
0x1173   : > { %v9445_v18 = vpack.c.bf16 %v10150_v16, %v10149_v17  ;;  %v4234_v16 = vld [vmem:[%s12766_s29 + $0x8] sm:$0xff]  ;;  %v4233_v17 = vld [vmem:[%s12766_s29] sm:$0xff]  ;;  %s12775_s29 = smov 119  }
0x1175   : > { %9446 = vmatprep.subr.bf16.mxu0 %v9445_v18 }
0x1176   : > { %9448 = vmatpush3.bf16.msra.mxu0 %v9445_v18  ;;  %v4231_v18 = vld [vmem:[%s12767_s13] sm:$0xff] }
0x1177   : > { %9450 = vmatprep.subr.bf16.mxu0 %v9449_v19 }
0x117a   : > { %9452 = vmatpush3.bf16.msra.mxu0 %v9449_v19 }
0x117b   : > { %9461 = vmatprep.subr.bf16.mxu0 %v10915_v59 }
0x117d   : > { %8947 = vmatmul.mubr.msk.f32.vlgmr.msra.gmra.mrb[12].mxu0 %vm3475_vm2, %v3809_v42 }
0x117e   : > { %8964 = vmatprep.mubr.msk.f32.mxu0 %vm10908_vm0, %v10905_v1 }
0x1180   : > { %v3820_v23 = vpop.permute.xlu1 %3819 }
0x1181   : > { %v3815_v21 = vpop.permute.xlu0 %3814 }
0x1250   : > { %v8948_v20 = vpop.f32.mrb[12].mxu0 }
0x1251   : > { %v3894_v22 = vpop.f32.mrb[13].mxu0  ;;  %v3900_v25 = vadd.f32 %v8948_v20, %v3820_v23 }
0x1252   : > { %v3895_v24 = vadd.f32 %v3894_v22, %v3815_v21 }
0x1254   : > { %8957 = vmatprep.mubr.msk.f32.mxu1 %vm2823_vm6, %v3895_v24 }
0x1255   : > { %8958 = vmatmul.mubr.msk.f32.vlgmr.msra.gmra.mrb[16].mxu1 %vm2823_vm6, %v3900_v25 }
0x1256   : > { %8969 = vmatprep.mubr.msk.f32.mxu1 %vm2914_vm13, %v4071_v44 }
0x1328   : > { %v8959_v26 = vpop.f32.mrb[16].mxu1 }
0x1329   : > { %v11675_v27 = vmax.f32 %v8959_v26, 0.0  ;;  %v3975_v28 = vpop.f32.mrb[17].mxu1 }
0x132a   : > { %v11677_v29 = vmax.f32 %v3975_v28, 0.0 }
0x132b   : > { %v3989_v31 = vsel %vm2835_vm5, %v11675_v27, 0.0 }
0x132c   : > { %3990 = vadd.xlane.f32.xlu1 %v3989_v31  ;;  %v3986_v32 = vsel %vm2835_vm5, %v11677_v29, 0.0 }
0x132d   : > { %3987 = vadd.xlane.f32.xlu0 %v3986_v32 }
0x13b9   : > { %v3991_v34 = vpop.xlane.xlu1 %3990 }
0x13ba   : > { %v3994_v35 = vmul.f32 0.0625, %v3991_v34  ;;  %v3988_v36 = vpop.xlane.xlu0 %3987 }
0x13bb   : > { %v3993_v37 = vmul.f32 0.0625, %v3988_v36 }
0x13bd   : > { %v9462_v41 = vpack.c.bf16 %v3994_v35, %v3993_v37 }
0x13bf   : > { %9463 = vmatpush3.bf16.msra.mxu0 %v9462_v41 }
0x13c2   : > { %8965 = vmatmul.mubr.msk.f32.vlgmr.msra.gmra.mrb[14].mxu0 %vm2835_vm5, %v3995_v43 }
0x13c3   : > { %9000 = vmatprep.mubr.msk.f32.mxu0 %vm3085_vm8, %v4231_v18 }
0x1495   : > { %v4066_v46 = vpop.f32.mrb[14].mxu0 }
0x1496   : > { %v4067_v47 = vadd.f32 %v4066_v46, %v3996_v45  ;;  %v8966_v40 = vpop.f32.mrb[15].mxu0 }
0x1498   : > { %v4070_v48 = vmax.f32 %v4067_v47, 0.0 }
0x149a   : > { %8967 = vmatprep.subr.mxu1 %v4070_v48 }
0x149b   : > { %8968 = vmatpush3.msra.mxu1 %v4070_v48 }
0x149c   : > { %8970 = vmatmul.mubr.msk.f32.vlgmr.msra.gmra.mrb[18].mxu1 %vm2914_vm13, %v4072_v49  ;;  %9494 = vmatprep.subr.bf16.mxu1 %v10915_v59  ;;  %v4232_v49 = vld [vmem:[%s12767_s13 + $0x8] sm:$0xff]  ;;  %s12772_s13 = sld [smem:[#allocation39_spill]] }
0x156f   : > { %v8971_v51 = vpop.f32.mrb[18].mxu1 }
0x1570   : > { %v4153_v52 = vadd.f32 %v8971_v51, %v4074_v50  ;;  %v4147_v55 = vpop.f32.mrb[19].mxu1 }
0x1571   : > { %v4148_v57 = vadd.f32 %v4147_v55, %v4073_v53 }
0x1572   : > { %v8362_v58 = vmul.f32 -1.442695, %v4153_v52 }
0x1573   : > { %v8361_v60 = vmul.f32 -1.442695, %v4148_v57 }
0x1574   : > { %10622 = vpow2.f32 %v8362_v58 }
0x1575   : > { %10624 = vpow2.f32 %v8361_v60 }
0x157e   : > { %v10623_v61 = vpop.eup %10622 }
0x157f   : > { %v10625_v62 = vpop.eup %10624  ;;  %v4163_v63 = vadd.f32 1.0, %v10623_v61 }
0x1580   : > { %v4162_v0 = vadd.f32 1.0, %v10625_v62 }
0x1581   : > { %10626 = vrcp.f32 %v4163_v63 }
0x1582   : > { %10628 = vrcp.f32 %v4162_v0 }
0x158b   : > { %v10627_v54 = vpop.eup %10626 }
0x158c   : > { %v10629_v56 = vpop.eup %10628  ;;  %4175 = vperm.xlu1 %10044, %v10627_v54  }
0x158d   : > { %4170 = vperm.xlu0 %10045, %v10629_v56  }
0x160b   : > { %v4176_v2 = vpop.permute.xlu1 %4175 }
0x160c   : > { %v4179_v3 = vmul.f32 %v4176_v2, %v11675_v27  ;;  %v4171_v4 = vpop.permute.xlu0 %4170 }
0x160d   : > { %v4178_v5 = vmul.f32 %v4171_v4, %v11677_v29 }
0x160f   : > { %v10156_v6 = vpack.i.bf16 %v4179_v3, %v4178_v5 }
0x1611   : > { %10157 = vrot.lane.b32.xlu0 %v10156_v6, %s12765_s8  ;;  %v4395_v6 = vld [vmem:[%s12772_s13] sm:$0xff] }
0x1683   : > { %v10158_v7 = vpop.permute.xlu0 %10157 }
0x1684   : > { %v10160_v8 = vunpack.i.h.bf16 %v10158_v7  ;;  %v10159_v9 = vunpack.i.l.bf16 %v10158_v7  ;;  %v10236_v7 = vpack.i.bf16 %v11675_v27, %v11677_v29 }
0x1686   : > { %v4189_v10 = vsel %vm2356_vm4, 0.0, %v10160_v8  ;;  %v4188_v11 = vsel %vm2356_vm4, 0.0, %v10159_v9  ;;  %v4396_v8 = vld [vmem:[%s12772_s13 + $0x8] sm:$0xff]  ;;  %s12783_s13 = sld [smem:[#allocation45_spill]] }
0x1687   : > { %v9464_v12 = vpack.c.bf16 %v4189_v10, %v4188_v11  ;;  %v4191_v13 = vsel %vm4190_vm12, %v4188_v11, 0.0  ;;  %v4192_v14 = vsel %vm4190_vm12, %v4189_v10, 0.0  ;;  %v4392_v9 = vld [vmem:[%s12773_s25 + $0x8] sm:$0xff]  ;;  %vm11756_vm12 = vmpackc.low %vm4609_vm7, %vm4609_vm7 }
0x1688   : > { %v10166_v15 = vpack.i.bf16 %v4192_v14, %v4191_v13  ;;  %8369 = vmatprep.mubr.msk.f32.mxu1 %vm2835_vm5, %v4392_v9 }
0x1689   : > { %9466 = vmatprep.subr.msk.bf16.mxu0 %vm9465_vm14, %v9464_v12 }
0x168a   : > { %9469 = vmatpush3.bf16.msk.msra.mxu0 %vm9465_vm14, %v9464_v12  ;;  %10167 = vrot.lane.b32.xlu0 %v10166_v15, %s12735_s5  ;;  %vm12785_vm14 = vcmask 80896  }
0x168b   : > { %10162 = vrot.lane.b32.xlu1 %v10166_v15, %s12736_s9 }
0x168e   : > { %10177 = vrot.lane.b32.xlu0 %v10166_v15, %s12768_s17 }
0x168f   : > { %10172 = vrot.lane.b32.xlu1 %v10166_v15, %s12743_s11 }
0x1692   : > { %10187 = vrot.lane.b32.xlu0 %v10166_v15, %s12744_s3 }
0x1693   : > { %10182 = vrot.lane.b32.xlu1 %v10166_v15, %s12752_s14 }
0x1696   : > { %4242 = vperm.xlu0 %10045, %v4234_v16  }
0x1697   : > { %4237 = vperm.xlu1 %10044, %v4233_v17  }
0x16fc   : > { %v10168_v19 = vpop.permute.xlu0 %10167 }
0x16fd   : > { %v10163_v42 = vpop.permute.xlu1 %10162  ;;  %v10170_v20 = vunpack.i.h.bf16 %v10168_v19  ;;  %v10169_v21 = vunpack.i.l.bf16 %v10168_v19 }
0x16fe   : > { %v10165_v22 = vunpack.i.h.bf16 %v10163_v42  ;;  %v10164_v23 = vunpack.i.l.bf16 %v10163_v42 }
0x16ff   : > { %v9474_v31 = vpack.c.bf16 %v10170_v20, %v10169_v21 }
0x1700   : > { %v9470_v24 = vpack.c.bf16 %v10165_v22, %v10164_v23  ;;  %v10178_v32 = vpop.permute.xlu0 %10177 }
0x1701   : > { %v10173_v25 = vpop.permute.xlu1 %10172  ;;  %v10180_v34 = vunpack.i.h.bf16 %v10178_v32  ;;  %v10179_v35 = vunpack.i.l.bf16 %v10178_v32 }
0x1702   : > { %v10175_v26 = vunpack.i.h.bf16 %v10173_v25  ;;  %v10174_v28 = vunpack.i.l.bf16 %v10173_v25  ;;  %9471 = vmatprep.subr.bf16.mxu0 %v9470_v24 }
0x1703   : > { %9473 = vmatpush3.bf16.msra.mxu0 %v9470_v24  ;;  %v9482_v44 = vpack.c.bf16 %v10180_v34, %v10179_v35 }
0x1704   : > { %9475 = vmatprep.subr.bf16.mxu0 %v9474_v31  ;;  %v9478_v36 = vpack.c.bf16 %v10175_v26, %v10174_v28  ;;  %v10188_v45 = vpop.permute.xlu0 %10187 }
0x1705   : > { %v10183_v37 = vpop.permute.xlu1 %10182  ;;  %v10190_v46 = vunpack.i.h.bf16 %v10188_v45  ;;  %v10189_v47 = vunpack.i.l.bf16 %v10188_v45 }
0x1706   : > { %v10185_v41 = vunpack.i.h.bf16 %v10183_v37  ;;  %v10184_v43 = vunpack.i.l.bf16 %v10183_v37 }
0x1707   : > { %9477 = vmatpush3.bf16.msra.mxu0 %v9474_v31  ;;  %v9490_v48 = vpack.c.bf16 %v10190_v46, %v10189_v47 }
0x1708   : > { %9479 = vmatprep.subr.bf16.mxu0 %v9478_v36  ;;  %v9486_v40 = vpack.c.bf16 %v10185_v41, %v10184_v43 }
0x170b   : > { %9481 = vmatpush3.bf16.msra.mxu0 %v9478_v36 }
0x170c   : > { %9483 = vmatprep.subr.bf16.mxu0 %v9482_v44 }
0x170f   : > { %9485 = vmatpush3.bf16.msra.mxu0 %v9482_v44 }
0x1710   : > { %9487 = vmatprep.subr.bf16.mxu0 %v9486_v40 }
0x1713   : > { %9489 = vmatpush3.bf16.msra.mxu0 %v9486_v40 }
0x1714   : > { %9491 = vmatprep.subr.bf16.mxu0 %v9490_v48 }
0x1715   : > { %v4243_v50 = vpop.permute.xlu0 %4242 }
0x1716   : > { %v4238_v51 = vpop.permute.xlu1 %4237 }
0x1717   : > { %9493 = vmatpush3.bf16.msra.mxu0 %v9490_v48 }
0x171a   : > { %9001 = vmatmul.mubr.msk.f32.vlgmr.msra.gmra.mrb[16].mxu0 %vm3085_vm8, %v4232_v49  ;;  %vm9496_vm8 = vmpackc.low %vm4338_vm15, %vm4338_vm15 }
0x17ed   : > { %v9002_v53 = vpop.f32.mrb[16].mxu0 }
0x17ee   : > { %v4323_v52 = vadd.f32 %v9002_v53, %v4243_v50  ;;  %v4317_v55 = vpop.f32.mrb[17].mxu0 }
0x17ef   : > { %v4318_v57 = vadd.f32 %v4317_v55, %v4238_v51 }
0x17f0   : > { %v4327_v58 = vmax.f32 %v4323_v52, 0.0 }
0x17f1   : > { %v4326_v60 = vmax.f32 %v4318_v57, 0.0 }
0x17f3   : > { %v10191_v61 = vpack.i.bf16 %v4327_v58, %v4326_v60 }
0x17f5   : > { %10192 = vrot.lane.b32.xlu1 %v10191_v61, %s12769_s19  ;;  %s12774_s19 = smov 116   ;;  %v4391_v61 = vld [vmem:[%s12773_s25] sm:$0xff] }
0x1867   : > { %v10193_v62 = vpop.permute.xlu1 %10192 }
0x1868   : > { %v10195_v63 = vunpack.i.h.bf16 %v10193_v62  ;;  %v10194_v0 = vunpack.i.l.bf16 %v10193_v62  ;;  %v4394_v62 = vld [vmem:[%s12773_s25 + $0x18] sm:$0xff] }
0x186a   : > { %v4337_v54 = vsel %vm12770_vm10, 0.0, %v10195_v63  ;;  %v4336_v56 = vsel %vm12771_vm9, 0.0, %v10194_v0  ;;  %v4393_v63 = vld [vmem:[%s12773_s25 + $0x10] sm:$0xff]  ;;  %s12784_s25 = smov 10   ;;  %vm12790_vm10 = vcmask 326656   ;;  %vm4812_vm9 = vcmask 113664  }
0x186b   : > { %v4340_v2 = vsel %vm4338_vm15, %v4337_v54, 0.0  ;;  %v4339_v3 = vsel %vm4338_vm15, %v4336_v56, 0.0  ;;  %v9495_v4 = vpack.c.bf16 %v4337_v54, %v4336_v56 }
0x186c   : > { %v10201_v5 = vpack.i.bf16 %v4340_v2, %v4339_v3 }
0x186d   : > { %9497 = vmatpush1.bf16.msk.msra.mxu1 %vm9496_vm8, %v9495_v4  ;;  %vm4814_vm8 = vcmask 244736  }
0x186e   : > { %10202 = vrot.lane.b32.xlu1 %v10201_v5, %s12744_s3  ;;  %10197 = vrot.lane.b32.xlu0 %v10201_v5, %s12743_s11 }
0x186f   : > { %9498 = vmatprep.subr.bf16.mxu1 %v10915_v59 }
0x1872   : > { %10212 = vrot.lane.b32.xlu1 %v10201_v5, %s12774_s19  ;;  %10207 = vrot.lane.b32.xlu0 %v10201_v5, %s12775_s29 }
0x1876   : > { %10222 = vrot.lane.b32.xlu1 %v10201_v5, %s12776_s30  ;;  %10217 = vrot.lane.b32.xlu0 %v10201_v5, %s12754_s24  ;;  %s12779_s30 = sld [smem:[#allocation40_spill]] }
0x187a   : > { %10232 = vrot.lane.b32.xlu1 %v10201_v5, %s12777_s26  ;;  %10227 = vrot.lane.b32.xlu0 %v10201_v5, %s12758_s27  ;;  %s12778_s26 = sld [smem:[#allocation43_spill]] }
0x187c   : > { %v4490_v0 = vld [vmem:[%s12779_s30] sm:$0xff] }
0x187d   : > { %9007 = vmatprep.mubr.msk.f32.mxu0 %vm2835_vm5, %v4490_v0 }
0x187e   : > { %4399 = vperm.xlu1 %10044, %v4395_v6   ;;  %10237 = vrot.lane.b32.xlu0 %v10236_v7, %s12745_s10 }
0x1880   : > { %v4627_v52 = vld [vmem:[%s12778_s26] sm:$0xff]  ;;  %s12780_s26 = sld [smem:[#allocation42_spill]] }
0x1882   : > { %4404 = vperm.xlu0 %10045, %v4396_v8  }
0x18e0   : > { %v10203_v10 = vpop.permute.xlu1 %10202  ;;  %v10198_v11 = vpop.permute.xlu0 %10197 }
0x18e1   : > { %v10200_v12 = vunpack.i.h.bf16 %v10198_v11  ;;  %v10199_v13 = vunpack.i.l.bf16 %v10198_v11  ;;  %v10205_v14 = vunpack.i.h.bf16 %v10203_v10  ;;  %v10204_v15 = vunpack.i.l.bf16 %v10203_v10 }
0x18e3   : > { %v9499_v16 = vpack.c.bf16 %v10200_v12, %v10199_v13  ;;  %v9502_v18 = vpack.c.bf16 %v10205_v14, %v10204_v15  ;;  %v4491_v12 = vld [vmem:[%s12779_s30 + $0x8] sm:$0xff]  ;;  %s12787_s30 = sld [smem:[#allocation44_spill]] }
0x18e4   : > { %v10208_v17 = vpop.permute.xlu0 %10207  ;;  %v10213_v20 = vpop.permute.xlu1 %10212 }
0x18e5   : > { %9500 = vmatpush1.bf16.msra.mxu1 %v9499_v16  ;;  %v10210_v19 = vunpack.i.h.bf16 %v10208_v17  ;;  %v10209_v42 = vunpack.i.l.bf16 %v10208_v17  ;;  %v10215_v22 = vunpack.i.h.bf16 %v10213_v20  ;;  %v10214_v23 = vunpack.i.l.bf16 %v10213_v20  ;;  %v4626_v20 = vld [vmem:[%s12780_s26] sm:$0xff]  ;;  %s12786_s26 = smov 118  }
0x18e6   : > { %9501 = vmatprep.subr.bf16.mxu1 %v10915_v59 }
0x18e7   : > { %v9505_v24 = vpack.c.bf16 %v10210_v19, %v10209_v42  ;;  %v9508_v26 = vpack.c.bf16 %v10215_v22, %v10214_v23 }
0x18e8   : > { %v10218_v21 = vpop.permute.xlu0 %10217  ;;  %v10223_v28 = vpop.permute.xlu1 %10222 }
0x18e9   : > { %9503 = vmatpush1.bf16.msra.mxu1 %v9502_v18  ;;  %v10220_v31 = vunpack.i.h.bf16 %v10218_v21  ;;  %v10219_v32 = vunpack.i.l.bf16 %v10218_v21  ;;  %v10225_v37 = vunpack.i.h.bf16 %v10223_v28  ;;  %v10224_v41 = vunpack.i.l.bf16 %v10223_v28 }
0x18ea   : > { %9504 = vmatprep.subr.bf16.mxu1 %v10915_v59 }
0x18eb   : > { %v9511_v43 = vpack.c.bf16 %v10220_v31, %v10219_v32  ;;  %v9514_v49 = vpack.c.bf16 %v10225_v37, %v10224_v41 }
0x18ec   : > { %v10228_v25 = vpop.permute.xlu0 %10227  ;;  %v10233_v51 = vpop.permute.xlu1 %10232 }
0x18ed   : > { %9506 = vmatpush1.bf16.msra.mxu1 %v9505_v24  ;;  %v10230_v50 = vunpack.i.h.bf16 %v10228_v25  ;;  %v10229_v53 = vunpack.i.l.bf16 %v10228_v25  ;;  %v10235_v55 = vunpack.i.h.bf16 %v10233_v51  ;;  %v10234_v57 = vunpack.i.l.bf16 %v10233_v51 }
0x18ee   : > { %9507 = vmatprep.subr.bf16.mxu1 %v10915_v59 }
0x18ef   : > { %v9517_v58 = vpack.c.bf16 %v10230_v50, %v10229_v53  ;;  %v9520_v60 = vpack.c.bf16 %v10235_v55, %v10234_v57 }
0x18f0   : > { %v10238_v34 = vpop.permute.xlu0 %10237 }
0x18f1   : > { %v10240_v35 = vunpack.i.h.bf16 %v10238_v34  ;;  %v10239_v36 = vunpack.i.l.bf16 %v10238_v34  ;;  %9509 = vmatpush1.bf16.msra.mxu1 %v9508_v26 }
0x18f2   : > { %9510 = vmatprep.subr.bf16.mxu1 %v10915_v59 }
0x18f3   : > { %v4608_v44 = vsel %vm2345_vm1, 0.0, %v10240_v35  ;;  %v4607_v45 = vsel %vm2345_vm1, 0.0, %v10239_v36  ;;  %v4728_v35 = vld [vmem:[%s12783_s13] sm:$0xff]  ;;  %s12792_s13 = sld [smem:[#allocation47_spill]] }
0x18f4   : > { %v9527_v46 = vpack.c.bf16 %v4608_v44, %v4607_v45  ;;  %v4610_v47 = vsel %vm4609_vm7, %v4607_v45, 0.0  ;;  %v4611_v40 = vsel %vm4609_vm7, %v4608_v44, 0.0  ;;  %v4727_v45 = vld [vmem:[%s12787_s30] sm:$0xff]  ;;  %s12794_s30 = smov 114  }
0x18f5   : > { %9512 = vmatpush1.bf16.msra.mxu1 %v9511_v43  ;;  %v10246_v48 = vpack.i.bf16 %v4611_v40, %v4610_v47 }
0x18f6   : > { %9513 = vmatprep.subr.bf16.mxu1 %v10915_v59 }
0x18f7   : > { %10247 = vrot.lane.b32.xlu0 %v10246_v48, %s12735_s5  ;;  %10242 = vrot.lane.b32.xlu1 %v10246_v48, %s12736_s9 }
0x18f9   : > { %9515 = vmatpush1.bf16.msra.mxu1 %v9514_v49 }
0x18fa   : > { %9516 = vmatprep.subr.bf16.mxu1 %v10915_v59 }
0x18fb   : > { %4630 = vperm.xlu1 %10044, %v4627_v52  }
0x18fd   : > { %9518 = vmatpush1.bf16.msra.mxu1 %v9517_v58  ;;  %v4400_v2 = vpop.permute.xlu1 %4399  ;;  %v4832_v58 = vld [vmem:[%s12792_s13 + $0x8] sm:$0xff] }
0x18fe   : > { %9519 = vmatprep.subr.bf16.mxu1 %v10915_v59 }
0x1901   : > { %9521 = vmatpush1.bf16.msra.mxu1 %v9520_v60  ;;  %v4405_v4 = vpop.permute.xlu0 %4404  ;;  %v4831_v60 = vld [vmem:[%s12792_s13] sm:$0xff]  ;;  %s12800_s13 = sld [smem:[#allocation49_spill]] }
0x1902   : > { %9536 = vmatprep.subr.bf16.mxu1 %v10915_v59 }
0x1904   : > { %4478 = vmatmul.mubr.f32.vlgmr.msra.gmra.mrb[20].mxu1 %v4391_v61 }
0x1905   : > { %8370 = vmatprep.mubr.msk.f32.mxu1 %vm2835_vm5, %v4394_v62 }
0x1908   : > { %4483 = vmatmul.mubr.f32.gmra.mrb[22].mxu1 %v4393_v63 }
0x1909   : > { %9035 = vmatprep.mubr.msk.f32.mxu1 %vm10908_vm0, %v10905_v1 }
0x1969   : > { %v10243_v11 = vpop.permute.xlu1 %10242  ;;  %v10248_v16 = vpop.permute.xlu0 %10247 }
0x196a   : > { %v10245_v14 = vunpack.i.h.bf16 %v10243_v11  ;;  %v10244_v15 = vunpack.i.l.bf16 %v10243_v11  ;;  %v10250_v17 = vunpack.i.h.bf16 %v10248_v16  ;;  %v10249_v18 = vunpack.i.l.bf16 %v10248_v16 }
0x196c   : > { %v9531_v19 = vpack.c.bf16 %v10245_v14, %v10244_v15  ;;  %v9534_v42 = vpack.c.bf16 %v10250_v17, %v10249_v18 }
0x197a   : > { %v4631_v23 = vpop.permute.xlu1 %4630 }
0x19d7   : > { %v4479_v54 = vpop.f32.mrb[20].mxu1 }
0x19d8   : > { %v4481_v56 = vpop.f32.mrb[21].mxu1  ;;  %v4480_v3 = vadd.f32 %v4479_v54, %v4400_v2 }
0x19da   : > { %v4488_v8 = vmax.f32 %v4480_v3, 0.0 }
0x19db   : > { %v4484_v5 = vpop.f32.mrb[22].mxu1 }
0x19dc   : > { %v4485_v6 = vadd.f32 %v4484_v5, %v4405_v4  ;;  %v4486_v7 = vpop.f32.mrb[23].mxu1 }
0x19de   : > { %v4489_v9 = vmax.f32 %v4485_v6, 0.0 }
0x19e0   : > { %v9522_v10 = vpack.c.bf16 %v4489_v9, %v4488_v8 }
0x19e2   : > { %9523 = vmatprep.subr.bf16.mxu0 %v9522_v10 }
0x19e3   : > { %9525 = vmatpush3.bf16.msra.mxu0 %v9522_v10 }
0x19e4   : > { %9526 = vmatprep.subr.bf16.mxu0 %v10915_v59 }
0x19e6   : > { %9008 = vmatmul.mubr.msk.f32.vlgmr.msra.gmra.mrb[18].mxu0 %vm2835_vm5, %v4491_v12 }
0x19e7   : > { %9529 = vmatpush3.bf16.msk.msra.mxu0 %vm11756_vm12, %v9527_v46  ;;  %9022 = vmatprep.mubr.msk.f32.mxu0 %vm10908_vm0, %v10905_v1  ;;  %vm4712_vm0 = vcmask 211968  }
0x19e8   : > { %9530 = vmatprep.subr.bf16.mxu0 %v10915_v59  ;;  %vm9538_vm15 = vmpackc.low %vm10914_vm3, %vm4712_vm0 }
0x19eb   : > { %9532 = vmatpush3.bf16.msra.mxu0 %v9531_v19 }
0x19ec   : > { %9533 = vmatprep.subr.bf16.mxu0 %v10915_v59 }
0x19ef   : > { %9535 = vmatpush3.bf16.msra.mxu0 %v9534_v42 }
0x19f2   : > { %9023 = vmatmul.mubr.msk.f32.vlgmr.msra.gmra.mrb[20].mxu0 %vm3475_vm2, %v4626_v20 }
0x1ab9   : > { %v11769_v21 = vpop.f32.mrb[18].mxu0 }
0x1aba   : > { %v11771_v22 = vpop.f32.mrb[19].mxu0 }
0x1ac5   : > { %v4702_v24 = vpop.f32.mrb[20].mxu0 }
0x1ac6   : > { %v4703_v25 = vadd.f32 %v4702_v24, %v4631_v23  ;;  %v9024_v26 = vpop.f32.mrb[21].mxu0 }
0x1ac8   : > { %v4706_v28 = vmax.f32 %v4703_v25, 0.0 }
0x1aca   : > { %4708 = vrot.lane.b32.xlu0 %v4706_v28, %s12784_s25  ;;  %s12789_s25 = sld [smem:[#allocation46_spill]] }
0x1ad0   : > { %v4829_v51 = vld [vmem:[%s12789_s25] sm:$0xff]  ;;  %v4830_v2 = vld [vmem:[%s12789_s25 + $0x8] sm:$0xff]  ;;  %s12804_s25 = sld [smem:[#allocation53_spill]] }
0x1b3c   : > { %v4709_v31 = vpop.permute.xlu0 %4708 }
0x1b3d   : > { %v4711_v32 = vsel %vm12785_vm14, 0.0, %v4709_v31  ;;  %vm9544_vm14 = vmpackc.low %vm10914_vm3, %vm4814_vm8 }
0x1b3e   : > { %v4713_v34 = vsel %vm4712_vm0, %v4711_v32, 0.0  ;;  %vm12793_vm0 = vmmov %vm12790_vm10 }
0x1b3f   : > { %4718 = vrot.lane.b32.xlu0 %v4713_v34, %s12786_s26  ;;  %4715 = vrot.lane.b32.xlu1 %v4713_v34, %s12752_s14 }
0x1b40   : > { %9048 = vmatprep.mubr.msk.f32.mxu0 %vm12793_vm0, %v4829_v51 }
0x1b43   : > { %4724 = vrot.lane.b32.xlu0 %v4713_v34, %s12788_s23  ;;  %4721 = vrot.lane.b32.xlu1 %v4713_v34, %s12754_s24  ;;  %s12791_s24 = sld [smem:[#allocation41_spill]]  ;;  %s10935_s23 = smov 14  }
0x1b47   : > { %4731 = vperm.xlu1 %10044, %v4728_v35  }
0x1b49   : > { %v4493_v55 = vld [vmem:[%s12791_s24 + $0x8] sm:$0xff]  ;;  %v4492_v57 = vld [vmem:[%s12791_s24] sm:$0xff]  ;;  %s12803_s24 = sld [smem:[#allocation51_spill]] }
0x1bb1   : > { %v4716_v36 = vpop.permute.xlu1 %4715  ;;  %v4719_v41 = vpop.permute.xlu0 %4718 }
0x1bb2   : > { %v9537_v37 = vpack.c.bf16 %v4716_v36, %v4711_v32 }
0x1bb4   : > { %9539 = vmatpush3.bf16.msk.msra.mxu1 %vm9538_vm15, %v9537_v37  ;;  %vm12797_vm15 = vmmov %vm12793_vm0 }
0x1bb5   : > { %v4722_v43 = vpop.permute.xlu1 %4721  ;;  %9540 = vmatprep.subr.bf16.mxu1 %v10915_v59  ;;  %v4725_v46 = vpop.permute.xlu0 %4724  ;;  %vm11987_vm0 = vmpackc.low %vm4812_vm9, %vm4812_vm9 }
0x1bb6   : > { %v9541_v44 = vpack.c.bf16 %v4722_v43, %v4719_v41  ;;  %v4961_v41 = vld [vmem:[%s12800_s13 + $0x8] sm:$0xff]  ;;  %v4960_v43 = vld [vmem:[%s12800_s13] sm:$0xff] }
0x1bb8   : > { %9542 = vmatpush3.bf16.msra.mxu1 %v9541_v44  ;;  %v4963_v44 = vld [vmem:[%s12800_s13 + $0x18] sm:$0xff] }
0x1bb9   : > { %9033 = vmatprep.subr.mxu1 %v10905_v1 }
0x1bbc   : > { %9034 = vmatpush3.msra.mxu1 %v4725_v46 }
0x1bbd   : > { %9036 = vmatmul.mubr.msk.f32.vlgmr.msra.gmra.mrb[24].mxu1 %vm12790_vm10, %v4727_v45  ;;  %v4962_v45 = vld [vmem:[%s12800_s13 + $0x10] sm:$0xff]  ;;  %s12802_s13 = sld [smem:[#allocation52_spill]] }
0x1bc6   : > { %v4732_v47 = vpop.permute.xlu1 %4731 }
0x1c90   : > { %v4803_v40 = vpop.f32.mrb[24].mxu1 }
0x1c91   : > { %v4804_v48 = vadd.f32 %v4803_v40, %v4732_v47  ;;  %v9037_v49 = vpop.f32.mrb[25].mxu1 }
0x1c93   : > { %v4807_v50 = vmax.f32 %v4804_v48, 0.0 }
0x1c95   : > { %4809 = vrot.lane.b32.xlu0 %v4807_v50, %s10935_s23 }
0x1d07   : > { %v4810_v1 = vpop.permute.xlu0 %4809 }
0x1d08   : > { %v4813_v53 = vsel %vm4812_vm9, 0.0, %v4810_v1 }
0x1d09   : > { %v4815_v52 = vsel %vm4814_vm8, %v4813_v53, 0.0  ;;  %vm5690_vm8 = vcmask 48128  }
0x1d0a   : > { %4820 = vrot.lane.b32.xlu0 %v4815_v52, %s12794_s30  ;;  %4817 = vrot.lane.b32.xlu1 %v4815_v52, %s12795_s2 }
0x1d0e   : > { %4826 = vrot.lane.b32.xlu0 %v4815_v52, %s12796_s16  ;;  %4823 = vrot.lane.b32.xlu1 %v4815_v52, %s12758_s27  ;;  %s12798_s27 = sld [smem:[#allocation48_spill]]  ;;  %s12799_s16 = sshll.u32 %s11431_s7, 4 }
0x1d0f   : > { %s11813_s23 = scalar_lea.vmem [#allocation6], %s12799_s16  ;;  %s12801_s16 = sld [smem:[#allocation50_spill]] }
0x1d12   : > { %4501 = vperm.xlu0 %10045, %v4493_v55   ;;  %4496 = vperm.xlu1 %10044, %v4492_v57  }
0x1d14   : > { %v4956_v36 = vld [vmem:[%s12798_s27] sm:$0xff]  ;;  %v4958_v51 = vld [vmem:[%s12798_s27 + $0x10] sm:$0xff]  ;;  %v4959_v52 = vld [vmem:[%s12798_s27 + $0x18] sm:$0xff] }
0x1d15   : > { %9063 = vmatprep.mubr.msk.f32.mxu1 %vm3475_vm2, %v4956_v36 }
0x1d16   : > { %4840 = vperm.xlu0 %10045, %v4832_v58   ;;  %4835 = vperm.xlu1 %10044, %v4831_v60  }
0x1d7c   : > { %v4818_v61 = vpop.permute.xlu1 %4817  ;;  %v4821_v63 = vpop.permute.xlu0 %4820 }
0x1d7d   : > { %v9543_v62 = vpack.c.bf16 %v4818_v61, %v4813_v53  ;;  %v4957_v53 = vld [vmem:[%s12798_s27 + $0x8] sm:$0xff] }
0x1d7f   : > { %9545 = vmatprep.subr.msk.bf16.mxu0 %vm9544_vm14, %v9543_v62 }
0x1d80   : > { %9548 = vmatpush3.bf16.msk.msra.mxu0 %vm9544_vm14, %v9543_v62  ;;  %v4824_v0 = vpop.permute.xlu1 %4823  ;;  %v4827_v56 = vpop.permute.xlu0 %4826  ;;  %vm6198_vm14 = vcmask 105472  }
0x1d81   : > { %v9549_v54 = vpack.c.bf16 %v4824_v0, %v4821_v63 }
0x1d83   : > { %9550 = vmatprep.subr.bf16.mxu0 %v9549_v54 }
0x1d84   : > { %9552 = vmatpush3.bf16.msra.mxu0 %v9549_v54 }
0x1d85   : > { %9046 = vmatprep.subr.mxu0 %v4827_v56 }
0x1d88   : > { %9047 = vmatpush3.msra.mxu0 %v4827_v56 }
0x1d89   : > { %9049 = vmatmul.mubr.msk.f32.vlgmr.msra.gmra.mrb[22].mxu0 %vm12797_vm15, %v4830_v2  ;;  %9568 = vmatprep.subr.msk.bf16.mxu0 %vm11464_vm11, %v10913_v39  ;;  %vm9696_vm15 = vmpackc.low %vm6198_vm14, %vm6198_vm14 }
0x1d8a   : > { %9570 = vmatpush3.bf16.msk.msra.mxu0 %vm11464_vm11, %v10913_v39  ;;  %vm5459_vm11 = vcmask 89088  }
0x1d8b   : > { %vm11892_vm3 = vmpackc.low %vm5459_vm11, %vm5459_vm11 }
0x1d91   : > { %v4502_v3 = vpop.permute.xlu0 %4501  ;;  %v4497_v4 = vpop.permute.xlu1 %4496 }
0x1d92   : > { %v4582_v5 = vadd.f32 %v11769_v21, %v4502_v3  ;;  %v4577_v6 = vadd.f32 %v11771_v22, %v4497_v4 }
0x1d94   : > { %v8374_v7 = vmul.f32 -1.442695, %v4582_v5  ;;  %v8373_v8 = vmul.f32 -1.442695, %v4577_v6 }
0x1d95   : > { %v4841_v38 = vpop.permute.xlu0 %4840  ;;  %v4836_v16 = vpop.permute.xlu1 %4835 }
0x1d96   : > { %10630 = vpow2.f32 %v8374_v7 }
0x1d97   : > { %10632 = vpow2.f32 %v8373_v8 }
0x1da0   : > { %v10631_v9 = vpop.eup %10630 }
0x1da1   : > { %v10633_v10 = vpop.eup %10632  ;;  %v4592_v11 = vadd.f32 1.0, %v10631_v9 }
0x1da2   : > { %v4591_v12 = vadd.f32 1.0, %v10633_v10 }
0x1da3   : > { %10634 = vrcp.f32 %v4592_v11 }
0x1da4   : > { %10636 = vrcp.f32 %v4591_v12 }
0x1dad   : > { %v10635_v14 = vpop.eup %10634 }
0x1dae   : > { %v10637_v15 = vpop.eup %10636  ;;  %v4598_v42 = vmul.f32 %v10635_v14, %v11675_v27 }
0x1daf   : > { %v4597_v21 = vmul.f32 %v10637_v15, %v11677_v29  ;;  %v5199_v15 = vld [vmem:[%s12801_s16] sm:$0xff] }
0x1e5c   : > { %v9050_v39 = vpop.f32.mrb[22].mxu0 }
0x1e5d   : > { %v4921_v17 = vadd.f32 %v9050_v39, %v4841_v38  ;;  %v4915_v18 = vpop.f32.mrb[23].mxu0 }
0x1e5e   : > { %v4916_v19 = vadd.f32 %v4915_v18, %v4836_v16 }
0x1e5f   : > { %v4925_v20 = vmax.f32 %v4921_v17, 0.0 }
0x1e60   : > { %v4924_v22 = vmax.f32 %v4916_v19, 0.0 }
0x1e61   : > { %v4927_v23 = vadd.f32 %v4925_v20, %v4598_v42 }
0x1e62   : > { %v4926_v24 = vadd.f32 %v4924_v22, %v4597_v21 }
0x1e63   : > { %4929 = vst.msk [vmem:[%s11813_s23 + $0x8] sm:$0xff] %vm2835_vm5, %v4927_v23 }
0x1e64   : > { %v10251_v25 = vpack.i.bf16 %v4927_v23, %v4926_v24  ;;  %4928 = vst.msk [vmem:[%s11813_s23] sm:$0xff] %vm2835_vm5, %v4926_v24 }
0x1e66   : > { %10252 = vrot.lane.b32.xlu1 %v10251_v25, %s12745_s10  ;;  %v5200_v25 = vld [vmem:[%s12801_s16 + $0x8] sm:$0xff]  ;;  %s12808_s16 = sld [smem:[#allocation54_spill]] }
0x1ed8   : > { %v10253_v27 = vpop.permute.xlu1 %10252 }
0x1ed9   : > { %v10255_v29 = vunpack.i.h.bf16 %v10253_v27  ;;  %v10254_v26 = vunpack.i.l.bf16 %v10253_v27  ;;  %v5286_v27 = vld [vmem:[%s12802_s13] sm:$0xff] }
0x1edb   : > { %v4939_v28 = vsel %vm2345_vm1, 0.0, %v10255_v29  ;;  %v4938_v31 = vsel %vm2345_vm1, 0.0, %v10254_v26  ;;  %v5202_v29 = vld [vmem:[%s12803_s24 + $0x8] sm:$0xff]  ;;  %v5201_v26 = vld [vmem:[%s12803_s24] sm:$0xff]  ;;  %s12816_s24 = sld [smem:[#allocation56_spill]] }
0x1edc   : > { %v4941_v32 = vsel %vm4609_vm7, %v4939_v28, 0.0  ;;  %v4940_v34 = vsel %vm4609_vm7, %v4938_v31, 0.0  ;;  %v9553_v35 = vpack.c.bf16 %v4939_v28, %v4938_v31  ;;  %vm5572_vm7 = vcmask 785408  }
0x1edd   : > { %v10261_v37 = vpack.i.bf16 %v4941_v32, %v4940_v34 }
0x1ede   : > { %9555 = vmatprep.subr.msk.bf16.mxu1 %vm11756_vm12, %v9553_v35 }
0x1edf   : > { %9558 = vmatpush3.bf16.msk.msra.mxu1 %vm11756_vm12, %v9553_v35  ;;  %10262 = vrot.lane.b32.xlu1 %v10261_v37, %s12735_s5  ;;  %vm6057_vm12 = vcmask 72704  }
0x1ee0   : > { %10257 = vrot.lane.b32.xlu0 %v10261_v37, %s12736_s9  ;;  %vm11957_vm10 = vmpackc.low %vm6057_vm12, %vm6057_vm12 }
0x1ee3   : > { %4971 = vperm.xlu1 %10044, %v4961_v41   ;;  %v5287_v41 = vld [vmem:[%s12802_s13 + $0x8] sm:$0xff] }
0x1ee4   : > { %4966 = vperm.xlu0 %10045, %v4960_v43   ;;  %v5288_v43 = vld [vmem:[%s12802_s13 + $0x10] sm:$0xff] }
0x1ee7   : > { %4981 = vperm.xlu1 %10044, %v4963_v44   ;;  %v5289_v44 = vld [vmem:[%s12802_s13 + $0x18] sm:$0xff]  ;;  %s12807_s13 = sld [smem:[#allocation55_spill]] }
0x1ee8   : > { %4976 = vperm.xlu0 %10045, %v4962_v45   ;;  %v5291_v45 = vld [vmem:[%s12804_s25 + $0x8] sm:$0xff] }
0x1f51   : > { %v10263_v46 = vpop.permute.xlu1 %10262 }
0x1f52   : > { %v10258_v47 = vpop.permute.xlu0 %10257  ;;  %v10265_v40 = vunpack.i.h.bf16 %v10263_v46  ;;  %v10264_v13 = vunpack.i.l.bf16 %v10263_v46  ;;  %v5290_v46 = vld [vmem:[%s12804_s25] sm:$0xff] }
0x1f53   : > { %v10260_v48 = vunpack.i.h.bf16 %v10258_v47  ;;  %v10259_v49 = vunpack.i.l.bf16 %v10258_v47 }
0x1f54   : > { %v9563_v1 = vpack.c.bf16 %v10265_v40, %v10264_v13 }
0x1f55   : > { %v9559_v50 = vpack.c.bf16 %v10260_v48, %v10259_v49  ;;  %v5293_v49 = vld [vmem:[%s12804_s25 + $0x18] sm:$0xff] }
0x1f57   : > { %9560 = vmatprep.subr.bf16.mxu1 %v9559_v50 }
0x1f58   : > { %9562 = vmatpush3.bf16.msra.mxu1 %v9559_v50 }
0x1f59   : > { %9564 = vmatprep.subr.bf16.mxu1 %v9563_v1 }
0x1f5c   : > { %9566 = vmatpush3.bf16.msra.mxu1 %v9563_v1  ;;  %v5292_v1 = vld [vmem:[%s12804_s25 + $0x10] sm:$0xff] }
0x1f5f   : > { %9064 = vmatmul.mubr.msk.f32.vlgmr.msra.gmra.mrb[26].mxu1 %vm3475_vm2, %v4957_v53 }
0x1f60   : > { %9066 = vmatprep.mubr.msk.f32.mxu1 %vm3475_vm2, %v4958_v51 }
0x1f62   : > { %v4972_v57 = vpop.permute.xlu1 %4971 }
0x1f63   : > { %9067 = vmatmul.mubr.msk.f32.gmra.mrb[28].mxu1 %vm3475_vm2, %v4959_v52  ;;  %v4967_v55 = vpop.permute.xlu0 %4966 }
0x1f64   : > { %9094 = vmatprep.mubr.msk.f32.mxu1 %vm2835_vm5, %v5286_v27 }
0x1f66   : > { %v4982_v56 = vpop.permute.xlu1 %4981 }
0x1f67   : > { %v4977_v0 = vpop.permute.xlu0 %4976 }
0x2032   : > { %v9065_v58 = vpop.f32.mrb[26].mxu1 }
0x2033   : > { %v5062_v60 = vpop.f32.mrb[27].mxu1  ;;  %v5068_v62 = vadd.f32 %v9065_v58, %v4972_v57 }
0x2034   : > { %v5063_v61 = vadd.f32 %v5062_v60, %v4967_v55 }
0x2036   : > { %v9068_v63 = vpop.f32.mrb[28].mxu1  ;;  %9073 = vmatprep.mubr.msk.f32.mxu0 %vm2835_vm5, %v5063_v61 }
0x2037   : > { %v5072_v54 = vpop.f32.mrb[29].mxu1  ;;  %9074 = vmatmul.mubr.msk.f32.vlgmr.msra.gmra.mrb[24].mxu0 %vm2835_vm5, %v5068_v62  ;;  %v5078_v3 = vadd.f32 %v9068_v63, %v4982_v56 }
0x2038   : > { %v5073_v2 = vadd.f32 %v5072_v54, %v4977_v0 }
0x203a   : > { %9076 = vmatprep.mubr.msk.f32.mxu0 %vm2835_vm5, %v5073_v2 }
0x203b   : > { %9077 = vmatmul.mubr.msk.f32.gmra.mrb[26].mxu0 %vm2835_vm5, %v5078_v3 }
0x203c   : > { %9087 = vmatprep.mubr.msk.f32.mxu0 %vm2823_vm6, %v5199_v15 }
0x210a   : > { %v9075_v4 = vpop.f32.mrb[24].mxu0 }
0x210b   : > { %v11846_v5 = vmax.f32 %v9075_v4, 0.0  ;;  %v5159_v6 = vpop.f32.mrb[25].mxu0 }
0x210c   : > { %v11848_v7 = vmax.f32 %v5159_v6, 0.0 }
0x210d   : > { %v5185_v8 = vsel %vm2914_vm13, %v11846_v5, 0.0 }
0x210e   : > { %5186 = vadd.xlane.f32.xlu1 %v5185_v8  ;;  %v9078_v9 = vpop.f32.mrb[26].mxu0  ;;  %v5182_v10 = vsel %vm2914_vm13, %v11848_v7, 0.0 }
0x210f   : > { %5183 = vadd.xlane.f32.xlu0 %v5182_v10  ;;  %v5169_v11 = vpop.f32.mrb[27].mxu0  ;;  %v11856_v14 = vmax.f32 %v9078_v9, 0.0 }
0x2110   : > { %v11854_v12 = vmax.f32 %v5169_v11, 0.0 }
0x2111   : > { %v5191_v39 = vsel %vm2914_vm13, %v11856_v14, 0.0 }
0x2112   : > { %v5188_v38 = vsel %vm2914_vm13, %v11854_v12, 0.0 }
0x2113   : > { %5189 = vadd.xlane.f32.xlu0 %v5188_v38 }
0x2117   : > { %5192 = vadd.xlane.f32.xlu0 %v5191_v39 }
0x219b   : > { %v5187_v16 = vpop.xlane.xlu1 %5186 }
0x219c   : > { %v5196_v17 = vmul.f32 0.125, %v5187_v16  ;;  %v5184_v18 = vpop.xlane.xlu0 %5183 }
0x219d   : > { %v5195_v19 = vmul.f32 0.125, %v5184_v18 }
0x219f   : > { %v9571_v42 = vpack.c.bf16 %v5196_v17, %v5195_v19 }
0x21a0   : > { %v5190_v20 = vpop.xlane.xlu0 %5189 }
0x21a1   : > { %9572 = vmatprep.subr.bf16.mxu0 %v9571_v42  ;;  %v5197_v22 = vmul.f32 0.125, %v5190_v20 }
0x21a2   : > { %9574 = vmatpush3.bf16.msra.mxu0 %v9571_v42 }
0x21a4   : > { %v5193_v21 = vpop.xlane.xlu0 %5192 }
0x21a5   : > { %v5198_v23 = vmul.f32 0.125, %v5193_v21 }
0x21a7   : > { %v9575_v24 = vpack.c.bf16 %v5198_v23, %v5197_v22 }
0x21a9   : > { %9576 = vmatprep.subr.bf16.mxu0 %v9575_v24 }
0x21aa   : > { %9578 = vmatpush3.bf16.msra.mxu0 %v9575_v24 }
0x21ab   : > { %9583 = vmatprep.subr.bf16.mxu0 %v10915_v59 }
0x21ad   : > { %9088 = vmatmul.mubr.msk.f32.vlgmr.msra.gmra.mrb[28].mxu0 %vm2823_vm6, %v5200_v25 }
0x2280   : > { %v9089_v28 = vpop.f32.mrb[28].mxu0 }
0x2281   : > { %v5281_v31 = vadd.f32 %v9089_v28, %v5202_v29  ;;  %v5275_v32 = vpop.f32.mrb[29].mxu0 }
0x2282   : > { %v5276_v34 = vadd.f32 %v5275_v32, %v5201_v26 }
0x2283   : > { %v5285_v35 = vmax.f32 %v5281_v31, 0.0 }
0x2284   : > { %v5284_v36 = vmax.f32 %v5276_v34, 0.0 }
0x2286   : > { %v9579_v37 = vpack.c.bf16 %v5285_v35, %v5284_v36 }
0x2288   : > { %9580 = vmatprep.subr.bf16.mxu1 %v9579_v37 }
0x2289   : > { %9582 = vmatpush3.bf16.msra.mxu1 %v9579_v37 }
0x228a   : > { %9627 = vmatprep.subr.bf16.mxu1 %v10915_v59 }
0x228c   : > { %9095 = vmatmul.mubr.msk.f32.vlgmr.msra.gmra.mrb[30].mxu1 %vm2835_vm5, %v5287_v41 }
0x228d   : > { %9097 = vmatprep.mubr.msk.f32.mxu1 %vm2835_vm5, %v5288_v43 }
0x2290   : > { %9098 = vmatmul.mubr.msk.f32.gmra.mrb[32].mxu1 %vm2835_vm5, %v5289_v44 }
0x235f   : > { %v9096_v47 = vpop.f32.mrb[30].mxu1 }
0x2360   : > { %v5378_v40 = vadd.f32 %v9096_v47, %v5291_v45  ;;  %v5372_v13 = vpop.f32.mrb[31].mxu1  ;;  %v10336_v45 = vpack.i.bf16 %v11846_v5, %v11848_v7  ;;  %v5550_v47 = vld [vmem:[%s12807_s13 + $0x10] sm:$0xff] }
0x2361   : > { %v5373_v48 = vadd.f32 %v5372_v13, %v5290_v46  ;;  %v5548_v46 = vld [vmem:[%s12807_s13] sm:$0xff]  ;;  %v5549_v13 = vld [vmem:[%s12807_s13 + $0x8] sm:$0xff] }
0x2362   : > { %v8402_v50 = vmul.f32 -1.442695, %v5378_v40  ;;  %v10341_v40 = vpack.i.bf16 %v11856_v14, %v11854_v12 }
0x2363   : > { %v8401_v53 = vmul.f32 -1.442695, %v5373_v48  ;;  %v9099_v51 = vpop.f32.mrb[32].mxu1  ;;  %v5551_v48 = vld [vmem:[%s12807_s13 + $0x18] sm:$0xff]  ;;  %s12811_s13 = sld [smem:[#allocation60_spill]] }
0x2364   : > { %10638 = vpow2.f32 %v8402_v50  ;;  %v5388_v52 = vadd.f32 %v9099_v51, %v5293_v49  ;;  %v5382_v55 = vpop.f32.mrb[33].mxu1  ;;  %v5541_v49 = vld [vmem:[%s12808_s16 + $0x8] sm:$0xff] }
0x2365   : > { %10640 = vpow2.f32 %v8401_v53  ;;  %v5383_v57 = vadd.f32 %v5382_v55, %v5292_v1  ;;  %8409 = vmatprep.mubr.msk.f32.mxu0 %vm5572_vm7, %v5541_v49 }
0x2366   : > { %v8404_v58 = vmul.f32 -1.442695, %v5388_v52 }
0x2367   : > { %v8403_v60 = vmul.f32 -1.442695, %v5383_v57 }
0x2368   : > { %10642 = vpow2.f32 %v8404_v58 }
0x2369   : > { %10644 = vpow2.f32 %v8403_v60 }
0x236e   : > { %v10639_v61 = vpop.eup %10638 }
0x236f   : > { %v10641_v62 = vpop.eup %10640  ;;  %v5404_v63 = vadd.f32 1.0, %v10639_v61 }
0x2370   : > { %v5403_v0 = vadd.f32 1.0, %v10641_v62 }
0x2371   : > { %10646 = vrcp.f32 %v5404_v63 }
0x2372   : > { %v10643_v54 = vpop.eup %10642  ;;  %10648 = vrcp.f32 %v5403_v0 }
0x2373   : > { %v10645_v56 = vpop.eup %10644  ;;  %v5406_v3 = vadd.f32 1.0, %v10643_v54 }
0x2374   : > { %v5405_v2 = vadd.f32 1.0, %v10645_v56 }
0x2376   : > { %10650 = vrcp.f32 %v5405_v2 }
0x2377   : > { %10652 = vrcp.f32 %v5406_v3 }
0x237b   : > { %v10647_v4 = vpop.eup %10646 }
0x237c   : > { %v10649_v6 = vpop.eup %10648  ;;  %5422 = vperm.xlu0 %10045, %v10647_v4  }
0x237d   : > { %5417 = vperm.xlu1 %10044, %v10649_v6  }
0x2380   : > { %v10651_v8 = vpop.eup %10650 }
0x2381   : > { %5427 = vperm.xlu1 %10044, %v10651_v8   ;;  %v10653_v9 = vpop.eup %10652 }
0x2385   : > { %5432 = vperm.xlu1 %10044, %v10653_v9  }
0x23fb   : > { %v5423_v10 = vpop.permute.xlu0 %5422 }
0x23fc   : > { %v5436_v11 = vmul.f32 %v5423_v10, %v11846_v5  ;;  %v5418_v38 = vpop.permute.xlu1 %5417 }
0x23fd   : > { %v5435_v39 = vmul.f32 %v5418_v38, %v11848_v7 }
0x23ff   : > { %v10266_v15 = vpack.i.bf16 %v5436_v11, %v5435_v39 }
0x2400   : > { %v5428_v16 = vpop.permute.xlu1 %5427 }
0x2401   : > { %10267 = vrot.lane.b32.xlu0 %v10266_v15, %s12765_s8  ;;  %v5437_v18 = vmul.f32 %v5428_v16, %v11854_v12 }
0x2404   : > { %v5433_v17 = vpop.permute.xlu1 %5432 }
0x2405   : > { %v5438_v19 = vmul.f32 %v5433_v17, %v11856_v14 }
0x2407   : > { %v10271_v42 = vpack.i.bf16 %v5438_v19, %v5437_v18 }
0x2409   : > { %10272 = vrot.lane.b32.xlu1 %v10271_v42, %s12765_s8 }
0x2473   : > { %v10268_v20 = vpop.permute.xlu0 %10267 }
0x2474   : > { %v10270_v21 = vunpack.i.h.bf16 %v10268_v20  ;;  %v10269_v22 = vunpack.i.l.bf16 %v10268_v20 }
0x2476   : > { %v5456_v23 = vsel %vm2356_vm4, 0.0, %v10270_v21  ;;  %v5455_v24 = vsel %vm2356_vm4, 0.0, %v10269_v22 }
0x2477   : > { %v5461_v27 = vsel %vm5459_vm11, %v5456_v23, 0.0  ;;  %v5460_v29 = vsel %vm5459_vm11, %v5455_v24, 0.0  ;;  %v9584_v26 = vpack.c.bf16 %v5456_v23, %v5455_v24 }
0x2478   : > { %v10276_v28 = vpack.i.bf16 %v5461_v27, %v5460_v29 }
0x2479   : > { %9586 = vmatpush1.bf16.msk.msra.mxu0 %vm11892_vm3, %v9584_v26 }
0x247a   : > { %10277 = vrot.lane.b32.xlu0 %v10276_v28, %s12736_s9  ;;  %9587 = vmatprep.subr.bf16.mxu0 %v10915_v59 }
0x247b   : > { %v10273_v31 = vpop.permute.xlu1 %10272 }
0x247c   : > { %v10275_v32 = vunpack.i.h.bf16 %v10273_v31  ;;  %v10274_v34 = vunpack.i.l.bf16 %v10273_v31 }
0x247e   : > { %v5458_v35 = vsel %vm2356_vm4, 0.0, %v10275_v32  ;;  %v5457_v36 = vsel %vm2356_vm4, 0.0, %v10274_v34  ;;  %10287 = vrot.lane.b32.xlu0 %v10276_v28, %s12735_s5 }
0x247f   : > { %v5463_v37 = vsel %vm5459_vm11, %v5458_v35, 0.0  ;;  %v5462_v41 = vsel %vm5459_vm11, %v5457_v36, 0.0  ;;  %v9588_v43 = vpack.c.bf16 %v5458_v35, %v5457_v36  ;;  %vm6320_vm11 = vcmask 56320  }
0x2480   : > { %v10281_v44 = vpack.i.bf16 %v5463_v37, %v5462_v41 }
0x2481   : > { %9590 = vmatpush1.bf16.msk.msra.mxu0 %vm11892_vm3, %v9588_v43  ;;  %vm6323_vm3 = vcmask 121856  }
0x2482   : > { %10297 = vrot.lane.b32.xlu0 %v10276_v28, %s12743_s11  ;;  %10282 = vrot.lane.b32.xlu1 %v10281_v44, %s12736_s9 }
0x2483   : > { %9591 = vmatprep.subr.bf16.mxu0 %v10915_v59 }
0x2486   : > { %10307 = vrot.lane.b32.xlu0 %v10276_v28, %s12768_s17  ;;  %10292 = vrot.lane.b32.xlu1 %v10281_v44, %s12735_s5 }
0x248a   : > { %10317 = vrot.lane.b32.xlu0 %v10276_v28, %s12752_s14  ;;  %10302 = vrot.lane.b32.xlu1 %v10281_v44, %s12743_s11 }
0x248e   : > { %10327 = vrot.lane.b32.xlu0 %v10276_v28, %s12744_s3  ;;  %10312 = vrot.lane.b32.xlu1 %v10281_v44, %s12768_s17 }
0x2492   : > { %10337 = vrot.lane.b32.xlu0 %v10336_v45, %s12745_s10  ;;  %10322 = vrot.lane.b32.xlu1 %v10281_v44, %s12752_s14 }
0x2496   : > { %5554 = vperm.xlu0 %10045, %v5548_v46   ;;  %10332 = vrot.lane.b32.xlu1 %v10281_v44, %s12744_s3 }
0x249a   : > { %5564 = vperm.xlu0 %10045, %v5550_v47   ;;  %10342 = vrot.lane.b32.xlu1 %v10341_v40, %s12745_s10 }
0x249e   : > { %5559 = vperm.xlu1 %10044, %v5549_v13  }
0x24a2   : > { %5569 = vperm.xlu1 %10044, %v5551_v48  }
0x24ec   : > { %v10278_v50 = vpop.permute.xlu0 %10277 }
0x24ed   : > { %v10280_v1 = vunpack.i.h.bf16 %v10278_v50  ;;  %v10279_v53 = vunpack.i.l.bf16 %v10278_v50 }
0x24ef   : > { %v9592_v51 = vpack.c.bf16 %v10280_v1, %v10279_v53 }
0x24f0   : > { %v10288_v52 = vpop.permute.xlu0 %10287 }
0x24f1   : > { %9593 = vmatpush1.bf16.msra.mxu0 %v9592_v51  ;;  %v10290_v61 = vunpack.i.h.bf16 %v10288_v52  ;;  %v10289_v62 = vunpack.i.l.bf16 %v10288_v52 }
0x24f2   : > { %9594 = vmatprep.subr.bf16.mxu0 %v10915_v59 }
0x24f3   : > { %v9598_v56 = vpack.c.bf16 %v10290_v61, %v10289_v62  ;;  %v5540_v61 = vld [vmem:[%s12808_s16] sm:$0xff]  ;;  %v5543_v62 = vld [vmem:[%s12808_s16 + $0x18] sm:$0xff] }
0x24f4   : > { %v10298_v55 = vpop.permute.xlu0 %10297  ;;  %v10283_v57 = vpop.permute.xlu1 %10282 }
0x24f5   : > { %v10285_v58 = vunpack.i.h.bf16 %v10283_v57  ;;  %v10284_v60 = vunpack.i.l.bf16 %v10283_v57  ;;  %v10300_v8 = vunpack.i.h.bf16 %v10298_v55  ;;  %v10299_v9 = vunpack.i.l.bf16 %v10298_v55 }
0x24f7   : > { %v9595_v63 = vpack.c.bf16 %v10285_v58, %v10284_v60  ;;  %v9604_v39 = vpack.c.bf16 %v10300_v8, %v10299_v9 }
0x24f8   : > { %v10308_v0 = vpop.permute.xlu0 %10307  ;;  %v10293_v54 = vpop.permute.xlu1 %10292 }
0x24f9   : > { %9596 = vmatpush1.bf16.msra.mxu0 %v9595_v63  ;;  %v10295_v2 = vunpack.i.h.bf16 %v10293_v54  ;;  %v10294_v3 = vunpack.i.l.bf16 %v10293_v54  ;;  %v10310_v20 = vunpack.i.h.bf16 %v10308_v0  ;;  %v10309_v21 = vunpack.i.l.bf16 %v10308_v0  ;;  %v5542_v0 = vld [vmem:[%s12808_s16 + $0x10] sm:$0xff]  ;;  %v5545_v54 = vld [vmem:[%s12808_s16 + $0x28] sm:$0xff] }
0x24fa   : > { %9597 = vmatprep.subr.bf16.mxu0 %v10915_v59 }
0x24fb   : > { %v9601_v10 = vpack.c.bf16 %v10295_v2, %v10294_v3  ;;  %v9610_v28 = vpack.c.bf16 %v10310_v20, %v10309_v21  ;;  %v5547_v2 = vld [vmem:[%s12808_s16 + $0x38] sm:$0xff]  ;;  %v5546_v3 = vld [vmem:[%s12808_s16 + $0x30] sm:$0xff] }
0x24fc   : > { %v10318_v4 = vpop.permute.xlu0 %10317  ;;  %v10303_v6 = vpop.permute.xlu1 %10302 }
0x24fd   : > { %9599 = vmatpush1.bf16.msra.mxu0 %v9598_v56  ;;  %v10305_v15 = vunpack.i.h.bf16 %v10303_v6  ;;  %v10304_v16 = vunpack.i.l.bf16 %v10303_v6  ;;  %v10320_v37 = vunpack.i.h.bf16 %v10318_v4  ;;  %v10319_v41 = vunpack.i.l.bf16 %v10318_v4  ;;  %v5544_v56 = vld [vmem:[%s12808_s16 + $0x20] sm:$0xff]  ;;  %s10936_s16 = smov 6  }
0x24fe   : > { %9600 = vmatprep.subr.bf16.mxu0 %v10915_v59 }
0x24ff   : > { %v9607_v22 = vpack.c.bf16 %v10305_v15, %v10304_v16  ;;  %v9616_v13 = vpack.c.bf16 %v10320_v37, %v10319_v41 }
0x2500   : > { %v10328_v11 = vpop.permute.xlu0 %10327  ;;  %v10313_v38 = vpop.permute.xlu1 %10312 }
0x2501   : > { %9602 = vmatpush1.bf16.msra.mxu0 %v9601_v10  ;;  %v10315_v31 = vunpack.i.h.bf16 %v10313_v38  ;;  %v10314_v32 = vunpack.i.l.bf16 %v10313_v38  ;;  %v10330_v50 = vunpack.i.h.bf16 %v10328_v11  ;;  %v10329_v1 = vunpack.i.l.bf16 %v10328_v11 }
0x2502   : > { %9603 = vmatprep.subr.bf16.mxu0 %v10915_v59 }
0x2503   : > { %v9613_v43 = vpack.c.bf16 %v10315_v31, %v10314_v32  ;;  %v9622_v51 = vpack.c.bf16 %v10330_v50, %v10329_v1 }
0x2504   : > { %v10338_v17 = vpop.permute.xlu0 %10337  ;;  %v10323_v18 = vpop.permute.xlu1 %10322 }
0x2505   : > { %v10340_v19 = vunpack.i.h.bf16 %v10338_v17  ;;  %v10339_v42 = vunpack.i.l.bf16 %v10338_v17  ;;  %9605 = vmatpush1.bf16.msra.mxu0 %v9604_v39  ;;  %v10325_v48 = vunpack.i.h.bf16 %v10323_v18  ;;  %v10324_v49 = vunpack.i.l.bf16 %v10323_v18 }
0x2506   : > { %9606 = vmatprep.subr.bf16.mxu0 %v10915_v59 }
0x2507   : > { %v6054_v23 = vsel %vm2345_vm1, 0.0, %v10340_v19  ;;  %v6053_v24 = vsel %vm2345_vm1, 0.0, %v10339_v42  ;;  %v9619_v53 = vpack.c.bf16 %v10325_v48, %v10324_v49 }
0x2508   : > { %v6059_v25 = vsel %vm6057_vm12, %v6054_v23, 0.0  ;;  %v6058_v27 = vsel %vm6057_vm12, %v6053_v24, 0.0  ;;  %v10333_v29 = vpop.permute.xlu1 %10332  ;;  %v9667_v60 = vpack.c.bf16 %v6054_v23, %v6053_v24 }
0x2509   : > { %9608 = vmatpush1.bf16.msra.mxu0 %v9607_v22  ;;  %v10346_v26 = vpack.i.bf16 %v6059_v25, %v6058_v27  ;;  %v10335_v52 = vunpack.i.h.bf16 %v10333_v29  ;;  %v10334_v55 = vunpack.i.l.bf16 %v10333_v29  ;;  %v6090_v25 = vld [vmem:[%s12811_s13] sm:$0xff]  ;;  %v6091_v29 = vld [vmem:[%s12811_s13 + $0x8] sm:$0xff]  ;;  %s12815_s13 = sld [smem:[#allocation57_spill]] }
0x250a   : > { %9609 = vmatprep.subr.bf16.mxu0 %v10915_v59 }
0x250b   : > { %10347 = vrot.lane.b32.xlu0 %v10346_v26, %s12736_s9  ;;  %v9625_v57 = vpack.c.bf16 %v10335_v52, %v10334_v55  ;;  %v5751_v55 = vld [vmem:[%s12816_s24] sm:$0xff] }
0x250c   : > { %v10343_v34 = vpop.permute.xlu1 %10342 }
0x250d   : > { %v10345_v35 = vunpack.i.h.bf16 %v10343_v34  ;;  %v10344_v36 = vunpack.i.l.bf16 %v10343_v34  ;;  %9611 = vmatpush1.bf16.msra.mxu0 %v9610_v28 }
0x250e   : > { %9612 = vmatprep.subr.bf16.mxu0 %v10915_v59 }
0x250f   : > { %v6056_v44 = vsel %vm2345_vm1, 0.0, %v10345_v35  ;;  %v6055_v45 = vsel %vm2345_vm1, 0.0, %v10344_v36  ;;  %10357 = vrot.lane.b32.xlu0 %v10346_v26, %s12735_s5 }
0x2510   : > { %v6061_v46 = vsel %vm6057_vm12, %v6056_v44, 0.0  ;;  %v6060_v47 = vsel %vm6057_vm12, %v6055_v45, 0.0  ;;  %v9673_v63 = vpack.c.bf16 %v6056_v44, %v6055_v45 }
0x2511   : > { %9614 = vmatpush1.bf16.msra.mxu0 %v9613_v43  ;;  %v10351_v40 = vpack.i.bf16 %v6061_v46, %v6060_v47 }
0x2512   : > { %9615 = vmatprep.subr.bf16.mxu0 %v10915_v59 }
0x2513   : > { %10352 = vrot.lane.b32.xlu1 %v10351_v40, %s12736_s9 }
0x2515   : > { %9617 = vmatpush1.bf16.msra.mxu0 %v9616_v13  ;;  %v5555_v4 = vpop.permute.xlu0 %5554 }
0x2516   : > { %9618 = vmatprep.subr.bf16.mxu0 %v10915_v59 }
0x2517   : > { %10362 = vrot.lane.b32.xlu1 %v10351_v40, %s12735_s5 }
0x2519   : > { %9620 = vmatpush1.bf16.msra.mxu0 %v9619_v53  ;;  %v5565_v6 = vpop.permute.xlu0 %5564 }
0x251a   : > { %9621 = vmatprep.subr.bf16.mxu0 %v10915_v59 }
0x251d   : > { %9623 = vmatpush1.bf16.msra.mxu0 %v9622_v51  ;;  %v5560_v8 = vpop.permute.xlu1 %5559 }
0x251e   : > { %9624 = vmatprep.subr.bf16.mxu0 %v10915_v59 }
0x2521   : > { %9626 = vmatpush1.bf16.msra.mxu0 %v9625_v57  ;;  %v5570_v39 = vpop.permute.xlu1 %5569 }
0x2522   : > { %9669 = vmatprep.subr.msk.bf16.mxu0 %vm11957_vm10, %v9667_v60 }
0x2524   : > { %5650 = vmatmul.mubr.f32.vlgmr.msra.gmra.mrb[30].mxu0 %v5540_v61 }
0x2525   : > { %9672 = vmatpush3.bf16.msk.msra.mxu0 %vm11957_vm10, %v9667_v60  ;;  %8410 = vmatprep.mubr.msk.f32.mxu0 %vm5572_vm7, %v5543_v62 }
0x2526   : > { %9675 = vmatprep.subr.msk.bf16.mxu0 %vm11957_vm10, %v9673_v63 }
0x2528   : > { %5655 = vmatmul.mubr.f32.gmra.mrb[32].mxu0 %v5542_v0 }
0x2529   : > { %9678 = vmatpush3.bf16.msk.msra.mxu0 %vm11957_vm10, %v9673_v63  ;;  %8411 = vmatprep.mubr.msk.f32.mxu0 %vm5572_vm7, %v5545_v54 }
0x252c   : > { %5660 = vmatmul.mubr.f32.gmra.mrb[34].mxu0 %v5544_v56 }
0x252d   : > { %8412 = vmatprep.mubr.msk.f32.mxu0 %vm5572_vm7, %v5547_v2 }
0x2530   : > { %5665 = vmatmul.mubr.f32.gmra.mrb[36].mxu0 %v5546_v3 }
0x2531   : > { %9138 = vmatprep.mubr.msk.f32.mxu0 %vm5572_vm7, %v6090_v25 }
0x257d   : > { %v10348_v9 = vpop.permute.xlu0 %10347 }
0x257e   : > { %v10350_v10 = vunpack.i.h.bf16 %v10348_v9  ;;  %v10349_v11 = vunpack.i.l.bf16 %v10348_v9 }
0x2580   : > { %v9679_v38 = vpack.c.bf16 %v10350_v10, %v10349_v11 }
0x2581   : > { %v10358_v15 = vpop.permute.xlu0 %10357 }
0x2582   : > { %9680 = vmatprep.subr.bf16.mxu0 %v9679_v38  ;;  %v10360_v17 = vunpack.i.h.bf16 %v10358_v15  ;;  %v10359_v18 = vunpack.i.l.bf16 %v10358_v15  ;;  %v5752_v15 = vld [vmem:[%s12816_s24 + $0x8] sm:$0xff] }
0x2583   : > { %9682 = vmatpush3.bf16.msra.mxu0 %v9679_v38  ;;  %8417 = vmatprep.mubr.msk.f32.mxu1 %vm2823_vm6, %v5752_v15 }
0x2584   : > { %v9687_v22 = vpack.c.bf16 %v10360_v17, %v10359_v18 }
0x2585   : > { %v10353_v16 = vpop.permute.xlu1 %10352 }
0x2586   : > { %v10355_v19 = vunpack.i.h.bf16 %v10353_v16  ;;  %v10354_v42 = vunpack.i.l.bf16 %v10353_v16  ;;  %v5761_v16 = vld [vmem:[%s12815_s13 + $0x10] sm:$0xff] }
0x2588   : > { %v9683_v20 = vpack.c.bf16 %v10355_v19, %v10354_v42 }
0x2589   : > { %v10363_v21 = vpop.permute.xlu1 %10362 }
0x258a   : > { %v10365_v23 = vunpack.i.h.bf16 %v10363_v21  ;;  %v10364_v24 = vunpack.i.l.bf16 %v10363_v21  ;;  %9684 = vmatprep.subr.bf16.mxu0 %v9683_v20 }
0x258b   : > { %9686 = vmatpush3.bf16.msra.mxu0 %v9683_v20 }
0x258c   : > { %9688 = vmatprep.subr.bf16.mxu0 %v9687_v22  ;;  %v9691_v27 = vpack.c.bf16 %v10365_v23, %v10364_v24 }
0x258f   : > { %9690 = vmatpush3.bf16.msra.mxu0 %v9687_v22 }
0x2590   : > { %9692 = vmatprep.subr.bf16.mxu0 %v9691_v27 }
0x2593   : > { %9694 = vmatpush3.bf16.msra.mxu0 %v9691_v27 }
0x2596   : > { %9139 = vmatmul.mubr.msk.f32.vlgmr.msra.gmra.mrb[38].mxu0 %vm5572_vm7, %v6091_v29 }
0x25f7   : > { %v5651_v26 = vpop.f32.mrb[30].mxu0 }
0x25f8   : > { %v5653_v28 = vpop.f32.mrb[31].mxu0  ;;  %v5652_v31 = vadd.f32 %v5651_v26, %v5555_v4 }
0x25fa   : > { %v5670_v36 = vmax.f32 %v5652_v31, 0.0 }
0x25fb   : > { %v5656_v32 = vpop.f32.mrb[32].mxu0 }
0x25fc   : > { %v5657_v34 = vadd.f32 %v5656_v32, %v5560_v8  ;;  %v5658_v35 = vpop.f32.mrb[33].mxu0 }
0x25fe   : > { %v5671_v37 = vmax.f32 %v5657_v34, 0.0 }
0x25ff   : > { %v5661_v41 = vpop.f32.mrb[34].mxu0 }
0x2600   : > { %v10366_v43 = vpack.i.bf16 %v5671_v37, %v5670_v36  ;;  %v5663_v44 = vpop.f32.mrb[35].mxu0  ;;  %v5662_v45 = vadd.f32 %v5661_v41, %v5565_v6 }
0x2602   : > { %10367 = vrot.lane.b32.xlu0 %v10366_v43, %s10936_s16  ;;  %v5672_v13 = vmax.f32 %v5662_v45, 0.0 }
0x2603   : > { %v5666_v46 = vpop.f32.mrb[36].mxu0 }
0x2604   : > { %v5667_v47 = vadd.f32 %v5666_v46, %v5570_v39  ;;  %v5668_v40 = vpop.f32.mrb[37].mxu0  ;;  %v5759_v39 = vld [vmem:[%s12815_s13] sm:$0xff] }
0x2606   : > { %v5673_v48 = vmax.f32 %v5667_v47, 0.0 }
0x2608   : > { %v10371_v49 = vpack.i.bf16 %v5673_v48, %v5672_v13 }
0x260a   : > { %10372 = vrot.lane.b32.xlu1 %v10371_v49, %s10936_s16  ;;  %s12814_s16 = sld [smem:[#allocation61_spill]] }
0x2610   : > { %v6092_v10 = vld [vmem:[%s12814_s16] sm:$0xff]  ;;  %v6093_v38 = vld [vmem:[%s12814_s16 + $0x8] sm:$0xff]  ;;  %s12818_s16 = sld [smem:[#allocation63_spill]] }
0x2669   : > { %v12009_v9 = vpop.f32.mrb[38].mxu0 }
0x266a   : > { %v6176_v11 = vpop.f32.mrb[39].mxu0 }
0x2674   : > { %v10368_v50 = vpop.permute.xlu0 %10367 }
0x2675   : > { %v10370_v1 = vunpack.i.h.bf16 %v10368_v50  ;;  %v10369_v53 = vunpack.i.l.bf16 %v10368_v50 }
0x2677   : > { %v5692_v51 = vsel %vm5690_vm8, 0.0, %v10370_v1  ;;  %v5691_v52 = vsel %vm5690_vm8, 0.0, %v10369_v53 }
0x2678   : > { %v5696_v57 = vsel %vm4812_vm9, %v5692_v51, 0.0  ;;  %v5695_v60 = vsel %vm4812_vm9, %v5691_v52, 0.0  ;;  %v9628_v61 = vpack.c.bf16 %v5692_v51, %v5691_v52 }
0x2679   : > { %v10376_v62 = vpack.i.bf16 %v5696_v57, %v5695_v60  ;;  %v5754_v60 = vld [vmem:[%s12816_s24 + $0x18] sm:$0xff] }
0x267a   : > { %9630 = vmatpush1.bf16.msk.msra.mxu1 %vm11987_vm0, %v9628_v61 }
0x267b   : > { %10377 = vrot.lane.b32.xlu0 %v10376_v62, %s12743_s11  ;;  %9631 = vmatprep.subr.bf16.mxu1 %v10915_v59 }
0x267c   : > { %v10373_v63 = vpop.permute.xlu1 %10372 }
0x267d   : > { %v10375_v0 = vunpack.i.h.bf16 %v10373_v63  ;;  %v10374_v54 = vunpack.i.l.bf16 %v10373_v63  ;;  %v5753_v63 = vld [vmem:[%s12816_s24 + $0x10] sm:$0xff] }
0x267f   : > { %v5694_v56 = vsel %vm5690_vm8, 0.0, %v10375_v0  ;;  %v5693_v2 = vsel %vm5690_vm8, 0.0, %v10374_v54  ;;  %10387 = vrot.lane.b32.xlu0 %v10376_v62, %s12744_s3  ;;  %v5756_v54 = vld [vmem:[%s12816_s24 + $0x28] sm:$0xff]  ;;  %vm9710_vm8 = vmpackc.low %vm6323_vm3, %vm6323_vm3 }
0x2680   : > { %v5698_v3 = vsel %vm4812_vm9, %v5694_v56, 0.0  ;;  %v5697_v4 = vsel %vm4812_vm9, %v5693_v2, 0.0  ;;  %v9632_v6 = vpack.c.bf16 %v5694_v56, %v5693_v2  ;;  %v5760_v56 = vld [vmem:[%s12815_s13 + $0x8] sm:$0xff]  ;;  %v5755_v2 = vld [vmem:[%s12816_s24 + $0x20] sm:$0xff]  ;;  %vm6195_vm9 = vcmask 39936  }
0x2681   : > { %v10381_v8 = vpack.i.bf16 %v5698_v3, %v5697_v4  ;;  %v5758_v3 = vld [vmem:[%s12816_s24 + $0x38] sm:$0xff] }
0x2682   : > { %9634 = vmatpush1.bf16.msk.msra.mxu1 %vm11987_vm0, %v9632_v6  ;;  %v5762_v4 = vld [vmem:[%s12815_s13 + $0x18] sm:$0xff]  ;;  %v5757_v6 = vld [vmem:[%s12816_s24 + $0x30] sm:$0xff]  ;;  %s12824_s24 = sld [smem:[#allocation65_spill]] }
0x2683   : > { %10382 = vrot.lane.b32.xlu1 %v10381_v8, %s12743_s11  ;;  %10397 = vrot.lane.b32.xlu0 %v10376_v62, %s12775_s29 }
0x2684   : > { %9635 = vmatprep.subr.bf16.mxu1 %v10915_v59 }
0x2687   : > { %10392 = vrot.lane.b32.xlu1 %v10381_v8, %s12744_s3  ;;  %10407 = vrot.lane.b32.xlu0 %v10376_v62, %s12774_s19 }
0x268b   : > { %10402 = vrot.lane.b32.xlu1 %v10381_v8, %s12775_s29  ;;  %6096 = vperm.xlu0 %10045, %v6092_v10   ;;  %s12817_s29 = sld [smem:[#allocation58_spill]] }
0x268f   : > { %10412 = vrot.lane.b32.xlu1 %v10381_v8, %s12774_s19  ;;  %s10937_s19 = smov 5  }
0x2691   : > { %v5884_v8 = vld [vmem:[%s12817_s29] sm:$0xff] }
0x2693   : > { %6101 = vperm.xlu1 %10044, %v6093_v38  }
0x2697   : > { %5765 = vperm.xlu1 %10044, %v5759_v39  }
0x269b   : > { %5775 = vperm.xlu1 %10044, %v5761_v16  }
0x26ed   : > { %v10378_v17 = vpop.permute.xlu0 %10377 }
0x26ee   : > { %v10380_v18 = vunpack.i.h.bf16 %v10378_v17  ;;  %v10379_v19 = vunpack.i.l.bf16 %v10378_v17 }
0x26f0   : > { %v9636_v42 = vpack.c.bf16 %v10380_v18, %v10379_v19  ;;  %v6218_v19 = vld [vmem:[%s12818_s16 + $0x8] sm:$0xff] }
0x26f1   : > { %v10388_v20 = vpop.permute.xlu0 %10387 }
0x26f2   : > { %9637 = vmatpush1.bf16.msra.mxu1 %v9636_v42  ;;  %v10390_v24 = vunpack.i.h.bf16 %v10388_v20  ;;  %v10389_v25 = vunpack.i.l.bf16 %v10388_v20  ;;  %v6217_v42 = vld [vmem:[%s12818_s16] sm:$0xff]  ;;  %s10938_s16 = smov 7  }
0x26f3   : > { %9638 = vmatprep.subr.bf16.mxu1 %v10915_v59 }
0x26f4   : > { %v9642_v26 = vpack.c.bf16 %v10390_v24, %v10389_v25 }
0x26f5   : > { %v10383_v21 = vpop.permute.xlu1 %10382  ;;  %v10398_v32 = vpop.permute.xlu0 %10397 }
0x26f6   : > { %v10385_v22 = vunpack.i.h.bf16 %v10383_v21  ;;  %v10384_v23 = vunpack.i.l.bf16 %v10383_v21  ;;  %v10400_v34 = vunpack.i.h.bf16 %v10398_v32  ;;  %v10399_v35 = vunpack.i.l.bf16 %v10398_v32 }
0x26f8   : > { %v9639_v27 = vpack.c.bf16 %v10385_v22, %v10384_v23  ;;  %v9648_v41 = vpack.c.bf16 %v10400_v34, %v10399_v35 }
0x26f9   : > { %v10393_v29 = vpop.permute.xlu1 %10392  ;;  %v10408_v45 = vpop.permute.xlu0 %10407 }
0x26fa   : > { %9640 = vmatpush1.bf16.msra.mxu1 %v9639_v27  ;;  %v10395_v28 = vunpack.i.h.bf16 %v10393_v29  ;;  %v10394_v31 = vunpack.i.l.bf16 %v10393_v29  ;;  %v10410_v46 = vunpack.i.h.bf16 %v10408_v45  ;;  %v10409_v47 = vunpack.i.l.bf16 %v10408_v45 }
0x26fb   : > { %9641 = vmatprep.subr.bf16.mxu1 %v10915_v59 }
0x26fc   : > { %v9645_v36 = vpack.c.bf16 %v10395_v28, %v10394_v31  ;;  %v9654_v48 = vpack.c.bf16 %v10410_v46, %v10409_v47 }
0x26fd   : > { %v10403_v37 = vpop.permute.xlu1 %10402 }
0x26fe   : > { %9643 = vmatpush1.bf16.msra.mxu1 %v9642_v26  ;;  %v10405_v43 = vunpack.i.h.bf16 %v10403_v37  ;;  %v10404_v44 = vunpack.i.l.bf16 %v10403_v37 }
0x26ff   : > { %9644 = vmatprep.subr.bf16.mxu1 %v10915_v59 }
0x2700   : > { %v9651_v40 = vpack.c.bf16 %v10405_v43, %v10404_v44 }
0x2701   : > { %v10413_v13 = vpop.permute.xlu1 %10412 }
0x2702   : > { %9646 = vmatpush1.bf16.msra.mxu1 %v9645_v36  ;;  %v10415_v49 = vunpack.i.h.bf16 %v10413_v13  ;;  %v10414_v50 = vunpack.i.l.bf16 %v10413_v13  ;;  %v5886_v13 = vld [vmem:[%s12817_s29 + $0x10] sm:$0xff] }
0x2703   : > { %9647 = vmatprep.subr.bf16.mxu1 %v10915_v59 }
0x2704   : > { %v9657_v53 = vpack.c.bf16 %v10415_v49, %v10414_v50 }
0x2706   : > { %9649 = vmatpush1.bf16.msra.mxu1 %v9648_v41 }
0x2707   : > { %9650 = vmatprep.subr.bf16.mxu1 %v10915_v59 }
0x270a   : > { %9652 = vmatpush1.bf16.msra.mxu1 %v9651_v40  ;;  %v6097_v1 = vpop.permute.xlu0 %6096  ;;  %v5885_v40 = vld [vmem:[%s12817_s29 + $0x8] sm:$0xff] }
0x270b   : > { %9653 = vmatprep.subr.bf16.mxu1 %v10915_v59  ;;  %v6177_v51 = vadd.f32 %v6176_v11, %v6097_v1 }
0x270d   : > { %v6185_v61 = vmax.f32 %v6177_v51, 0.0 }
0x270e   : > { %9655 = vmatpush1.bf16.msra.mxu1 %v9654_v48  ;;  %v5887_v48 = vld [vmem:[%s12817_s29 + $0x18] sm:$0xff] }
0x270f   : > { %9656 = vmatprep.subr.bf16.mxu1 %v10915_v59 }
0x2712   : > { %v6102_v52 = vpop.permute.xlu1 %6101  ;;  %9658 = vmatpush1.bf16.msra.mxu1 %v9657_v53 }
0x2713   : > { %v6182_v57 = vadd.f32 %v12009_v9, %v6102_v52 }
0x2715   : > { %v6186_v62 = vmax.f32 %v6182_v57, 0.0  ;;  %5860 = vmatmul.mubr.f32.vlgmr.msra.gmra.mrb[34].mxu1 %v5751_v55 }
0x2716   : > { %8418 = vmatprep.mubr.msk.f32.mxu1 %vm2823_vm6, %v5754_v60  ;;  %v5766_v22 = vpop.permute.xlu1 %5765 }
0x2717   : > { %v10416_v0 = vpack.i.bf16 %v6186_v62, %v6185_v61 }
0x2719   : > { %10417 = vrot.lane.b32.xlu0 %v10416_v0, %s10937_s19  ;;  %5865 = vmatmul.mubr.f32.gmra.mrb[36].mxu1 %v5753_v63 }
0x271a   : > { %8419 = vmatprep.mubr.msk.f32.mxu1 %vm2823_vm6, %v5756_v54  ;;  %v5776_v35 = vpop.permute.xlu1 %5775 }
0x271d   : > { %5770 = vperm.xlu0 %10045, %v5760_v56   ;;  %5870 = vmatmul.mubr.f32.gmra.mrb[38].mxu1 %v5755_v2 }
0x271e   : > { %8420 = vmatprep.mubr.msk.f32.mxu1 %vm2823_vm6, %v5758_v3 }
0x2721   : > { %5780 = vperm.xlu0 %10045, %v5762_v4   ;;  %5875 = vmatmul.mubr.f32.gmra.mrb[40].mxu1 %v5757_v6 }
0x2722   : > { %9108 = vmatprep.mubr.msk.f32.mxu1 %vm2823_vm6, %v5884_v8 }
0x278b   : > { %v10418_v9 = vpop.permute.xlu0 %10417 }
0x278c   : > { %v10420_v10 = vunpack.i.h.bf16 %v10418_v9  ;;  %v10419_v11 = vunpack.i.l.bf16 %v10418_v9 }
0x278e   : > { %v6197_v38 = vsel %vm6195_vm9, 0.0, %v10420_v10  ;;  %v6196_v39 = vsel %vm6195_vm9, 0.0, %v10419_v11 }
0x278f   : > { %v6200_v15 = vsel %vm6198_vm14, %v6197_v38, 0.0  ;;  %v6199_v16 = vsel %vm6198_vm14, %v6196_v39, 0.0  ;;  %v9695_v17 = vpack.c.bf16 %v6197_v38, %v6196_v39 }
0x2790   : > { %v10426_v18 = vpack.i.bf16 %v6200_v15, %v6199_v16 }
0x2792   : > { %10427 = vrot.lane.b32.xlu0 %v10426_v18, %s12786_s26  ;;  %10422 = vrot.lane.b32.xlu1 %v10426_v18, %s12752_s14  ;;  %s12819_s26 = sld [smem:[#allocation62_spill]] }
0x2796   : > { %6226 = vperm.xlu0 %10045, %v6218_v19   ;;  %6221 = vperm.xlu1 %10044, %v6217_v42  }
0x2798   : > { %s12820_s19 = smov %s12819_s26  ;;  %v6215_v49 = vld [vmem:[%s12819_s26] sm:$0xff]  ;;  %s12821_s26 = sld [smem:[#allocation64_spill]] }
0x2799   : > { %v6216_v61 = vld [vmem:[%s12820_s19 + $0x8] sm:$0xff]  ;;  %s12823_s19 = sld [smem:[#allocation59_spill]] }
0x279c   : > { %v5771_v24 = vpop.permute.xlu0 %5770 }
0x279e   : > { %s12822_s13 = smov %s12821_s26 }
0x27a0   : > { %v5781_v37 = vpop.permute.xlu0 %5780 }
0x27e8   : > { %v5861_v20 = vpop.f32.mrb[34].mxu1 }
0x27e9   : > { %v5863_v21 = vpop.f32.mrb[35].mxu1  ;;  %v5862_v23 = vadd.f32 %v5861_v20, %v5766_v22  ;;  %v6340_v20 = vld [vmem:[%s12821_s26] sm:$0xff]  ;;  %v5889_v22 = vld [vmem:[%s12823_s19 + $0x8] sm:$0xff]  ;;  %s12826_s26 = sld [smem:[#allocation67_spill]] }
0x27eb   : > { %v5880_v26 = vmax.f32 %v5862_v23, 0.0  ;;  %v5888_v23 = vld [vmem:[%s12823_s19] sm:$0xff] }
0x27ec   : > { %v5866_v25 = vpop.f32.mrb[36].mxu1 }
0x27ed   : > { %v5867_v27 = vadd.f32 %v5866_v25, %v5771_v24  ;;  %v5868_v29 = vpop.f32.mrb[37].mxu1  ;;  %v5891_v24 = vld [vmem:[%s12823_s19 + $0x18] sm:$0xff]  ;;  %v5890_v25 = vld [vmem:[%s12823_s19 + $0x10] sm:$0xff] }
0x27ee   : > { %v6344_v29 = vld [vmem:[%s12824_s24] sm:$0xff] }
0x27ef   : > { %v5881_v28 = vmax.f32 %v5867_v27, 0.0  ;;  %v6345_v27 = vld [vmem:[%s12824_s24 + $0x8] sm:$0xff] }
0x27f0   : > { %v5871_v31 = vpop.f32.mrb[38].mxu1 }
0x27f1   : > { %v9659_v32 = vpack.c.bf16 %v5881_v28, %v5880_v26  ;;  %v5873_v34 = vpop.f32.mrb[39].mxu1  ;;  %v5872_v36 = vadd.f32 %v5871_v31, %v5776_v35  ;;  %v6347_v26 = vld [vmem:[%s12824_s24 + $0x18] sm:$0xff]  ;;  %v6346_v28 = vld [vmem:[%s12824_s24 + $0x10] sm:$0xff] }
0x27f3   : > { %9660 = vmatprep.subr.bf16.mxu1 %v9659_v32  ;;  %v5882_v45 = vmax.f32 %v5872_v36, 0.0 }
0x27f4   : > { %v5876_v41 = vpop.f32.mrb[40].mxu1  ;;  %9662 = vmatpush3.bf16.msra.mxu1 %v9659_v32 }
0x27f5   : > { %v5877_v43 = vadd.f32 %v5876_v41, %v5781_v37  ;;  %v5878_v44 = vpop.f32.mrb[41].mxu1 }
0x27f6   : > { %v6341_v44 = vld [vmem:[%s12822_s13 + $0x8] sm:$0xff] }
0x27f7   : > { %v5883_v46 = vmax.f32 %v5877_v43, 0.0 }
0x27f9   : > { %v9663_v47 = vpack.c.bf16 %v5883_v46, %v5882_v45  ;;  %v6342_v45 = vld [vmem:[%s12822_s13 + $0x10] sm:$0xff]  ;;  %v6343_v46 = vld [vmem:[%s12822_s13 + $0x18] sm:$0xff]  ;;  %s12832_s13 = sld [smem:[#allocation70_spill]] }
0x27fb   : > { %9664 = vmatprep.subr.bf16.mxu1 %v9663_v47 }
0x27fc   : > { %9666 = vmatpush3.bf16.msra.mxu1 %v9663_v47 }
0x27fd   : > { %9697 = vmatprep.subr.msk.bf16.mxu1 %vm9696_vm15, %v9695_v17 }
0x27ff   : > { %9109 = vmatmul.mubr.msk.f32.vlgmr.msra.gmra.mrb[42].mxu1 %vm2823_vm6, %v5885_v40 }
0x2800   : > { %9700 = vmatpush3.bf16.msk.msra.mxu1 %vm9696_vm15, %v9695_v17  ;;  %9111 = vmatprep.mubr.msk.f32.mxu1 %vm2823_vm6, %v5886_v13 }
0x2803   : > { %9112 = vmatmul.mubr.msk.f32.gmra.mrb[44].mxu1 %vm2823_vm6, %v5887_v48 }
0x2804   : > { %v10428_v50 = vpop.permute.xlu0 %10427  ;;  %v10423_v1 = vpop.permute.xlu1 %10422  ;;  %9153 = vmatprep.mubr.msk.f32.mxu1 %vm3475_vm2, %v6215_v49 }
0x2805   : > { %v10430_v53 = vunpack.i.h.bf16 %v10428_v50  ;;  %v10429_v51 = vunpack.i.l.bf16 %v10428_v50  ;;  %v10425_v52 = vunpack.i.h.bf16 %v10423_v1  ;;  %v10424_v55 = vunpack.i.l.bf16 %v10423_v1 }
0x2807   : > { %v9701_v57 = vpack.c.bf16 %v10425_v52, %v10424_v55  ;;  %v9705_v60 = vpack.c.bf16 %v10430_v53, %v10429_v51 }
0x2809   : > { %9702 = vmatprep.subr.bf16.mxu1 %v9701_v57 }
0x280a   : > { %9704 = vmatpush3.bf16.msra.mxu1 %v9701_v57 }
0x280b   : > { %9706 = vmatprep.subr.bf16.mxu1 %v9705_v60 }
0x280e   : > { %9708 = vmatpush3.bf16.msra.mxu1 %v9705_v60 }
0x2811   : > { %9154 = vmatmul.mubr.msk.f32.vlgmr.msra.gmra.mrb[46].mxu1 %vm3475_vm2, %v6216_v61 }
0x2812   : > { %9168 = vmatprep.mubr.msk.f32.mxu1 %vm3475_vm2, %v6340_v20 }
0x2815   : > { %v6227_v56 = vpop.permute.xlu0 %6226  ;;  %v6222_v3 = vpop.permute.xlu1 %6221 }
0x28d2   : > { %v12061_v62 = vpop.f32.mrb[42].mxu1 }
0x28d3   : > { %v12063_v63 = vpop.f32.mrb[43].mxu1 }
0x28d6   : > { %v12065_v0 = vpop.f32.mrb[44].mxu1 }
0x28d7   : > { %v12067_v54 = vpop.f32.mrb[45].mxu1 }
0x28e4   : > { %v9155_v2 = vpop.f32.mrb[46].mxu1 }
0x28e5   : > { %v6307_v4 = vadd.f32 %v9155_v2, %v6227_v56  ;;  %v6301_v6 = vpop.f32.mrb[47].mxu1 }
0x28e6   : > { %v6302_v8 = vadd.f32 %v6301_v6, %v6222_v3 }
0x28e7   : > { %v6311_v9 = vmax.f32 %v6307_v4, 0.0 }
0x28e8   : > { %v6310_v10 = vmax.f32 %v6302_v8, 0.0 }
0x28ea   : > { %v10431_v11 = vpack.i.bf16 %v6311_v9, %v6310_v10 }
0x28ec   : > { %10432 = vrot.lane.b32.xlu1 %v10431_v11, %s10938_s16  ;;  %s12825_s16 = sld [smem:[#allocation66_spill]] }
0x295e   : > { %v10433_v38 = vpop.permute.xlu1 %10432 }
0x295f   : > { %v10435_v39 = vunpack.i.h.bf16 %v10433_v38  ;;  %v10434_v15 = vunpack.i.l.bf16 %v10433_v38 }
0x2961   : > { %v6322_v16 = vsel %vm6320_vm11, 0.0, %v10435_v39  ;;  %v6321_v17 = vsel %vm6320_vm11, 0.0, %v10434_v15 }
0x2962   : > { %v6325_v18 = vsel %vm6323_vm3, %v6322_v16, 0.0  ;;  %v6324_v19 = vsel %vm6323_vm3, %v6321_v17, 0.0  ;;  %v9709_v42 = vpack.c.bf16 %v6322_v16, %v6321_v17 }
0x2963   : > { %v10441_v21 = vpack.i.bf16 %v6325_v18, %v6324_v19 }
0x2964   : > { %9711 = vmatprep.subr.msk.bf16.mxu1 %vm9710_vm8, %v9709_v42 }
0x2965   : > { %9714 = vmatpush3.bf16.msk.msra.mxu1 %vm9710_vm8, %v9709_v42  ;;  %10442 = vrot.lane.b32.xlu1 %v10441_v21, %s12794_s30 }
0x2966   : > { %10437 = vrot.lane.b32.xlu0 %v10441_v21, %s12795_s2  ;;  %s12618_s2 = sshll.u32 %s11405_s18, 5 }
0x2967   : > { %s2339_s30 = scalar_lea.vmem %s11348_s20, %s12618_s2 }
0x2969   : > { %5899 = vperm.xlu1 %10044, %v5889_v22  }
0x296a   : > { %5894 = vperm.xlu0 %10045, %v5888_v23  }
0x296d   : > { %5909 = vperm.xlu1 %10044, %v5891_v24  }
0x296e   : > { %5904 = vperm.xlu0 %10045, %v5890_v25  }
0x2971   : > { %6355 = vperm.xlu1 %10044, %v6345_v27  }
0x2972   : > { %6350 = vperm.xlu0 %10045, %v6344_v29  }
0x2975   : > { %6365 = vperm.xlu1 %10044, %v6347_v26  }
0x2976   : > { %6360 = vperm.xlu0 %10045, %v6346_v28  }
0x29d7   : > { %v10443_v31 = vpop.permute.xlu1 %10442 }
0x29d8   : > { %v10438_v32 = vpop.permute.xlu0 %10437  ;;  %v10445_v34 = vunpack.i.h.bf16 %v10443_v31  ;;  %v10444_v35 = vunpack.i.l.bf16 %v10443_v31 }
0x29d9   : > { %v10440_v36 = vunpack.i.h.bf16 %v10438_v32  ;;  %v10439_v37 = vunpack.i.l.bf16 %v10438_v32 }
0x29da   : > { %v9719_v43 = vpack.c.bf16 %v10445_v34, %v10444_v35 }
0x29db   : > { %v9715_v41 = vpack.c.bf16 %v10440_v36, %v10439_v37 }
0x29dd   : > { %9716 = vmatprep.subr.bf16.mxu1 %v9715_v41 }
0x29de   : > { %9718 = vmatpush3.bf16.msra.mxu1 %v9715_v41 }
0x29df   : > { %9720 = vmatprep.subr.bf16.mxu1 %v9719_v43 }
0x29e2   : > { %9722 = vmatpush3.bf16.msra.mxu1 %v9719_v43 }
0x29e5   : > { %9169 = vmatmul.mubr.msk.f32.vlgmr.msra.gmra.mrb[48].mxu1 %vm3475_vm2, %v6341_v44 }
0x29e6   : > { %9171 = vmatprep.mubr.msk.f32.mxu1 %vm3475_vm2, %v6342_v45 }
0x29e8   : > { %v5900_v47 = vpop.permute.xlu1 %5899 }
0x29e9   : > { %9172 = vmatmul.mubr.msk.f32.gmra.mrb[50].mxu1 %vm3475_vm2, %v6343_v46  ;;  %v5895_v40 = vpop.permute.xlu0 %5894  ;;  %v5996_v13 = vadd.f32 %v12061_v62, %v5900_v47  ;;  %vm12828_vm2 = vcmp.eq.s32.totalorder %v11447_v30, %v11450_v33 }
0x29ea   : > { %v5991_v48 = vadd.f32 %v12063_v63, %v5895_v40 }
0x29eb   : > { %v8426_v1 = vmul.f32 -1.442695, %v5996_v13 }
0x29ec   : > { %v5910_v49 = vpop.permute.xlu1 %5909  ;;  %v8425_v51 = vmul.f32 -1.442695, %v5991_v48 }
0x29ed   : > { %v5905_v50 = vpop.permute.xlu0 %5904  ;;  %v6006_v53 = vadd.f32 %v12065_v0, %v5910_v49  ;;  %10654 = vpow2.f32 %v8426_v1 }
0x29ee   : > { %v6001_v52 = vadd.f32 %v12067_v54, %v5905_v50  ;;  %10656 = vpow2.f32 %v8425_v51  ;;  %v6529_v51 = vld [vmem:[%s12825_s16] sm:$0xff] }
0x29ef   : > { %v8428_v55 = vmul.f32 -1.442695, %v6006_v53  ;;  %9198 = vmatprep.mubr.msk.f32.mxu0 %vm5572_vm7, %v6529_v51 }
0x29f0   : > { %v8427_v57 = vmul.f32 -1.442695, %v6001_v52  ;;  %v6356_v54 = vpop.permute.xlu1 %6355  ;;  %v6533_v52 = vld [vmem:[%s12826_s26] sm:$0xff] }
0x29f1   : > { %10658 = vpow2.f32 %v8428_v55  ;;  %v6351_v4 = vpop.permute.xlu0 %6350 }
0x29f2   : > { %10660 = vpow2.f32 %v8427_v57 }
0x29f4   : > { %v6366_v17 = vpop.permute.xlu1 %6365 }
0x29f5   : > { %v6361_v21 = vpop.permute.xlu0 %6360 }
0x29f7   : > { %v10655_v60 = vpop.eup %10654 }
0x29f8   : > { %v10657_v61 = vpop.eup %10656  ;;  %v6022_v62 = vadd.f32 1.0, %v10655_v60 }
0x29f9   : > { %v6021_v63 = vadd.f32 1.0, %v10657_v61 }
0x29fa   : > { %10662 = vrcp.f32 %v6022_v62 }
0x29fb   : > { %v10659_v56 = vpop.eup %10658  ;;  %10664 = vrcp.f32 %v6021_v63 }
0x29fc   : > { %v10661_v2 = vpop.eup %10660  ;;  %v6024_v3 = vadd.f32 1.0, %v10659_v56 }
0x29fd   : > { %v6023_v0 = vadd.f32 1.0, %v10661_v2 }
0x29fe   : > { %10666 = vrcp.f32 %v6024_v3 }
0x29ff   : > { %10668 = vrcp.f32 %v6023_v0 }
0x2a04   : > { %v10663_v6 = vpop.eup %10662 }
0x2a05   : > { %v10665_v9 = vpop.eup %10664  ;;  %v6034_v39 = vmul.f32 %v10663_v6, %v11846_v5 }
0x2a06   : > { %v6033_v18 = vmul.f32 %v10665_v9, %v11848_v7 }
0x2a08   : > { %v10667_v16 = vpop.eup %10666 }
0x2a09   : > { %v10669_v20 = vpop.eup %10668  ;;  %v6036_v5 = vmul.f32 %v10667_v16, %v11856_v14  ;;  %v6532_v16 = vld [vmem:[%s12825_s16 + $0x18] sm:$0xff] }
0x2a0a   : > { %v6035_v28 = vmul.f32 %v10669_v20, %v11854_v12 }
0x2ab8   : > { %v9170_v8 = vpop.f32.mrb[48].mxu1 }
0x2ab9   : > { %v6452_v10 = vadd.f32 %v9170_v8, %v6356_v54  ;;  %v6446_v11 = vpop.f32.mrb[49].mxu1 }
0x2aba   : > { %v6447_v38 = vadd.f32 %v6446_v11, %v6351_v4 }
0x2abb   : > { %v6466_v15 = vmax.f32 %v6452_v10, 0.0 }
0x2abc   : > { %v6465_v19 = vmax.f32 %v6447_v38, 0.0  ;;  %v9173_v42 = vpop.f32.mrb[50].mxu1 }
0x2abd   : > { %v6470_v22 = vadd.f32 %v6466_v15, %v6034_v39  ;;  %v6462_v23 = vadd.f32 %v9173_v42, %v6366_v17  ;;  %v6456_v24 = vpop.f32.mrb[51].mxu1  ;;  %v6530_v39 = vld [vmem:[%s12825_s16 + $0x8] sm:$0xff]  ;;  %v6531_v15 = vld [vmem:[%s12825_s16 + $0x10] sm:$0xff]  ;;  %v10939_v17 = vmov 1.0   ;;  %s12833_s16 = sld [smem:[#allocation69_spill]] }
0x2abe   : > { %v6469_v25 = vadd.f32 %v6465_v19, %v6033_v18  ;;  %v6457_v27 = vadd.f32 %v6456_v24, %v6361_v21  ;;  %9204 = vmatprep.subr.msk.mxu1 %vm12828_vm2, %v10939_v17 }
0x2abf   : > { %6474 = vst.msk [vmem:[%s2339_s30 + $0x8] sm:$0xff] %vm2914_vm13, %v6470_v22  ;;  %v6468_v29 = vmax.f32 %v6462_v23, 0.0 }
0x2ac0   : > { %v10446_v26 = vpack.i.bf16 %v6470_v22, %v6469_v25  ;;  %6473 = vst.msk [vmem:[%s2339_s30] sm:$0xff] %vm2914_vm13, %v6469_v25  ;;  %v6467_v7 = vmax.f32 %v6457_v27, 0.0 }
0x2ac1   : > { %v6472_v31 = vadd.f32 %v6468_v29, %v6036_v5 }
0x2ac2   : > { %v6471_v32 = vadd.f32 %v6467_v7, %v6035_v28  ;;  %10447 = vrot.lane.b32.xlu0 %v10446_v26, %s12745_s10 }
0x2ac3   : > { %6476 = vst.msk [vmem:[%s2339_s30 + $0x18] sm:$0xff] %vm2914_vm13, %v6472_v31  ;;  %v6775_v51 = vld [vmem:[%s12833_s16] sm:$0xff] }
0x2ac4   : > { %v10451_v34 = vpack.i.bf16 %v6472_v31, %v6471_v32  ;;  %6475 = vst.msk [vmem:[%s2339_s30 + $0x10] sm:$0xff] %vm2914_vm13, %v6471_v32  ;;  %s12827_s30 = smov %s12826_s26  ;;  %s12830_s26 = sld [smem:[#allocation68_spill]] }
0x2ac5   : > { %v6534_v55 = vld [vmem:[%s12827_s30 + $0x8] sm:$0xff]  ;;  %v6535_v57 = vld [vmem:[%s12827_s30 + $0x10] sm:$0xff]  ;;  %v6536_v60 = vld [vmem:[%s12827_s30 + $0x18] sm:$0xff] }
0x2ac6   : > { %10452 = vrot.lane.b32.xlu1 %v10451_v34, %s12745_s10 }
0x2aca   : > { %s12831_s2 = smov %s12830_s26 }
0x2b34   : > { %v10448_v35 = vpop.permute.xlu0 %10447 }
0x2b35   : > { %v10450_v14 = vunpack.i.h.bf16 %v10448_v35  ;;  %v10449_v36 = vunpack.i.l.bf16 %v10448_v35 }
0x2b37   : > { %v6494_v37 = vsel %vm2345_vm1, 0.0, %v10450_v14  ;;  %v6493_v41 = vsel %vm2345_vm1, 0.0, %v10449_v36 }
0x2b38   : > { %v6498_v12 = vsel %vm6057_vm12, %v6494_v37, 0.0  ;;  %v6497_v43 = vsel %vm6057_vm12, %v6493_v41, 0.0  ;;  %v9723_v44 = vpack.c.bf16 %v6494_v37, %v6493_v41  ;;  %v10453_v45 = vpop.permute.xlu1 %10452  ;;  %v6773_v41 = vld [vmem:[%s12830_s26] sm:$0xff]  ;;  %s12834_s26 = sld [smem:[#allocation71_spill]] }
0x2b39   : > { %v10456_v46 = vpack.i.bf16 %v6498_v12, %v6497_v43  ;;  %v10455_v47 = vunpack.i.h.bf16 %v10453_v45  ;;  %v10454_v40 = vunpack.i.l.bf16 %v10453_v45 }
0x2b3a   : > { %9725 = vmatprep.subr.msk.bf16.mxu0 %vm11957_vm10, %v9723_v44 }
0x2b3b   : > { %v6496_v13 = vsel %vm2345_vm1, 0.0, %v10455_v47  ;;  %v6495_v48 = vsel %vm2345_vm1, 0.0, %v10454_v40  ;;  %9728 = vmatpush3.bf16.msk.msra.mxu0 %vm11957_vm10, %v9723_v44  ;;  %10457 = vrot.lane.b32.xlu0 %v10456_v46, %s12736_s9 }
0x2b3c   : > { %v6500_v49 = vsel %vm6057_vm12, %v6496_v13, 0.0  ;;  %v6499_v50 = vsel %vm6057_vm12, %v6495_v48, 0.0  ;;  %v9729_v1 = vpack.c.bf16 %v6496_v13, %v6495_v48  ;;  %vm12829_vm12 = vmmov %vm12828_vm2 }
0x2b3d   : > { %v10461_v53 = vpack.i.bf16 %v6500_v49, %v6499_v50  ;;  %9205 = vmatpush3.msk.msra.mxu1 %vm12829_vm12, %v10939_v17  ;;  %v6774_v50 = vld [vmem:[%s12831_s2 + $0x8] sm:$0xff] }
0x2b3e   : > { %9731 = vmatprep.subr.msk.bf16.mxu0 %vm11957_vm10, %v9729_v1  ;;  %s12835_s19 = smov %s12834_s26 }
0x2b3f   : > { %10462 = vrot.lane.b32.xlu1 %v10461_v53, %s12736_s9  ;;  %9734 = vmatpush3.bf16.msk.msra.mxu0 %vm11957_vm10, %v9729_v1  ;;  %vm6755_vm10 = vcmask 31744   ;;  %v6860_v1 = vld [vmem:[%s12832_s13] sm:$0xff] }
0x2b40   : > { %10467 = vrot.lane.b32.xlu0 %v10456_v46, %s12735_s5 }
0x2b43   : > { %10472 = vrot.lane.b32.xlu1 %v10461_v53, %s12735_s5  ;;  %v6776_v53 = vld [vmem:[%s12833_s16 + $0x8] sm:$0xff] }
0x2b44   : > { %6539 = vperm.xlu0 %10045, %v6533_v52  }
0x2b47   : > { %6544 = vperm.xlu1 %10044, %v6534_v55  }
0x2b48   : > { %6549 = vperm.xlu0 %10045, %v6535_v57  }
0x2b4b   : > { %6554 = vperm.xlu1 %10044, %v6536_v60  }
0x2bad   : > { %v10458_v61 = vpop.permute.xlu0 %10457 }
0x2bae   : > { %v10460_v62 = vunpack.i.h.bf16 %v10458_v61  ;;  %v10459_v56 = vunpack.i.l.bf16 %v10458_v61 }
0x2bb0   : > { %v9735_v58 = vpack.c.bf16 %v10460_v62, %v10459_v56 }
0x2bb1   : > { %v10463_v63 = vpop.permute.xlu1 %10462 }
0x2bb2   : > { %v10465_v2 = vunpack.i.h.bf16 %v10463_v63  ;;  %v10464_v3 = vunpack.i.l.bf16 %v10463_v63  ;;  %v10468_v0 = vpop.permute.xlu0 %10467  ;;  %9736 = vmatprep.subr.bf16.mxu0 %v9735_v58  ;;  %v6862_v63 = vld [vmem:[%s12832_s13 + $0x10] sm:$0xff] }
0x2bb3   : > { %v10470_v54 = vunpack.i.h.bf16 %v10468_v0  ;;  %v10469_v4 = vunpack.i.l.bf16 %v10468_v0  ;;  %9738 = vmatpush3.bf16.msra.mxu0 %v9735_v58  ;;  %v6861_v58 = vld [vmem:[%s12832_s13 + $0x8] sm:$0xff]  ;;  %v6864_v0 = vld [vmem:[%s12835_s19] sm:$0xff] }
0x2bb4   : > { %v9739_v6 = vpack.c.bf16 %v10465_v2, %v10464_v3  ;;  %v6863_v2 = vld [vmem:[%s12832_s13 + $0x18] sm:$0xff]  ;;  %v6865_v3 = vld [vmem:[%s12834_s26 + $0x8] sm:$0xff]  ;;  %s12838_s26 = sld [smem:[#allocation73_spill]]  ;;  %s12840_s13 = sld [smem:[#allocation72_spill]] }
0x2bb5   : > { %v10473_v8 = vpop.permute.xlu1 %10472  ;;  %v9743_v9 = vpack.c.bf16 %v10470_v54, %v10469_v4 }
0x2bb6   : > { %v10475_v10 = vunpack.i.h.bf16 %v10473_v8  ;;  %v10474_v11 = vunpack.i.l.bf16 %v10473_v8  ;;  %9740 = vmatprep.subr.bf16.mxu0 %v9739_v6 }
0x2bb7   : > { %9742 = vmatpush3.bf16.msra.mxu0 %v9739_v6 }
0x2bb8   : > { %9744 = vmatprep.subr.bf16.mxu0 %v9743_v9  ;;  %v9747_v38 = vpack.c.bf16 %v10475_v10, %v10474_v11  ;;  %v6866_v11 = vld [vmem:[%s12835_s19 + $0x10] sm:$0xff] }
0x2bba   : > { %s12839_s2 = smov %s12838_s26 }
0x2bbb   : > { %9746 = vmatpush3.bf16.msra.mxu0 %v9743_v9  ;;  %v6867_v9 = vld [vmem:[%s12835_s19 + $0x18] sm:$0xff] }
0x2bbc   : > { %9748 = vmatprep.subr.bf16.mxu0 %v9747_v38 }
0x2bbf   : > { %9750 = vmatpush3.bf16.msra.mxu0 %v9747_v38 }
0x2bc2   : > { %9199 = vmatmul.mubr.msk.f32.vlgmr.msra.gmra.mrb[40].mxu0 %vm5572_vm7, %v6530_v39 }
0x2bc3   : > { %9201 = vmatprep.mubr.msk.f32.mxu0 %vm5572_vm7, %v6531_v15  ;;  %v6540_v18 = vpop.permute.xlu0 %6539 }
0x2bc6   : > { %9202 = vmatmul.mubr.msk.f32.gmra.mrb[42].mxu0 %vm5572_vm7, %v6532_v16  ;;  %v6545_v19 = vpop.permute.xlu1 %6544 }
0x2bc7   : > { %v6550_v24 = vpop.permute.xlu0 %6549 }
0x2bca   : > { %v6555_v27 = vpop.permute.xlu1 %6554 }
0x2c95   : > { %v9200_v42 = vpop.f32.mrb[40].mxu0 }
0x2c96   : > { %v6635_v20 = vpop.f32.mrb[41].mxu0  ;;  %v6641_v22 = vadd.f32 %v9200_v42, %v6545_v19 }
0x2c97   : > { %v6636_v21 = vadd.f32 %v6635_v20, %v6540_v18 }
0x2c99   : > { %v9203_v23 = vpop.f32.mrb[42].mxu0  ;;  %9206 = vmatprep.mubr.msk.f32.mxu1 %vm2914_vm13, %v6636_v21 }
0x2c9a   : > { %v6645_v25 = vpop.f32.mrb[43].mxu0  ;;  %9207 = vmatmul.mubr.msk.f32.vlgmr.msra.gmra.mrb[52].mxu1 %vm2914_vm13, %v6641_v22  ;;  %v6651_v29 = vadd.f32 %v9203_v23, %v6555_v27 }
0x2c9b   : > { %v6646_v5 = vadd.f32 %v6645_v25, %v6550_v24 }
0x2c9d   : > { %9209 = vmatprep.mubr.msk.f32.mxu1 %vm2914_vm13, %v6646_v5 }
0x2c9e   : > { %9210 = vmatmul.mubr.msk.f32.gmra.mrb[54].mxu1 %vm2914_vm13, %v6651_v29  ;;  %vm12194_vm13 = vmpackc.low %vm6320_vm11, %vm6320_vm11 }
0x2c9f   : > { %9220 = vmatprep.mubr.msk.f32.mxu1 %vm2823_vm6, %v6773_v41 }
0x2d6d   : > { %v9208_v30 = vpop.f32.mrb[52].mxu1 }
0x2d6e   : > { %v12149_v33 = vmax.f32 %v9208_v30, 0.0  ;;  %v6732_v26 = vpop.f32.mrb[53].mxu1 }
0x2d6f   : > { %v12151_v28 = vmax.f32 %v6732_v26, 0.0 }
0x2d70   : > { %v6759_v7 = vsel %vm6755_vm10, %v12149_v33, 0.0 }
0x2d71   : > { %6760 = vadd.xlane.f32.xlu1 %v6759_v7  ;;  %v9211_v31 = vpop.f32.mrb[54].mxu1  ;;  %v6756_v32 = vsel %vm6755_vm10, %v12151_v28, 0.0 }
0x2d72   : > { %6757 = vadd.xlane.f32.xlu0 %v6756_v32  ;;  %v6742_v34 = vpop.f32.mrb[55].mxu1  ;;  %v12159_v14 = vmax.f32 %v9211_v31, 0.0 }
0x2d73   : > { %v12157_v35 = vmax.f32 %v6742_v34, 0.0 }
0x2d74   : > { %v6765_v37 = vsel %vm6755_vm10, %v12159_v14, 0.0 }
0x2d75   : > { %v6762_v36 = vsel %vm6755_vm10, %v12157_v35, 0.0 }
0x2d76   : > { %6763 = vadd.xlane.f32.xlu0 %v6762_v36 }
0x2d7a   : > { %6766 = vadd.xlane.f32.xlu0 %v6765_v37 }
0x2dfe   : > { %v6761_v12 = vpop.xlane.xlu1 %6760 }
0x2dff   : > { %v6770_v43 = vmul.f32 0.25, %v6761_v12  ;;  %v6758_v44 = vpop.xlane.xlu0 %6757 }
0x2e00   : > { %v6769_v45 = vmul.f32 0.25, %v6758_v44 }
0x2e02   : > { %v9751_v46 = vpack.c.bf16 %v6770_v43, %v6769_v45 }
0x2e03   : > { %v6764_v47 = vpop.xlane.xlu0 %6763 }
0x2e04   : > { %9752 = vmatprep.subr.bf16.mxu1 %v9751_v46  ;;  %v6771_v13 = vmul.f32 0.25, %v6764_v47 }
0x2e05   : > { %9754 = vmatpush3.bf16.msra.mxu1 %v9751_v46 }
0x2e07   : > { %v6767_v40 = vpop.xlane.xlu0 %6766 }
0x2e08   : > { %v6772_v48 = vmul.f32 0.25, %v6767_v40 }
0x2e0a   : > { %v9755_v49 = vpack.c.bf16 %v6772_v48, %v6771_v13 }
0x2e0c   : > { %9756 = vmatprep.subr.bf16.mxu1 %v9755_v49 }
0x2e0d   : > { %9758 = vmatpush3.bf16.msra.mxu1 %v9755_v49 }
0x2e10   : > { %9221 = vmatmul.mubr.msk.f32.vlgmr.msra.gmra.mrb[56].mxu1 %vm2823_vm6, %v6774_v50 }
0x2e11   : > { %9227 = vmatprep.mubr.msk.f32.mxu1 %vm2835_vm5, %v6860_v1 }
0x2ee3   : > { %v9222_v52 = vpop.f32.mrb[56].mxu1 }
0x2ee4   : > { %v6855_v55 = vadd.f32 %v9222_v52, %v6776_v53  ;;  %v6849_v57 = vpop.f32.mrb[57].mxu1 }
0x2ee5   : > { %v6850_v60 = vadd.f32 %v6849_v57, %v6775_v51 }
0x2ee6   : > { %v6859_v61 = vmax.f32 %v6855_v55, 0.0 }
0x2ee7   : > { %v6858_v62 = vmax.f32 %v6850_v60, 0.0 }
0x2ee9   : > { %v9759_v56 = vpack.c.bf16 %v6859_v61, %v6858_v62 }
0x2eeb   : > { %9760 = vmatprep.subr.bf16.mxu1 %v9759_v56 }
0x2eec   : > { %9762 = vmatpush3.bf16.msra.mxu1 %v9759_v56 }
0x2eed   : > { %9763 = vmatprep.subr.bf16.mxu1 %v10915_v59 }
0x2eef   : > { %9228 = vmatmul.mubr.msk.f32.vlgmr.msra.gmra.mrb[58].mxu1 %vm2835_vm5, %v6861_v58 }
0x2ef0   : > { %9230 = vmatprep.mubr.msk.f32.mxu1 %vm2835_vm5, %v6862_v63  ;;  %v7121_v63 = vld [vmem:[%s12838_s26] sm:$0xff]  ;;  %s12851_s26 = sld [smem:[#allocation80_spill]] }
0x2ef3   : > { %9231 = vmatmul.mubr.msk.f32.gmra.mrb[60].mxu1 %vm2835_vm5, %v6863_v2  ;;  %v7123_v2 = vld [vmem:[%s12839_s2 + $0x10] sm:$0xff] }
0x2fc2   : > { %v9229_v54 = vpop.f32.mrb[58].mxu1 }
0x2fc3   : > { %v6952_v4 = vadd.f32 %v9229_v54, %v6865_v3  ;;  %v6946_v6 = vpop.f32.mrb[59].mxu1  ;;  %v7122_v3 = vld [vmem:[%s12839_s2 + $0x8] sm:$0xff] }
0x2fc4   : > { %v6947_v8 = vadd.f32 %v6946_v6, %v6864_v0  ;;  %v7124_v0 = vld [vmem:[%s12839_s2 + $0x18] sm:$0xff]  ;;  %v7114_v54 = vld [vmem:[%s12840_s13 + $0x8] sm:$0xff]  ;;  %s12852_s2 = smov %s12851_s26 }
0x2fc5   : > { %v8465_v10 = vmul.f32 -1.442695, %v6952_v4  ;;  %8472 = vmatprep.mubr.msk.f32.mxu1 %vm5572_vm7, %v7114_v54 }
0x2fc6   : > { %v8464_v38 = vmul.f32 -1.442695, %v6947_v8  ;;  %v9232_v39 = vpop.f32.mrb[60].mxu1 }
0x2fc7   : > { %10670 = vpow2.f32 %v8465_v10  ;;  %v6962_v15 = vadd.f32 %v9232_v39, %v6867_v9  ;;  %v6956_v16 = vpop.f32.mrb[61].mxu1 }
0x2fc8   : > { %10672 = vpow2.f32 %v8464_v38  ;;  %v6957_v17 = vadd.f32 %v6956_v16, %v6866_v11 }
0x2fc9   : > { %v8467_v18 = vmul.f32 -1.442695, %v6962_v15 }
0x2fca   : > { %v8466_v19 = vmul.f32 -1.442695, %v6957_v17 }
0x2fcb   : > { %10674 = vpow2.f32 %v8467_v18 }
0x2fcc   : > { %10676 = vpow2.f32 %v8466_v19 }
0x2fd1   : > { %v10671_v42 = vpop.eup %10670 }
0x2fd2   : > { %v10673_v20 = vpop.eup %10672  ;;  %v6978_v21 = vadd.f32 1.0, %v10671_v42 }
0x2fd3   : > { %v6977_v22 = vadd.f32 1.0, %v10673_v20 }
0x2fd4   : > { %10678 = vrcp.f32 %v6978_v21 }
0x2fd5   : > { %v10675_v23 = vpop.eup %10674  ;;  %10680 = vrcp.f32 %v6977_v22 }
0x2fd6   : > { %v10677_v24 = vpop.eup %10676  ;;  %v6980_v27 = vadd.f32 1.0, %v10675_v23 }
0x2fd7   : > { %v6979_v25 = vadd.f32 1.0, %v10677_v24 }
0x2fd9   : > { %10682 = vrcp.f32 %v6979_v25 }
0x2fda   : > { %10684 = vrcp.f32 %v6980_v27 }
0x2fde   : > { %v10679_v5 = vpop.eup %10678 }
0x2fdf   : > { %v10681_v29 = vpop.eup %10680  ;;  %6996 = vperm.xlu0 %10045, %v10679_v5  }
0x2fe0   : > { %6991 = vperm.xlu1 %10044, %v10681_v29  }
0x2fe3   : > { %v10683_v30 = vpop.eup %10682 }
0x2fe4   : > { %7001 = vperm.xlu1 %10044, %v10683_v30   ;;  %v10685_v26 = vpop.eup %10684 }
0x2fe8   : > { %7006 = vperm.xlu1 %10044, %v10685_v26  }
0x305e   : > { %v6997_v7 = vpop.permute.xlu0 %6996 }
0x305f   : > { %v7010_v31 = vmul.f32 %v6997_v7, %v12149_v33  ;;  %v6992_v32 = vpop.permute.xlu1 %6991 }
0x3060   : > { %v7009_v34 = vmul.f32 %v6992_v32, %v12151_v28 }
0x3062   : > { %v10476_v36 = vpack.i.bf16 %v7010_v31, %v7009_v34 }
0x3063   : > { %v7002_v37 = vpop.permute.xlu1 %7001 }
0x3064   : > { %10477 = vrot.lane.b32.xlu0 %v10476_v36, %s12765_s8  ;;  %v7011_v12 = vmul.f32 %v7002_v37, %v12157_v35 }
0x3067   : > { %v7007_v41 = vpop.permute.xlu1 %7006 }
0x3068   : > { %v7012_v43 = vmul.f32 %v7007_v41, %v12159_v14 }
0x306a   : > { %v10481_v44 = vpack.i.bf16 %v7012_v43, %v7011_v12 }
0x306c   : > { %10482 = vrot.lane.b32.xlu1 %v10481_v44, %s12765_s8 }
0x30d6   : > { %v10478_v45 = vpop.permute.xlu0 %10477 }
0x30d7   : > { %v10480_v46 = vunpack.i.h.bf16 %v10478_v45  ;;  %v10479_v47 = vunpack.i.l.bf16 %v10478_v45 }
0x30d9   : > { %v7030_v40 = vsel %vm2356_vm4, 0.0, %v10480_v46  ;;  %v7029_v13 = vsel %vm2356_vm4, 0.0, %v10479_v47 }
0x30da   : > { %v7034_v49 = vsel %vm6320_vm11, %v7030_v40, 0.0  ;;  %v7033_v50 = vsel %vm6320_vm11, %v7029_v13, 0.0  ;;  %v9764_v1 = vpack.c.bf16 %v7030_v40, %v7029_v13 }
0x30db   : > { %v10486_v53 = vpack.i.bf16 %v7034_v49, %v7033_v50 }
0x30dc   : > { %9766 = vmatpush1.bf16.msk.msra.mxu1 %vm12194_vm13, %v9764_v1 }
0x30dd   : > { %10487 = vrot.lane.b32.xlu0 %v10486_v53, %s12736_s9  ;;  %9767 = vmatprep.subr.bf16.mxu1 %v10915_v59 }
0x30de   : > { %v10483_v51 = vpop.permute.xlu1 %10482 }
0x30df   : > { %v10485_v52 = vunpack.i.h.bf16 %v10483_v51  ;;  %v10484_v55 = vunpack.i.l.bf16 %v10483_v51 }
0x30e1   : > { %v7032_v57 = vsel %vm2356_vm4, 0.0, %v10485_v52  ;;  %v7031_v60 = vsel %vm2356_vm4, 0.0, %v10484_v55  ;;  %10497 = vrot.lane.b32.xlu0 %v10486_v53, %s12735_s5 }
0x30e2   : > { %v7036_v61 = vsel %vm6320_vm11, %v7032_v57, 0.0  ;;  %v7035_v62 = vsel %vm6320_vm11, %v7031_v60, 0.0  ;;  %v9768_v56 = vpack.c.bf16 %v7032_v57, %v7031_v60  ;;  %v7113_v60 = vld [vmem:[%s12840_s13] sm:$0xff] }
0x30e3   : > { %v10491_v58 = vpack.i.bf16 %v7036_v61, %v7035_v62  ;;  %v7116_v61 = vld [vmem:[%s12840_s13 + $0x18] sm:$0xff]  ;;  %v7115_v62 = vld [vmem:[%s12840_s13 + $0x10] sm:$0xff] }
0x30e4   : > { %9770 = vmatpush1.bf16.msk.msra.mxu1 %vm12194_vm13, %v9768_v56  ;;  %v7118_v56 = vld [vmem:[%s12840_s13 + $0x28] sm:$0xff] }
0x30e5   : > { %10507 = vrot.lane.b32.xlu0 %v10486_v53, %s12743_s11  ;;  %10492 = vrot.lane.b32.xlu1 %v10491_v58, %s12736_s9 }
0x30e6   : > { %9771 = vmatprep.subr.bf16.mxu1 %v10915_v59 }
0x30e9   : > { %10517 = vrot.lane.b32.xlu0 %v10486_v53, %s12768_s17  ;;  %10502 = vrot.lane.b32.xlu1 %v10491_v58, %s12735_s5 }
0x30ed   : > { %10527 = vrot.lane.b32.xlu0 %v10486_v53, %s12752_s14  ;;  %10512 = vrot.lane.b32.xlu1 %v10491_v58, %s12743_s11 }
0x30f1   : > { %10537 = vrot.lane.b32.xlu0 %v10486_v53, %s12744_s3  ;;  %10522 = vrot.lane.b32.xlu1 %v10491_v58, %s12768_s17  ;;  %s12842_s17 = sld [smem:[#allocation74_spill]] }
0x30f5   : > { %7127 = vperm.xlu0 %10045, %v7121_v63   ;;  %10532 = vrot.lane.b32.xlu1 %v10491_v58, %s12752_s14  ;;  %v7120_v63 = vld [vmem:[%s12840_s13 + $0x38] sm:$0xff]  ;;  %s12841_s14 = sld [smem:[#allocation75_spill]] }
0x30f9   : > { %7137 = vperm.xlu0 %10045, %v7123_v2   ;;  %10542 = vrot.lane.b32.xlu1 %v10491_v58, %s12744_s3  ;;  %v7117_v58 = vld [vmem:[%s12840_s13 + $0x20] sm:$0xff]  ;;  %v7119_v2 = vld [vmem:[%s12840_s13 + $0x30] sm:$0xff] }
0x30fb   : > { %v7305_v48 = vld [vmem:[%s12841_s14 + $0x18] sm:$0xff] }
0x30fd   : > { %7132 = vperm.xlu1 %10044, %v7122_v3  }
0x3101   : > { %7142 = vperm.xlu1 %10044, %v7124_v0  }
0x314f   : > { %v10488_v4 = vpop.permute.xlu0 %10487 }
0x3150   : > { %v10490_v6 = vunpack.i.h.bf16 %v10488_v4  ;;  %v10489_v8 = vunpack.i.l.bf16 %v10488_v4 }
0x3152   : > { %v9772_v9 = vpack.c.bf16 %v10490_v6, %v10489_v8 }
0x3153   : > { %v10498_v10 = vpop.permute.xlu0 %10497 }
0x3154   : > { %9773 = vmatpush1.bf16.msra.mxu1 %v9772_v9  ;;  %v10500_v15 = vunpack.i.h.bf16 %v10498_v10  ;;  %v10499_v16 = vunpack.i.l.bf16 %v10498_v10 }
0x3155   : > { %9774 = vmatprep.subr.bf16.mxu1 %v10915_v59 }
0x3156   : > { %v9778_v19 = vpack.c.bf16 %v10500_v15, %v10499_v16 }
0x3157   : > { %v10493_v11 = vpop.permute.xlu1 %10492  ;;  %v10508_v21 = vpop.permute.xlu0 %10507 }
0x3158   : > { %v10495_v38 = vunpack.i.h.bf16 %v10493_v11  ;;  %v10494_v39 = vunpack.i.l.bf16 %v10493_v11  ;;  %v10510_v22 = vunpack.i.h.bf16 %v10508_v21  ;;  %v10509_v23 = vunpack.i.l.bf16 %v10508_v21 }
0x315a   : > { %v9775_v17 = vpack.c.bf16 %v10495_v38, %v10494_v39  ;;  %v9784_v27 = vpack.c.bf16 %v10510_v22, %v10509_v23 }
0x315b   : > { %v10503_v18 = vpop.permute.xlu1 %10502  ;;  %v10518_v30 = vpop.permute.xlu0 %10517 }
0x315c   : > { %9776 = vmatpush1.bf16.msra.mxu1 %v9775_v17  ;;  %v10505_v42 = vunpack.i.h.bf16 %v10503_v18  ;;  %v10504_v20 = vunpack.i.l.bf16 %v10503_v18  ;;  %v10520_v26 = vunpack.i.h.bf16 %v10518_v30  ;;  %v10519_v7 = vunpack.i.l.bf16 %v10518_v30 }
0x315d   : > { %9777 = vmatprep.subr.bf16.mxu1 %v10915_v59 }
0x315e   : > { %v9781_v24 = vpack.c.bf16 %v10505_v42, %v10504_v20  ;;  %v9790_v34 = vpack.c.bf16 %v10520_v26, %v10519_v7 }
0x315f   : > { %v10513_v25 = vpop.permute.xlu1 %10512  ;;  %v10528_v41 = vpop.permute.xlu0 %10527 }
0x3160   : > { %9779 = vmatpush1.bf16.msra.mxu1 %v9778_v19  ;;  %v10515_v5 = vunpack.i.h.bf16 %v10513_v25  ;;  %v10514_v29 = vunpack.i.l.bf16 %v10513_v25  ;;  %v10530_v12 = vunpack.i.h.bf16 %v10528_v41  ;;  %v10529_v43 = vunpack.i.l.bf16 %v10528_v41 }
0x3161   : > { %9780 = vmatprep.subr.bf16.mxu1 %v10915_v59 }
0x3162   : > { %v9787_v31 = vpack.c.bf16 %v10515_v5, %v10514_v29  ;;  %v9796_v46 = vpack.c.bf16 %v10530_v12, %v10529_v43 }
0x3163   : > { %v10523_v32 = vpop.permute.xlu1 %10522  ;;  %v10538_v13 = vpop.permute.xlu0 %10537 }
0x3164   : > { %9782 = vmatpush1.bf16.msra.mxu1 %v9781_v24  ;;  %v10525_v36 = vunpack.i.h.bf16 %v10523_v32  ;;  %v10524_v37 = vunpack.i.l.bf16 %v10523_v32  ;;  %v10540_v49 = vunpack.i.h.bf16 %v10538_v13  ;;  %v10539_v50 = vunpack.i.l.bf16 %v10538_v13 }
0x3165   : > { %9783 = vmatprep.subr.bf16.mxu1 %v10915_v59  ;;  %v10581_v13 = vpack.i.bf16 %v12159_v14, %v12157_v35 }
0x3166   : > { %v9793_v44 = vpack.c.bf16 %v10525_v36, %v10524_v37  ;;  %v9802_v51 = vpack.c.bf16 %v10540_v49, %v10539_v50  ;;  %v7304_v49 = vld [vmem:[%s12841_s14 + $0x10] sm:$0xff]  ;;  %v7303_v50 = vld [vmem:[%s12841_s14 + $0x8] sm:$0xff] }
0x3167   : > { %v10533_v45 = vpop.permute.xlu1 %10532 }
0x3168   : > { %9785 = vmatpush1.bf16.msra.mxu1 %v9784_v27  ;;  %v10535_v47 = vunpack.i.h.bf16 %v10533_v45  ;;  %v10534_v40 = vunpack.i.l.bf16 %v10533_v45 }
0x3169   : > { %9786 = vmatprep.subr.bf16.mxu1 %v10915_v59 }
0x316a   : > { %v9799_v1 = vpack.c.bf16 %v10535_v47, %v10534_v40  ;;  %v7302_v47 = vld [vmem:[%s12841_s14] sm:$0xff] }
0x316b   : > { %v10543_v53 = vpop.permute.xlu1 %10542  ;;  %v7298_v40 = vld [vmem:[%s12842_s17] sm:$0xff] }
0x316c   : > { %9788 = vmatpush1.bf16.msra.mxu1 %v9787_v31  ;;  %v10545_v52 = vunpack.i.h.bf16 %v10543_v53  ;;  %v10544_v55 = vunpack.i.l.bf16 %v10543_v53  ;;  %9257 = vmatprep.mubr.msk.f32.mxu0 %vm5572_vm7, %v7298_v40 }
0x316d   : > { %9789 = vmatprep.subr.bf16.mxu1 %v10915_v59 }
0x316e   : > { %v9805_v57 = vpack.c.bf16 %v10545_v52, %v10544_v55 }
0x3170   : > { %9791 = vmatpush1.bf16.msra.mxu1 %v9790_v34 }
0x3171   : > { %9792 = vmatprep.subr.bf16.mxu1 %v10915_v59 }
0x3174   : > { %9794 = vmatpush1.bf16.msra.mxu1 %v9793_v44  ;;  %v7128_v0 = vpop.permute.xlu0 %7127 }
0x3175   : > { %9795 = vmatprep.subr.bf16.mxu1 %v10915_v59 }
0x3178   : > { %9797 = vmatpush1.bf16.msra.mxu1 %v9796_v46  ;;  %v7138_v16 = vpop.permute.xlu0 %7137  ;;  %v10576_v46 = vpack.i.bf16 %v12149_v33, %v12151_v28 }
0x3179   : > { %9798 = vmatprep.subr.bf16.mxu1 %v10915_v59 }
0x317c   : > { %9800 = vmatpush1.bf16.msra.mxu1 %v9799_v1  ;;  %v7133_v4 = vpop.permute.xlu1 %7132 }
0x317d   : > { %9801 = vmatprep.subr.bf16.mxu1 %v10915_v59 }
0x3180   : > { %9803 = vmatpush1.bf16.msra.mxu1 %v9802_v51  ;;  %v7143_v18 = vpop.permute.xlu1 %7142 }
0x3181   : > { %9804 = vmatprep.subr.bf16.mxu1 %v10915_v59 }
0x3184   : > { %9806 = vmatpush1.bf16.msra.mxu1 %v9805_v57 }
0x3187   : > { %7222 = vmatmul.mubr.f32.vlgmr.msra.gmra.mrb[62].mxu1 %v7113_v60 }
0x3188   : > { %8473 = vmatprep.mubr.msk.f32.mxu1 %vm5572_vm7, %v7116_v61 }
0x318b   : > { %7227 = vmatmul.mubr.f32.gmra.mrb[64].mxu1 %v7115_v62 }
0x318c   : > { %8474 = vmatprep.mubr.msk.f32.mxu1 %vm5572_vm7, %v7118_v56 }
0x318f   : > { %7232 = vmatmul.mubr.f32.gmra.mrb[66].mxu1 %v7117_v58 }
0x3190   : > { %8475 = vmatprep.mubr.msk.f32.mxu1 %vm5572_vm7, %v7120_v63 }
0x3193   : > { %7237 = vmatmul.mubr.f32.gmra.mrb[68].mxu1 %v7119_v2 }
0x325a   : > { %v7223_v59 = vpop.f32.mrb[62].mxu1 }
0x325b   : > { %v7225_v3 = vpop.f32.mrb[63].mxu1  ;;  %v7224_v54 = vadd.f32 %v7223_v59, %v7128_v0 }
0x325d   : > { %v7242_v10 = vmax.f32 %v7224_v54, 0.0 }
0x325e   : > { %v7228_v6 = vpop.f32.mrb[64].mxu1 }
0x325f   : > { %v7229_v8 = vadd.f32 %v7228_v6, %v7133_v4  ;;  %v7230_v9 = vpop.f32.mrb[65].mxu1 }
0x3261   : > { %v7243_v11 = vmax.f32 %v7229_v8, 0.0 }
0x3262   : > { %v7233_v38 = vpop.f32.mrb[66].mxu1 }
0x3263   : > { %v10546_v39 = vpack.i.bf16 %v7243_v11, %v7242_v10  ;;  %v7235_v15 = vpop.f32.mrb[67].mxu1  ;;  %v7234_v17 = vadd.f32 %v7233_v38, %v7138_v16 }
0x3265   : > { %10547 = vrot.lane.b32.xlu0 %v10546_v39, %s12765_s8  ;;  %v7244_v21 = vmax.f32 %v7234_v17, 0.0 }
0x3266   : > { %v7238_v19 = vpop.f32.mrb[68].mxu1 }
0x3267   : > { %v7239_v42 = vadd.f32 %v7238_v19, %v7143_v18  ;;  %v7240_v20 = vpop.f32.mrb[69].mxu1 }
0x3269   : > { %v7245_v22 = vmax.f32 %v7239_v42, 0.0 }
0x326b   : > { %v10551_v23 = vpack.i.bf16 %v7245_v22, %v7244_v21 }
0x326d   : > { %10552 = vrot.lane.b32.xlu1 %v10551_v23, %s12765_s8  ;;  %s12846_s8 = sld [smem:[#allocation83_spill]] }
0x32d7   : > { %v10548_v24 = vpop.permute.xlu0 %10547 }
0x32d8   : > { %v10550_v25 = vunpack.i.h.bf16 %v10548_v24  ;;  %v10549_v27 = vunpack.i.l.bf16 %v10548_v24  ;;  %v7299_v24 = vld [vmem:[%s12842_s17 + $0x8] sm:$0xff] }
0x32da   : > { %v7263_v5 = vsel %vm2356_vm4, 0.0, %v10550_v25  ;;  %v7262_v29 = vsel %vm2356_vm4, 0.0, %v10549_v27  ;;  %v7300_v25 = vld [vmem:[%s12842_s17 + $0x10] sm:$0xff] }
0x32db   : > { %v7267_v30 = vsel %vm6320_vm11, %v7263_v5, 0.0  ;;  %v7266_v26 = vsel %vm6320_vm11, %v7262_v29, 0.0  ;;  %v9807_v7 = vpack.c.bf16 %v7263_v5, %v7262_v29  ;;  %v7301_v5 = vld [vmem:[%s12842_s17 + $0x18] sm:$0xff] }
0x32dc   : > { %v10556_v31 = vpack.i.bf16 %v7267_v30, %v7266_v26 }
0x32dd   : > { %9809 = vmatprep.subr.msk.bf16.mxu0 %vm12194_vm13, %v9807_v7 }
0x32de   : > { %9812 = vmatpush3.bf16.msk.msra.mxu0 %vm12194_vm13, %v9807_v7  ;;  %10557 = vrot.lane.b32.xlu0 %v10556_v31, %s12743_s11 }
0x32df   : > { %v10553_v32 = vpop.permute.xlu1 %10552 }
0x32e0   : > { %v10555_v34 = vunpack.i.h.bf16 %v10553_v32  ;;  %v10554_v36 = vunpack.i.l.bf16 %v10553_v32  ;;  %v7830_v32 = vld [vmem:[%s12846_s8] sm:$0xff] }
0x32e2   : > { %v7265_v37 = vsel %vm2356_vm4, 0.0, %v10555_v34  ;;  %v7264_v41 = vsel %vm2356_vm4, 0.0, %v10554_v36  ;;  %10567 = vrot.lane.b32.xlu0 %v10556_v31, %s12744_s3  ;;  %v7832_v36 = vld [vmem:[%s12846_s8 + $0x10] sm:$0xff] }
0x32e3   : > { %v7269_v12 = vsel %vm6320_vm11, %v7265_v37, 0.0  ;;  %v7268_v43 = vsel %vm6320_vm11, %v7264_v41, 0.0  ;;  %v9813_v44 = vpack.c.bf16 %v7265_v37, %v7264_v41  ;;  %v7831_v37 = vld [vmem:[%s12846_s8 + $0x8] sm:$0xff]  ;;  %v7833_v41 = vld [vmem:[%s12846_s8 + $0x18] sm:$0xff] }
0x32e4   : > { %v10561_v45 = vpack.i.bf16 %v7269_v12, %v7268_v43 }
0x32e5   : > { %9815 = vmatprep.subr.msk.bf16.mxu0 %vm12194_vm13, %v9813_v44 }
0x32e6   : > { %10562 = vrot.lane.b32.xlu1 %v10561_v45, %s12743_s11  ;;  %9818 = vmatpush3.bf16.msk.msra.mxu0 %vm12194_vm13, %v9813_v44  ;;  %s12844_s11 = sld [smem:[#allocation81_spill]] }
0x32e7   : > { %10577 = vrot.lane.b32.xlu0 %v10576_v46, %s12745_s10 }
0x32ea   : > { %10572 = vrot.lane.b32.xlu1 %v10561_v45, %s12744_s3  ;;  %s12843_s3 = sld [smem:[#allocation79_spill]] }
0x32eb   : > { %7308 = vperm.xlu0 %10045, %v7302_v47  }
0x32ec   : > { %v7731_v27 = vld [vmem:[%s12844_s11] sm:$0xff]  ;;  %v7732_v26 = vld [vmem:[%s12844_s11 + $0x8] sm:$0xff] }
0x32ee   : > { %10582 = vrot.lane.b32.xlu1 %v10581_v13, %s12745_s10  ;;  %s12845_s10 = sld [smem:[#allocation77_spill]] }
0x32ef   : > { %7318 = vperm.xlu0 %10045, %v7304_v49  }
0x32f0   : > { %v7634_v23 = vld [vmem:[%s12843_s3] sm:$0xff]  ;;  %v7635_v29 = vld [vmem:[%s12843_s3 + $0x8] sm:$0xff]  ;;  %s12853_s3 = sld [smem:[#allocation82_spill]] }
0x32f2   : > { %7313 = vperm.xlu1 %10044, %v7303_v50  }
0x32f4   : > { %v7431_v30 = vld [vmem:[%s12845_s10] sm:$0xff]  ;;  %v7433_v7 = vld [vmem:[%s12845_s10 + $0x10] sm:$0xff]  ;;  %v7432_v31 = vld [vmem:[%s12845_s10 + $0x8] sm:$0xff] }
0x32f5   : > { %v7434_v34 = vld [vmem:[%s12845_s10 + $0x18] sm:$0xff] }
0x32f6   : > { %7323 = vperm.xlu1 %10044, %v7305_v48  }
0x3350   : > { %v10558_v1 = vpop.permute.xlu0 %10557 }
0x3351   : > { %v10560_v53 = vunpack.i.h.bf16 %v10558_v1  ;;  %v10559_v51 = vunpack.i.l.bf16 %v10558_v1 }
0x3353   : > { %v9819_v52 = vpack.c.bf16 %v10560_v53, %v10559_v51 }
0x3354   : > { %v10568_v55 = vpop.permute.xlu0 %10567 }
0x3355   : > { %9820 = vmatprep.subr.bf16.mxu0 %v9819_v52  ;;  %v10570_v57 = vunpack.i.h.bf16 %v10568_v55  ;;  %v10569_v60 = vunpack.i.l.bf16 %v10568_v55 }
0x3356   : > { %9822 = vmatpush3.bf16.msra.mxu0 %v9819_v52 }
0x3357   : > { %v9827_v3 = vpack.c.bf16 %v10570_v57, %v10569_v60 }
0x3358   : > { %v10563_v61 = vpop.permute.xlu1 %10562 }
0x3359   : > { %v10565_v62 = vunpack.i.h.bf16 %v10563_v61  ;;  %v10564_v56 = vunpack.i.l.bf16 %v10563_v61  ;;  %v10578_v58 = vpop.permute.xlu0 %10577 }
0x335a   : > { %v10580_v63 = vunpack.i.h.bf16 %v10578_v58  ;;  %v10579_v2 = vunpack.i.l.bf16 %v10578_v58 }
0x335b   : > { %v9823_v59 = vpack.c.bf16 %v10565_v62, %v10564_v56 }
0x335c   : > { %v7597_v0 = vsel %vm2345_vm1, 0.0, %v10580_v63  ;;  %v7596_v54 = vsel %vm2345_vm1, 0.0, %v10579_v2  ;;  %v10573_v4 = vpop.permute.xlu1 %10572 }
0x335d   : > { %v7601_v6 = vsel %vm6195_vm9, %v7597_v0, 0.0  ;;  %v7600_v8 = vsel %vm6195_vm9, %v7596_v54, 0.0  ;;  %v12287_v9 = vpack.c.bf16 %v7597_v0, %v7596_v54  ;;  %v10575_v10 = vunpack.i.h.bf16 %v10573_v4  ;;  %9824 = vmatprep.subr.bf16.mxu0 %v9823_v59 }
0x335e   : > { %v10586_v11 = vpack.i.bf16 %v7601_v6, %v7600_v8  ;;  %v10574_v38 = vunpack.i.l.bf16 %v10573_v4  ;;  %9826 = vmatpush3.bf16.msra.mxu0 %v9823_v59 }
0x335f   : > { %9828 = vmatprep.subr.bf16.mxu0 %v9827_v3 }
0x3360   : > { %10587 = vrot.lane.b32.xlu0 %v10586_v11, %s12736_s9  ;;  %v10583_v39 = vpop.permute.xlu1 %10582  ;;  %v9831_v15 = vpack.c.bf16 %v10575_v10, %v10574_v38 }
0x3361   : > { %v10585_v16 = vunpack.i.h.bf16 %v10583_v39  ;;  %v10584_v17 = vunpack.i.l.bf16 %v10583_v39 }
0x3362   : > { %9830 = vmatpush3.bf16.msra.mxu0 %v9827_v3 }
0x3363   : > { %v7599_v18 = vsel %vm2345_vm1, 0.0, %v10585_v16  ;;  %v7598_v19 = vsel %vm2345_vm1, 0.0, %v10584_v17  ;;  %9832 = vmatprep.subr.bf16.mxu0 %v9831_v15  ;;  %vm12321_vm1 = vmpackc.low %vm6195_vm9, %vm6195_vm9 }
0x3364   : > { %v7603_v42 = vsel %vm6195_vm9, %v7599_v18, 0.0  ;;  %v7602_v20 = vsel %vm6195_vm9, %v7598_v19, 0.0  ;;  %v12294_v21 = vpack.c.bf16 %v7599_v18, %v7598_v19  ;;  %10597 = vrot.lane.b32.xlu0 %v10586_v11, %s12735_s5 }
0x3365   : > { %v10591_v22 = vpack.i.bf16 %v7603_v42, %v7602_v20  ;;  %v7729_v42 = vld [vmem:[%s12851_s26] sm:$0xff]  ;;  %s8029_s26 = sshll.u32 %s11813_s23, 4  ;;  %s10940_s23 = smov [#allocation4]   ;;  %s12368_s26 = int_to_ptr.vmem [resolvable:$true] %s8029_s26 }
0x3366   : > { %9834 = vmatpush3.bf16.msra.mxu0 %v9831_v15 }
0x3367   : > { %10592 = vrot.lane.b32.xlu1 %v10591_v22, %s12736_s9  ;;  %s12847_s9 = sld [smem:[#allocation76_spill]] }
0x3368   : > { %7638 = vperm.xlu0 %10045, %v7634_v23  }
0x3369   : > { %9258 = vmatmul.mubr.msk.f32.vlgmr.msra.gmra.mrb[44].mxu0 %vm5572_vm7, %v7299_v24 }
0x336a   : > { %9260 = vmatprep.mubr.msk.f32.mxu0 %vm5572_vm7, %v7300_v25  ;;  %v7309_v44 = vpop.permute.xlu0 %7308 }
0x336b   : > { %10602 = vrot.lane.b32.xlu1 %v10591_v22, %s12735_s5  ;;  %s12848_s5 = sld [smem:[#allocation78_spill]] }
0x336c   : > { %7735 = vperm.xlu0 %10045, %v7731_v27  }
0x336d   : > { %9261 = vmatmul.mubr.msk.f32.gmra.mrb[46].mxu0 %vm5572_vm7, %v7301_v5  ;;  %v7427_v12 = vld [vmem:[%s12847_s9] sm:$0xff]  ;;  %v7428_v58 = vld [vmem:[%s12847_s9 + $0x8] sm:$0xff]  ;;  %v7429_v63 = vld [vmem:[%s12847_s9 + $0x10] sm:$0xff] }
0x336e   : > { %9271 = vmatprep.mubr.msk.f32.mxu0 %vm2823_vm6, %v7427_v12  ;;  %v7319_v1 = vpop.permute.xlu0 %7318  ;;  %v7430_v0 = vld [vmem:[%s12847_s9 + $0x18] sm:$0xff]  ;;  %s8013_s9 = sshll.u32 %s11647_s21, 4  ;;  %s12378_s9 = int_to_ptr.vmem [resolvable:$true] %s8013_s9 }
0x336f   : > { %7643 = vperm.xlu1 %10044, %v7635_v29   ;;  %s10702_s11 = scalar_lea.vmem %s12378_s9, 256 }
0x3370   : > { %7437 = vperm.xlu0 %10045, %v7431_v30   ;;  %p10703_p11 = scmp.ne.s32.totalorder %s12378_s9, %s10702_s11 }
0x3371   : > { %v7314_v43 = vpop.permute.xlu1 %7313  ;;  %v7632_v54 = vld [vmem:[%s12848_s5] sm:$0xff]  ;;  %v7633_v19 = vld [vmem:[%s12848_s5 + $0x8] sm:$0xff]  ;;  %s8516_s5 = sshll.u32 %s11371_s0, 8 }
0x3372   : > { %s12375_s8 = scalar_lea.hbm %s12716_s4, %s8516_s5  ;;  %p10704_p12 = pnand %p10703_p11, %p11390_p5 }
0x3373   : > { %7740 = vperm.xlu1 %10044, %v7732_v26  }
0x3374   : > { %7447 = vperm.xlu0 %10045, %v7433_v7   ;;  %p10705_p13 = pneg %p10704_p12 }
0x3375   : > { %v7324_v49 = vpop.permute.xlu1 %7323 }
0x3377   : > { %7442 = vperm.xlu1 %10044, %v7432_v31  }
0x3378   : > { %7836 = vperm.xlu0 %10045, %v7830_v32   ;;  %v7730_v32 = vld [vmem:[%s12852_s2 + $0x8] sm:$0xff]  ;;  %s7973_s2 = sand.u32 1, %s11371_s0  }
0x3379   : > { %s12380_s10 = scalar_lea.sflag [#allocation5], %s7973_s2 }
0x337b   : > { %7452 = vperm.xlu1 %10044, %v7434_v34   ;;  %v7826_v34 = vld [vmem:[%s12853_s3] sm:$0xff] }
0x337c   : > { %7846 = vperm.xlu0 %10045, %v7832_v36  }
0x337f   : > { %7841 = vperm.xlu1 %10044, %v7831_v37  }
0x3383   : > { %7851 = vperm.xlu1 %10044, %v7833_v41  }
0x33d2   : > { %v10588_v56 = vpop.permute.xlu0 %10587 }
0x33d3   : > { %v10590_v2 = vunpack.i.h.bf16 %v10588_v56  ;;  %v10589_v59 = vunpack.i.l.bf16 %v10588_v56 }
0x33d5   : > { %v9855_v4 = vpack.c.bf16 %v10590_v2, %v10589_v59 }
0x33d6   : > { %v10598_v10 = vpop.permute.xlu0 %10597 }
0x33d7   : > { %v10599_v11 = vunpack.i.l.bf16 %v10598_v10 }
0x33d9   : > { %v10593_v3 = vpop.permute.xlu1 %10592 }
0x33da   : > { %v10595_v6 = vunpack.i.h.bf16 %v10593_v3  ;;  %v10594_v8 = vunpack.i.l.bf16 %v10593_v3 }
0x33dc   : > { %v9859_v38 = vpack.c.bf16 %v10595_v6, %v10594_v8 }
0x33dd   : > { %v10603_v39 = vpop.permute.xlu1 %10602 }
0x33de   : > { %v10605_v16 = vunpack.i.h.bf16 %v10603_v39  ;;  %v10604_v17 = vunpack.i.l.bf16 %v10603_v39 }
0x33e0   : > { %v9867_v18 = vpack.c.bf16 %v10605_v16, %v10604_v17 }
0x33e7   : > { %v7639_v27 = vpop.permute.xlu0 %7638 }
0x33eb   : > { %v7736_v41 = vpop.permute.xlu0 %7735 }
0x33ee   : > { %v7644_v24 = vpop.permute.xlu1 %7643 }
0x33f2   : > { %v7741_v36 = vpop.permute.xlu1 %7740 }
0x343c   : > { %v9259_v45 = vpop.f32.mrb[44].mxu0 }
0x343d   : > { %v7410_v46 = vadd.f32 %v9259_v45, %v7314_v43  ;;  %v7404_v47 = vpop.f32.mrb[45].mxu0 }
0x343e   : > { %v7405_v40 = vadd.f32 %v7404_v47, %v7309_v44 }
0x343f   : > { %v7424_v13 = vmax.f32 %v7410_v46, 0.0 }
0x3440   : > { %v7423_v50 = vmax.f32 %v7405_v40, 0.0  ;;  %v9262_v48 = vpop.f32.mrb[46].mxu0  ;;  %v7827_v40 = vld [vmem:[%s12853_s3 + $0x8] sm:$0xff] }
0x3441   : > { %v7420_v53 = vadd.f32 %v9262_v48, %v7324_v49  ;;  %v7414_v51 = vpop.f32.mrb[47].mxu0  ;;  %v7829_v49 = vld [vmem:[%s12853_s3 + $0x18] sm:$0xff] }
0x3442   : > { %v9835_v52 = vpack.c.bf16 %v7424_v13, %v7423_v50  ;;  %v7415_v55 = vadd.f32 %v7414_v51, %v7319_v1  ;;  %v7828_v13 = vld [vmem:[%s12853_s3 + $0x10] sm:$0xff]  ;;  %s10706_s3 = sshll.u32 %s10940_s23, 4  ;;  %s10707_s3 = int_to_ptr.vmem [resolvable:$false] %s10706_s3 }
0x3443   : > { %v7426_v57 = vmax.f32 %v7420_v53, 0.0  ;;  %s10708_s13 = scalar_lea.vmem %s10707_s3, 512  ;;  %p10709_p0 = scmp.lt.s32.totalorder %s12378_s9, %s10707_s3 }
0x3444   : > { %v7425_v60 = vmax.f32 %v7415_v55, 0.0  ;;  %9836 = vmatprep.subr.bf16.mxu0 %v9835_v52  ;;  %p10710_p1 = scmp.lt.s32.totalorder %s10708_s13, %s10702_s11 }
0x3445   : > { %9838 = vmatpush3.bf16.msra.mxu0 %v9835_v52 }
0x3446   : > { %v9839_v61 = vpack.c.bf16 %v7426_v57, %v7425_v60  ;;  %p10711_p2 = por %p10710_p1, %p10709_p0 }
0x3448   : > { %9840 = vmatprep.subr.bf16.mxu0 %v9839_v61  ;;  %p10712_p3 = pnand %p10711_p2, %p10705_p13 }
0x3449   : > { %9842 = vmatpush3.bf16.msra.mxu0 %v9839_v61 }
0x344a   : > { %9845 = vmatprep.subr.msk.bf16.mxu0 %vm12321_vm1, %v12287_v9 }
0x344c   : > { %9272 = vmatmul.mubr.msk.f32.vlgmr.msra.gmra.mrb[48].mxu0 %vm2823_vm6, %v7428_v58 }
0x344d   : > { %9848 = vmatpush3.bf16.msk.msra.mxu0 %vm12321_vm1, %v12287_v9  ;;  %9274 = vmatprep.mubr.msk.f32.mxu0 %vm2823_vm6, %v7429_v63  ;;  %v10600_v9 = vunpack.i.h.bf16 %v10598_v10 }
0x344e   : > { %9851 = vmatprep.subr.msk.bf16.mxu0 %vm12321_vm1, %v12294_v21 }
0x344f   : > { %v9863_v15 = vpack.c.bf16 %v10600_v9, %v10599_v11 }
0x3450   : > { %9275 = vmatmul.mubr.msk.f32.gmra.mrb[50].mxu0 %vm2823_vm6, %v7430_v0 }
0x3451   : > { %9854 = vmatpush3.bf16.msk.msra.mxu0 %vm12321_vm1, %v12294_v21  ;;  %9301 = vmatprep.mubr.msk.f32.mxu0 %vm5572_vm7, %v7632_v54 }
0x3452   : > { %9856 = vmatprep.subr.bf16.mxu0 %v9855_v4 }
0x3455   : > { %9858 = vmatpush3.bf16.msra.mxu0 %v9855_v4 }
0x3456   : > { %9860 = vmatprep.subr.bf16.mxu0 %v9859_v38 }
0x3459   : > { %9862 = vmatpush3.bf16.msra.mxu0 %v9859_v38 }
0x345a   : > { %9864 = vmatprep.subr.bf16.mxu0 %v9863_v15 }
0x345d   : > { %9866 = vmatpush3.bf16.msra.mxu0 %v9863_v15 }
0x345e   : > { %9868 = vmatprep.subr.bf16.mxu0 %v9867_v18 }
0x3461   : > { %9870 = vmatpush3.bf16.msra.mxu0 %v9867_v18 }
0x3464   : > { %9302 = vmatmul.mubr.msk.f32.vlgmr.msra.gmra.mrb[52].mxu0 %vm5572_vm7, %v7633_v19 }
0x3465   : > { %9308 = vmatprep.mubr.msk.f32.mxu0 %vm2835_vm5, %v7729_v42 }
0x351f   : > { %v12349_v20 = vpop.f32.mrb[48].mxu0 }
0x3520   : > { %v12351_v21 = vpop.f32.mrb[49].mxu0 }
0x3523   : > { %v12353_v22 = vpop.f32.mrb[50].mxu0 }
0x3524   : > { %v12355_v23 = vpop.f32.mrb[51].mxu0 }
0x3537   : > { %v9303_v25 = vpop.f32.mrb[52].mxu0 }
0x3538   : > { %v7724_v5 = vadd.f32 %v9303_v25, %v7644_v24  ;;  %v7718_v29 = vpop.f32.mrb[53].mxu0 }
0x3539   : > { %v7719_v30 = vadd.f32 %v7718_v29, %v7639_v27 }
0x353a   : > { %v7728_v26 = vmax.f32 %v7724_v5, 0.0 }
0x353b   : > { %v7727_v7 = vmax.f32 %v7719_v30, 0.0 }
0x353d   : > { %v9871_v31 = vpack.c.bf16 %v7728_v26, %v7727_v7 }
0x353f   : > { %9872 = vmatprep.subr.bf16.mxu0 %v9871_v31 }
0x3540   : > { %9874 = vmatpush3.bf16.msra.mxu0 %v9871_v31 }
0x3543   : > { %9309 = vmatmul.mubr.msk.f32.vlgmr.msra.gmra.mrb[54].mxu0 %vm2835_vm5, %v7730_v32 }
0x3544   : > { %9315 = vmatprep.mubr.msk.f32.mxu0 %vm2835_vm5, %v7826_v34 }
0x3616   : > { %v9310_v37 = vpop.f32.mrb[54].mxu0 }
0x3617   : > { %v7821_v12 = vadd.f32 %v9310_v37, %v7741_v36  ;;  %v7815_v43 = vpop.f32.mrb[55].mxu0 }
0x3618   : > { %v7816_v44 = vadd.f32 %v7815_v43, %v7736_v41 }
0x3619   : > { %v7825_v45 = vmax.f32 %v7821_v12, 0.0 }
0x361a   : > { %v7824_v46 = vmax.f32 %v7816_v44, 0.0 }
0x361c   : > { %v9875_v47 = vpack.c.bf16 %v7825_v45, %v7824_v46 }
0x361e   : > { %9876 = vmatprep.subr.bf16.mxu0 %v9875_v47 }
0x361f   : > { %9878 = vmatpush3.bf16.msra.mxu0 %v9875_v47 }
0x3622   : > { %9316 = vmatmul.mubr.msk.f32.vlgmr.msra.gmra.mrb[56].mxu0 %vm2835_vm5, %v7827_v40 }
0x3623   : > { %9318 = vmatprep.mubr.msk.f32.mxu0 %vm2835_vm5, %v7828_v13 }
0x3626   : > { %9319 = vmatmul.mubr.msk.f32.gmra.mrb[58].mxu0 %vm2835_vm5, %v7829_v49 }
0x3627   : > { %10715 = shalt.err (!%p10712_p3)
}
0x3628   : > { %s10716_s21 = scalar_lea.hbm %s12375_s8, 256  ;;  %s10720_s2 = scalar_lea.hbm %s12716_s4, 512 }
0x3629   : > { %p10717_p4 = scmp.ne.s32.totalorder %s12375_s8, %s10716_s21  ;;  %p10721_p9 = scmp.lt.u32.totalorder %s12375_s8, %s12716_s4 }
0x362a   : > { %p10722_p10 = scmp.lt.u32.totalorder %s10720_s2, %s10716_s21  ;;  %p10724_p12 = scmp.lt.u32.totalorder %s10716_s21, %s12375_s8 }
0x362b   : > { %p10718_p7 = pnand %p10717_p4, %p11390_p5 }
0x362c   : > { %p10723_p11 = por %p10722_p10, %p10721_p9 }
0x362d   : > { %p10719_p8 = pneg %p10718_p7 }
0x362e   : > { %p10725_p0 = por %p10724_p12, %p10723_p11 }
0x3630   : > { %p10726_p13 = pnand %p10725_p0, %p10719_p8 }
0x3632   : > { %10729 = shalt.err (!%p10726_p13)
}
0x3633   : > { %s10941_s13 = smov 128   ;;  %s10942_s3 = smov 8  }
0x3634   : > { %9880 = dma.vmem_to_hbm [thread:$0]  (%p11390_p5), %s12378_s9, 256, %s12375_s8, %s12380_s10, %s10941_s13, %s10941_s13, %s10942_s3  }
0x3635   : > { %s12406_s11 = scalar_lea.hbm %s11343_s12, %s8516_s5  ;;  %s8507_s23 = sshll.u32 %s11371_s0, 7 }
0x3636   : > { %s8000_s21 = sshll.u32 %s11435_s1, 4  ;;  %s12411_s2 = scalar_lea.hbm %s11333_s6, %s8507_s23  ;;  %s8001_s21 = int_to_ptr.vmem [resolvable:$true] %s8000_s21 }
0x3637   : > { %s7969_s4 = scalar_lea.sflag [#allocation3], %s11431_s7  ;;  %s10730_s14 = scalar_lea.vmem %s8001_s21, 128 }
0x3638   : > { %p10731_p1 = scmp.ne.s32.totalorder %s8001_s21, %s10730_s14  ;;  %s10943_s16 = smov [#allocation2]  }
0x3639   : > { %s10734_s17 = sshll.u32 %s10943_s16, 4  ;;  %s10735_s17 = int_to_ptr.vmem [resolvable:$false] %s10734_s17 }
0x363a   : > { %p10732_p2 = pnand %p10731_p1, %p11390_p5  ;;  %s10736_s19 = scalar_lea.vmem %s10735_s17, 256 }
0x363b   : > { %p10737_p4 = scmp.lt.s32.totalorder %s8001_s21, %s10735_s17  ;;  %p10738_p7 = scmp.lt.s32.totalorder %s10736_s19, %s10730_s14 }
0x363c   : > { %p10733_p3 = pneg %p10732_p2 }
0x363d   : > { %p10739_p8 = por %p10738_p7, %p10737_p4 }
0x363f   : > { %p10740_p9 = pnand %p10739_p8, %p10733_p3 }
0x3641   : > { %10743 = shalt.err (!%p10740_p9)
}
0x3642   : > { %s10744_s0 = scalar_lea.hbm %s12411_s2, 128  ;;  %s10748_s7 = scalar_lea.hbm %s11333_s6, 256 }
0x3643   : > { %p10745_p10 = scmp.ne.s32.totalorder %s12411_s2, %s10744_s0  ;;  %p10749_p0 = scmp.lt.u32.totalorder %s12411_s2, %s11333_s6 }
0x3644   : > { %p10750_p13 = scmp.lt.u32.totalorder %s10748_s7, %s10744_s0  ;;  %p10752_p2 = scmp.lt.u32.totalorder %s10744_s0, %s12411_s2 }
0x3645   : > { %p10746_p11 = pnand %p10745_p10, %p11390_p5 }
0x3646   : > { %p10751_p1 = por %p10750_p13, %p10749_p0 }
0x3647   : > { %p10747_p12 = pneg %p10746_p11 }
0x3648   : > { %p10753_p4 = por %p10752_p2, %p10751_p1 }
0x364a   : > { %p10754_p3 = pnand %p10753_p4, %p10747_p12 }
0x364c   : > { %10757 = shalt.err (!%p10754_p3)
}
0x364d   : > { %9879 = dma.vmem_to_hbm [thread:$0]  (%p11390_p5), %s8001_s21, 128, %s12411_s2, %s7969_s4  }
0x364e   : > { %s10758_s1 = scalar_lea.vmem %s12368_s26, 256  ;;  %s10944_s19 = smov [#allocation6]  }
0x364f   : > { %p10759_p7 = scmp.ne.s32.totalorder %s12368_s26, %s10758_s1  ;;  %s10762_s16 = sshll.u32 %s10944_s19, 4  ;;  %s10763_s16 = int_to_ptr.vmem [resolvable:$false] %s10762_s16 }
0x3650   : > { %s10764_s14 = scalar_lea.vmem %s10763_s16, 512  ;;  %p10765_p10 = scmp.lt.s32.totalorder %s12368_s26, %s10763_s16 }
0x3651   : > { %p10760_p8 = pnand %p10759_p7, %p11390_p5  ;;  %p10766_p11 = scmp.lt.s32.totalorder %s10764_s14, %s10758_s1 }
0x3653   : > { %p10761_p9 = pneg %p10760_p8  ;;  %p10767_p12 = por %p10766_p11, %p10765_p10 }
0x3655   : > { %p10768_p0 = pnand %p10767_p12, %p10761_p9 }
0x3657   : > { %10771 = shalt.err (!%p10768_p0)
}
0x3658   : > { %s10772_s4 = scalar_lea.hbm %s12406_s11, 256  ;;  %s10776_s17 = scalar_lea.hbm %s11343_s12, 512 }
0x3659   : > { %p10773_p13 = scmp.ne.s32.totalorder %s12406_s11, %s10772_s4  ;;  %p10777_p4 = scmp.lt.u32.totalorder %s12406_s11, %s11343_s12 }
0x365a   : > { %p10778_p3 = scmp.lt.u32.totalorder %s10776_s17, %s10772_s4  ;;  %p10780_p8 = scmp.lt.u32.totalorder %s10772_s4, %s12406_s11 }
0x365b   : > { %p10774_p1 = pnand %p10773_p13, %p11390_p5 }
0x365c   : > { %p10779_p7 = por %p10778_p3, %p10777_p4 }
0x365d   : > { %p10775_p2 = pneg %p10774_p1 }
0x365e   : > { %p10781_p10 = por %p10780_p8, %p10779_p7 }
0x3660   : > { %p10782_p9 = pnand %p10781_p10, %p10775_p2 }
0x3662   : > { %10785 = shalt.err (!%p10782_p9)
}
0x3663   : > { %9881 = dma.vmem_to_hbm [thread:$0]  (%p11390_p5), %s12368_s26, 256, %s12406_s11, %s12380_s10, %s10941_s13, %s10941_s13, %s10942_s3   ;;  %v7443_v50 = vpop.permute.xlu1 %7442  ;;  %v7438_v48 = vpop.permute.xlu0 %7437 }
0x3664   : > { %v7539_v1 = vadd.f32 %v12349_v20, %v7443_v50  ;;  %v7534_v53 = vadd.f32 %v12351_v21, %v7438_v48  ;;  %s12854_s15 = sld [smem:[#allocation84_spill]]  ;;  %s12855_s10 = sshll.u32 %s11405_s18, 5 }
0x3666   : > { %v8489_v55 = vmul.f32 -1.442695, %v7539_v1  ;;  %v8488_v60 = vmul.f32 -1.442695, %v7534_v53 }
0x3667   : > { %v7453_v51 = vpop.permute.xlu1 %7452  ;;  %v7448_v52 = vpop.permute.xlu0 %7447 }
0x3668   : > { %v7549_v57 = vadd.f32 %v12353_v22, %v7453_v51  ;;  %v7544_v61 = vadd.f32 %v12355_v23, %v7448_v52  ;;  %10686 = vpow2.f32 %v8489_v55 }
0x3669   : > { %10688 = vpow2.f32 %v8488_v60 }
0x366a   : > { %v8491_v62 = vmul.f32 -1.442695, %v7549_v57  ;;  %v8490_v56 = vmul.f32 -1.442695, %v7544_v61  ;;  %s2334_s8 = scalar_lea.vmem %s12854_s15, %s12855_s10 }
0x366b   : > { %v7842_v6 = vpop.permute.xlu1 %7841  ;;  %v7837_v8 = vpop.permute.xlu0 %7836 }
0x366c   : > { %10690 = vpow2.f32 %v8491_v62 }
0x366d   : > { %10692 = vpow2.f32 %v8490_v56 }
0x366f   : > { %v7852_v19 = vpop.permute.xlu1 %7851  ;;  %v7847_v23 = vpop.permute.xlu0 %7846 }
0x3672   : > { %v10687_v58 = vpop.eup %10686 }
0x3673   : > { %v10689_v63 = vpop.eup %10688  ;;  %v7565_v2 = vadd.f32 1.0, %v10687_v58 }
0x3674   : > { %v7564_v3 = vadd.f32 1.0, %v10689_v63 }
0x3675   : > { %10694 = vrcp.f32 %v7565_v2 }
0x3676   : > { %v10691_v59 = vpop.eup %10690  ;;  %10696 = vrcp.f32 %v7564_v3 }
0x3677   : > { %v10693_v0 = vpop.eup %10692  ;;  %v7567_v54 = vadd.f32 1.0, %v10691_v59 }
0x3678   : > { %v7566_v4 = vadd.f32 1.0, %v10693_v0 }
0x3679   : > { %10698 = vrcp.f32 %v7567_v54 }
0x367a   : > { %10700 = vrcp.f32 %v7566_v4 }
0x367f   : > { %v10695_v10 = vpop.eup %10694 }
0x3680   : > { %v10697_v11 = vpop.eup %10696  ;;  %v7577_v16 = vmul.f32 %v10695_v10, %v12149_v33 }
0x3681   : > { %v7576_v42 = vmul.f32 %v10697_v11, %v12151_v28 }
0x3683   : > { %v10699_v18 = vpop.eup %10698 }
0x3684   : > { %v10701_v22 = vpop.eup %10700  ;;  %v7579_v33 = vmul.f32 %v10699_v18, %v12159_v14 }
0x3685   : > { %v7578_v26 = vmul.f32 %v10701_v22, %v12157_v35 }
0x36f5   : > { %v9317_v9 = vpop.f32.mrb[56].mxu0 }
0x36f6   : > { %v7938_v38 = vadd.f32 %v9317_v9, %v7842_v6  ;;  %v7932_v39 = vpop.f32.mrb[57].mxu0 }
0x36f7   : > { %v7933_v15 = vadd.f32 %v7932_v39, %v7837_v8 }
0x36f8   : > { %v7952_v17 = vmax.f32 %v7938_v38, 0.0 }
0x36f9   : > { %v7951_v20 = vmax.f32 %v7933_v15, 0.0  ;;  %v9320_v21 = vpop.f32.mrb[58].mxu0 }
0x36fa   : > { %v7956_v24 = vadd.f32 %v7952_v17, %v7577_v16  ;;  %v7948_v25 = vadd.f32 %v9320_v21, %v7852_v19  ;;  %v7942_v27 = vpop.f32.mrb[59].mxu0 }
0x36fb   : > { %v7955_v5 = vadd.f32 %v7951_v20, %v7576_v42  ;;  %v7943_v29 = vadd.f32 %v7942_v27, %v7847_v23 }
0x36fc   : > { %7960 = vst.msk [vmem:[%s2334_s8 + $0x8] sm:$0xff] %vm6755_vm10, %v7956_v24  ;;  %v7954_v30 = vmax.f32 %v7948_v25, 0.0 }
0x36fd   : > { %7959 = vst.msk [vmem:[%s2334_s8] sm:$0xff] %vm6755_vm10, %v7955_v5  ;;  %v7953_v7 = vmax.f32 %v7943_v29, 0.0 }
0x36fe   : > { %v7958_v28 = vadd.f32 %v7954_v30, %v7579_v33 }
0x36ff   : > { %v7957_v31 = vadd.f32 %v7953_v7, %v7578_v26 }
0x3700   : > { %7962 = vst.msk [vmem:[%s2334_s8 + $0x18] sm:$0xff] %vm6755_vm10, %v7958_v28 }
0x3701   : > { %7961 = vst.msk [vmem:[%s2334_s8 + $0x10] sm:$0xff] %vm6755_vm10, %v7957_v31 }
0x3702 PF: > { %p9895_p5 = scmp.ge.s32.totalorder %s10824_s28, 2  ;;  %s8055_s9 = sand.u32 1, %s10812_s22  }
0x3703   : > { %s8056_s5 = scalar_lea.sflag [#allocation3], %s8055_s9 }
0x3704   : > { %p9886_p11 = pnand %p9895_p5, %p11394_p6 }
0x3706   : > { %10803 = dma.done.wait (!%p9886_p11), %s8056_s5, 128  }
0x3707   : > { %10805 = vsyncadd (!%p9886_p11), %s8056_s5, 4294967168  ;;  %s12857_s26 = sadd.s32 4294967294, %s10824_s28  }
0x3708   : > { %s8064_s13 = sand.u32 1, %s12857_s26  }
0x3709   : > { %s8065_s3 = scalar_lea.sflag [#allocation5], %s8064_s13 }
0x370a   : > { %10807 = dma.done.wait (!%p9886_p11), %s8065_s3, 512  }
0x370b   : > { %10809 = vsyncadd (!%p9886_p11), %s8065_s3, 4294966784  ;;  %s12858_s28 = sld [smem:[#allocation88_spill]]  ;;  %s12859_s22 = sld [smem:[#allocation86_spill]] }
0x370c   : > { %s12860_s23 = sld [smem:[#allocation87_spill]]  ;;  %s12861_s26 = sld [smem:[#allocation89_spill]] }
0x3711   : > { %p173_p12 = scmp.ge.s32.totalorder %s12858_s28, 4  }
0x3713   :  { %175 = sbr.rel (!%p173_p12) target bundleno = 193 (0xc1), region = 490 }
0x371a   :  { %8087 = vsyncpa [#allocation3], 1 }
0x371b   :  { %8089 = vsyncpa [#allocation3 + $0x1], 1 }
0x371c   :  { %8090 = vsyncpa [#allocation5], 1 }
0x371d   :  { %8092 = vsyncpa [#allocation5 + $0x1], 1 }

</bundles_post_ra>
